<compile_context>
chip_gen: v6e
topology: v6e:2x2x1
jax: 0.10.0
libtpu: 0.0.40
codegen_flags: <defaults>
</compile_context>

<pallas_src>
import jax
import jax.numpy as jnp
from jax.experimental import pallas as pl
from jax.experimental.pallas import tpu as pltpu


def _fused_mlp_kernel(x_ref, w1_ref, b1_ref, w2_ref, b2_ref, w3_ref, b3_ref,
                      w4_ref, b4_ref, w5_ref, b5_ref, o_ref):
    """All 5 layers fused; everything is VMEM-resident, single grid step."""
    def layer(h_f32, w_ref, b_ref, relu):
        h = jnp.dot(h_f32.astype(jnp.bfloat16), w_ref[...],
                    preferred_element_type=jnp.float32) + b_ref[...]
        return jnp.maximum(h, 0.0) if relu else h

    h = layer(x_ref[...], w1_ref, b1_ref, relu=True)
    h = layer(h, w2_ref, b2_ref, relu=True)
    h = layer(h, w3_ref, b3_ref, relu=True)
    h = layer(h, w4_ref, b4_ref, relu=True)
    out = layer(h, w5_ref, b5_ref, relu=False)
    o_ref[...] = out.astype(o_ref.dtype)


def fc_cifar_forward(xb, prepared_params):
    """Pallas forward mirroring FC_CIFAR.forward (single fused kernel).

    `prepared_params` come from prepare_params(): weights (in, out) bf16,
    biases (1, out) f32.
    """
    B = xb.shape[0]
    x = xb.reshape(B, -1).astype(jnp.float32)           # (B, 3072), like xb.view(B,-1)
    (w1, b1), (w2, b2), (w3, b3), (w4, b4), (w5, b5) = prepared_params
    N_out = w5.shape[1]

    # Pad batch (sublane dim) up to a multiple of 8 for f32 tiling.
    Mp = ((B + 7) // 8) * 8
    if Mp != B:
        x = jnp.pad(x, ((0, Mp - B), (0, 0)))

    def full_spec(shape):
        # Whole-array resident block (legal: equals full array dims).
        nd = len(shape)
        return pl.BlockSpec(shape, lambda i, _nd=nd: (0,) * _nd)

    in_specs = [
        full_spec((Mp, x.shape[1])),                     # x
        full_spec(w1.shape), full_spec(b1.shape),        # W1 (3072,1024) bf16, b1
        full_spec(w2.shape), full_spec(b2.shape),
        full_spec(w3.shape), full_spec(b3.shape),
        full_spec(w4.shape), full_spec(b4.shape),
        full_spec(w5.shape), full_spec(b5.shape),
    ]

    out = pl.pallas_call(
        _fused_mlp_kernel,
        out_shape=jax.ShapeDtypeStruct((Mp, N_out), jnp.float32),
        grid=(1,),
        in_specs=in_specs,
        out_specs=pl.BlockSpec((Mp, N_out), lambda i: (0, 0)),
        compiler_params=pltpu.CompilerParams(
            dimension_semantics=("arbitrary",),
            vmem_limit_bytes=32 * 1024 * 1024,
        ),
    )(x, w1, b1, w2, b2, w3, b3, w4, b4, w5, b5)
    return out[:B]


def init_params(key):
    """Deterministic synthetic params matching nn.Linear (out, in) f32 shapes."""
    dims = [(3072, 1024), (1024, 512), (512, 64), (64, 64), (64, 10)]
    params = []
    for fan_in, fan_out in dims:
        kw, kb, key = jax.random.split(key, 3)
        bound = 1.0 / jnp.sqrt(fan_in)
        w = jax.random.uniform(kw, (fan_out, fan_in), jnp.float32, -bound, bound)
        b = jax.random.uniform(kb, (fan_out,), jnp.float32, -bound, bound)
        params.append((w, b))
    return params


def prepare_params(params):
    """One-time (per model, not per forward): transpose to (in, out) + bf16 weights."""
    return [(jnp.asarray(w.T, dtype=jnp.bfloat16),
             b.reshape(1, -1).astype(jnp.float32)) for w, b in params]


def fc_cifar_reference(xb, prepared_params):
    """Pure-JAX reference using the same bf16 weights / f32 accumulation."""
    out = xb.reshape(xb.shape[0], -1).astype(jnp.float32)
    n_layers = len(prepared_params)
    for i, (w, b) in enumerate(prepared_params):
        out = jnp.dot(out.astype(jnp.bfloat16), w,
                      preferred_element_type=jnp.float32) + b
        if i < n_layers - 1:
            out = jnp.maximum(out, 0.0)
    return out


if __name__ == "__main__":
    key = jax.random.PRNGKey(0)
    kx, kp = jax.random.split(key)

    # CIFAR-shaped NCHW input at small batch (forward flattens to 3*32*32=3072).
    x = jax.random.normal(kx, (2, 3, 32, 32), jnp.float32)
    params = init_params(kp)
    prepared = prepare_params(params)    # one-time weight cast/transpose

    forward = jax.jit(fc_cifar_forward)
    out = forward(x, prepared)
    out = jax.block_until_ready(out)

    ref = fc_cifar_reference(x, prepared)
    assert out.shape == (2, 10), out.shape
    assert jnp.allclose(out, ref, atol=1e-2, rtol=1e-2), "mismatch vs reference"

    print("KERNEL_OK")
</pallas_src>

<mosaic_0001>
module attributes {stable_mosaic.version = 11 : i64} {
  func.func @_fused_mlp_kernel(%arg0: i32, %arg1: memref<8x3072xf32, #tpu.memory_space<vmem>>, %arg2: memref<3072x1024xbf16, #tpu.memory_space<vmem>>, %arg3: memref<1x1024xf32, #tpu.memory_space<vmem>>, %arg4: memref<1024x512xbf16, #tpu.memory_space<vmem>>, %arg5: memref<1x512xf32, #tpu.memory_space<vmem>>, %arg6: memref<512x64xbf16, #tpu.memory_space<vmem>>, %arg7: memref<1x64xf32, #tpu.memory_space<vmem>>, %arg8: memref<64x64xbf16, #tpu.memory_space<vmem>>, %arg9: memref<1x64xf32, #tpu.memory_space<vmem>>, %arg10: memref<64x10xbf16, #tpu.memory_space<vmem>>, %arg11: memref<1x10xf32, #tpu.memory_space<vmem>>, %arg12: memref<8x10xf32, #tpu.memory_space<vmem>>) attributes {dimension_semantics = [#tpu.dimension_semantics<arbitrary>], iteration_bounds = array<i64: 1>, scalar_prefetch = 0 : i64, scratch_operands = 0 : i64, tpu.core_type = #tpu.core_type<tc>, window_params = [{pipeline_mode = #tpu.pipeline_mode<synchronous>, transform_indices = @transform_0, window_bounds = array<i64: 8, 3072>}, {pipeline_mode = #tpu.pipeline_mode<synchronous>, transform_indices = @transform_1, window_bounds = array<i64: 3072, 1024>}, {pipeline_mode = #tpu.pipeline_mode<synchronous>, transform_indices = @transform_2, window_bounds = array<i64: 1, 1024>}, {pipeline_mode = #tpu.pipeline_mode<synchronous>, transform_indices = @transform_3, window_bounds = array<i64: 1024, 512>}, {pipeline_mode = #tpu.pipeline_mode<synchronous>, transform_indices = @transform_4, window_bounds = array<i64: 1, 512>}, {pipeline_mode = #tpu.pipeline_mode<synchronous>, transform_indices = @transform_5, window_bounds = array<i64: 512, 64>}, {pipeline_mode = #tpu.pipeline_mode<synchronous>, transform_indices = @transform_6, window_bounds = array<i64: 1, 64>}, {pipeline_mode = #tpu.pipeline_mode<synchronous>, transform_indices = @transform_7, window_bounds = array<i64: 64, 64>}, {pipeline_mode = #tpu.pipeline_mode<synchronous>, transform_indices = @transform_8, window_bounds = array<i64: 1, 64>}, {pipeline_mode = #tpu.pipeline_mode<synchronous>, transform_indices = @transform_9, window_bounds = array<i64: 64, 10>}, {pipeline_mode = #tpu.pipeline_mode<synchronous>, transform_indices = @transform_10, window_bounds = array<i64: 1, 10>}, {pipeline_mode = #tpu.pipeline_mode<synchronous>, transform_indices = @transform_11, window_bounds = array<i64: 8, 10>}]} {
    %c0 = arith.constant 0 : index
    %c0_0 = arith.constant 0 : index
    %0 = vector.load %arg1[%c0, %c0_0] : memref<8x3072xf32, #tpu.memory_space<vmem>>, vector<8x3072xf32>
    %1 = arith.truncf %0 : vector<8x3072xf32> to vector<8x3072xbf16>
    %c0_1 = arith.constant 0 : index
    %c0_2 = arith.constant 0 : index
    %2 = vector.load %arg2[%c0_1, %c0_2] : memref<3072x1024xbf16, #tpu.memory_space<vmem>>, vector<3072x1024xbf16>
    %cst = arith.constant dense<0.000000e+00> : vector<8x1024xf32>
    %3 = tpu.matmul %1, %2, %cst {dimension_numbers = #tpu.dot_dimension_numbers<[1], [0], [0], [1], [0, 0, 1, 1], [], []>} : vector<8x3072xbf16>, vector<3072x1024xbf16>, vector<8x1024xf32> -> vector<8x1024xf32>
    %c0_3 = arith.constant 0 : index
    %c0_4 = arith.constant 0 : index
    %4 = vector.load %arg3[%c0_3, %c0_4] : memref<1x1024xf32, #tpu.memory_space<vmem>>, vector<1x1024xf32>
    %5 = vector.broadcast %4 : vector<1x1024xf32> to vector<8x1024xf32>
    %6 = arith.addf %3, %5 : vector<8x1024xf32>
    %cst_5 = arith.constant 0.000000e+00 : f32
    %7 = vector.broadcast %cst_5 : f32 to vector<8x1024xf32>
    %8 = arith.maximumf %6, %7 : vector<8x1024xf32>
    %9 = arith.truncf %8 : vector<8x1024xf32> to vector<8x1024xbf16>
    %c0_6 = arith.constant 0 : index
    %c0_7 = arith.constant 0 : index
    %10 = vector.load %arg4[%c0_6, %c0_7] : memref<1024x512xbf16, #tpu.memory_space<vmem>>, vector<1024x512xbf16>
    %cst_8 = arith.constant dense<0.000000e+00> : vector<8x512xf32>
    %11 = tpu.matmul %9, %10, %cst_8 {dimension_numbers = #tpu.dot_dimension_numbers<[1], [0], [0], [1], [0, 0, 1, 1], [], []>} : vector<8x1024xbf16>, vector<1024x512xbf16>, vector<8x512xf32> -> vector<8x512xf32>
    %c0_9 = arith.constant 0 : index
    %c0_10 = arith.constant 0 : index
    %12 = vector.load %arg5[%c0_9, %c0_10] : memref<1x512xf32, #tpu.memory_space<vmem>>, vector<1x512xf32>
    %13 = vector.broadcast %12 : vector<1x512xf32> to vector<8x512xf32>
    %14 = arith.addf %11, %13 : vector<8x512xf32>
    %cst_11 = arith.constant 0.000000e+00 : f32
    %15 = vector.broadcast %cst_11 : f32 to vector<8x512xf32>
    %16 = arith.maximumf %14, %15 : vector<8x512xf32>
    %17 = arith.truncf %16 : vector<8x512xf32> to vector<8x512xbf16>
    %c0_12 = arith.constant 0 : index
    %c0_13 = arith.constant 0 : index
    %18 = vector.load %arg6[%c0_12, %c0_13] : memref<512x64xbf16, #tpu.memory_space<vmem>>, vector<512x64xbf16>
    %cst_14 = arith.constant dense<0.000000e+00> : vector<8x64xf32>
    %19 = tpu.matmul %17, %18, %cst_14 {dimension_numbers = #tpu.dot_dimension_numbers<[1], [0], [0], [1], [0, 0, 1, 1], [], []>} : vector<8x512xbf16>, vector<512x64xbf16>, vector<8x64xf32> -> vector<8x64xf32>
    %c0_15 = arith.constant 0 : index
    %c0_16 = arith.constant 0 : index
    %20 = vector.load %arg7[%c0_15, %c0_16] : memref<1x64xf32, #tpu.memory_space<vmem>>, vector<1x64xf32>
    %21 = vector.broadcast %20 : vector<1x64xf32> to vector<8x64xf32>
    %22 = arith.addf %19, %21 : vector<8x64xf32>
    %cst_17 = arith.constant 0.000000e+00 : f32
    %23 = vector.broadcast %cst_17 : f32 to vector<8x64xf32>
    %24 = arith.maximumf %22, %23 : vector<8x64xf32>
    %25 = arith.truncf %24 : vector<8x64xf32> to vector<8x64xbf16>
    %c0_18 = arith.constant 0 : index
    %c0_19 = arith.constant 0 : index
    %26 = vector.load %arg8[%c0_18, %c0_19] : memref<64x64xbf16, #tpu.memory_space<vmem>>, vector<64x64xbf16>
    %cst_20 = arith.constant dense<0.000000e+00> : vector<8x64xf32>
    %27 = tpu.matmul %25, %26, %cst_20 {dimension_numbers = #tpu.dot_dimension_numbers<[1], [0], [0], [1], [0, 0, 1, 1], [], []>} : vector<8x64xbf16>, vector<64x64xbf16>, vector<8x64xf32> -> vector<8x64xf32>
    %c0_21 = arith.constant 0 : index
    %c0_22 = arith.constant 0 : index
    %28 = vector.load %arg9[%c0_21, %c0_22] : memref<1x64xf32, #tpu.memory_space<vmem>>, vector<1x64xf32>
    %29 = vector.broadcast %28 : vector<1x64xf32> to vector<8x64xf32>
    %30 = arith.addf %27, %29 : vector<8x64xf32>
    %cst_23 = arith.constant 0.000000e+00 : f32
    %31 = vector.broadcast %cst_23 : f32 to vector<8x64xf32>
    %32 = arith.maximumf %30, %31 : vector<8x64xf32>
    %33 = arith.truncf %32 : vector<8x64xf32> to vector<8x64xbf16>
    %c0_24 = arith.constant 0 : index
    %c0_25 = arith.constant 0 : index
    %34 = vector.load %arg10[%c0_24, %c0_25] : memref<64x10xbf16, #tpu.memory_space<vmem>>, vector<64x10xbf16>
    %cst_26 = arith.constant dense<0.000000e+00> : vector<8x10xf32>
    %35 = tpu.matmul %33, %34, %cst_26 {dimension_numbers = #tpu.dot_dimension_numbers<[1], [0], [0], [1], [0, 0, 1, 1], [], []>} : vector<8x64xbf16>, vector<64x10xbf16>, vector<8x10xf32> -> vector<8x10xf32>
    %c0_27 = arith.constant 0 : index
    %c0_28 = arith.constant 0 : index
    %36 = vector.load %arg11[%c0_27, %c0_28] : memref<1x10xf32, #tpu.memory_space<vmem>>, vector<1x10xf32>
    %37 = vector.broadcast %36 : vector<1x10xf32> to vector<8x10xf32>
    %38 = arith.addf %35, %37 : vector<8x10xf32>
    %c0_29 = arith.constant 0 : index
    %c0_30 = arith.constant 0 : index
    %39 = vector.load %arg12[%c0_29, %c0_30] : memref<8x10xf32, #tpu.memory_space<vmem>>, vector<8x10xf32>
    tpu.vector_store %arg12[%c0_29, %c0_30], %38 {strides = array<i32>} : memref<8x10xf32, #tpu.memory_space<vmem>>, vector<8x10xf32>,
    return
  }
  func.func @transform_0(%arg0: i32) -> (i32, i32) {
    %c0_i32 = arith.constant 0 : i32
    %c0_i32_0 = arith.constant 0 : i32
    %c0_i32_1 = arith.constant 0 : i32
    return %c0_i32, %c0_i32_0 : i32, i32
  }
  func.func @transform_1(%arg0: i32) -> (i32, i32) {
    %c0_i32 = arith.constant 0 : i32
    %c0_i32_0 = arith.constant 0 : i32
    %c0_i32_1 = arith.constant 0 : i32
    return %c0_i32, %c0_i32_0 : i32, i32
  }
  func.func @transform_2(%arg0: i32) -> (i32, i32) {
    %c0_i32 = arith.constant 0 : i32
    %c0_i32_0 = arith.constant 0 : i32
    %c0_i32_1 = arith.constant 0 : i32
    return %c0_i32, %c0_i32_0 : i32, i32
  }
  func.func @transform_3(%arg0: i32) -> (i32, i32) {
    %c0_i32 = arith.constant 0 : i32
    %c0_i32_0 = arith.constant 0 : i32
    %c0_i32_1 = arith.constant 0 : i32
    return %c0_i32, %c0_i32_0 : i32, i32
  }
  func.func @transform_4(%arg0: i32) -> (i32, i32) {
    %c0_i32 = arith.constant 0 : i32
    %c0_i32_0 = arith.constant 0 : i32
    %c0_i32_1 = arith.constant 0 : i32
    return %c0_i32, %c0_i32_0 : i32, i32
  }
  func.func @transform_5(%arg0: i32) -> (i32, i32) {
    %c0_i32 = arith.constant 0 : i32
    %c0_i32_0 = arith.constant 0 : i32
    %c0_i32_1 = arith.constant 0 : i32
    return %c0_i32, %c0_i32_0 : i32, i32
  }
  func.func @transform_6(%arg0: i32) -> (i32, i32) {
    %c0_i32 = arith.constant 0 : i32
    %c0_i32_0 = arith.constant 0 : i32
    %c0_i32_1 = arith.constant 0 : i32
    return %c0_i32, %c0_i32_0 : i32, i32
  }
  func.func @transform_7(%arg0: i32) -> (i32, i32) {
    %c0_i32 = arith.constant 0 : i32
    %c0_i32_0 = arith.constant 0 : i32
    %c0_i32_1 = arith.constant 0 : i32
    return %c0_i32, %c0_i32_0 : i32, i32
  }
  func.func @transform_8(%arg0: i32) -> (i32, i32) {
    %c0_i32 = arith.constant 0 : i32
    %c0_i32_0 = arith.constant 0 : i32
    %c0_i32_1 = arith.constant 0 : i32
    return %c0_i32, %c0_i32_0 : i32, i32
  }
  func.func @transform_9(%arg0: i32) -> (i32, i32) {
    %c0_i32 = arith.constant 0 : i32
    %c0_i32_0 = arith.constant 0 : i32
    %c0_i32_1 = arith.constant 0 : i32
    return %c0_i32, %c0_i32_0 : i32, i32
  }
  func.func @transform_10(%arg0: i32) -> (i32, i32) {
    %c0_i32 = arith.constant 0 : i32
    %c0_i32_0 = arith.constant 0 : i32
    %c0_i32_1 = arith.constant 0 : i32
    return %c0_i32, %c0_i32_0 : i32, i32
  }
  func.func @transform_11(%arg0: i32) -> (i32, i32) {
    %c0_i32 = arith.constant 0 : i32
    %c0_i32_0 = arith.constant 0 : i32
    %c0_i32_1 = arith.constant 0 : i32
    return %c0_i32, %c0_i32_0 : i32, i32
  }
}

</mosaic_0001>

<bundles_post_ra>
// kernel: fc_cifar_forward.1
= control target key start
LH: loop header
LB: loop body
LE: loop exit
PB: predicated region body
PF: predicated region fallthrough
CT: control target
= control target key end

     0   :  { %16 = vsyncpa [#allocation3], 0  ;;  %s17013_s0 = inlined_call_operand.vmem [shape: f32[8,3072], index: 0, kind: input, shape index: {}]   ;;  %s17014_s1 = inlined_call_operand.hbm [shape: bf16[3072,1024], index: 1, kind: input, shape index: {}]   ;;  %s17015_s2 = inlined_call_operand.hbm [shape: f32[1,1024], index: 2, kind: input, shape index: {}]   ;;  %s17016_s3 = inlined_call_operand.hbm [shape: bf16[1024,512], index: 3, kind: input, shape index: {}]   ;;  %s17017_s4 = inlined_call_operand.hbm [shape: f32[1,512], index: 4, kind: input, shape index: {}]   ;;  %s17018_s5 = inlined_call_operand.vmem [shape: bf16[512,64], index: 5, kind: input, shape index: {}]   ;;  %s17019_s6 = inlined_call_operand.hbm [shape: f32[1,64], index: 6, kind: input, shape index: {}]   ;;  %s17020_s7 = inlined_call_operand.hbm [shape: bf16[64,64], index: 7, kind: input, shape index: {}]   ;;  %s17021_s8 = inlined_call_operand.hbm [shape: f32[1,64], index: 8, kind: input, shape index: {}]   ;;  %s17022_s9 = inlined_call_operand.vmem [shape: bf16[64,10], index: 9, kind: input, shape index: {}]   ;;  %s17023_s10 = inlined_call_operand.hbm [shape: f32[1,10], index: 10, kind: input, shape index: {}]   ;;  %s17024_s11 = inlined_call_operand.vmem [shape: f32[8,10], index: 11, kind: output, shape index: {}]  }
   0x1   :  { %17 = vsyncpa [#allocation5], 0 }
   0x2   :  { %18 = vsyncpa [#allocation8], 0 }
   0x3   :  { %19 = vsyncpa [#allocation11], 0 }
   0x4   :  { %20 = vsyncpa [#allocation14], 0  ;;  %s16373_s17 = smov [#allocation4]   ;;  %s16374_s19 = smov [#allocation7]  }
   0x5   :  { %s41_s18 = sshll.u32 %s16373_s17, 4  ;;  %s63_s20 = sshll.u32 %s16374_s19, 4  ;;  %s42_s18 = int_to_ptr.vmem [resolvable:$true] %s41_s18  ;;  %s64_s20 = int_to_ptr.vmem [resolvable:$true] %s63_s20 }
   0x6   :  { %s16211_s21 = scalar_lea.vmem %s42_s18, 128  ;;  %p16216_p1 = scmp.lt.s32.totalorder %s42_s18, %s42_s18 }
   0x7   :  { %p16212_p0 = scmp.ne.s32.totalorder %s42_s18, %s16211_s21  ;;  %p16217_p2 = scmp.lt.s32.totalorder %s16211_s21, %s16211_s21 }
   0x9   :  { %p16218_p3 = por %p16217_p2, %p16216_p1 }
   0xb   :  { %p16219_p4 = pnand %p16218_p3, %p16212_p0 }
   0xd   :  { %16222 = shalt.err (!%p16219_p4)
}
   0xe   :  { %44 = dma.hbm_to_vmem [thread:$0]  %s17015_s2, 128, %s42_s18, [#allocation5]  }
   0xf   :  { %s16231_s24 = scalar_lea.vmem %s64_s20, 64  ;;  %p16236_p6 = scmp.lt.s32.totalorder %s64_s20, %s64_s20 }
  0x10   :  { %p16232_p5 = scmp.ne.s32.totalorder %s64_s20, %s16231_s24  ;;  %p16237_p7 = scmp.lt.s32.totalorder %s16231_s24, %s16231_s24 }
  0x12   :  { %p16238_p8 = por %p16237_p7, %p16236_p6 }
  0x14   :  { %p16239_p9 = pnand %p16238_p8, %p16232_p5 }
  0x16   :  { %16242 = shalt.err (!%p16239_p9)
}
  0x17   :  { %66 = dma.hbm_to_vmem [thread:$0]  %s17017_s4, 64, %s64_s20, [#allocation8]  }
  0x18   :  { %s16375_s27 = smov [#allocation10]  }
  0x19   :  { %s84_s28 = sshll.u32 %s16375_s27, 4  ;;  %s85_s28 = int_to_ptr.vmem [resolvable:$true] %s84_s28 }
  0x1a   :  { %s16251_s29 = scalar_lea.vmem %s85_s28, 512  ;;  %p16256_p11 = scmp.lt.s32.totalorder %s85_s28, %s85_s28 }
  0x1b   :  { %p16252_p10 = scmp.ne.s32.totalorder %s85_s28, %s16251_s29  ;;  %p16257_p12 = scmp.lt.s32.totalorder %s16251_s29, %s16251_s29 }
  0x1d   :  { %p16258_p13 = por %p16257_p12, %p16256_p11 }
  0x1f   :  { %p16259_p0 = pnand %p16258_p13, %p16252_p10 }
  0x21   :  { %16262 = shalt.err (!%p16259_p0)
}
  0x22   :  { %s16376_s2 = smov 64   ;;  %s16377_s30 = smov 4  }
  0x23   :  { %90 = dma.hbm_to_vmem [thread:$0]  %s17020_s7, 512, %s85_s28, [#allocation11], %s16376_s2, %s16376_s2, %s16377_s30  }
  0x24   :  { %s16378_s14 = smov [#allocation2]  }
  0x25   :  { %s28_s15 = sshll.u32 %s16378_s14, 4  ;;  %s29_s15 = int_to_ptr.vmem [resolvable:$true] %s28_s15 }
  0x26   :  { %s16271_s4 = scalar_lea.vmem %s29_s15, 196608  ;;  %p16276_p2 = scmp.lt.s32.totalorder %s29_s15, %s29_s15 }
  0x27   :  { %p16272_p1 = scmp.ne.s32.totalorder %s29_s15, %s16271_s4  ;;  %p16277_p3 = scmp.lt.s32.totalorder %s16271_s4, %s16271_s4 }
  0x29   :  { %p16278_p4 = por %p16277_p3, %p16276_p2 }
  0x2b   :  { %p16279_p5 = pnand %p16278_p4, %p16272_p1 }
  0x2d   :  { %16282 = shalt.err (!%p16279_p5)
}
  0x2e   :  { %s16379_s16 = smov 512   ;;  %s16380_s17 = smov 32  }
  0x2f   :  { %34 = dma.hbm_to_vmem [thread:$0]  %s17014_s1, 196608, %s29_s15, [#allocation3], %s16379_s16, %s16379_s16, %s16380_s17  }
  0x30   :  { %s16381_s20 = smov [#allocation6]  }
  0x31   :  { %s50_s21 = sshll.u32 %s16381_s20, 4  ;;  %s51_s21 = int_to_ptr.vmem [resolvable:$true] %s50_s21 }
  0x32   :  { %s16291_s7 = scalar_lea.vmem %s51_s21, 32768  ;;  %p16296_p7 = scmp.lt.s32.totalorder %s51_s21, %s51_s21 }
  0x33   :  { %p16292_p6 = scmp.ne.s32.totalorder %s51_s21, %s16291_s7  ;;  %p16297_p8 = scmp.lt.s32.totalorder %s16291_s7, %s16291_s7 }
  0x35   :  { %p16298_p9 = por %p16297_p8, %p16296_p7 }
  0x37   :  { %p16299_p10 = pnand %p16298_p9, %p16292_p6 }
  0x39   :  { %16302 = shalt.err (!%p16299_p10)
}
  0x3a   :  { %s16382_s22 = smov 256   ;;  %s16383_s23 = smov 16  }
  0x3b   :  { %56 = dma.hbm_to_vmem [thread:$0]  %s17016_s3, 32768, %s51_s21, [#allocation5], %s16382_s22, %s16382_s22, %s16383_s23  }
  0x3c   :  { %s16384_s26 = smov [#allocation9]   ;;  %s16385_s1 = smov [#allocation12]  }
  0x3d   :  { %s75_s27 = sshll.u32 %s16384_s26, 4  ;;  %s97_s28 = sshll.u32 %s16385_s1, 4  ;;  %s76_s27 = int_to_ptr.vmem [resolvable:$true] %s75_s27  ;;  %s98_s28 = int_to_ptr.vmem [resolvable:$true] %s97_s28 }
  0x3e   :  { %s16311_s29 = scalar_lea.vmem %s76_s27, 16  ;;  %s16315_s2 = scalar_lea.vmem %s76_s27, 32 }
  0x3f   :  { %p16312_p11 = scmp.ne.s32.totalorder %s76_s27, %s16311_s29  ;;  %p16316_p12 = scmp.lt.s32.totalorder %s76_s27, %s76_s27 }
  0x40   :  { %p16317_p13 = scmp.lt.s32.totalorder %s16315_s2, %s16311_s29 }
  0x42   :  { %p16318_p0 = por %p16317_p13, %p16316_p12 }
  0x44   :  { %p16319_p1 = pnand %p16318_p0, %p16312_p11 }
  0x46   :  { %16322 = shalt.err (!%p16319_p1)
}
  0x47   :  { %78 = dma.hbm_to_vmem [thread:$0]  %s17019_s6, 16, %s76_s27, [#allocation8]  }
  0x48   :  { %s16331_s13 = scalar_lea.vmem %s98_s28, 16  ;;  %s16335_s3 = scalar_lea.vmem %s98_s28, 32 }
  0x49   :  { %p16332_p2 = scmp.ne.s32.totalorder %s98_s28, %s16331_s13  ;;  %p16336_p3 = scmp.lt.s32.totalorder %s98_s28, %s98_s28 }
  0x4a   :  { %p16337_p4 = scmp.lt.s32.totalorder %s16335_s3, %s16331_s13 }
  0x4c   :  { %p16338_p5 = por %p16337_p4, %p16336_p3 }
  0x4e   :  { %p16339_p6 = pnand %p16338_p5, %p16332_p2 }
  0x50   :  { %16342 = shalt.err (!%p16339_p6)
}
  0x51   :  { %100 = dma.hbm_to_vmem [thread:$0]  %s17021_s8, 16, %s98_s28, [#allocation11]  }
  0x52   :  { %s16386_s4 = smov [#allocation13]  }
  0x53   :  { %s109_s16 = sshll.u32 %s16386_s4, 4  ;;  %s110_s16 = int_to_ptr.vmem [resolvable:$true] %s109_s16 }
  0x54   :  { %s16351_s17 = scalar_lea.vmem %s110_s16, 16  ;;  %s16355_s18 = scalar_lea.vmem %s110_s16, 32 }
  0x55   :  { %p16352_p7 = scmp.ne.s32.totalorder %s110_s16, %s16351_s17  ;;  %p16356_p8 = scmp.lt.s32.totalorder %s110_s16, %s110_s16 }
  0x56   :  { %p16357_p9 = scmp.lt.s32.totalorder %s16355_s18, %s16351_s17 }
  0x58   :  { %p16358_p10 = por %p16357_p9, %p16356_p8 }
  0x5a   :  { %p16359_p11 = pnand %p16358_p10, %p16352_p7 }
  0x5c   :  { %16362 = shalt.err (!%p16359_p11)
}
  0x5d   :  { %112 = dma.hbm_to_vmem [thread:$0]  %s17023_s10, 16, %s110_s16, [#allocation14]  }
  0x5e   :  { %16363 = dma.done.wait [#allocation3], 196608  }
  0x5f   :  { %16364 = vsyncadd [#allocation3], 4294770688 }
  0x60   :  { %16365 = dma.done.wait [#allocation5], 32896  }
  0x61   :  { %16366 = vsyncadd [#allocation5], 4294934400 }
  0x62   :  { %16367 = dma.done.wait [#allocation8], 80  }
  0x63   :  { %16368 = vsyncadd [#allocation8], 4294967216 }
  0x64   :  { %16369 = dma.done.wait [#allocation11], 528  }
  0x65   :  { %16370 = vsyncadd [#allocation11], 4294966768 }
  0x66   :  { %16371 = dma.done.wait [#allocation14], 16  }
  0x67   :  { %16372 = vsyncadd [#allocation14], 4294967280  ;;  %v242_v0 = vld [vmem:[#allocation2 + $0x1c0] sm:$0xff]  ;;  %v139_v53 = vld [vmem:[%s17013_s0 + $0x8] sm:$0xff]  ;;  %vm16388_vm0 = vmmov 0   ;;  %vm13706_vm1 = vcmask 523264  }
  0x68   :  { %v246_v1 = vld [vmem:[#allocation2 + $0x1e0] sm:$0xff]  ;;  %v141_v54 = vld [vmem:[%s17013_s0 + $0x18] sm:$0xff]  ;;  %v16479_v58 = vpack.c.bf16 %v139_v53, %v139_v53  ;;  %vm13834_vm2 = vcmask 80896  }
  0x69   :  { %v370_v2 = vld [vmem:[#allocation2 + $0x5c0] sm:$0xff]  ;;  %v13902_v3 = vcombine.high %v242_v0, %v246_v1  ;;  %v13901_v5 = vcombine.low %v242_v0, %v246_v1  ;;  %v16481_v59 = vpack.c.bf16 %v141_v54, %v141_v54 }
  0x6a   :  { %v374_v4 = vld [vmem:[#allocation2 + $0x5e0] sm:$0xff]  ;;  %9476 = vmatprep.mubr.bf16.mxu0 %v16479_v58 }
  0x6b   :  { %v234_v6 = vld [vmem:[#allocation2 + $0x180] sm:$0xff]  ;;  %v14030_v8 = vcombine.high %v370_v2, %v374_v4  ;;  %v14029_v9 = vcombine.low %v370_v2, %v374_v4  ;;  %9444 = vmatprep.subr.bf16.mxu0 %v13902_v3  ;;  %9517 = vmatprep.mubr.bf16.mxu1 %v16481_v59 }
  0x6c   :  { %v238_v7 = vld [vmem:[#allocation2 + $0x1a0] sm:$0xff]  ;;  %9445 = vmatpush1.bf16.msra.mxu0 %v13901_v5 }
  0x6d   :  { %v13894_v10 = vcombine.high %v234_v6, %v238_v7  ;;  %v362_v11 = vld [vmem:[#allocation2 + $0x580] sm:$0xff]  ;;  %9485 = vmatprep.subr.bf16.mxu1 %v14030_v8  ;;  %v13893_v18 = vcombine.low %v234_v6, %v238_v7 }
  0x6e   :  { %v366_v12 = vld [vmem:[#allocation2 + $0x5a0] sm:$0xff]  ;;  %9486 = vmatpush1.bf16.msra.mxu1 %v14029_v9 }
  0x6f   :  { %v226_v13 = vld [vmem:[#allocation2 + $0x140] sm:$0xff]  ;;  %v14022_v14 = vcombine.high %v362_v11, %v366_v12  ;;  %9446 = vmatprep.subr.bf16.mxu0 %v13894_v10  ;;  %v14021_v19 = vcombine.low %v362_v11, %v366_v12 }
  0x70   :  { %v230_v15 = vld [vmem:[#allocation2 + $0x160] sm:$0xff]  ;;  %9447 = vmatpush1.bf16.msra.mxu0 %v13893_v18 }
  0x71   :  { %v354_v16 = vld [vmem:[#allocation2 + $0x540] sm:$0xff]  ;;  %v13886_v20 = vcombine.high %v226_v13, %v230_v15  ;;  %9487 = vmatprep.subr.bf16.mxu1 %v14022_v14  ;;  %v13885_v26 = vcombine.low %v226_v13, %v230_v15 }
  0x72   :  { %v358_v17 = vld [vmem:[#allocation2 + $0x560] sm:$0xff]  ;;  %9488 = vmatpush1.bf16.msra.mxu1 %v14021_v19 }
  0x73   :  { %v14014_v21 = vcombine.high %v354_v16, %v358_v17  ;;  %v218_v22 = vld [vmem:[#allocation2 + $0x100] sm:$0xff]  ;;  %9448 = vmatprep.subr.bf16.mxu0 %v13886_v20  ;;  %v14013_v27 = vcombine.low %v354_v16, %v358_v17 }
  0x74   :  { %v222_v23 = vld [vmem:[#allocation2 + $0x120] sm:$0xff]  ;;  %9449 = vmatpush1.bf16.msra.mxu0 %v13885_v26 }
  0x75   :  { %v346_v24 = vld [vmem:[#allocation2 + $0x500] sm:$0xff]  ;;  %v13878_v28 = vcombine.high %v218_v22, %v222_v23  ;;  %9489 = vmatprep.subr.bf16.mxu1 %v14014_v21  ;;  %v13877_v34 = vcombine.low %v218_v22, %v222_v23 }
  0x76   :  { %v350_v25 = vld [vmem:[#allocation2 + $0x520] sm:$0xff]  ;;  %9490 = vmatpush1.bf16.msra.mxu1 %v14013_v27 }
  0x77   :  { %v14006_v29 = vcombine.high %v346_v24, %v350_v25  ;;  %v210_v30 = vld [vmem:[#allocation2 + $0xc0] sm:$0xff]  ;;  %9450 = vmatprep.subr.bf16.mxu0 %v13878_v28  ;;  %v14005_v35 = vcombine.low %v346_v24, %v350_v25 }
  0x78   :  { %v214_v31 = vld [vmem:[#allocation2 + $0xe0] sm:$0xff]  ;;  %9451 = vmatpush1.bf16.msra.mxu0 %v13877_v34 }
  0x79   :  { %v338_v32 = vld [vmem:[#allocation2 + $0x4c0] sm:$0xff]  ;;  %v13870_v36 = vcombine.high %v210_v30, %v214_v31  ;;  %9491 = vmatprep.subr.bf16.mxu1 %v14006_v29  ;;  %v13869_v42 = vcombine.low %v210_v30, %v214_v31 }
  0x7a   :  { %v342_v33 = vld [vmem:[#allocation2 + $0x4e0] sm:$0xff]  ;;  %9492 = vmatpush1.bf16.msra.mxu1 %v14005_v35 }
  0x7b   :  { %v13998_v37 = vcombine.high %v338_v32, %v342_v33  ;;  %v202_v38 = vld [vmem:[#allocation2 + $0x80] sm:$0xff]  ;;  %9452 = vmatprep.subr.bf16.mxu0 %v13870_v36  ;;  %v13997_v43 = vcombine.low %v338_v32, %v342_v33 }
  0x7c   :  { %v206_v39 = vld [vmem:[#allocation2 + $0xa0] sm:$0xff]  ;;  %9453 = vmatpush1.bf16.msra.mxu0 %v13869_v42 }
  0x7d   :  { %v330_v40 = vld [vmem:[#allocation2 + $0x480] sm:$0xff]  ;;  %v13862_v44 = vcombine.high %v202_v38, %v206_v39  ;;  %9493 = vmatprep.subr.bf16.mxu1 %v13998_v37  ;;  %v13861_v50 = vcombine.low %v202_v38, %v206_v39 }
  0x7e   :  { %v334_v41 = vld [vmem:[#allocation2 + $0x4a0] sm:$0xff]  ;;  %9494 = vmatpush1.bf16.msra.mxu1 %v13997_v43 }
  0x7f   :  { %v13990_v45 = vcombine.high %v330_v40, %v334_v41  ;;  %v194_v46 = vld [vmem:[#allocation2 + $0x40] sm:$0xff]  ;;  %9454 = vmatprep.subr.bf16.mxu0 %v13862_v44  ;;  %v13989_v51 = vcombine.low %v330_v40, %v334_v41 }
  0x80   :  { %v198_v47 = vld [vmem:[#allocation2 + $0x60] sm:$0xff]  ;;  %9455 = vmatpush1.bf16.msra.mxu0 %v13861_v50 }
  0x81   :  { %v322_v48 = vld [vmem:[#allocation2 + $0x440] sm:$0xff]  ;;  %v13854_v52 = vcombine.high %v194_v46, %v198_v47  ;;  %9495 = vmatprep.subr.bf16.mxu1 %v13990_v45  ;;  %v13853_v62 = vcombine.low %v194_v46, %v198_v47 }
  0x82   :  { %v326_v49 = vld [vmem:[#allocation2 + $0x460] sm:$0xff]  ;;  %9496 = vmatpush1.bf16.msra.mxu1 %v13989_v51 }
  0x83   :  { %v13982_v55 = vcombine.high %v322_v48, %v326_v49  ;;  %v186_v56 = vld [vmem:[#allocation2] sm:$0xff]  ;;  %9456 = vmatprep.subr.bf16.mxu0 %v13854_v52  ;;  %v13981_v63 = vcombine.low %v322_v48, %v326_v49 }
  0x84   :  { %v190_v57 = vld [vmem:[#allocation2 + $0x20] sm:$0xff]  ;;  %9457 = vmatpush1.bf16.msra.mxu0 %v13853_v62 }
  0x85   :  { %v314_v60 = vld [vmem:[#allocation2 + $0x400] sm:$0xff]  ;;  %v13846_v0 = vcombine.high %v186_v56, %v190_v57  ;;  %9497 = vmatprep.subr.bf16.mxu1 %v13982_v55  ;;  %v13845_v6 = vcombine.low %v186_v56, %v190_v57 }
  0x86   :  { %v318_v61 = vld [vmem:[#allocation2 + $0x420] sm:$0xff]  ;;  %9498 = vmatpush1.bf16.msra.mxu1 %v13981_v63 }
  0x87   :  { %v13974_v1 = vcombine.high %v314_v60, %v318_v61  ;;  %v306_v2 = vld [vmem:[#allocation2 + $0x3c0] sm:$0xff]  ;;  %9458 = vmatprep.subr.bf16.mxu0 %v13846_v0  ;;  %v13973_v7 = vcombine.low %v314_v60, %v318_v61 }
  0x88   :  { %v310_v3 = vld [vmem:[#allocation2 + $0x3e0] sm:$0xff]  ;;  %9459 = vmatpush1.bf16.msra.mxu0 %v13845_v6 }
  0x89   :  { %v434_v4 = vld [vmem:[#allocation2 + $0x7c0] sm:$0xff]  ;;  %v13966_v8 = vcombine.high %v306_v2, %v310_v3  ;;  %9499 = vmatprep.subr.bf16.mxu1 %v13974_v1  ;;  %v13965_v14 = vcombine.low %v306_v2, %v310_v3 }
  0x8a   :  { %v438_v5 = vld [vmem:[#allocation2 + $0x7e0] sm:$0xff]  ;;  %9500 = vmatpush1.bf16.msra.mxu1 %v13973_v7 }
  0x8b   :  { %v14094_v9 = vcombine.high %v434_v4, %v438_v5  ;;  %v298_v10 = vld [vmem:[#allocation2 + $0x380] sm:$0xff]  ;;  %9460 = vmatprep.subr.bf16.mxu0 %v13966_v8  ;;  %v14093_v15 = vcombine.low %v434_v4, %v438_v5 }
  0x8c   :  { %v302_v11 = vld [vmem:[#allocation2 + $0x3a0] sm:$0xff]  ;;  %9461 = vmatpush2.bf16.msra.mxu0 %v13965_v14 }
  0x8d   :  { %v426_v12 = vld [vmem:[#allocation2 + $0x780] sm:$0xff]  ;;  %v13958_v16 = vcombine.high %v298_v10, %v302_v11  ;;  %9501 = vmatprep.subr.bf16.mxu1 %v14094_v9  ;;  %v13957_v22 = vcombine.low %v298_v10, %v302_v11  ;;  %v140_v11 = vld [vmem:[%s17013_s0 + $0x10] sm:$0xff] }
  0x8e   :  { %v430_v13 = vld [vmem:[#allocation2 + $0x7a0] sm:$0xff]  ;;  %9502 = vmatpush2.bf16.msra.mxu1 %v14093_v15 }
  0x8f   :  { %v14086_v17 = vcombine.high %v426_v12, %v430_v13  ;;  %v290_v18 = vld [vmem:[#allocation2 + $0x340] sm:$0xff]  ;;  %9462 = vmatprep.subr.bf16.mxu0 %v13958_v16  ;;  %v14085_v23 = vcombine.low %v426_v12, %v430_v13 }
  0x90   :  { %v294_v19 = vld [vmem:[#allocation2 + $0x360] sm:$0xff]  ;;  %9463 = vmatpush2.bf16.msra.mxu0 %v13957_v22  ;;  %v145_v22 = vld [vmem:[%s17013_s0 + $0x38] sm:$0xff] }
  0x91   :  { %v418_v20 = vld [vmem:[#allocation2 + $0x740] sm:$0xff]  ;;  %v13950_v24 = vcombine.high %v290_v18, %v294_v19  ;;  %9503 = vmatprep.subr.bf16.mxu1 %v14086_v17  ;;  %v13949_v30 = vcombine.low %v290_v18, %v294_v19  ;;  %v143_v19 = vld [vmem:[%s17013_s0 + $0x28] sm:$0xff] }
  0x92   :  { %v422_v21 = vld [vmem:[#allocation2 + $0x760] sm:$0xff]  ;;  %9504 = vmatpush2.bf16.msra.mxu1 %v14085_v23 }
  0x93   :  { %v14078_v25 = vcombine.high %v418_v20, %v422_v21  ;;  %v282_v26 = vld [vmem:[#allocation2 + $0x300] sm:$0xff]  ;;  %9464 = vmatprep.subr.bf16.mxu0 %v13950_v24  ;;  %v14077_v31 = vcombine.low %v418_v20, %v422_v21  ;;  %v16496_v20 = vpack.c.bf16 %v140_v11, %v140_v11 }
  0x94   :  { %v286_v27 = vld [vmem:[#allocation2 + $0x320] sm:$0xff]  ;;  %9465 = vmatpush2.bf16.msra.mxu0 %v13949_v30 }
  0x95   :  { %v410_v28 = vld [vmem:[#allocation2 + $0x700] sm:$0xff]  ;;  %v13942_v32 = vcombine.high %v282_v26, %v286_v27  ;;  %9505 = vmatprep.subr.bf16.mxu1 %v14078_v25  ;;  %v13941_v38 = vcombine.low %v282_v26, %v286_v27 }
  0x96   :  { %v414_v29 = vld [vmem:[#allocation2 + $0x720] sm:$0xff]  ;;  %9506 = vmatpush2.bf16.msra.mxu1 %v14077_v31  ;;  %v16504_v31 = vpack.c.bf16 %v145_v22, %v145_v22 }
  0x97   :  { %v14070_v33 = vcombine.high %v410_v28, %v414_v29  ;;  %v274_v34 = vld [vmem:[#allocation2 + $0x2c0] sm:$0xff]  ;;  %9466 = vmatprep.subr.bf16.mxu0 %v13942_v32  ;;  %v14069_v39 = vcombine.low %v410_v28, %v414_v29  ;;  %v16501_v28 = vpack.c.bf16 %v143_v19, %v143_v19 }
  0x98   :  { %v278_v35 = vld [vmem:[#allocation2 + $0x2e0] sm:$0xff]  ;;  %9467 = vmatpush2.bf16.msra.mxu0 %v13941_v38 }
  0x99   :  { %v402_v36 = vld [vmem:[#allocation2 + $0x6c0] sm:$0xff]  ;;  %v13934_v40 = vcombine.high %v274_v34, %v278_v35  ;;  %9507 = vmatprep.subr.bf16.mxu1 %v14070_v33  ;;  %v13933_v46 = vcombine.low %v274_v34, %v278_v35 }
  0x9a   :  { %v406_v37 = vld [vmem:[#allocation2 + $0x6e0] sm:$0xff]  ;;  %9508 = vmatpush2.bf16.msra.mxu1 %v14069_v39 }
  0x9b   :  { %v14062_v41 = vcombine.high %v402_v36, %v406_v37  ;;  %v266_v42 = vld [vmem:[#allocation2 + $0x280] sm:$0xff]  ;;  %9468 = vmatprep.subr.bf16.mxu0 %v13934_v40  ;;  %v14061_v47 = vcombine.low %v402_v36, %v406_v37 }
  0x9c   :  { %v270_v43 = vld [vmem:[#allocation2 + $0x2a0] sm:$0xff]  ;;  %9469 = vmatpush2.bf16.msra.mxu0 %v13933_v46 }
  0x9d   :  { %v394_v44 = vld [vmem:[#allocation2 + $0x680] sm:$0xff]  ;;  %v13926_v48 = vcombine.high %v266_v42, %v270_v43  ;;  %9509 = vmatprep.subr.bf16.mxu1 %v14062_v41  ;;  %v13925_v54 = vcombine.low %v266_v42, %v270_v43 }
  0x9e   :  { %v398_v45 = vld [vmem:[#allocation2 + $0x6a0] sm:$0xff]  ;;  %9510 = vmatpush2.bf16.msra.mxu1 %v14061_v47 }
  0x9f   :  { %v14054_v49 = vcombine.high %v394_v44, %v398_v45  ;;  %v258_v50 = vld [vmem:[#allocation2 + $0x240] sm:$0xff]  ;;  %9470 = vmatprep.subr.bf16.mxu0 %v13926_v48  ;;  %v14053_v55 = vcombine.low %v394_v44, %v398_v45 }
  0xa0   :  { %v262_v51 = vld [vmem:[#allocation2 + $0x260] sm:$0xff]  ;;  %9471 = vmatpush2.bf16.msra.mxu0 %v13925_v54 }
  0xa1   :  { %v386_v52 = vld [vmem:[#allocation2 + $0x640] sm:$0xff]  ;;  %v13918_v56 = vcombine.high %v258_v50, %v262_v51  ;;  %9511 = vmatprep.subr.bf16.mxu1 %v14054_v49  ;;  %v13917_v0 = vcombine.low %v258_v50, %v262_v51 }
  0xa2   :  { %v390_v53 = vld [vmem:[#allocation2 + $0x660] sm:$0xff]  ;;  %9512 = vmatpush2.bf16.msra.mxu1 %v14053_v55 }
  0xa3   :  { %v14046_v57 = vcombine.high %v386_v52, %v390_v53  ;;  %v250_v60 = vld [vmem:[#allocation2 + $0x200] sm:$0xff]  ;;  %9472 = vmatprep.subr.bf16.mxu0 %v13918_v56  ;;  %v14045_v1 = vcombine.low %v386_v52, %v390_v53 }
  0xa4   :  { %v254_v61 = vld [vmem:[#allocation2 + $0x220] sm:$0xff]  ;;  %9473 = vmatpush2.bf16.msra.mxu0 %v13917_v0 }
  0xa5   :  { %v378_v62 = vld [vmem:[#allocation2 + $0x600] sm:$0xff]  ;;  %v13910_v2 = vcombine.high %v250_v60, %v254_v61  ;;  %9513 = vmatprep.subr.bf16.mxu1 %v14046_v57  ;;  %v13909_v8 = vcombine.low %v250_v60, %v254_v61 }
  0xa6   :  { %v382_v63 = vld [vmem:[#allocation2 + $0x620] sm:$0xff]  ;;  %9514 = vmatpush2.bf16.msra.mxu1 %v14045_v1 }
  0xa7   :  { %v14038_v3 = vcombine.high %v378_v62, %v382_v63  ;;  %v498_v4 = vld [vmem:[#allocation2 + $0x9c0] sm:$0xff]  ;;  %9474 = vmatprep.subr.bf16.mxu0 %v13910_v2  ;;  %v14037_v10 = vcombine.low %v378_v62, %v382_v63 }
  0xa8   :  { %v502_v5 = vld [vmem:[#allocation2 + $0x9e0] sm:$0xff]  ;;  %9475 = vmatpush2.bf16.msra.mxu0 %v13909_v8 }
  0xa9   :  { %v626_v6 = vld [vmem:[#allocation2 + $0xdc0] sm:$0xff]  ;;  %v14158_v12 = vcombine.high %v498_v4, %v502_v5  ;;  %9515 = vmatprep.subr.bf16.mxu1 %v14038_v3  ;;  %v14157_v21 = vcombine.low %v498_v4, %v502_v5 }
  0xaa   :  { %v630_v7 = vld [vmem:[#allocation2 + $0xde0] sm:$0xff]  ;;  %9516 = vmatpush2.bf16.msra.mxu1 %v14037_v10 }
  0xab   :  { %v138_v9 = vld [vmem:[%s17013_s0] sm:$0xff]  ;;  %v14286_v13 = vcombine.high %v626_v6, %v630_v7  ;;  %9526 = vmatprep.subr.bf16.mxu0 %v14158_v12  ;;  %v14285_v23 = vcombine.low %v626_v6, %v630_v7 }
  0xac   :  { %v490_v14 = vld [vmem:[#allocation2 + $0x980] sm:$0xff]  ;;  %v16491_v16 = vpack.c.bf16 %v138_v9, %v138_v9 }
  0xad   :  { %v494_v15 = vld [vmem:[#allocation2 + $0x9a0] sm:$0xff]  ;;  %9567 = vmatprep.subr.bf16.mxu1 %v14286_v13  ;;  %9518 = vmatmul.mubr.bf16.vlgmr.msra.gmra.mxu1 %v16496_v20 }
  0xae   :  { %v618_v17 = vld [vmem:[#allocation2 + $0xd80] sm:$0xff]  ;;  %v14150_v24 = vcombine.high %v490_v14, %v494_v15  ;;  %9477 = vmatmul.mubr.bf16.vlgmr.msra.gmra.mxu0 %v16491_v16  ;;  %v14149_v32 = vcombine.low %v490_v14, %v494_v15  ;;  %9568 = vmatpush1.bf16.msra.mxu1 %v14285_v23 }
  0xaf   :  { %v622_v18 = vld [vmem:[#allocation2 + $0xda0] sm:$0xff]  ;;  %9527 = vmatpush1.bf16.msra.mxu0 %v14157_v21  ;;  %9558 = vmatprep.mubr.bf16.mxu0 %v16501_v28 }
  0xb0   :  { %v14278_v25 = vcombine.high %v618_v17, %v622_v18  ;;  %v482_v26 = vld [vmem:[#allocation2 + $0x940] sm:$0xff]  ;;  %9528 = vmatprep.subr.bf16.mxu0 %v14150_v24  ;;  %v14277_v33 = vcombine.low %v618_v17, %v622_v18  ;;  %9599 = vmatprep.mubr.bf16.mxu1 %v16504_v31 }
  0xb1   :  { %v486_v27 = vld [vmem:[#allocation2 + $0x960] sm:$0xff] }
  0xb2   :  { %v610_v29 = vld [vmem:[#allocation2 + $0xd40] sm:$0xff]  ;;  %v14142_v34 = vcombine.high %v482_v26, %v486_v27  ;;  %9569 = vmatprep.subr.bf16.mxu1 %v14278_v25  ;;  %v14141_v40 = vcombine.low %v482_v26, %v486_v27 }
  0xb3   :  { %v614_v30 = vld [vmem:[#allocation2 + $0xd60] sm:$0xff]  ;;  %9529 = vmatpush1.bf16.msra.mxu0 %v14149_v32  ;;  %9570 = vmatpush1.bf16.msra.mxu1 %v14277_v33 }
  0xb4   :  { %v474_v35 = vld [vmem:[#allocation2 + $0x900] sm:$0xff]  ;;  %v14270_v37 = vcombine.high %v610_v29, %v614_v30  ;;  %9530 = vmatprep.subr.bf16.mxu0 %v14142_v34  ;;  %v14269_v41 = vcombine.low %v610_v29, %v614_v30 }
  0xb5   :  { %v478_v36 = vld [vmem:[#allocation2 + $0x920] sm:$0xff] }
  0xb6   :  { %v602_v38 = vld [vmem:[#allocation2 + $0xd00] sm:$0xff]  ;;  %v14134_v42 = vcombine.high %v474_v35, %v478_v36  ;;  %9571 = vmatprep.subr.bf16.mxu1 %v14270_v37  ;;  %v14133_v48 = vcombine.low %v474_v35, %v478_v36 }
  0xb7   :  { %v606_v39 = vld [vmem:[#allocation2 + $0xd20] sm:$0xff]  ;;  %9531 = vmatpush1.bf16.msra.mxu0 %v14141_v40  ;;  %9572 = vmatpush1.bf16.msra.mxu1 %v14269_v41 }
  0xb8   :  { %v466_v43 = vld [vmem:[#allocation2 + $0x8c0] sm:$0xff]  ;;  %v14262_v46 = vcombine.high %v602_v38, %v606_v39  ;;  %9532 = vmatprep.subr.bf16.mxu0 %v14134_v42  ;;  %v14261_v49 = vcombine.low %v602_v38, %v606_v39 }
  0xb9   :  { %v470_v44 = vld [vmem:[#allocation2 + $0x8e0] sm:$0xff] }
  0xba   :  { %v594_v45 = vld [vmem:[#allocation2 + $0xcc0] sm:$0xff]  ;;  %v14126_v50 = vcombine.high %v466_v43, %v470_v44  ;;  %9573 = vmatprep.subr.bf16.mxu1 %v14262_v46  ;;  %v14125_v56 = vcombine.low %v466_v43, %v470_v44 }
  0xbb   :  { %v598_v47 = vld [vmem:[#allocation2 + $0xce0] sm:$0xff]  ;;  %9533 = vmatpush1.bf16.msra.mxu0 %v14133_v48  ;;  %9574 = vmatpush1.bf16.msra.mxu1 %v14261_v49 }
  0xbc   :  { %v458_v51 = vld [vmem:[#allocation2 + $0x880] sm:$0xff]  ;;  %v14254_v54 = vcombine.high %v594_v45, %v598_v47  ;;  %9534 = vmatprep.subr.bf16.mxu0 %v14126_v50  ;;  %v14253_v57 = vcombine.low %v594_v45, %v598_v47 }
  0xbd   :  { %v462_v52 = vld [vmem:[#allocation2 + $0x8a0] sm:$0xff] }
  0xbe   :  { %v586_v53 = vld [vmem:[#allocation2 + $0xc80] sm:$0xff]  ;;  %v14118_v60 = vcombine.high %v458_v51, %v462_v52  ;;  %9575 = vmatprep.subr.bf16.mxu1 %v14254_v54  ;;  %v14117_v2 = vcombine.low %v458_v51, %v462_v52 }
  0xbf   :  { %v590_v55 = vld [vmem:[#allocation2 + $0xca0] sm:$0xff]  ;;  %9535 = vmatpush1.bf16.msra.mxu0 %v14125_v56  ;;  %9576 = vmatpush1.bf16.msra.mxu1 %v14253_v57 }
  0xc0   :  { %v450_v61 = vld [vmem:[#allocation2 + $0x840] sm:$0xff]  ;;  %v14246_v0 = vcombine.high %v586_v53, %v590_v55  ;;  %9536 = vmatprep.subr.bf16.mxu0 %v14118_v60  ;;  %v14245_v3 = vcombine.low %v586_v53, %v590_v55 }
  0xc1   :  { %v454_v62 = vld [vmem:[#allocation2 + $0x860] sm:$0xff] }
  0xc2   :  { %v578_v63 = vld [vmem:[#allocation2 + $0xc40] sm:$0xff]  ;;  %v14110_v4 = vcombine.high %v450_v61, %v454_v62  ;;  %9577 = vmatprep.subr.bf16.mxu1 %v14246_v0  ;;  %v14109_v10 = vcombine.low %v450_v61, %v454_v62 }
  0xc3   :  { %v582_v1 = vld [vmem:[#allocation2 + $0xc60] sm:$0xff]  ;;  %9537 = vmatpush1.bf16.msra.mxu0 %v14117_v2  ;;  %9578 = vmatpush1.bf16.msra.mxu1 %v14245_v3 }
  0xc4   :  { %v442_v5 = vld [vmem:[#allocation2 + $0x800] sm:$0xff]  ;;  %v14238_v8 = vcombine.high %v578_v63, %v582_v1  ;;  %9538 = vmatprep.subr.bf16.mxu0 %v14110_v4  ;;  %v14237_v11 = vcombine.low %v578_v63, %v582_v1 }
  0xc5   :  { %v446_v6 = vld [vmem:[#allocation2 + $0x820] sm:$0xff] }
  0xc6   :  { %v570_v7 = vld [vmem:[#allocation2 + $0xc00] sm:$0xff]  ;;  %v14102_v12 = vcombine.high %v442_v5, %v446_v6  ;;  %9579 = vmatprep.subr.bf16.mxu1 %v14238_v8  ;;  %v14101_v19 = vcombine.low %v442_v5, %v446_v6 }
  0xc7   :  { %v574_v9 = vld [vmem:[#allocation2 + $0xc20] sm:$0xff]  ;;  %9539 = vmatpush1.bf16.msra.mxu0 %v14109_v10  ;;  %9580 = vmatpush1.bf16.msra.mxu1 %v14237_v11 }
  0xc8   :  { %v562_v13 = vld [vmem:[#allocation2 + $0xbc0] sm:$0xff]  ;;  %v14230_v17 = vcombine.high %v570_v7, %v574_v9  ;;  %9540 = vmatprep.subr.bf16.mxu0 %v14102_v12  ;;  %v14229_v21 = vcombine.low %v570_v7, %v574_v9 }
  0xc9   :  { %v566_v14 = vld [vmem:[#allocation2 + $0xbe0] sm:$0xff] }
  0xca   :  { %v690_v15 = vld [vmem:[#allocation2 + $0xfc0] sm:$0xff]  ;;  %v14222_v22 = vcombine.high %v562_v13, %v566_v14  ;;  %9581 = vmatprep.subr.bf16.mxu1 %v14230_v17  ;;  %v14221_v29 = vcombine.low %v562_v13, %v566_v14 }
  0xcb   :  { %v694_v18 = vld [vmem:[#allocation2 + $0xfe0] sm:$0xff]  ;;  %9541 = vmatpush1.bf16.msra.mxu0 %v14101_v19  ;;  %9582 = vmatpush1.bf16.msra.mxu1 %v14229_v21 }
  0xcc   :  { %v554_v23 = vld [vmem:[#allocation2 + $0xb80] sm:$0xff]  ;;  %v14350_v26 = vcombine.high %v690_v15, %v694_v18  ;;  %9542 = vmatprep.subr.bf16.mxu0 %v14222_v22  ;;  %v14349_v30 = vcombine.low %v690_v15, %v694_v18 }
  0xcd   :  { %v558_v24 = vld [vmem:[#allocation2 + $0xba0] sm:$0xff] }
  0xce   :  { %v682_v25 = vld [vmem:[#allocation2 + $0xf80] sm:$0xff]  ;;  %v14214_v32 = vcombine.high %v554_v23, %v558_v24  ;;  %9583 = vmatprep.subr.bf16.mxu1 %v14350_v26  ;;  %v14213_v38 = vcombine.low %v554_v23, %v558_v24 }
  0xcf   :  { %v686_v27 = vld [vmem:[#allocation2 + $0xfa0] sm:$0xff]  ;;  %9543 = vmatpush2.bf16.msra.mxu0 %v14221_v29  ;;  %9584 = vmatpush2.bf16.msra.mxu1 %v14349_v30 }
  0xd0   :  { %v546_v33 = vld [vmem:[#allocation2 + $0xb40] sm:$0xff]  ;;  %v14342_v36 = vcombine.high %v682_v25, %v686_v27  ;;  %9544 = vmatprep.subr.bf16.mxu0 %v14214_v32  ;;  %v14341_v39 = vcombine.low %v682_v25, %v686_v27  ;;  %v144_v27 = vld [vmem:[%s17013_s0 + $0x30] sm:$0xff] }
  0xd1   :  { %v550_v34 = vld [vmem:[#allocation2 + $0xb60] sm:$0xff] }
  0xd2   :  { %v674_v35 = vld [vmem:[#allocation2 + $0xf40] sm:$0xff]  ;;  %v14206_v40 = vcombine.high %v546_v33, %v550_v34  ;;  %9585 = vmatprep.subr.bf16.mxu1 %v14342_v36  ;;  %v14205_v46 = vcombine.low %v546_v33, %v550_v34 }
  0xd3   :  { %v678_v37 = vld [vmem:[#allocation2 + $0xf60] sm:$0xff]  ;;  %9545 = vmatpush2.bf16.msra.mxu0 %v14213_v38  ;;  %9586 = vmatpush2.bf16.msra.mxu1 %v14341_v39  ;;  %v147_v38 = vld [vmem:[%s17013_s0 + $0x48] sm:$0xff] }
  0xd4   :  { %v538_v41 = vld [vmem:[#allocation2 + $0xb00] sm:$0xff]  ;;  %v14334_v44 = vcombine.high %v674_v35, %v678_v37  ;;  %9546 = vmatprep.subr.bf16.mxu0 %v14206_v40  ;;  %v14333_v47 = vcombine.low %v674_v35, %v678_v37  ;;  %v16520_v40 = vpack.c.bf16 %v144_v27, %v144_v27 }
  0xd5   :  { %v542_v42 = vld [vmem:[#allocation2 + $0xb20] sm:$0xff] }
  0xd6   :  { %v666_v43 = vld [vmem:[#allocation2 + $0xf00] sm:$0xff]  ;;  %v14198_v48 = vcombine.high %v538_v41, %v542_v42  ;;  %9587 = vmatprep.subr.bf16.mxu1 %v14334_v44  ;;  %v14197_v54 = vcombine.low %v538_v41, %v542_v42  ;;  %v149_v42 = vld [vmem:[%s17013_s0 + $0x58] sm:$0xff] }
  0xd7   :  { %v670_v45 = vld [vmem:[#allocation2 + $0xf20] sm:$0xff]  ;;  %9547 = vmatpush2.bf16.msra.mxu0 %v14205_v46  ;;  %9588 = vmatpush2.bf16.msra.mxu1 %v14333_v47 }
  0xd8   :  { %v530_v49 = vld [vmem:[#allocation2 + $0xac0] sm:$0xff]  ;;  %v14326_v52 = vcombine.high %v666_v43, %v670_v45  ;;  %9548 = vmatprep.subr.bf16.mxu0 %v14198_v48  ;;  %v14325_v55 = vcombine.low %v666_v43, %v670_v45 }
  0xd9   :  { %v534_v50 = vld [vmem:[#allocation2 + $0xae0] sm:$0xff] }
  0xda   :  { %v658_v51 = vld [vmem:[#allocation2 + $0xec0] sm:$0xff]  ;;  %v14190_v56 = vcombine.high %v530_v49, %v534_v50  ;;  %9589 = vmatprep.subr.bf16.mxu1 %v14326_v52  ;;  %v14189_v0 = vcombine.low %v530_v49, %v534_v50  ;;  %v16525_v49 = vpack.c.bf16 %v147_v38, %v147_v38 }
  0xdb   :  { %v662_v53 = vld [vmem:[#allocation2 + $0xee0] sm:$0xff]  ;;  %9549 = vmatpush2.bf16.msra.mxu0 %v14197_v54  ;;  %9590 = vmatpush2.bf16.msra.mxu1 %v14325_v55 }
  0xdc   :  { %v522_v57 = vld [vmem:[#allocation2 + $0xa80] sm:$0xff]  ;;  %v14318_v62 = vcombine.high %v658_v51, %v662_v53  ;;  %9550 = vmatprep.subr.bf16.mxu0 %v14190_v56  ;;  %v14317_v1 = vcombine.low %v658_v51, %v662_v53  ;;  %v16528_v51 = vpack.c.bf16 %v149_v42, %v149_v42 }
  0xdd   :  { %v526_v60 = vld [vmem:[#allocation2 + $0xaa0] sm:$0xff] }
  0xde   :  { %v650_v61 = vld [vmem:[#allocation2 + $0xe80] sm:$0xff]  ;;  %v14182_v2 = vcombine.high %v522_v57, %v526_v60  ;;  %9591 = vmatprep.subr.bf16.mxu1 %v14318_v62  ;;  %v14181_v8 = vcombine.low %v522_v57, %v526_v60 }
  0xdf   :  { %v654_v63 = vld [vmem:[#allocation2 + $0xea0] sm:$0xff]  ;;  %9551 = vmatpush2.bf16.msra.mxu0 %v14189_v0  ;;  %9592 = vmatpush2.bf16.msra.mxu1 %v14317_v1 }
  0xe0   :  { %v514_v3 = vld [vmem:[#allocation2 + $0xa40] sm:$0xff]  ;;  %v14310_v6 = vcombine.high %v650_v61, %v654_v63  ;;  %9552 = vmatprep.subr.bf16.mxu0 %v14182_v2  ;;  %v14309_v9 = vcombine.low %v650_v61, %v654_v63 }
  0xe1   :  { %v518_v4 = vld [vmem:[#allocation2 + $0xa60] sm:$0xff] }
  0xe2   :  { %v642_v5 = vld [vmem:[#allocation2 + $0xe40] sm:$0xff]  ;;  %v14174_v10 = vcombine.high %v514_v3, %v518_v4  ;;  %9593 = vmatprep.subr.bf16.mxu1 %v14310_v6  ;;  %v14173_v17 = vcombine.low %v514_v3, %v518_v4 }
  0xe3   :  { %v646_v7 = vld [vmem:[#allocation2 + $0xe60] sm:$0xff]  ;;  %9553 = vmatpush2.bf16.msra.mxu0 %v14181_v8  ;;  %9594 = vmatpush2.bf16.msra.mxu1 %v14309_v9 }
  0xe4   :  { %v506_v11 = vld [vmem:[#allocation2 + $0xa00] sm:$0xff]  ;;  %v14302_v14 = vcombine.high %v642_v5, %v646_v7  ;;  %9554 = vmatprep.subr.bf16.mxu0 %v14174_v10  ;;  %v14301_v18 = vcombine.low %v642_v5, %v646_v7 }
  0xe5   :  { %v510_v12 = vld [vmem:[#allocation2 + $0xa20] sm:$0xff] }
  0xe6   :  { %v634_v13 = vld [vmem:[#allocation2 + $0xe00] sm:$0xff]  ;;  %v14166_v19 = vcombine.high %v506_v11, %v510_v12  ;;  %9595 = vmatprep.subr.bf16.mxu1 %v14302_v14  ;;  %v14165_v29 = vcombine.low %v506_v11, %v510_v12 }
  0xe7   :  { %v638_v15 = vld [vmem:[#allocation2 + $0xe20] sm:$0xff]  ;;  %9555 = vmatpush2.bf16.msra.mxu0 %v14173_v17  ;;  %9596 = vmatpush2.bf16.msra.mxu1 %v14301_v18 }
  0xe8   :  { %v754_v21 = vld [vmem:[#allocation2 + $0x11c0] sm:$0xff]  ;;  %v14294_v24 = vcombine.high %v634_v13, %v638_v15  ;;  %9556 = vmatprep.subr.bf16.mxu0 %v14166_v19  ;;  %v14293_v32 = vcombine.low %v634_v13, %v638_v15 }
  0xe9   :  { %v758_v22 = vld [vmem:[#allocation2 + $0x11e0] sm:$0xff] }
  0xea   :  { %v882_v23 = vld [vmem:[#allocation2 + $0x15c0] sm:$0xff]  ;;  %v14414_v33 = vcombine.high %v754_v21, %v758_v22  ;;  %9597 = vmatprep.subr.bf16.mxu1 %v14294_v24  ;;  %v14413_v41 = vcombine.low %v754_v21, %v758_v22 }
  0xeb   :  { %v142_v25 = vld [vmem:[%s17013_s0 + $0x20] sm:$0xff]  ;;  %9557 = vmatpush2.bf16.msra.mxu0 %v14165_v29  ;;  %9598 = vmatpush2.bf16.msra.mxu1 %v14293_v32 }
  0xec   :  { %v886_v26 = vld [vmem:[#allocation2 + $0x15e0] sm:$0xff]  ;;  %v16518_v39 = vpack.c.bf16 %v142_v25, %v142_v25  ;;  %9608 = vmatprep.subr.bf16.mxu0 %v14414_v33 }
  0xed   :  { %v746_v30 = vld [vmem:[#allocation2 + $0x1180] sm:$0xff]  ;;  %v14542_v37 = vcombine.high %v882_v23, %v886_v26  ;;  %v14541_v43 = vcombine.low %v882_v23, %v886_v26 }
  0xee   :  { %v750_v34 = vld [vmem:[#allocation2 + $0x11a0] sm:$0xff]  ;;  %9559 = vmatmul.mubr.bf16.vlgmr.msra.gmra.mxu0 %v16518_v39  ;;  %9600 = vmatmul.mubr.bf16.vlgmr.msra.gmra.mxu1 %v16520_v40 }
  0xef   :  { %v874_v35 = vld [vmem:[#allocation2 + $0x1580] sm:$0xff]  ;;  %v14406_v44 = vcombine.high %v746_v30, %v750_v34  ;;  %9649 = vmatprep.subr.bf16.mxu1 %v14542_v37  ;;  %9609 = vmatpush1.bf16.msra.mxu0 %v14413_v41  ;;  %v14405_v52 = vcombine.low %v746_v30, %v750_v34 }
  0xf0   :  { %v878_v36 = vld [vmem:[#allocation2 + $0x15a0] sm:$0xff]  ;;  %9650 = vmatpush1.bf16.msra.mxu1 %v14541_v43  ;;  %9640 = vmatprep.mubr.bf16.mxu0 %v16525_v49 }
  0xf1   :  { %v14534_v45 = vcombine.high %v874_v35, %v878_v36  ;;  %v738_v46 = vld [vmem:[#allocation2 + $0x1140] sm:$0xff]  ;;  %9610 = vmatprep.subr.bf16.mxu0 %v14406_v44  ;;  %v14533_v53 = vcombine.low %v874_v35, %v878_v36  ;;  %9681 = vmatprep.mubr.bf16.mxu1 %v16528_v51 }
  0xf2   :  { %v742_v47 = vld [vmem:[#allocation2 + $0x1160] sm:$0xff] }
  0xf3   :  { %v866_v48 = vld [vmem:[#allocation2 + $0x1540] sm:$0xff]  ;;  %v14398_v54 = vcombine.high %v738_v46, %v742_v47  ;;  %9651 = vmatprep.subr.bf16.mxu1 %v14534_v45  ;;  %9611 = vmatpush1.bf16.msra.mxu0 %v14405_v52  ;;  %v14397_v62 = vcombine.low %v738_v46, %v742_v47 }
  0xf4   :  { %v870_v50 = vld [vmem:[#allocation2 + $0x1560] sm:$0xff]  ;;  %9652 = vmatpush1.bf16.msra.mxu1 %v14533_v53 }
  0xf5   :  { %v730_v55 = vld [vmem:[#allocation2 + $0x1100] sm:$0xff]  ;;  %v14526_v60 = vcombine.high %v866_v48, %v870_v50  ;;  %9612 = vmatprep.subr.bf16.mxu0 %v14398_v54  ;;  %v14525_v63 = vcombine.low %v866_v48, %v870_v50 }
  0xf6   :  { %v734_v56 = vld [vmem:[#allocation2 + $0x1120] sm:$0xff] }
  0xf7   :  { %v858_v57 = vld [vmem:[#allocation2 + $0x1500] sm:$0xff]  ;;  %v14390_v0 = vcombine.high %v730_v55, %v734_v56  ;;  %9653 = vmatprep.subr.bf16.mxu1 %v14526_v60  ;;  %9613 = vmatpush1.bf16.msra.mxu0 %v14397_v62  ;;  %v14389_v6 = vcombine.low %v730_v55, %v734_v56 }
  0xf8   :  { %v862_v61 = vld [vmem:[#allocation2 + $0x1520] sm:$0xff]  ;;  %9654 = vmatpush1.bf16.msra.mxu1 %v14525_v63 }
  0xf9   :  { %v722_v1 = vld [vmem:[#allocation2 + $0x10c0] sm:$0xff]  ;;  %v14518_v4 = vcombine.high %v858_v57, %v862_v61  ;;  %9614 = vmatprep.subr.bf16.mxu0 %v14390_v0  ;;  %v14517_v7 = vcombine.low %v858_v57, %v862_v61 }
  0xfa   :  { %v726_v2 = vld [vmem:[#allocation2 + $0x10e0] sm:$0xff] }
  0xfb   :  { %v850_v3 = vld [vmem:[#allocation2 + $0x14c0] sm:$0xff]  ;;  %v14382_v8 = vcombine.high %v722_v1, %v726_v2  ;;  %9655 = vmatprep.subr.bf16.mxu1 %v14518_v4  ;;  %9615 = vmatpush1.bf16.msra.mxu0 %v14389_v6  ;;  %v14381_v14 = vcombine.low %v722_v1, %v726_v2 }
  0xfc   :  { %v854_v5 = vld [vmem:[#allocation2 + $0x14e0] sm:$0xff]  ;;  %9656 = vmatpush1.bf16.msra.mxu1 %v14517_v7 }
  0xfd   :  { %v714_v9 = vld [vmem:[#allocation2 + $0x1080] sm:$0xff]  ;;  %v14510_v12 = vcombine.high %v850_v3, %v854_v5  ;;  %9616 = vmatprep.subr.bf16.mxu0 %v14382_v8  ;;  %v14509_v15 = vcombine.low %v850_v3, %v854_v5 }
  0xfe   :  { %v718_v10 = vld [vmem:[#allocation2 + $0x10a0] sm:$0xff] }
  0xff   :  { %v842_v11 = vld [vmem:[#allocation2 + $0x1480] sm:$0xff]  ;;  %v14374_v17 = vcombine.high %v714_v9, %v718_v10  ;;  %9657 = vmatprep.subr.bf16.mxu1 %v14510_v12  ;;  %9617 = vmatpush1.bf16.msra.mxu0 %v14381_v14  ;;  %v14373_v24 = vcombine.low %v714_v9, %v718_v10 }
 0x100   :  { %v846_v13 = vld [vmem:[#allocation2 + $0x14a0] sm:$0xff]  ;;  %9658 = vmatpush1.bf16.msra.mxu1 %v14509_v15 }
 0x101   :  { %v706_v18 = vld [vmem:[#allocation2 + $0x1040] sm:$0xff]  ;;  %v14502_v22 = vcombine.high %v842_v11, %v846_v13  ;;  %9618 = vmatprep.subr.bf16.mxu0 %v14374_v17  ;;  %v14501_v25 = vcombine.low %v842_v11, %v846_v13 }
 0x102   :  { %v710_v19 = vld [vmem:[#allocation2 + $0x1060] sm:$0xff] }
 0x103   :  { %v834_v21 = vld [vmem:[#allocation2 + $0x1440] sm:$0xff]  ;;  %v14366_v26 = vcombine.high %v706_v18, %v710_v19  ;;  %9659 = vmatprep.subr.bf16.mxu1 %v14502_v22  ;;  %9619 = vmatpush1.bf16.msra.mxu0 %v14373_v24  ;;  %v14365_v34 = vcombine.low %v706_v18, %v710_v19 }
 0x104   :  { %v838_v23 = vld [vmem:[#allocation2 + $0x1460] sm:$0xff]  ;;  %9660 = vmatpush1.bf16.msra.mxu1 %v14501_v25 }
 0x105   :  { %v698_v27 = vld [vmem:[#allocation2 + $0x1000] sm:$0xff]  ;;  %v14494_v32 = vcombine.high %v834_v21, %v838_v23  ;;  %9620 = vmatprep.subr.bf16.mxu0 %v14366_v26  ;;  %v14493_v35 = vcombine.low %v834_v21, %v838_v23 }
 0x106   :  { %v702_v29 = vld [vmem:[#allocation2 + $0x1020] sm:$0xff] }
 0x107   :  { %v826_v30 = vld [vmem:[#allocation2 + $0x1400] sm:$0xff]  ;;  %v14358_v36 = vcombine.high %v698_v27, %v702_v29  ;;  %9661 = vmatprep.subr.bf16.mxu1 %v14494_v32  ;;  %9621 = vmatpush1.bf16.msra.mxu0 %v14365_v34  ;;  %v14357_v44 = vcombine.low %v698_v27, %v702_v29 }
 0x108   :  { %v830_v33 = vld [vmem:[#allocation2 + $0x1420] sm:$0xff]  ;;  %9662 = vmatpush1.bf16.msra.mxu1 %v14493_v35 }
 0x109   :  { %v818_v37 = vld [vmem:[#allocation2 + $0x13c0] sm:$0xff]  ;;  %v14486_v42 = vcombine.high %v826_v30, %v830_v33  ;;  %9622 = vmatprep.subr.bf16.mxu0 %v14358_v36  ;;  %v14485_v45 = vcombine.low %v826_v30, %v830_v33 }
 0x10a   :  { %v822_v38 = vld [vmem:[#allocation2 + $0x13e0] sm:$0xff] }
 0x10b   :  { %v946_v41 = vld [vmem:[#allocation2 + $0x17c0] sm:$0xff]  ;;  %v14478_v46 = vcombine.high %v818_v37, %v822_v38  ;;  %9663 = vmatprep.subr.bf16.mxu1 %v14486_v42  ;;  %9623 = vmatpush1.bf16.msra.mxu0 %v14357_v44  ;;  %v14477_v54 = vcombine.low %v818_v37, %v822_v38 }
 0x10c   :  { %v950_v43 = vld [vmem:[#allocation2 + $0x17e0] sm:$0xff]  ;;  %9664 = vmatpush1.bf16.msra.mxu1 %v14485_v45 }
 0x10d   :  { %v810_v47 = vld [vmem:[#allocation2 + $0x1380] sm:$0xff]  ;;  %v14606_v52 = vcombine.high %v946_v41, %v950_v43  ;;  %9624 = vmatprep.subr.bf16.mxu0 %v14478_v46  ;;  %v14605_v55 = vcombine.low %v946_v41, %v950_v43 }
 0x10e   :  { %v814_v48 = vld [vmem:[#allocation2 + $0x13a0] sm:$0xff] }
 0x10f   :  { %v938_v50 = vld [vmem:[#allocation2 + $0x1780] sm:$0xff]  ;;  %v14470_v56 = vcombine.high %v810_v47, %v814_v48  ;;  %9665 = vmatprep.subr.bf16.mxu1 %v14606_v52  ;;  %9625 = vmatpush2.bf16.msra.mxu0 %v14477_v54  ;;  %v14469_v0 = vcombine.low %v810_v47, %v814_v48 }
 0x110   :  { %v942_v53 = vld [vmem:[#allocation2 + $0x17a0] sm:$0xff]  ;;  %9666 = vmatpush2.bf16.msra.mxu1 %v14605_v55 }
 0x111   :  { %v802_v57 = vld [vmem:[#allocation2 + $0x1340] sm:$0xff]  ;;  %v14598_v62 = vcombine.high %v938_v50, %v942_v53  ;;  %9626 = vmatprep.subr.bf16.mxu0 %v14470_v56  ;;  %v14597_v1 = vcombine.low %v938_v50, %v942_v53 }
 0x112   :  { %v806_v60 = vld [vmem:[#allocation2 + $0x1360] sm:$0xff] }
 0x113   :  { %v930_v61 = vld [vmem:[#allocation2 + $0x1740] sm:$0xff]  ;;  %v14462_v2 = vcombine.high %v802_v57, %v806_v60  ;;  %9667 = vmatprep.subr.bf16.mxu1 %v14598_v62  ;;  %9627 = vmatpush2.bf16.msra.mxu0 %v14469_v0  ;;  %v14461_v8 = vcombine.low %v802_v57, %v806_v60  ;;  %v148_v57 = vld [vmem:[%s17013_s0 + $0x50] sm:$0xff] }
 0x114   :  { %v934_v63 = vld [vmem:[#allocation2 + $0x1760] sm:$0xff]  ;;  %9668 = vmatpush2.bf16.msra.mxu1 %v14597_v1 }
 0x115   :  { %v794_v3 = vld [vmem:[#allocation2 + $0x1300] sm:$0xff]  ;;  %v14590_v6 = vcombine.high %v930_v61, %v934_v63  ;;  %9628 = vmatprep.subr.bf16.mxu0 %v14462_v2  ;;  %v14589_v9 = vcombine.low %v930_v61, %v934_v63 }
 0x116   :  { %v798_v4 = vld [vmem:[#allocation2 + $0x1320] sm:$0xff] }
 0x117   :  { %v922_v5 = vld [vmem:[#allocation2 + $0x1700] sm:$0xff]  ;;  %v14454_v10 = vcombine.high %v794_v3, %v798_v4  ;;  %9669 = vmatprep.subr.bf16.mxu1 %v14590_v6  ;;  %9629 = vmatpush2.bf16.msra.mxu0 %v14461_v8  ;;  %v14453_v17 = vcombine.low %v794_v3, %v798_v4  ;;  %v151_v4 = vld [vmem:[%s17013_s0 + $0x68] sm:$0xff]  ;;  %v16544_v6 = vpack.c.bf16 %v148_v57, %v148_v57  ;;  %v153_v8 = vld [vmem:[%s17013_s0 + $0x78] sm:$0xff] }
 0x118   :  { %v926_v7 = vld [vmem:[#allocation2 + $0x1720] sm:$0xff]  ;;  %9670 = vmatpush2.bf16.msra.mxu1 %v14589_v9 }
 0x119   :  { %v786_v11 = vld [vmem:[#allocation2 + $0x12c0] sm:$0xff]  ;;  %v14582_v14 = vcombine.high %v922_v5, %v926_v7  ;;  %9630 = vmatprep.subr.bf16.mxu0 %v14454_v10  ;;  %v14581_v18 = vcombine.low %v922_v5, %v926_v7 }
 0x11a   :  { %v790_v12 = vld [vmem:[#allocation2 + $0x12e0] sm:$0xff] }
 0x11b   :  { %v914_v13 = vld [vmem:[#allocation2 + $0x16c0] sm:$0xff]  ;;  %v14446_v19 = vcombine.high %v786_v11, %v790_v12  ;;  %9671 = vmatprep.subr.bf16.mxu1 %v14582_v14  ;;  %9631 = vmatpush2.bf16.msra.mxu0 %v14453_v17  ;;  %v14445_v26 = vcombine.low %v786_v11, %v790_v12  ;;  %v16549_v17 = vpack.c.bf16 %v151_v4, %v151_v4 }
 0x11c   :  { %v918_v15 = vld [vmem:[#allocation2 + $0x16e0] sm:$0xff]  ;;  %9672 = vmatpush2.bf16.msra.mxu1 %v14581_v18  ;;  %v16552_v18 = vpack.c.bf16 %v153_v8, %v153_v8 }
 0x11d   :  { %v778_v21 = vld [vmem:[#allocation2 + $0x1280] sm:$0xff]  ;;  %v14574_v24 = vcombine.high %v914_v13, %v918_v15  ;;  %9632 = vmatprep.subr.bf16.mxu0 %v14446_v19  ;;  %v14573_v27 = vcombine.low %v914_v13, %v918_v15 }
 0x11e   :  { %v782_v22 = vld [vmem:[#allocation2 + $0x12a0] sm:$0xff] }
 0x11f   :  { %v906_v23 = vld [vmem:[#allocation2 + $0x1680] sm:$0xff]  ;;  %v14438_v29 = vcombine.high %v778_v21, %v782_v22  ;;  %9673 = vmatprep.subr.bf16.mxu1 %v14574_v24  ;;  %9633 = vmatpush2.bf16.msra.mxu0 %v14445_v26  ;;  %v14437_v36 = vcombine.low %v778_v21, %v782_v22 }
 0x120   :  { %v910_v25 = vld [vmem:[#allocation2 + $0x16a0] sm:$0xff]  ;;  %9674 = vmatpush2.bf16.msra.mxu1 %v14573_v27 }
 0x121   :  { %v770_v30 = vld [vmem:[#allocation2 + $0x1240] sm:$0xff]  ;;  %v14566_v34 = vcombine.high %v906_v23, %v910_v25  ;;  %9634 = vmatprep.subr.bf16.mxu0 %v14438_v29  ;;  %v14565_v37 = vcombine.low %v906_v23, %v910_v25 }
 0x122   :  { %v774_v32 = vld [vmem:[#allocation2 + $0x1260] sm:$0xff] }
 0x123   :  { %v898_v33 = vld [vmem:[#allocation2 + $0x1640] sm:$0xff]  ;;  %v14430_v38 = vcombine.high %v770_v30, %v774_v32  ;;  %9675 = vmatprep.subr.bf16.mxu1 %v14566_v34  ;;  %9635 = vmatpush2.bf16.msra.mxu0 %v14437_v36  ;;  %v14429_v46 = vcombine.low %v770_v30, %v774_v32 }
 0x124   :  { %v902_v35 = vld [vmem:[#allocation2 + $0x1660] sm:$0xff]  ;;  %9676 = vmatpush2.bf16.msra.mxu1 %v14565_v37 }
 0x125   :  { %v762_v41 = vld [vmem:[#allocation2 + $0x1200] sm:$0xff]  ;;  %v14558_v44 = vcombine.high %v898_v33, %v902_v35  ;;  %9636 = vmatprep.subr.bf16.mxu0 %v14430_v38  ;;  %v14557_v47 = vcombine.low %v898_v33, %v902_v35 }
 0x126   :  { %v766_v42 = vld [vmem:[#allocation2 + $0x1220] sm:$0xff] }
 0x127   :  { %v890_v43 = vld [vmem:[#allocation2 + $0x1600] sm:$0xff]  ;;  %v14422_v48 = vcombine.high %v762_v41, %v766_v42  ;;  %9677 = vmatprep.subr.bf16.mxu1 %v14558_v44  ;;  %9637 = vmatpush2.bf16.msra.mxu0 %v14429_v46  ;;  %v14421_v60 = vcombine.low %v762_v41, %v766_v42 }
 0x128   :  { %v894_v45 = vld [vmem:[#allocation2 + $0x1620] sm:$0xff]  ;;  %9678 = vmatpush2.bf16.msra.mxu1 %v14557_v47 }
 0x129   :  { %v1010_v50 = vld [vmem:[#allocation2 + $0x19c0] sm:$0xff]  ;;  %v14550_v54 = vcombine.high %v890_v43, %v894_v45  ;;  %9638 = vmatprep.subr.bf16.mxu0 %v14422_v48  ;;  %v14549_v62 = vcombine.low %v890_v43, %v894_v45 }
 0x12a   :  { %v1014_v52 = vld [vmem:[#allocation2 + $0x19e0] sm:$0xff] }
 0x12b   :  { %v1138_v53 = vld [vmem:[#allocation2 + $0x1dc0] sm:$0xff]  ;;  %v14670_v63 = vcombine.high %v1010_v50, %v1014_v52  ;;  %9679 = vmatprep.subr.bf16.mxu1 %v14550_v54  ;;  %9639 = vmatpush2.bf16.msra.mxu0 %v14421_v60  ;;  %v14669_v7 = vcombine.low %v1010_v50, %v1014_v52 }
 0x12c   :  { %v146_v55 = vld [vmem:[%s17013_s0 + $0x40] sm:$0xff]  ;;  %9680 = vmatpush2.bf16.msra.mxu1 %v14549_v62 }
 0x12d   :  { %v1142_v56 = vld [vmem:[#allocation2 + $0x1de0] sm:$0xff]  ;;  %v16542_v5 = vpack.c.bf16 %v146_v55, %v146_v55  ;;  %9690 = vmatprep.subr.bf16.mxu0 %v14670_v63 }
 0x12e   :  { %v1002_v61 = vld [vmem:[#allocation2 + $0x1980] sm:$0xff]  ;;  %v14798_v3 = vcombine.high %v1138_v53, %v1142_v56  ;;  %v14797_v9 = vcombine.low %v1138_v53, %v1142_v56 }
 0x12f   :  { %v1006_v0 = vld [vmem:[#allocation2 + $0x19a0] sm:$0xff]  ;;  %9641 = vmatmul.mubr.bf16.vlgmr.msra.gmra.mxu0 %v16542_v5  ;;  %9682 = vmatmul.mubr.bf16.vlgmr.msra.gmra.mxu1 %v16544_v6 }
 0x130   :  { %v1130_v1 = vld [vmem:[#allocation2 + $0x1d80] sm:$0xff]  ;;  %v14662_v10 = vcombine.high %v1002_v61, %v1006_v0  ;;  %9731 = vmatprep.subr.bf16.mxu1 %v14798_v3  ;;  %9691 = vmatpush1.bf16.msra.mxu0 %v14669_v7  ;;  %v14661_v19 = vcombine.low %v1002_v61, %v1006_v0 }
 0x131   :  { %v1134_v2 = vld [vmem:[#allocation2 + $0x1da0] sm:$0xff]  ;;  %9732 = vmatpush1.bf16.msra.mxu1 %v14797_v9  ;;  %9722 = vmatprep.mubr.bf16.mxu0 %v16549_v17 }
 0x132   :  { %v994_v11 = vld [vmem:[#allocation2 + $0x1940] sm:$0xff]  ;;  %v14790_v12 = vcombine.high %v1130_v1, %v1134_v2  ;;  %9692 = vmatprep.subr.bf16.mxu0 %v14662_v10  ;;  %v14789_v21 = vcombine.low %v1130_v1, %v1134_v2  ;;  %9763 = vmatprep.mubr.bf16.mxu1 %v16552_v18 }
 0x133   :  { %v998_v13 = vld [vmem:[#allocation2 + $0x1960] sm:$0xff] }
 0x134   :  { %v1122_v14 = vld [vmem:[#allocation2 + $0x1d40] sm:$0xff]  ;;  %v14654_v22 = vcombine.high %v994_v11, %v998_v13  ;;  %9733 = vmatprep.subr.bf16.mxu1 %v14790_v12  ;;  %9693 = vmatpush1.bf16.msra.mxu0 %v14661_v19  ;;  %v14653_v29 = vcombine.low %v994_v11, %v998_v13 }
 0x135   :  { %v1126_v15 = vld [vmem:[#allocation2 + $0x1d60] sm:$0xff]  ;;  %9734 = vmatpush1.bf16.msra.mxu1 %v14789_v21 }
 0x136   :  { %v986_v23 = vld [vmem:[#allocation2 + $0x1900] sm:$0xff]  ;;  %v14782_v26 = vcombine.high %v1122_v14, %v1126_v15  ;;  %9694 = vmatprep.subr.bf16.mxu0 %v14654_v22  ;;  %v14781_v30 = vcombine.low %v1122_v14, %v1126_v15 }
 0x137   :  { %v990_v24 = vld [vmem:[#allocation2 + $0x1920] sm:$0xff] }
 0x138   :  { %v1114_v25 = vld [vmem:[#allocation2 + $0x1d00] sm:$0xff]  ;;  %v14646_v32 = vcombine.high %v986_v23, %v990_v24  ;;  %9735 = vmatprep.subr.bf16.mxu1 %v14782_v26  ;;  %9695 = vmatpush1.bf16.msra.mxu0 %v14653_v29  ;;  %v14645_v38 = vcombine.low %v986_v23, %v990_v24 }
 0x139   :  { %v1118_v27 = vld [vmem:[#allocation2 + $0x1d20] sm:$0xff]  ;;  %9736 = vmatpush1.bf16.msra.mxu1 %v14781_v30 }
 0x13a   :  { %v978_v33 = vld [vmem:[#allocation2 + $0x18c0] sm:$0xff]  ;;  %v14774_v36 = vcombine.high %v1114_v25, %v1118_v27  ;;  %9696 = vmatprep.subr.bf16.mxu0 %v14646_v32  ;;  %v14773_v41 = vcombine.low %v1114_v25, %v1118_v27 }
 0x13b   :  { %v982_v34 = vld [vmem:[#allocation2 + $0x18e0] sm:$0xff] }
 0x13c   :  { %v1106_v35 = vld [vmem:[#allocation2 + $0x1cc0] sm:$0xff]  ;;  %v14638_v42 = vcombine.high %v978_v33, %v982_v34  ;;  %9737 = vmatprep.subr.bf16.mxu1 %v14774_v36  ;;  %9697 = vmatpush1.bf16.msra.mxu0 %v14645_v38  ;;  %v14637_v48 = vcombine.low %v978_v33, %v982_v34 }
 0x13d   :  { %v1110_v37 = vld [vmem:[#allocation2 + $0x1ce0] sm:$0xff]  ;;  %9738 = vmatpush1.bf16.msra.mxu1 %v14773_v41 }
 0x13e   :  { %v970_v43 = vld [vmem:[#allocation2 + $0x1880] sm:$0xff]  ;;  %v14766_v46 = vcombine.high %v1106_v35, %v1110_v37  ;;  %9698 = vmatprep.subr.bf16.mxu0 %v14638_v42  ;;  %v14765_v50 = vcombine.low %v1106_v35, %v1110_v37 }
 0x13f   :  { %v974_v44 = vld [vmem:[#allocation2 + $0x18a0] sm:$0xff] }
 0x140   :  { %v1098_v45 = vld [vmem:[#allocation2 + $0x1c80] sm:$0xff]  ;;  %v14630_v52 = vcombine.high %v970_v43, %v974_v44  ;;  %9739 = vmatprep.subr.bf16.mxu1 %v14766_v46  ;;  %9699 = vmatpush1.bf16.msra.mxu0 %v14637_v48  ;;  %v14629_v60 = vcombine.low %v970_v43, %v974_v44 }
 0x141   :  { %v1102_v47 = vld [vmem:[#allocation2 + $0x1ca0] sm:$0xff]  ;;  %9740 = vmatpush1.bf16.msra.mxu1 %v14765_v50 }
 0x142   :  { %v962_v53 = vld [vmem:[#allocation2 + $0x1840] sm:$0xff]  ;;  %v14758_v56 = vcombine.high %v1098_v45, %v1102_v47  ;;  %9700 = vmatprep.subr.bf16.mxu0 %v14630_v52  ;;  %v14757_v61 = vcombine.low %v1098_v45, %v1102_v47 }
 0x143   :  { %v966_v54 = vld [vmem:[#allocation2 + $0x1860] sm:$0xff] }
 0x144   :  { %v1090_v55 = vld [vmem:[#allocation2 + $0x1c40] sm:$0xff]  ;;  %v14622_v62 = vcombine.high %v962_v53, %v966_v54  ;;  %9741 = vmatprep.subr.bf16.mxu1 %v14758_v56  ;;  %9701 = vmatpush1.bf16.msra.mxu0 %v14629_v60  ;;  %v14621_v4 = vcombine.low %v962_v53, %v966_v54 }
 0x145   :  { %v1094_v57 = vld [vmem:[#allocation2 + $0x1c60] sm:$0xff]  ;;  %9742 = vmatpush1.bf16.msra.mxu1 %v14757_v61 }
 0x146   :  { %v954_v63 = vld [vmem:[#allocation2 + $0x1800] sm:$0xff]  ;;  %v14750_v2 = vcombine.high %v1090_v55, %v1094_v57  ;;  %9702 = vmatprep.subr.bf16.mxu0 %v14622_v62  ;;  %v14749_v7 = vcombine.low %v1090_v55, %v1094_v57 }
 0x147   :  { %v958_v0 = vld [vmem:[#allocation2 + $0x1820] sm:$0xff] }
 0x148   :  { %v1082_v1 = vld [vmem:[#allocation2 + $0x1c00] sm:$0xff]  ;;  %v14614_v8 = vcombine.high %v954_v63, %v958_v0  ;;  %9743 = vmatprep.subr.bf16.mxu1 %v14750_v2  ;;  %9703 = vmatpush1.bf16.msra.mxu0 %v14621_v4  ;;  %v14613_v14 = vcombine.low %v954_v63, %v958_v0 }
 0x149   :  { %v1086_v3 = vld [vmem:[#allocation2 + $0x1c20] sm:$0xff]  ;;  %9744 = vmatpush1.bf16.msra.mxu1 %v14749_v7 }
 0x14a   :  { %v1074_v9 = vld [vmem:[#allocation2 + $0x1bc0] sm:$0xff]  ;;  %v14742_v12 = vcombine.high %v1082_v1, %v1086_v3  ;;  %9704 = vmatprep.subr.bf16.mxu0 %v14614_v8  ;;  %v14741_v15 = vcombine.low %v1082_v1, %v1086_v3 }
 0x14b   :  { %v1078_v10 = vld [vmem:[#allocation2 + $0x1be0] sm:$0xff] }
 0x14c   :  { %v1202_v11 = vld [vmem:[#allocation2 + $0x1fc0] sm:$0xff]  ;;  %v14734_v19 = vcombine.high %v1074_v9, %v1078_v10  ;;  %9745 = vmatprep.subr.bf16.mxu1 %v14742_v12  ;;  %9705 = vmatpush1.bf16.msra.mxu0 %v14613_v14  ;;  %v14733_v26 = vcombine.low %v1074_v9, %v1078_v10 }
 0x14d   :  { %v1206_v13 = vld [vmem:[#allocation2 + $0x1fe0] sm:$0xff]  ;;  %9746 = vmatpush1.bf16.msra.mxu1 %v14741_v15 }
 0x14e   :  { %v1066_v21 = vld [vmem:[#allocation2 + $0x1b80] sm:$0xff]  ;;  %v14862_v24 = vcombine.high %v1202_v11, %v1206_v13  ;;  %9706 = vmatprep.subr.bf16.mxu0 %v14734_v19  ;;  %v14861_v27 = vcombine.low %v1202_v11, %v1206_v13  ;;  %v1724_v13 = vlaneseq }
 0x14f   :  { %v1070_v22 = vld [vmem:[#allocation2 + $0x1ba0] sm:$0xff] }
 0x150   :  { %v1194_v23 = vld [vmem:[#allocation2 + $0x1f80] sm:$0xff]  ;;  %v14726_v29 = vcombine.high %v1066_v21, %v1070_v22  ;;  %9747 = vmatprep.subr.bf16.mxu1 %v14862_v24  ;;  %9707 = vmatpush2.bf16.msra.mxu0 %v14733_v26  ;;  %v14725_v36 = vcombine.low %v1066_v21, %v1070_v22  ;;  %v16557_v26 = vshrl.u32 %v1724_v13, 7 }
 0x151   :  { %v1198_v25 = vld [vmem:[#allocation2 + $0x1fa0] sm:$0xff]  ;;  %9748 = vmatpush2.bf16.msra.mxu1 %v14861_v27 }
 0x152   :  { %v1058_v30 = vld [vmem:[#allocation2 + $0x1b40] sm:$0xff]  ;;  %v14854_v34 = vcombine.high %v1194_v23, %v1198_v25  ;;  %9708 = vmatprep.subr.bf16.mxu0 %v14726_v29  ;;  %v14853_v37 = vcombine.low %v1194_v23, %v1198_v25 }
 0x153   :  { %v1062_v32 = vld [vmem:[#allocation2 + $0x1b60] sm:$0xff] }
 0x154   :  { %v1186_v33 = vld [vmem:[#allocation2 + $0x1f40] sm:$0xff]  ;;  %v14718_v38 = vcombine.high %v1058_v30, %v1062_v32  ;;  %9749 = vmatprep.subr.bf16.mxu1 %v14854_v34  ;;  %9709 = vmatpush2.bf16.msra.mxu0 %v14725_v36  ;;  %v14717_v46 = vcombine.low %v1058_v30, %v1062_v32 }
 0x155   :  { %v1190_v35 = vld [vmem:[#allocation2 + $0x1f60] sm:$0xff]  ;;  %9750 = vmatpush2.bf16.msra.mxu1 %v14853_v37  ;;  %v1726_v37 = vsub.s32 0, %v16557_v26 }
 0x156   :  { %v1050_v41 = vld [vmem:[#allocation2 + $0x1b00] sm:$0xff]  ;;  %v14846_v44 = vcombine.high %v1186_v33, %v1190_v35  ;;  %9710 = vmatprep.subr.bf16.mxu0 %v14718_v38  ;;  %v14845_v47 = vcombine.low %v1186_v33, %v1190_v35 }
 0x157   :  { %v1054_v42 = vld [vmem:[#allocation2 + $0x1b20] sm:$0xff] }
 0x158   :  { %v1178_v43 = vld [vmem:[#allocation2 + $0x1f00] sm:$0xff]  ;;  %v14710_v48 = vcombine.high %v1050_v41, %v1054_v42  ;;  %9751 = vmatprep.subr.bf16.mxu1 %v14846_v44  ;;  %9711 = vmatpush2.bf16.msra.mxu0 %v14717_v46  ;;  %v14709_v56 = vcombine.low %v1050_v41, %v1054_v42  ;;  %v1730_v46 = vsub.s32 1, %v16557_v26 }
 0x159   :  { %v1182_v45 = vld [vmem:[#allocation2 + $0x1f20] sm:$0xff]  ;;  %9752 = vmatpush2.bf16.msra.mxu1 %v14845_v47 }
 0x15a   :  { %v1042_v50 = vld [vmem:[#allocation2 + $0x1ac0] sm:$0xff]  ;;  %v14838_v54 = vcombine.high %v1178_v43, %v1182_v45  ;;  %9712 = vmatprep.subr.bf16.mxu0 %v14710_v48  ;;  %v14837_v57 = vcombine.low %v1178_v43, %v1182_v45  ;;  %v152_v43 = vld [vmem:[%s17013_s0 + $0x70] sm:$0xff] }
 0x15b   :  { %v1046_v52 = vld [vmem:[#allocation2 + $0x1ae0] sm:$0xff] }
 0x15c   :  { %v1170_v53 = vld [vmem:[#allocation2 + $0x1ec0] sm:$0xff]  ;;  %v14702_v60 = vcombine.high %v1042_v50, %v1046_v52  ;;  %9753 = vmatprep.subr.bf16.mxu1 %v14838_v54  ;;  %9713 = vmatpush2.bf16.msra.mxu0 %v14709_v56  ;;  %v14701_v2 = vcombine.low %v1042_v50, %v1046_v52  ;;  %v155_v54 = vld [vmem:[%s17013_s0 + $0x88] sm:$0xff]  ;;  %v16574_v56 = vpack.c.bf16 %v152_v43, %v152_v43 }
 0x15d   :  { %v1174_v55 = vld [vmem:[#allocation2 + $0x1ee0] sm:$0xff]  ;;  %9754 = vmatpush2.bf16.msra.mxu1 %v14837_v57 }
 0x15e   :  { %v1034_v61 = vld [vmem:[#allocation2 + $0x1a80] sm:$0xff]  ;;  %v14830_v0 = vcombine.high %v1170_v53, %v1174_v55  ;;  %9714 = vmatprep.subr.bf16.mxu0 %v14702_v60  ;;  %v14829_v3 = vcombine.low %v1170_v53, %v1174_v55  ;;  %v157_v60 = vld [vmem:[%s17013_s0 + $0x98] sm:$0xff] }
 0x15f   :  { %v1038_v62 = vld [vmem:[#allocation2 + $0x1aa0] sm:$0xff] }
 0x160   :  { %v1162_v63 = vld [vmem:[#allocation2 + $0x1e80] sm:$0xff]  ;;  %v14694_v4 = vcombine.high %v1034_v61, %v1038_v62  ;;  %9755 = vmatprep.subr.bf16.mxu1 %v14830_v0  ;;  %9715 = vmatpush2.bf16.msra.mxu0 %v14701_v2  ;;  %v14693_v12 = vcombine.low %v1034_v61, %v1038_v62 }
 0x161   :  { %v1166_v1 = vld [vmem:[#allocation2 + $0x1ea0] sm:$0xff]  ;;  %9756 = vmatpush2.bf16.msra.mxu1 %v14829_v3  ;;  %v16581_v3 = vpack.c.bf16 %v155_v54, %v155_v54 }
 0x162   :  { %v1026_v7 = vld [vmem:[#allocation2 + $0x1a40] sm:$0xff]  ;;  %v14822_v8 = vcombine.high %v1162_v63, %v1166_v1  ;;  %9716 = vmatprep.subr.bf16.mxu0 %v14694_v4  ;;  %v14821_v14 = vcombine.low %v1162_v63, %v1166_v1 }
 0x163   :  { %v1030_v9 = vld [vmem:[#allocation2 + $0x1a60] sm:$0xff] }
 0x164   :  { %v1154_v10 = vld [vmem:[#allocation2 + $0x1e40] sm:$0xff]  ;;  %v14686_v15 = vcombine.high %v1026_v7, %v1030_v9  ;;  %9757 = vmatprep.subr.bf16.mxu1 %v14822_v8  ;;  %9717 = vmatpush2.bf16.msra.mxu0 %v14693_v12  ;;  %v14685_v25 = vcombine.low %v1026_v7, %v1030_v9  ;;  %v16584_v9 = vpack.c.bf16 %v157_v60, %v157_v60 }
 0x165   :  { %v1158_v11 = vld [vmem:[#allocation2 + $0x1e60] sm:$0xff]  ;;  %9758 = vmatpush2.bf16.msra.mxu1 %v14821_v14 }
 0x166   :  { %v14814_v19 = vcombine.high %v1154_v10, %v1158_v11  ;;  %v1018_v21 = vld [vmem:[#allocation2 + $0x1a00] sm:$0xff]  ;;  %9718 = vmatprep.subr.bf16.mxu0 %v14686_v15  ;;  %v14813_v27 = vcombine.low %v1154_v10, %v1158_v11 }
 0x167   :  { %v1022_v22 = vld [vmem:[#allocation2 + $0x1a20] sm:$0xff] }
 0x168   :  { %v1146_v23 = vld [vmem:[#allocation2 + $0x1e00] sm:$0xff]  ;;  %v14678_v29 = vcombine.high %v1018_v21, %v1022_v22  ;;  %9759 = vmatprep.subr.bf16.mxu1 %v14814_v19  ;;  %9719 = vmatpush2.bf16.msra.mxu0 %v14685_v25  ;;  %v14677_v36 = vcombine.low %v1018_v21, %v1022_v22 }
 0x169   :  { %v1150_v24 = vld [vmem:[#allocation2 + $0x1e20] sm:$0xff]  ;;  %9760 = vmatpush2.bf16.msra.mxu1 %v14813_v27 }
 0x16a   :  { %v14806_v30 = vcombine.high %v1146_v23, %v1150_v24  ;;  %v1266_v32 = vld [vmem:[#allocation2 + $0x21c0] sm:$0xff]  ;;  %9720 = vmatprep.subr.bf16.mxu0 %v14678_v29  ;;  %v14805_v41 = vcombine.low %v1146_v23, %v1150_v24 }
 0x16b   :  { %v1270_v33 = vld [vmem:[#allocation2 + $0x21e0] sm:$0xff] }
 0x16c   :  { %v1394_v34 = vld [vmem:[#allocation2 + $0x25c0] sm:$0xff]  ;;  %v14926_v44 = vcombine.high %v1266_v32, %v1270_v33  ;;  %9761 = vmatprep.subr.bf16.mxu1 %v14806_v30  ;;  %9721 = vmatpush2.bf16.msra.mxu0 %v14677_v36  ;;  %v14925_v57 = vcombine.low %v1266_v32, %v1270_v33 }
 0x16d   :  { %v1398_v35 = vld [vmem:[#allocation2 + $0x25e0] sm:$0xff]  ;;  %9762 = vmatpush2.bf16.msra.mxu1 %v14805_v41  ;;  %v9519_v11 = vpop.f32.mrf.mxu1 }
 0x16e   :  { %v150_v38 = vld [vmem:[%s17013_s0 + $0x60] sm:$0xff]  ;;  %v15054_v45 = vcombine.high %v1394_v34, %v1398_v35  ;;  %9772 = vmatprep.subr.bf16.mxu0 %v14926_v44  ;;  %v15053_v61 = vcombine.low %v1394_v34, %v1398_v35  ;;  %v9478_v4 = vpop.f32.mrf.mxu0 }
 0x16f   :  { %v1722_v42 = vld [vmem:[#allocation4] sm:$0xff]  ;;  %v16567_v50 = vpack.c.bf16 %v150_v38, %v150_v38  ;;  %v9521_v22 = vpop.f32.mrf.mxu1 }
 0x170   :  { %v1258_v47 = vld [vmem:[#allocation2 + $0x2180] sm:$0xff]  ;;  %v1727_v55 = vrot.slane %v1722_v42, %v1726_v37  ;;  %9813 = vmatprep.subr.bf16.mxu1 %v15054_v45  ;;  %v1731_v63 = vrot.slane %v1722_v42, %v1730_v46  ;;  %9764 = vmatmul.mubr.bf16.vlgmr.msra.gmra.mxu1 %v16574_v56  ;;  %v9480_v13 = vpop.f32.mrf.mxu0 }
 0x171   :  { %v1262_v48 = vld [vmem:[#allocation2 + $0x21a0] sm:$0xff]  ;;  %9723 = vmatmul.mubr.bf16.vlgmr.msra.gmra.mxu0 %v16567_v50  ;;  %9814 = vmatpush1.bf16.msra.mxu1 %v15053_v61  ;;  %v9523_v33 = vpop.f32.mrf.mxu1 }
 0x172   :  { %v1386_v52 = vld [vmem:[#allocation2 + $0x2580] sm:$0xff]  ;;  %v14918_v62 = vcombine.high %v1258_v47, %v1262_v48  ;;  %v9479_v10 = vadd.f32 %v9478_v4, %v1727_v55  ;;  %9773 = vmatpush1.bf16.msra.mxu0 %v14925_v57  ;;  %v14917_v12 = vcombine.low %v1258_v47, %v1262_v48  ;;  %v9481_v21 = vadd.f32 %v9480_v13, %v1731_v63  ;;  %v9482_v27 = vpop.f32.mrf.mxu0 }
 0x173   :  { %v1390_v53 = vld [vmem:[#allocation2 + $0x25a0] sm:$0xff]  ;;  %9804 = vmatprep.mubr.bf16.mxu0 %v16581_v3  ;;  %9845 = vmatprep.mubr.bf16.mxu1 %v16584_v9  ;;  %v9524_v41 = vpop.f32.mrf.mxu1 }
 0x174   :  { %v15046_v0 = vcombine.high %v1386_v52, %v1390_v53  ;;  %v1250_v1 = vld [vmem:[#allocation2 + $0x2140] sm:$0xff]  ;;  %9774 = vmatprep.subr.bf16.mxu0 %v14918_v62  ;;  %v15045_v14 = vcombine.low %v1386_v52, %v1390_v53  ;;  %v16587_v19 = vadd.f32 %v9519_v11, %v9479_v10  ;;  %v16591_v32 = vadd.f32 %v9521_v22, %v9481_v21  ;;  %v9483_v35 = vpop.f32.mrf.mxu0 }
 0x175   :  { %v1254_v2 = vld [vmem:[#allocation2 + $0x2160] sm:$0xff] }
 0x176   :  { %v1378_v7 = vld [vmem:[#allocation2 + $0x2540] sm:$0xff]  ;;  %v14910_v15 = vcombine.high %v1250_v1, %v1254_v2  ;;  %9815 = vmatprep.subr.bf16.mxu1 %v15046_v0  ;;  %9775 = vmatpush1.bf16.msra.mxu0 %v14917_v12  ;;  %v14909_v34 = vcombine.low %v1250_v1, %v1254_v2 }
 0x177   :  { %v1382_v8 = vld [vmem:[#allocation2 + $0x2560] sm:$0xff]  ;;  %9816 = vmatpush1.bf16.msra.mxu1 %v15045_v14 }
 0x178   :  { %v15038_v23 = vcombine.high %v1378_v7, %v1382_v8  ;;  %v1242_v24 = vld [vmem:[#allocation2 + $0x2100] sm:$0xff]  ;;  %9776 = vmatprep.subr.bf16.mxu0 %v14910_v15  ;;  %v15037_v36 = vcombine.low %v1378_v7, %v1382_v8 }
 0x179   :  { %v1246_v25 = vld [vmem:[#allocation2 + $0x2120] sm:$0xff] }
 0x17a   :  { %v1370_v29 = vld [vmem:[#allocation2 + $0x2500] sm:$0xff]  ;;  %v14902_v38 = vcombine.high %v1242_v24, %v1246_v25  ;;  %9817 = vmatprep.subr.bf16.mxu1 %v15038_v23  ;;  %9777 = vmatpush1.bf16.msra.mxu0 %v14909_v34  ;;  %v14901_v48 = vcombine.low %v1242_v24, %v1246_v25 }
 0x17b   :  { %v1374_v30 = vld [vmem:[#allocation2 + $0x2520] sm:$0xff]  ;;  %9818 = vmatpush1.bf16.msra.mxu1 %v15037_v36 }
 0x17c   :  { %v15030_v42 = vcombine.high %v1370_v29, %v1374_v30  ;;  %v1234_v43 = vld [vmem:[#allocation2 + $0x20c0] sm:$0xff]  ;;  %9778 = vmatprep.subr.bf16.mxu0 %v14902_v38  ;;  %v15029_v52 = vcombine.low %v1370_v29, %v1374_v30 }
 0x17d   :  { %v1238_v44 = vld [vmem:[#allocation2 + $0x20e0] sm:$0xff] }
 0x17e   :  { %v1362_v45 = vld [vmem:[#allocation2 + $0x24c0] sm:$0xff]  ;;  %v14894_v53 = vcombine.high %v1234_v43, %v1238_v44  ;;  %9819 = vmatprep.subr.bf16.mxu1 %v15030_v42  ;;  %9779 = vmatpush1.bf16.msra.mxu0 %v14901_v48  ;;  %v14893_v62 = vcombine.low %v1234_v43, %v1238_v44 }
 0x17f   :  { %v1366_v47 = vld [vmem:[#allocation2 + $0x24e0] sm:$0xff]  ;;  %9820 = vmatpush1.bf16.msra.mxu1 %v15029_v52 }
 0x180   :  { %v15022_v54 = vcombine.high %v1362_v45, %v1366_v47  ;;  %v1226_v55 = vld [vmem:[#allocation2 + $0x2080] sm:$0xff]  ;;  %9780 = vmatprep.subr.bf16.mxu0 %v14894_v53  ;;  %v15021_v63 = vcombine.low %v1362_v45, %v1366_v47 }
 0x181   :  { %v1230_v57 = vld [vmem:[#allocation2 + $0x20a0] sm:$0xff] }
 0x182   :  { %v1354_v60 = vld [vmem:[#allocation2 + $0x2480] sm:$0xff]  ;;  %v14886_v0 = vcombine.high %v1226_v55, %v1230_v57  ;;  %9821 = vmatprep.subr.bf16.mxu1 %v15022_v54  ;;  %9781 = vmatpush1.bf16.msra.mxu0 %v14893_v62  ;;  %v14885_v10 = vcombine.low %v1226_v55, %v1230_v57 }
 0x183   :  { %v1358_v61 = vld [vmem:[#allocation2 + $0x24a0] sm:$0xff]  ;;  %9822 = vmatpush1.bf16.msra.mxu1 %v15021_v63 }
 0x184   :  { %v15014_v1 = vcombine.high %v1354_v60, %v1358_v61  ;;  %v1218_v2 = vld [vmem:[#allocation2 + $0x2040] sm:$0xff]  ;;  %9782 = vmatprep.subr.bf16.mxu0 %v14886_v0  ;;  %v15013_v11 = vcombine.low %v1354_v60, %v1358_v61 }
 0x185   :  { %v1222_v4 = vld [vmem:[#allocation2 + $0x2060] sm:$0xff] }
 0x186   :  { %v1346_v7 = vld [vmem:[#allocation2 + $0x2440] sm:$0xff]  ;;  %v14878_v12 = vcombine.high %v1218_v2, %v1222_v4  ;;  %9823 = vmatprep.subr.bf16.mxu1 %v15014_v1  ;;  %9783 = vmatpush1.bf16.msra.mxu0 %v14885_v10  ;;  %v14877_v23 = vcombine.low %v1218_v2, %v1222_v4 }
 0x187   :  { %v1350_v8 = vld [vmem:[#allocation2 + $0x2460] sm:$0xff]  ;;  %9824 = vmatpush1.bf16.msra.mxu1 %v15013_v11 }
 0x188   :  { %v15006_v13 = vcombine.high %v1346_v7, %v1350_v8  ;;  %v1210_v14 = vld [vmem:[#allocation2 + $0x2000] sm:$0xff]  ;;  %9784 = vmatprep.subr.bf16.mxu0 %v14878_v12  ;;  %v15005_v24 = vcombine.low %v1346_v7, %v1350_v8 }
 0x189   :  { %v1214_v15 = vld [vmem:[#allocation2 + $0x2020] sm:$0xff] }
 0x18a   :  { %v1338_v21 = vld [vmem:[#allocation2 + $0x2400] sm:$0xff]  ;;  %v14870_v25 = vcombine.high %v1210_v14, %v1214_v15  ;;  %9825 = vmatprep.subr.bf16.mxu1 %v15006_v13  ;;  %9785 = vmatpush1.bf16.msra.mxu0 %v14877_v23  ;;  %v14869_v35 = vcombine.low %v1210_v14, %v1214_v15 }
 0x18b   :  { %v1342_v22 = vld [vmem:[#allocation2 + $0x2420] sm:$0xff]  ;;  %9826 = vmatpush1.bf16.msra.mxu1 %v15005_v24 }
 0x18c   :  { %v14998_v27 = vcombine.high %v1338_v21, %v1342_v22  ;;  %v1330_v29 = vld [vmem:[#allocation2 + $0x23c0] sm:$0xff]  ;;  %9786 = vmatprep.subr.bf16.mxu0 %v14870_v25  ;;  %v14997_v36 = vcombine.low %v1338_v21, %v1342_v22 }
 0x18d   :  { %v1334_v30 = vld [vmem:[#allocation2 + $0x23e0] sm:$0xff] }
 0x18e   :  { %v1458_v33 = vld [vmem:[#allocation2 + $0x27c0] sm:$0xff]  ;;  %v14990_v38 = vcombine.high %v1330_v29, %v1334_v30  ;;  %9827 = vmatprep.subr.bf16.mxu1 %v14998_v27  ;;  %9787 = vmatpush1.bf16.msra.mxu0 %v14869_v35  ;;  %v14989_v47 = vcombine.low %v1330_v29, %v1334_v30 }
 0x18f   :  { %v1462_v34 = vld [vmem:[#allocation2 + $0x27e0] sm:$0xff]  ;;  %9828 = vmatpush1.bf16.msra.mxu1 %v14997_v36 }
 0x190   :  { %v15118_v41 = vcombine.high %v1458_v33, %v1462_v34  ;;  %v1322_v42 = vld [vmem:[#allocation2 + $0x2380] sm:$0xff]  ;;  %9788 = vmatprep.subr.bf16.mxu0 %v14990_v38  ;;  %v15117_v48 = vcombine.low %v1458_v33, %v1462_v34 }
 0x191   :  { %v1326_v43 = vld [vmem:[#allocation2 + $0x23a0] sm:$0xff] }
 0x192   :  { %v1450_v44 = vld [vmem:[#allocation2 + $0x2780] sm:$0xff]  ;;  %v14982_v52 = vcombine.high %v1322_v42, %v1326_v43  ;;  %9829 = vmatprep.subr.bf16.mxu1 %v15118_v41  ;;  %9789 = vmatpush2.bf16.msra.mxu0 %v14989_v47  ;;  %v14981_v61 = vcombine.low %v1322_v42, %v1326_v43 }
 0x193   :  { %v1454_v45 = vld [vmem:[#allocation2 + $0x27a0] sm:$0xff]  ;;  %9830 = vmatpush2.bf16.msra.mxu1 %v15117_v48 }
 0x194   :  { %v15110_v53 = vcombine.high %v1450_v44, %v1454_v45  ;;  %v1314_v54 = vld [vmem:[#allocation2 + $0x2340] sm:$0xff]  ;;  %9790 = vmatprep.subr.bf16.mxu0 %v14982_v52  ;;  %v15109_v62 = vcombine.low %v1450_v44, %v1454_v45 }
 0x195   :  { %v1318_v55 = vld [vmem:[#allocation2 + $0x2360] sm:$0xff] }
 0x196   :  { %v1442_v57 = vld [vmem:[#allocation2 + $0x2740] sm:$0xff]  ;;  %v14974_v63 = vcombine.high %v1314_v54, %v1318_v55  ;;  %9831 = vmatprep.subr.bf16.mxu1 %v15110_v53  ;;  %9791 = vmatpush2.bf16.msra.mxu0 %v14981_v61  ;;  %v14973_v8 = vcombine.low %v1314_v54, %v1318_v55 }
 0x197   :  { %v1446_v60 = vld [vmem:[#allocation2 + $0x2760] sm:$0xff]  ;;  %9832 = vmatpush2.bf16.msra.mxu1 %v15109_v62 }
 0x198   :  { %v15102_v0 = vcombine.high %v1442_v57, %v1446_v60  ;;  %v1306_v1 = vld [vmem:[#allocation2 + $0x2300] sm:$0xff]  ;;  %9792 = vmatprep.subr.bf16.mxu0 %v14974_v63  ;;  %v15101_v10 = vcombine.low %v1442_v57, %v1446_v60 }
 0x199   :  { %v1310_v2 = vld [vmem:[#allocation2 + $0x2320] sm:$0xff] }
 0x19a   :  { %v1434_v4 = vld [vmem:[#allocation2 + $0x2700] sm:$0xff]  ;;  %v14966_v11 = vcombine.high %v1306_v1, %v1310_v2  ;;  %9833 = vmatprep.subr.bf16.mxu1 %v15102_v0  ;;  %9793 = vmatpush2.bf16.msra.mxu0 %v14973_v8  ;;  %v14965_v22 = vcombine.low %v1306_v1, %v1310_v2 }
 0x19b   :  { %v1438_v7 = vld [vmem:[#allocation2 + $0x2720] sm:$0xff]  ;;  %9834 = vmatpush2.bf16.msra.mxu1 %v15101_v10 }
 0x19c   :  { %v15094_v12 = vcombine.high %v1434_v4, %v1438_v7  ;;  %v1298_v13 = vld [vmem:[#allocation2 + $0x22c0] sm:$0xff]  ;;  %9794 = vmatprep.subr.bf16.mxu0 %v14966_v11  ;;  %v15093_v23 = vcombine.low %v1434_v4, %v1438_v7  ;;  %v156_v11 = vld [vmem:[%s17013_s0 + $0x90] sm:$0xff] }
 0x19d   :  { %v1302_v14 = vld [vmem:[#allocation2 + $0x22e0] sm:$0xff] }
 0x19e   :  { %v1426_v15 = vld [vmem:[#allocation2 + $0x26c0] sm:$0xff]  ;;  %v14958_v24 = vcombine.high %v1298_v13, %v1302_v14  ;;  %9835 = vmatprep.subr.bf16.mxu1 %v15094_v12  ;;  %9795 = vmatpush2.bf16.msra.mxu0 %v14965_v22  ;;  %v14957_v34 = vcombine.low %v1298_v13, %v1302_v14 }
 0x19f   :  { %v1430_v21 = vld [vmem:[#allocation2 + $0x26e0] sm:$0xff]  ;;  %9836 = vmatpush2.bf16.msra.mxu1 %v15093_v23 }
 0x1a0   :  { %v15086_v25 = vcombine.high %v1426_v15, %v1430_v21  ;;  %v1290_v27 = vld [vmem:[#allocation2 + $0x2280] sm:$0xff]  ;;  %9796 = vmatprep.subr.bf16.mxu0 %v14958_v24  ;;  %v15085_v35 = vcombine.low %v1426_v15, %v1430_v21  ;;  %v159_v24 = vld [vmem:[%s17013_s0 + $0xa8] sm:$0xff] }
 0x1a1   :  { %v1294_v29 = vld [vmem:[#allocation2 + $0x22a0] sm:$0xff] }
 0x1a2   :  { %v1418_v30 = vld [vmem:[#allocation2 + $0x2680] sm:$0xff]  ;;  %v14950_v36 = vcombine.high %v1290_v27, %v1294_v29  ;;  %9837 = vmatprep.subr.bf16.mxu1 %v15086_v25  ;;  %9797 = vmatpush2.bf16.msra.mxu0 %v14957_v34  ;;  %v14949_v45 = vcombine.low %v1290_v27, %v1294_v29  ;;  %v16604_v25 = vpack.c.bf16 %v156_v11, %v156_v11  ;;  %v161_v29 = vld [vmem:[%s17013_s0 + $0xb8] sm:$0xff] }
 0x1a3   :  { %v1422_v33 = vld [vmem:[#allocation2 + $0x26a0] sm:$0xff]  ;;  %9838 = vmatpush2.bf16.msra.mxu1 %v15085_v35 }
 0x1a4   :  { %v15078_v38 = vcombine.high %v1418_v30, %v1422_v33  ;;  %v1282_v41 = vld [vmem:[#allocation2 + $0x2240] sm:$0xff]  ;;  %9798 = vmatprep.subr.bf16.mxu0 %v14950_v36  ;;  %v15077_v47 = vcombine.low %v1418_v30, %v1422_v33 }
 0x1a5   :  { %v1286_v42 = vld [vmem:[#allocation2 + $0x2260] sm:$0xff] }
 0x1a6   :  { %v1410_v43 = vld [vmem:[#allocation2 + $0x2640] sm:$0xff]  ;;  %v14942_v48 = vcombine.high %v1282_v41, %v1286_v42  ;;  %9839 = vmatprep.subr.bf16.mxu1 %v15078_v38  ;;  %9799 = vmatpush2.bf16.msra.mxu0 %v14949_v45  ;;  %v14941_v60 = vcombine.low %v1282_v41, %v1286_v42  ;;  %v16609_v38 = vpack.c.bf16 %v159_v24, %v159_v24 }
 0x1a7   :  { %v1414_v44 = vld [vmem:[#allocation2 + $0x2660] sm:$0xff]  ;;  %9840 = vmatpush2.bf16.msra.mxu1 %v15077_v47 }
 0x1a8   :  { %v15070_v52 = vcombine.high %v1410_v43, %v1414_v44  ;;  %v1274_v53 = vld [vmem:[#allocation2 + $0x2200] sm:$0xff]  ;;  %9800 = vmatprep.subr.bf16.mxu0 %v14942_v48  ;;  %v15069_v61 = vcombine.low %v1410_v43, %v1414_v44  ;;  %v16612_v44 = vpack.c.bf16 %v161_v29, %v161_v29 }
 0x1a9   :  { %v1278_v54 = vld [vmem:[#allocation2 + $0x2220] sm:$0xff] }
 0x1aa   :  { %v1402_v55 = vld [vmem:[#allocation2 + $0x2600] sm:$0xff]  ;;  %v14934_v62 = vcombine.high %v1274_v53, %v1278_v54  ;;  %9841 = vmatprep.subr.bf16.mxu1 %v15070_v52  ;;  %9801 = vmatpush2.bf16.msra.mxu0 %v14941_v60  ;;  %v14933_v7 = vcombine.low %v1274_v53, %v1278_v54 }
 0x1ab   :  { %v1406_v57 = vld [vmem:[#allocation2 + $0x2620] sm:$0xff]  ;;  %9842 = vmatpush2.bf16.msra.mxu1 %v15069_v61 }
 0x1ac   :  { %v15062_v63 = vcombine.high %v1402_v55, %v1406_v57  ;;  %v1522_v0 = vld [vmem:[#allocation2 + $0x29c0] sm:$0xff]  ;;  %9802 = vmatprep.subr.bf16.mxu0 %v14934_v62  ;;  %v15061_v10 = vcombine.low %v1402_v55, %v1406_v57 }
 0x1ad   :  { %v1526_v1 = vld [vmem:[#allocation2 + $0x29e0] sm:$0xff] }
 0x1ae   :  { %v1650_v2 = vld [vmem:[#allocation2 + $0x2dc0] sm:$0xff]  ;;  %v15182_v12 = vcombine.high %v1522_v0, %v1526_v1  ;;  %9843 = vmatprep.subr.bf16.mxu1 %v15062_v63  ;;  %9803 = vmatpush2.bf16.msra.mxu0 %v14933_v7  ;;  %v15181_v27 = vcombine.low %v1522_v0, %v1526_v1  ;;  %v9560_v41 = vpop.f32.mrf.mxu0  ;;  %v9601_v47 = vpop.f32.mrf.mxu1 }
 0x1af   :  { %v1654_v4 = vld [vmem:[#allocation2 + $0x2de0] sm:$0xff]  ;;  %9844 = vmatpush2.bf16.msra.mxu1 %v15061_v10  ;;  %v9561_v45 = vadd.f32 %v9560_v41, %v16587_v19 }
 0x1b0   :  { %v154_v8 = vld [vmem:[%s17013_s0 + $0x80] sm:$0xff]  ;;  %v15310_v13 = vcombine.high %v1650_v2, %v1654_v4  ;;  %9854 = vmatprep.subr.bf16.mxu0 %v15182_v12  ;;  %v15309_v30 = vcombine.low %v1650_v2, %v1654_v4  ;;  %v9562_v52 = vpop.f32.mrf.mxu0  ;;  %v9603_v60 = vpop.f32.mrf.mxu1 }
 0x1b1   :  { %v1514_v14 = vld [vmem:[#allocation2 + $0x2980] sm:$0xff]  ;;  %v16599_v21 = vpack.c.bf16 %v154_v8, %v154_v8  ;;  %v16616_v55 = vadd.f32 %v9601_v47, %v9561_v45  ;;  %v9563_v57 = vadd.f32 %v9562_v52, %v16591_v32 }
 0x1b2   :  { %v1518_v15 = vld [vmem:[#allocation2 + $0x29a0] sm:$0xff]  ;;  %9895 = vmatprep.subr.bf16.mxu1 %v15310_v13  ;;  %9846 = vmatmul.mubr.bf16.vlgmr.msra.gmra.mxu1 %v16604_v25  ;;  %v9564_v19 = vpop.f32.mrf.mxu0  ;;  %v9605_v4 = vpop.f32.mrf.mxu1 }
 0x1b3   :  { %v1642_v22 = vld [vmem:[#allocation2 + $0x2d80] sm:$0xff]  ;;  %v15174_v33 = vcombine.high %v1514_v14, %v1518_v15  ;;  %9805 = vmatmul.mubr.bf16.vlgmr.msra.gmra.mxu0 %v16599_v21  ;;  %v15173_v48 = vcombine.low %v1514_v14, %v1518_v15  ;;  %9896 = vmatpush1.bf16.msra.mxu1 %v15309_v30  ;;  %v16621_v2 = vadd.f32 %v9603_v60, %v9563_v57 }
 0x1b4   :  { %v1646_v23 = vld [vmem:[#allocation2 + $0x2da0] sm:$0xff]  ;;  %9855 = vmatpush1.bf16.msra.mxu0 %v15181_v27  ;;  %9886 = vmatprep.mubr.bf16.mxu0 %v16609_v38  ;;  %v9565_v8 = vpop.f32.mrf.mxu0  ;;  %v9606_v11 = vpop.f32.mrf.mxu1 }
 0x1b5   :  { %v15302_v34 = vcombine.high %v1642_v22, %v1646_v23  ;;  %v1506_v35 = vld [vmem:[#allocation2 + $0x2940] sm:$0xff]  ;;  %9856 = vmatprep.subr.bf16.mxu0 %v15174_v33  ;;  %v15301_v53 = vcombine.low %v1642_v22, %v1646_v23  ;;  %9927 = vmatprep.mubr.bf16.mxu1 %v16612_v44 }
 0x1b6   :  { %v1510_v36 = vld [vmem:[#allocation2 + $0x2960] sm:$0xff] }
 0x1b7   :  { %v1634_v42 = vld [vmem:[#allocation2 + $0x2d40] sm:$0xff]  ;;  %v15166_v54 = vcombine.high %v1506_v35, %v1510_v36  ;;  %9897 = vmatprep.subr.bf16.mxu1 %v15302_v34  ;;  %v15165_v7 = vcombine.low %v1506_v35, %v1510_v36 }
 0x1b8   :  { %v1638_v43 = vld [vmem:[#allocation2 + $0x2d60] sm:$0xff]  ;;  %9857 = vmatpush1.bf16.msra.mxu0 %v15173_v48  ;;  %9898 = vmatpush1.bf16.msra.mxu1 %v15301_v53 }
 0x1b9   :  { %v15294_v61 = vcombine.high %v1634_v42, %v1638_v43  ;;  %v1498_v62 = vld [vmem:[#allocation2 + $0x2900] sm:$0xff]  ;;  %9858 = vmatprep.subr.bf16.mxu0 %v15166_v54  ;;  %v15293_v32 = vcombine.low %v1634_v42, %v1638_v43 }
 0x1ba   :  { %v1502_v63 = vld [vmem:[#allocation2 + $0x2920] sm:$0xff] }
 0x1bb   :  { %v1626_v0 = vld [vmem:[#allocation2 + $0x2d00] sm:$0xff]  ;;  %v15158_v10 = vcombine.high %v1498_v62, %v1502_v63  ;;  %9899 = vmatprep.subr.bf16.mxu1 %v15294_v61  ;;  %v15157_v23 = vcombine.low %v1498_v62, %v1502_v63 }
 0x1bc   :  { %v1630_v1 = vld [vmem:[#allocation2 + $0x2d20] sm:$0xff]  ;;  %9859 = vmatpush1.bf16.msra.mxu0 %v15165_v7  ;;  %9900 = vmatpush1.bf16.msra.mxu1 %v15293_v32 }
 0x1bd   :  { %v15286_v12 = vcombine.high %v1626_v0, %v1630_v1  ;;  %v1490_v13 = vld [vmem:[#allocation2 + $0x28c0] sm:$0xff]  ;;  %9860 = vmatprep.subr.bf16.mxu0 %v15158_v10  ;;  %v15285_v24 = vcombine.low %v1626_v0, %v1630_v1 }
 0x1be   :  { %v1494_v14 = vld [vmem:[#allocation2 + $0x28e0] sm:$0xff] }
 0x1bf   :  { %v1618_v15 = vld [vmem:[#allocation2 + $0x2cc0] sm:$0xff]  ;;  %v15150_v27 = vcombine.high %v1490_v13, %v1494_v14  ;;  %9901 = vmatprep.subr.bf16.mxu1 %v15286_v12  ;;  %v15149_v36 = vcombine.low %v1490_v13, %v1494_v14 }
 0x1c0   :  { %v1622_v22 = vld [vmem:[#allocation2 + $0x2ce0] sm:$0xff]  ;;  %9861 = vmatpush1.bf16.msra.mxu0 %v15157_v23  ;;  %9902 = vmatpush1.bf16.msra.mxu1 %v15285_v24 }
 0x1c1   :  { %v15278_v29 = vcombine.high %v1618_v15, %v1622_v22  ;;  %v1482_v30 = vld [vmem:[#allocation2 + $0x2880] sm:$0xff]  ;;  %9862 = vmatprep.subr.bf16.mxu0 %v15150_v27  ;;  %v15277_v41 = vcombine.low %v1618_v15, %v1622_v22 }
 0x1c2   :  { %v1486_v33 = vld [vmem:[#allocation2 + $0x28a0] sm:$0xff] }
 0x1c3   :  { %v1610_v34 = vld [vmem:[#allocation2 + $0x2c80] sm:$0xff]  ;;  %v15142_v42 = vcombine.high %v1482_v30, %v1486_v33  ;;  %9903 = vmatprep.subr.bf16.mxu1 %v15278_v29  ;;  %v15141_v53 = vcombine.low %v1482_v30, %v1486_v33 }
 0x1c4   :  { %v1614_v35 = vld [vmem:[#allocation2 + $0x2ca0] sm:$0xff]  ;;  %9863 = vmatpush1.bf16.msra.mxu0 %v15149_v36  ;;  %9904 = vmatpush1.bf16.msra.mxu1 %v15277_v41 }
 0x1c5   :  { %v15270_v43 = vcombine.high %v1610_v34, %v1614_v35  ;;  %v1474_v45 = vld [vmem:[#allocation2 + $0x2840] sm:$0xff]  ;;  %9864 = vmatprep.subr.bf16.mxu0 %v15142_v42  ;;  %v15269_v54 = vcombine.low %v1610_v34, %v1614_v35 }
 0x1c6   :  { %v1478_v47 = vld [vmem:[#allocation2 + $0x2860] sm:$0xff] }
 0x1c7   :  { %v1602_v48 = vld [vmem:[#allocation2 + $0x2c40] sm:$0xff]  ;;  %v15134_v57 = vcombine.high %v1474_v45, %v1478_v47  ;;  %9905 = vmatprep.subr.bf16.mxu1 %v15270_v43  ;;  %v15133_v0 = vcombine.low %v1474_v45, %v1478_v47 }
 0x1c8   :  { %v1606_v52 = vld [vmem:[#allocation2 + $0x2c60] sm:$0xff]  ;;  %9865 = vmatpush1.bf16.msra.mxu0 %v15141_v53  ;;  %9906 = vmatpush1.bf16.msra.mxu1 %v15269_v54 }
 0x1c9   :  { %v15262_v60 = vcombine.high %v1602_v48, %v1606_v52  ;;  %v1466_v61 = vld [vmem:[#allocation2 + $0x2800] sm:$0xff]  ;;  %9866 = vmatprep.subr.bf16.mxu0 %v15134_v57  ;;  %v15261_v1 = vcombine.low %v1602_v48, %v1606_v52 }
 0x1ca   :  { %v1470_v62 = vld [vmem:[#allocation2 + $0x2820] sm:$0xff] }
 0x1cb   :  { %v1594_v63 = vld [vmem:[#allocation2 + $0x2c00] sm:$0xff]  ;;  %v15126_v4 = vcombine.high %v1466_v61, %v1470_v62  ;;  %9907 = vmatprep.subr.bf16.mxu1 %v15262_v60  ;;  %v15125_v12 = vcombine.low %v1466_v61, %v1470_v62 }
 0x1cc   :  { %v1598_v19 = vld [vmem:[#allocation2 + $0x2c20] sm:$0xff]  ;;  %9867 = vmatpush1.bf16.msra.mxu0 %v15133_v0  ;;  %9908 = vmatpush1.bf16.msra.mxu1 %v15261_v1 }
 0x1cd   :  { %v15254_v7 = vcombine.high %v1594_v63, %v1598_v19  ;;  %v1586_v8 = vld [vmem:[#allocation2 + $0x2bc0] sm:$0xff]  ;;  %9868 = vmatprep.subr.bf16.mxu0 %v15126_v4  ;;  %v15253_v13 = vcombine.low %v1594_v63, %v1598_v19 }
 0x1ce   :  { %v1590_v32 = vld [vmem:[#allocation2 + $0x2be0] sm:$0xff] }
 0x1cf   :  { %v1714_v10 = vld [vmem:[#allocation2 + $0x2fc0] sm:$0xff]  ;;  %v15246_v14 = vcombine.high %v1586_v8, %v1590_v32  ;;  %9909 = vmatprep.subr.bf16.mxu1 %v15254_v7  ;;  %v15245_v29 = vcombine.low %v1586_v8, %v1590_v32 }
 0x1d0   :  { %v1718_v11 = vld [vmem:[#allocation2 + $0x2fe0] sm:$0xff]  ;;  %9869 = vmatpush1.bf16.msra.mxu0 %v15125_v12  ;;  %9910 = vmatpush1.bf16.msra.mxu1 %v15253_v13 }
 0x1d1   :  { %v15374_v15 = vcombine.high %v1714_v10, %v1718_v11  ;;  %v1578_v22 = vld [vmem:[#allocation2 + $0x2b80] sm:$0xff]  ;;  %9870 = vmatprep.subr.bf16.mxu0 %v15246_v14  ;;  %v15373_v30 = vcombine.low %v1714_v10, %v1718_v11 }
 0x1d2   :  { %v1582_v23 = vld [vmem:[#allocation2 + $0x2ba0] sm:$0xff] }
 0x1d3   :  { %v1706_v24 = vld [vmem:[#allocation2 + $0x2f80] sm:$0xff]  ;;  %v15238_v33 = vcombine.high %v1578_v22, %v1582_v23  ;;  %9911 = vmatprep.subr.bf16.mxu1 %v15374_v15  ;;  %v15237_v43 = vcombine.low %v1578_v22, %v1582_v23 }
 0x1d4   :  { %v1710_v27 = vld [vmem:[#allocation2 + $0x2fa0] sm:$0xff]  ;;  %9871 = vmatpush2.bf16.msra.mxu0 %v15245_v29  ;;  %9912 = vmatpush2.bf16.msra.mxu1 %v15373_v30 }
 0x1d5   :  { %v15366_v34 = vcombine.high %v1706_v24, %v1710_v27  ;;  %v1570_v35 = vld [vmem:[#allocation2 + $0x2b40] sm:$0xff]  ;;  %9872 = vmatprep.subr.bf16.mxu0 %v15238_v33  ;;  %v15365_v45 = vcombine.low %v1706_v24, %v1710_v27 }
 0x1d6   :  { %v1574_v36 = vld [vmem:[#allocation2 + $0x2b60] sm:$0xff] }
 0x1d7   :  { %v1698_v41 = vld [vmem:[#allocation2 + $0x2f40] sm:$0xff]  ;;  %v15230_v47 = vcombine.high %v1570_v35, %v1574_v36  ;;  %9913 = vmatprep.subr.bf16.mxu1 %v15366_v34  ;;  %v15229_v60 = vcombine.low %v1570_v35, %v1574_v36 }
 0x1d8   :  { %v1702_v42 = vld [vmem:[#allocation2 + $0x2f60] sm:$0xff]  ;;  %9873 = vmatpush2.bf16.msra.mxu0 %v15237_v43  ;;  %9914 = vmatpush2.bf16.msra.mxu1 %v15365_v45 }
 0x1d9   :  { %v15358_v48 = vcombine.high %v1698_v41, %v1702_v42  ;;  %v1562_v52 = vld [vmem:[#allocation2 + $0x2b00] sm:$0xff]  ;;  %9874 = vmatprep.subr.bf16.mxu0 %v15230_v47  ;;  %v15357_v61 = vcombine.low %v1698_v41, %v1702_v42 }
 0x1da   :  { %v1566_v53 = vld [vmem:[#allocation2 + $0x2b20] sm:$0xff] }
 0x1db   :  { %v1690_v54 = vld [vmem:[#allocation2 + $0x2f00] sm:$0xff]  ;;  %v15222_v62 = vcombine.high %v1562_v52, %v1566_v53  ;;  %9915 = vmatprep.subr.bf16.mxu1 %v15358_v48  ;;  %v15221_v7 = vcombine.low %v1562_v52, %v1566_v53 }
 0x1dc   :  { %v1694_v57 = vld [vmem:[#allocation2 + $0x2f20] sm:$0xff]  ;;  %9875 = vmatpush2.bf16.msra.mxu0 %v15229_v60  ;;  %9916 = vmatpush2.bf16.msra.mxu1 %v15357_v61  ;;  %v247_v60 = vld [vmem:[#allocation2 + $0x1e8] sm:$0xff] }
 0x1dd   :  { %v15350_v63 = vcombine.high %v1690_v54, %v1694_v57  ;;  %v1554_v19 = vld [vmem:[#allocation2 + $0x2ac0] sm:$0xff]  ;;  %9876 = vmatprep.subr.bf16.mxu0 %v15222_v62  ;;  %v15349_v8 = vcombine.low %v1690_v54, %v1694_v57  ;;  %v243_v57 = vld [vmem:[#allocation2 + $0x1c8] sm:$0xff] }
 0x1de   :  { %v1558_v0 = vld [vmem:[#allocation2 + $0x2ae0] sm:$0xff]  ;;  %v371_v61 = vld [vmem:[#allocation2 + $0x5c8] sm:$0xff] }
 0x1df   :  { %v1682_v1 = vld [vmem:[#allocation2 + $0x2ec0] sm:$0xff]  ;;  %v15214_v32 = vcombine.high %v1554_v19, %v1558_v0  ;;  %9917 = vmatprep.subr.bf16.mxu1 %v15350_v63  ;;  %v15213_v15 = vcombine.low %v1554_v19, %v1558_v0  ;;  %v375_v62 = vld [vmem:[#allocation2 + $0x5e8] sm:$0xff] }
 0x1e0   :  { %v1686_v4 = vld [vmem:[#allocation2 + $0x2ee0] sm:$0xff]  ;;  %9877 = vmatpush2.bf16.msra.mxu0 %v15221_v7  ;;  %9918 = vmatpush2.bf16.msra.mxu1 %v15349_v8  ;;  %v14032_v7 = vcombine.high %v371_v61, %v375_v62  ;;  %v235_v8 = vld [vmem:[#allocation2 + $0x188] sm:$0xff] }
 0x1e1   :  { %v15342_v10 = vcombine.high %v1682_v1, %v1686_v4  ;;  %v1546_v11 = vld [vmem:[#allocation2 + $0x2a80] sm:$0xff]  ;;  %9878 = vmatprep.subr.bf16.mxu0 %v15214_v32  ;;  %v15341_v22 = vcombine.low %v1682_v1, %v1686_v4  ;;  %v160_v1 = vld [vmem:[%s17013_s0 + $0xb0] sm:$0xff]  ;;  %v13904_v4 = vcombine.high %v243_v57, %v247_v60  ;;  %v239_v32 = vld [vmem:[#allocation2 + $0x1a8] sm:$0xff] }
 0x1e2   :  { %v1550_v12 = vld [vmem:[#allocation2 + $0x2aa0] sm:$0xff] }
 0x1e3   :  { %v1674_v13 = vld [vmem:[#allocation2 + $0x2e80] sm:$0xff]  ;;  %v15206_v23 = vcombine.high %v1546_v11, %v1550_v12  ;;  %9919 = vmatprep.subr.bf16.mxu1 %v15342_v10  ;;  %v15205_v34 = vcombine.low %v1546_v11, %v1550_v12  ;;  %v363_v11 = vld [vmem:[#allocation2 + $0x588] sm:$0xff] }
 0x1e4   :  { %v1678_v14 = vld [vmem:[#allocation2 + $0x2ea0] sm:$0xff]  ;;  %9879 = vmatpush2.bf16.msra.mxu0 %v15213_v15  ;;  %9920 = vmatpush2.bf16.msra.mxu1 %v15341_v22  ;;  %v367_v12 = vld [vmem:[#allocation2 + $0x5a8] sm:$0xff]  ;;  %v14031_v15 = vcombine.low %v371_v61, %v375_v62  ;;  %v13896_v22 = vcombine.high %v235_v8, %v239_v32 }
 0x1e5   :  { %v15334_v24 = vcombine.high %v1674_v13, %v1678_v14  ;;  %v1538_v27 = vld [vmem:[#allocation2 + $0x2a40] sm:$0xff]  ;;  %9880 = vmatprep.subr.bf16.mxu0 %v15206_v23  ;;  %v15333_v35 = vcombine.low %v1674_v13, %v1678_v14  ;;  %v16631_v13 = vpack.c.bf16 %v160_v1, %v160_v1  ;;  %v13903_v14 = vcombine.low %v243_v57, %v247_v60  ;;  %v347_v57 = vld [vmem:[#allocation2 + $0x508] sm:$0xff] }
 0x1e6   :  { %v1542_v29 = vld [vmem:[#allocation2 + $0x2a60] sm:$0xff]  ;;  %v14024_v23 = vcombine.high %v363_v11, %v367_v12  ;;  %v351_v60 = vld [vmem:[#allocation2 + $0x528] sm:$0xff] }
 0x1e7   :  { %v1666_v30 = vld [vmem:[#allocation2 + $0x2e40] sm:$0xff]  ;;  %v15198_v36 = vcombine.high %v1538_v27, %v1542_v29  ;;  %9921 = vmatprep.subr.bf16.mxu1 %v15334_v24  ;;  %v15197_v48 = vcombine.low %v1538_v27, %v1542_v29  ;;  %v227_v24 = vld [vmem:[#allocation2 + $0x148] sm:$0xff] }
 0x1e8   :  { %v1670_v33 = vld [vmem:[#allocation2 + $0x2e60] sm:$0xff]  ;;  %9881 = vmatpush2.bf16.msra.mxu0 %v15205_v34  ;;  %9922 = vmatpush2.bf16.msra.mxu1 %v15333_v35  ;;  %v231_v27 = vld [vmem:[#allocation2 + $0x168] sm:$0xff] }
 0x1e9   :  { %v15326_v41 = vcombine.high %v1666_v30, %v1670_v33  ;;  %v1530_v42 = vld [vmem:[#allocation2 + $0x2a00] sm:$0xff]  ;;  %9882 = vmatprep.subr.bf16.mxu0 %v15198_v36  ;;  %v15325_v52 = vcombine.low %v1666_v30, %v1670_v33  ;;  %v355_v30 = vld [vmem:[#allocation2 + $0x548] sm:$0xff]  ;;  %v13895_v36 = vcombine.low %v235_v8, %v239_v32 }
 0x1ea   :  { %v1534_v43 = vld [vmem:[#allocation2 + $0x2a20] sm:$0xff]  ;;  %v359_v33 = vld [vmem:[#allocation2 + $0x568] sm:$0xff] }
 0x1eb   :  { %v1658_v45 = vld [vmem:[#allocation2 + $0x2e00] sm:$0xff]  ;;  %v15190_v53 = vcombine.high %v1530_v42, %v1534_v43  ;;  %9923 = vmatprep.subr.bf16.mxu1 %v15326_v41  ;;  %v15189_v63 = vcombine.low %v1530_v42, %v1534_v43  ;;  %v14023_v42 = vcombine.low %v363_v11, %v367_v12  ;;  %v13888_v43 = vcombine.high %v227_v24, %v231_v27  ;;  %v215_v8 = vld [vmem:[#allocation2 + $0xe8] sm:$0xff] }
 0x1ec   :  { %v1662_v47 = vld [vmem:[#allocation2 + $0x2e20] sm:$0xff]  ;;  %9883 = vmatpush2.bf16.msra.mxu0 %v15197_v48  ;;  %9924 = vmatpush2.bf16.msra.mxu1 %v15325_v52  ;;  %v14016_v52 = vcombine.high %v355_v30, %v359_v33  ;;  %v339_v32 = vld [vmem:[#allocation2 + $0x4c8] sm:$0xff] }
 0x1ed   :  { %v15318_v54 = vcombine.high %v1658_v45, %v1662_v47  ;;  %v158_v19 = vld [vmem:[%s17013_s0 + $0xa0] sm:$0xff]  ;;  %9884 = vmatprep.subr.bf16.mxu0 %v15190_v53  ;;  %v15317_v0 = vcombine.low %v1658_v45, %v1662_v47  ;;  %v219_v53 = vld [vmem:[#allocation2 + $0x108] sm:$0xff] }
 0x1ee   :  { %v16629_v10 = vpack.c.bf16 %v158_v19, %v158_v19  ;;  %v343_v11 = vld [vmem:[#allocation2 + $0x4e8] sm:$0xff] }
 0x1ef   :  { %9925 = vmatprep.subr.bf16.mxu1 %v15318_v54  ;;  %v9642_v29 = vpop.f32.mrf.mxu0  ;;  %v9683_v35 = vpop.f32.mrf.mxu1  ;;  %v223_v54 = vld [vmem:[#allocation2 + $0x128] sm:$0xff] }
 0x1f0   :  { %9885 = vmatpush2.bf16.msra.mxu0 %v15189_v63  ;;  %9926 = vmatpush2.bf16.msra.mxu1 %v15317_v0  ;;  %v9643_v34 = vadd.f32 %v9642_v29, %v16616_v55  ;;  %v13887_v63 = vcombine.low %v227_v24, %v231_v27  ;;  %v13880_v0 = vcombine.high %v219_v53, %v223_v54  ;;  %v207_v24 = vld [vmem:[#allocation2 + $0xa8] sm:$0xff] }
 0x1f1   :  { %9936 = vmatprep.subr.bf16.mxu0 %v13904_v4  ;;  %9977 = vmatprep.subr.bf16.mxu1 %v14032_v7  ;;  %v9644_v41 = vpop.f32.mrf.mxu0  ;;  %v9685_v48 = vpop.f32.mrf.mxu1  ;;  %v14008_v4 = vcombine.high %v347_v57, %v351_v60  ;;  %v211_v7 = vld [vmem:[#allocation2 + $0xc8] sm:$0xff]  ;;  %v13879_v12 = vcombine.low %v219_v53, %v223_v54 }
 0x1f2   :  { %v16636_v45 = vadd.f32 %v9683_v35, %v9643_v34  ;;  %v9645_v47 = vadd.f32 %v9644_v41, %v16621_v2  ;;  %v14015_v2 = vcombine.low %v355_v30, %v359_v33  ;;  %v331_v27 = vld [vmem:[#allocation2 + $0x488] sm:$0xff]  ;;  %v13871_v30 = vcombine.low %v211_v7, %v215_v8 }
 0x1f3   :  { %9887 = vmatmul.mubr.bf16.vlgmr.msra.gmra.mxu0 %v16629_v10  ;;  %9928 = vmatmul.mubr.bf16.vlgmr.msra.gmra.mxu1 %v16631_v13  ;;  %v9646_v55 = vpop.f32.mrf.mxu0  ;;  %v9687_v62 = vpop.f32.mrf.mxu1  ;;  %v335_v29 = vld [vmem:[#allocation2 + $0x4a8] sm:$0xff]  ;;  %v13999_v33 = vcombine.low %v339_v32, %v343_v11 }
 0x1f4   :  { %9937 = vmatpush1.bf16.msra.mxu0 %v13903_v14  ;;  %9978 = vmatpush1.bf16.msra.mxu1 %v14031_v15  ;;  %v16641_v61 = vadd.f32 %v9685_v48, %v9645_v47  ;;  %v14007_v14 = vcombine.low %v347_v57, %v351_v60  ;;  %v13872_v15 = vcombine.high %v211_v7, %v215_v8  ;;  %v199_v41 = vld [vmem:[#allocation2 + $0x68] sm:$0xff] }
 0x1f5   :  { %9938 = vmatprep.subr.bf16.mxu0 %v13896_v22  ;;  %9979 = vmatprep.subr.bf16.mxu1 %v14024_v23  ;;  %v9647_v19 = vpop.f32.mrf.mxu0  ;;  %v9688_v1 = vpop.f32.mrf.mxu1  ;;  %v14000_v22 = vcombine.high %v339_v32, %v343_v11  ;;  %v203_v23 = vld [vmem:[#allocation2 + $0x88] sm:$0xff]  ;;  %v13992_v35 = vcombine.high %v331_v27, %v335_v29  ;;  %v13991_v48 = vcombine.low %v331_v27, %v335_v29 }
 0x1f6   :  { %9968 = vmatprep.mubr.bf16.mxu0 %v16479_v58  ;;  %10009 = vmatprep.mubr.bf16.mxu1 %v16481_v59  ;;  %v13864_v34 = vcombine.high %v203_v23, %v207_v24  ;;  %v13863_v47 = vcombine.low %v203_v23, %v207_v24  ;;  %v187_v54 = vld [vmem:[#allocation2 + $0x8] sm:$0xff] }
 0x1f7   :  { %v191_v55 = vld [vmem:[#allocation2 + $0x28] sm:$0xff] }
 0x1f8   :  { %9939 = vmatpush1.bf16.msra.mxu0 %v13895_v36  ;;  %9980 = vmatpush1.bf16.msra.mxu1 %v14023_v42  ;;  %v195_v36 = vld [vmem:[#allocation2 + $0x48] sm:$0xff]  ;;  %v13848_v19 = vcombine.high %v187_v54, %v191_v55  ;;  %v13847_v8 = vcombine.low %v187_v54, %v191_v55 }
 0x1f9   :  { %9940 = vmatprep.subr.bf16.mxu0 %v13888_v43  ;;  %9981 = vmatprep.subr.bf16.mxu1 %v14016_v52  ;;  %v323_v42 = vld [vmem:[#allocation2 + $0x448] sm:$0xff]  ;;  %v13856_v52 = vcombine.high %v195_v36, %v199_v41  ;;  %v13855_v62 = vcombine.low %v195_v36, %v199_v41 }
 0x1fa   :  { %v327_v43 = vld [vmem:[#allocation2 + $0x468] sm:$0xff] }
 0x1fb   :  { %v13984_v53 = vcombine.high %v323_v42, %v327_v43  ;;  %v315_v57 = vld [vmem:[#allocation2 + $0x408] sm:$0xff] }
 0x1fc   :  { %9941 = vmatpush1.bf16.msra.mxu0 %v13887_v63  ;;  %9982 = vmatpush1.bf16.msra.mxu1 %v14015_v2  ;;  %v319_v60 = vld [vmem:[#allocation2 + $0x428] sm:$0xff]  ;;  %v13983_v63 = vcombine.low %v323_v42, %v327_v43 }
 0x1fd   :  { %9942 = vmatprep.subr.bf16.mxu0 %v13880_v0  ;;  %9983 = vmatprep.subr.bf16.mxu1 %v14008_v4  ;;  %v13976_v2 = vcombine.high %v315_v57, %v319_v60  ;;  %v307_v0 = vld [vmem:[#allocation2 + $0x3c8] sm:$0xff]  ;;  %v13975_v32 = vcombine.low %v315_v57, %v319_v60 }
 0x1fe   :  { %v311_v1 = vld [vmem:[#allocation2 + $0x3e8] sm:$0xff] }
 0x1ff   :  { %v435_v4 = vld [vmem:[#allocation2 + $0x7c8] sm:$0xff]  ;;  %v13968_v11 = vcombine.high %v307_v0, %v311_v1  ;;  %v13967_v24 = vcombine.low %v307_v0, %v311_v1 }
 0x200   :  { %9943 = vmatpush1.bf16.msra.mxu0 %v13879_v12  ;;  %9984 = vmatpush1.bf16.msra.mxu1 %v14007_v14  ;;  %v439_v7 = vld [vmem:[#allocation2 + $0x7e8] sm:$0xff] }
 0x201   :  { %9944 = vmatprep.subr.bf16.mxu0 %v13872_v15  ;;  %9985 = vmatprep.subr.bf16.mxu1 %v14000_v22  ;;  %v14096_v12 = vcombine.high %v435_v4, %v439_v7  ;;  %v299_v14 = vld [vmem:[#allocation2 + $0x388] sm:$0xff]  ;;  %v14095_v27 = vcombine.low %v435_v4, %v439_v7 }
 0x202   :  { %v303_v15 = vld [vmem:[#allocation2 + $0x3a8] sm:$0xff] }
 0x203   :  { %v427_v22 = vld [vmem:[#allocation2 + $0x788] sm:$0xff]  ;;  %v13960_v29 = vcombine.high %v299_v14, %v303_v15  ;;  %v13959_v41 = vcombine.low %v299_v14, %v303_v15 }
 0x204   :  { %9945 = vmatpush1.bf16.msra.mxu0 %v13871_v30  ;;  %9986 = vmatpush1.bf16.msra.mxu1 %v13999_v33  ;;  %v431_v23 = vld [vmem:[#allocation2 + $0x7a8] sm:$0xff] }
 0x205   :  { %9946 = vmatprep.subr.bf16.mxu0 %v13864_v34  ;;  %9987 = vmatprep.subr.bf16.mxu1 %v13992_v35  ;;  %v14088_v30 = vcombine.high %v427_v22, %v431_v23  ;;  %v291_v33 = vld [vmem:[#allocation2 + $0x348] sm:$0xff]  ;;  %v14087_v42 = vcombine.low %v427_v22, %v431_v23 }
 0x206   :  { %v295_v34 = vld [vmem:[#allocation2 + $0x368] sm:$0xff] }
 0x207   :  { %v419_v35 = vld [vmem:[#allocation2 + $0x748] sm:$0xff]  ;;  %v13952_v43 = vcombine.high %v291_v33, %v295_v34  ;;  %v13951_v55 = vcombine.low %v291_v33, %v295_v34 }
 0x208   :  { %9947 = vmatpush1.bf16.msra.mxu0 %v13863_v47  ;;  %9988 = vmatpush1.bf16.msra.mxu1 %v13991_v48  ;;  %v423_v36 = vld [vmem:[#allocation2 + $0x768] sm:$0xff] }
 0x209   :  { %9948 = vmatprep.subr.bf16.mxu0 %v13856_v52  ;;  %9989 = vmatprep.subr.bf16.mxu1 %v13984_v53  ;;  %v14080_v47 = vcombine.high %v419_v35, %v423_v36  ;;  %v283_v48 = vld [vmem:[#allocation2 + $0x308] sm:$0xff]  ;;  %v14079_v57 = vcombine.low %v419_v35, %v423_v36 }
 0x20a   :  { %v287_v52 = vld [vmem:[#allocation2 + $0x328] sm:$0xff] }
 0x20b   :  { %v411_v53 = vld [vmem:[#allocation2 + $0x708] sm:$0xff]  ;;  %v13944_v60 = vcombine.high %v283_v48, %v287_v52  ;;  %v13943_v1 = vcombine.low %v283_v48, %v287_v52 }
 0x20c   :  { %9949 = vmatpush1.bf16.msra.mxu0 %v13855_v62  ;;  %9990 = vmatpush1.bf16.msra.mxu1 %v13983_v63  ;;  %v415_v54 = vld [vmem:[#allocation2 + $0x728] sm:$0xff] }
 0x20d   :  { %9950 = vmatprep.subr.bf16.mxu0 %v13848_v19  ;;  %9991 = vmatprep.subr.bf16.mxu1 %v13976_v2  ;;  %v14072_v62 = vcombine.high %v411_v53, %v415_v54  ;;  %v275_v63 = vld [vmem:[#allocation2 + $0x2c8] sm:$0xff]  ;;  %v14071_v4 = vcombine.low %v411_v53, %v415_v54 }
 0x20e   :  { %v279_v19 = vld [vmem:[#allocation2 + $0x2e8] sm:$0xff] }
 0x20f   :  { %v403_v2 = vld [vmem:[#allocation2 + $0x6c8] sm:$0xff]  ;;  %v13936_v7 = vcombine.high %v275_v63, %v279_v19  ;;  %v13935_v15 = vcombine.low %v275_v63, %v279_v19 }
 0x210   :  { %9951 = vmatpush1.bf16.msra.mxu0 %v13847_v8  ;;  %9992 = vmatpush1.bf16.msra.mxu1 %v13975_v32  ;;  %v407_v0 = vld [vmem:[#allocation2 + $0x6e8] sm:$0xff] }
 0x211   :  { %9952 = vmatprep.subr.bf16.mxu0 %v13968_v11  ;;  %9993 = vmatprep.subr.bf16.mxu1 %v14096_v12  ;;  %v14064_v8 = vcombine.high %v403_v2, %v407_v0  ;;  %v267_v32 = vld [vmem:[#allocation2 + $0x288] sm:$0xff]  ;;  %v14063_v22 = vcombine.low %v403_v2, %v407_v0 }
 0x212   :  { %v271_v11 = vld [vmem:[#allocation2 + $0x2a8] sm:$0xff] }
 0x213   :  { %v395_v12 = vld [vmem:[#allocation2 + $0x688] sm:$0xff]  ;;  %v13928_v23 = vcombine.high %v267_v32, %v271_v11  ;;  %v13927_v34 = vcombine.low %v267_v32, %v271_v11 }
 0x214   :  { %9953 = vmatpush2.bf16.msra.mxu0 %v13967_v24  ;;  %9994 = vmatpush2.bf16.msra.mxu1 %v14095_v27  ;;  %v399_v14 = vld [vmem:[#allocation2 + $0x6a8] sm:$0xff] }
 0x215   :  { %9954 = vmatprep.subr.bf16.mxu0 %v13960_v29  ;;  %9995 = vmatprep.subr.bf16.mxu1 %v14088_v30  ;;  %v14056_v24 = vcombine.high %v395_v12, %v399_v14  ;;  %v259_v27 = vld [vmem:[#allocation2 + $0x248] sm:$0xff]  ;;  %v14055_v35 = vcombine.low %v395_v12, %v399_v14 }
 0x216   :  { %v263_v29 = vld [vmem:[#allocation2 + $0x268] sm:$0xff] }
 0x217   :  { %v387_v30 = vld [vmem:[#allocation2 + $0x648] sm:$0xff]  ;;  %v13920_v36 = vcombine.high %v259_v27, %v263_v29  ;;  %v13919_v52 = vcombine.low %v259_v27, %v263_v29 }
 0x218   :  { %9955 = vmatpush2.bf16.msra.mxu0 %v13959_v41  ;;  %9996 = vmatpush2.bf16.msra.mxu1 %v14087_v42  ;;  %v391_v33 = vld [vmem:[#allocation2 + $0x668] sm:$0xff] }
 0x219   :  { %9956 = vmatprep.subr.bf16.mxu0 %v13952_v43  ;;  %9997 = vmatprep.subr.bf16.mxu1 %v14080_v47  ;;  %v14048_v41 = vcombine.high %v387_v30, %v391_v33  ;;  %v251_v42 = vld [vmem:[#allocation2 + $0x208] sm:$0xff]  ;;  %v14047_v53 = vcombine.low %v387_v30, %v391_v33 }
 0x21a   :  { %v255_v43 = vld [vmem:[#allocation2 + $0x228] sm:$0xff] }
 0x21b   :  { %v379_v47 = vld [vmem:[#allocation2 + $0x608] sm:$0xff]  ;;  %v13912_v54 = vcombine.high %v251_v42, %v255_v43  ;;  %v13911_v19 = vcombine.low %v251_v42, %v255_v43 }
 0x21c   :  { %9957 = vmatpush2.bf16.msra.mxu0 %v13951_v55  ;;  %9998 = vmatpush2.bf16.msra.mxu1 %v14079_v57  ;;  %v383_v48 = vld [vmem:[#allocation2 + $0x628] sm:$0xff] }
 0x21d   :  { %9958 = vmatprep.subr.bf16.mxu0 %v13944_v60  ;;  %9999 = vmatprep.subr.bf16.mxu1 %v14072_v62  ;;  %v14040_v55 = vcombine.high %v379_v47, %v383_v48  ;;  %v499_v57 = vld [vmem:[#allocation2 + $0x9c8] sm:$0xff]  ;;  %v14039_v2 = vcombine.low %v379_v47, %v383_v48 }
 0x21e   :  { %v503_v60 = vld [vmem:[#allocation2 + $0x9e8] sm:$0xff] }
 0x21f   :  { %v627_v62 = vld [vmem:[#allocation2 + $0xdc8] sm:$0xff]  ;;  %v14160_v0 = vcombine.high %v499_v57, %v503_v60  ;;  %v14159_v11 = vcombine.low %v499_v57, %v503_v60 }
 0x220   :  { %9959 = vmatpush2.bf16.msra.mxu0 %v13943_v1  ;;  %10000 = vmatpush2.bf16.msra.mxu1 %v14071_v4  ;;  %v631_v63 = vld [vmem:[#allocation2 + $0xde8] sm:$0xff] }
 0x221   :  { %9960 = vmatprep.subr.bf16.mxu0 %v13936_v7  ;;  %10001 = vmatprep.subr.bf16.mxu1 %v14064_v8  ;;  %v14288_v1 = vcombine.high %v627_v62, %v631_v63  ;;  %v491_v4 = vld [vmem:[#allocation2 + $0x988] sm:$0xff]  ;;  %v14287_v12 = vcombine.low %v627_v62, %v631_v63 }
 0x222   :  { %v495_v7 = vld [vmem:[#allocation2 + $0x9a8] sm:$0xff] }
 0x223   :  { %v619_v8 = vld [vmem:[#allocation2 + $0xd88] sm:$0xff]  ;;  %v14152_v14 = vcombine.high %v491_v4, %v495_v7 }
 0x224   :  { %9961 = vmatpush2.bf16.msra.mxu0 %v13935_v15  ;;  %10002 = vmatpush2.bf16.msra.mxu1 %v14063_v22  ;;  %v623_v32 = vld [vmem:[#allocation2 + $0xda8] sm:$0xff] }
 0x225   :  { %9962 = vmatprep.subr.bf16.mxu0 %v13928_v23  ;;  %10003 = vmatprep.subr.bf16.mxu1 %v14056_v24  ;;  %v14280_v15 = vcombine.high %v619_v8, %v623_v32  ;;  %v483_v22 = vld [vmem:[#allocation2 + $0x948] sm:$0xff] }
 0x226   :  { %v487_v23 = vld [vmem:[#allocation2 + $0x968] sm:$0xff] }
 0x227   :  { %v611_v27 = vld [vmem:[#allocation2 + $0xd48] sm:$0xff]  ;;  %v14143_v62 = vcombine.low %v483_v22, %v487_v23 }
 0x228   :  { %9963 = vmatpush2.bf16.msra.mxu0 %v13927_v34  ;;  %10004 = vmatpush2.bf16.msra.mxu1 %v14055_v35  ;;  %v615_v29 = vld [vmem:[#allocation2 + $0xd68] sm:$0xff]  ;;  %v14151_v34 = vcombine.low %v491_v4, %v495_v7 }
 0x229   :  { %9964 = vmatprep.subr.bf16.mxu0 %v13920_v36  ;;  %10005 = vmatprep.subr.bf16.mxu1 %v14048_v41  ;;  %v14279_v36 = vcombine.low %v619_v8, %v623_v32  ;;  %v14144_v41 = vcombine.high %v483_v22, %v487_v23  ;;  %v14272_v48 = vcombine.high %v611_v27, %v615_v29  ;;  %v471_v4 = vld [vmem:[#allocation2 + $0x8e8] sm:$0xff] }
 0x22a   :  { %v595_v7 = vld [vmem:[#allocation2 + $0xcc8] sm:$0xff] }
 0x22b   :  { %v599_v8 = vld [vmem:[#allocation2 + $0xce8] sm:$0xff] }
 0x22c   :  { %9965 = vmatpush2.bf16.msra.mxu0 %v13919_v52  ;;  %10006 = vmatpush2.bf16.msra.mxu1 %v14047_v53  ;;  %v475_v52 = vld [vmem:[#allocation2 + $0x908] sm:$0xff] }
 0x22d   :  { %9966 = vmatprep.subr.bf16.mxu0 %v13912_v54  ;;  %10007 = vmatprep.subr.bf16.mxu1 %v14040_v55  ;;  %v479_v53 = vld [vmem:[#allocation2 + $0x928] sm:$0xff] }
 0x22e   :  { %v603_v54 = vld [vmem:[#allocation2 + $0xd08] sm:$0xff]  ;;  %v14135_v32 = vcombine.low %v475_v52, %v479_v53 }
 0x22f   :  { %v607_v55 = vld [vmem:[#allocation2 + $0xd28] sm:$0xff] }
 0x230   :  { %9967 = vmatpush2.bf16.msra.mxu0 %v13911_v19  ;;  %10008 = vmatpush2.bf16.msra.mxu1 %v14039_v2  ;;  %v9765_v33 = vpop.f32.mrf.mxu1  ;;  %v14136_v19 = vcombine.high %v475_v52, %v479_v53  ;;  %v463_v22 = vld [vmem:[#allocation2 + $0x8a8] sm:$0xff] }
 0x231   :  { %10018 = vmatprep.subr.bf16.mxu0 %v14160_v0  ;;  %10059 = vmatprep.subr.bf16.mxu1 %v14288_v1  ;;  %v9724_v24 = vpop.f32.mrf.mxu0  ;;  %v14264_v0 = vcombine.high %v603_v54, %v607_v55  ;;  %v467_v1 = vld [vmem:[#allocation2 + $0x8c8] sm:$0xff] }
 0x232   :  { %v9725_v30 = vadd.f32 %v9724_v24, %v16636_v45  ;;  %v9767_v47 = vpop.f32.mrf.mxu1  ;;  %v587_v23 = vld [vmem:[#allocation2 + $0xc88] sm:$0xff] }
 0x233   :  { %9969 = vmatmul.mubr.bf16.vlgmr.msra.gmra.mxu0 %v16491_v16  ;;  %10010 = vmatmul.mubr.bf16.vlgmr.msra.gmra.mxu1 %v16496_v20  ;;  %v9726_v35 = vpop.f32.mrf.mxu0  ;;  %v591_v24 = vld [vmem:[#allocation2 + $0xca8] sm:$0xff] }
 0x234   :  { %10019 = vmatpush1.bf16.msra.mxu0 %v14159_v11  ;;  %10060 = vmatpush1.bf16.msra.mxu1 %v14287_v12  ;;  %v16646_v42 = vadd.f32 %v9765_v33, %v9725_v30  ;;  %v9727_v43 = vadd.f32 %v9726_v35, %v16641_v61  ;;  %v9769_v60 = vpop.f32.mrf.mxu1  ;;  %v14271_v61 = vcombine.low %v611_v27, %v615_v29  ;;  %v455_v35 = vld [vmem:[#allocation2 + $0x868] sm:$0xff] }
 0x235   :  { %10020 = vmatprep.subr.bf16.mxu0 %v14152_v14  ;;  %10061 = vmatprep.subr.bf16.mxu1 %v14280_v15  ;;  %v9728_v45 = vpop.f32.mrf.mxu0  ;;  %v14263_v11 = vcombine.low %v603_v54, %v607_v55  ;;  %v14128_v12 = vcombine.high %v467_v1, %v471_v4  ;;  %v14256_v14 = vcombine.high %v595_v7, %v599_v8  ;;  %v459_v15 = vld [vmem:[#allocation2 + $0x888] sm:$0xff] }
 0x236   :  { %10050 = vmatprep.mubr.bf16.mxu0 %v16501_v28  ;;  %10091 = vmatprep.mubr.bf16.mxu1 %v16504_v31  ;;  %v16651_v57 = vadd.f32 %v9767_v47, %v9727_v43  ;;  %v9770_v2 = vpop.f32.mrf.mxu1  ;;  %v14127_v27 = vcombine.low %v467_v1, %v471_v4  ;;  %v14255_v29 = vcombine.low %v595_v7, %v599_v8  ;;  %v443_v53 = vld [vmem:[#allocation2 + $0x808] sm:$0xff] }
 0x237   :  { %v9729_v63 = vpop.f32.mrf.mxu0  ;;  %v14120_v30 = vcombine.high %v459_v15, %v463_v22  ;;  %v14248_v33 = vcombine.high %v587_v23, %v591_v24  ;;  %v14119_v43 = vcombine.low %v459_v15, %v463_v22  ;;  %v14247_v47 = vcombine.low %v587_v23, %v591_v24  ;;  %v447_v45 = vld [vmem:[#allocation2 + $0x828] sm:$0xff] }
 0x238   :  { %10021 = vmatpush1.bf16.msra.mxu0 %v14151_v34  ;;  %10062 = vmatpush1.bf16.msra.mxu1 %v14279_v36  ;;  %v451_v34 = vld [vmem:[#allocation2 + $0x848] sm:$0xff]  ;;  %v14104_v63 = vcombine.high %v443_v53, %v447_v45  ;;  %v14103_v4 = vcombine.low %v443_v53, %v447_v45 }
 0x239   :  { %10022 = vmatprep.subr.bf16.mxu0 %v14144_v41  ;;  %10063 = vmatprep.subr.bf16.mxu1 %v14272_v48  ;;  %v579_v36 = vld [vmem:[#allocation2 + $0xc48] sm:$0xff]  ;;  %v14112_v48 = vcombine.high %v451_v34, %v455_v35  ;;  %v14111_v60 = vcombine.low %v451_v34, %v455_v35 }
 0x23a   :  { %v583_v41 = vld [vmem:[#allocation2 + $0xc68] sm:$0xff] }
 0x23b   :  { %v14240_v52 = vcombine.high %v579_v36, %v583_v41  ;;  %v571_v54 = vld [vmem:[#allocation2 + $0xc08] sm:$0xff] }
 0x23c   :  { %10023 = vmatpush1.bf16.msra.mxu0 %v14143_v62  ;;  %10064 = vmatpush1.bf16.msra.mxu1 %v14271_v61  ;;  %v575_v55 = vld [vmem:[#allocation2 + $0xc28] sm:$0xff]  ;;  %v14239_v62 = vcombine.low %v579_v36, %v583_v41 }
 0x23d   :  { %10024 = vmatprep.subr.bf16.mxu0 %v14136_v19  ;;  %10065 = vmatprep.subr.bf16.mxu1 %v14264_v0  ;;  %v14232_v61 = vcombine.high %v571_v54, %v575_v55  ;;  %v563_v19 = vld [vmem:[#allocation2 + $0xbc8] sm:$0xff]  ;;  %v14231_v7 = vcombine.low %v571_v54, %v575_v55 }
 0x23e   :  { %v567_v2 = vld [vmem:[#allocation2 + $0xbe8] sm:$0xff] }
 0x23f   :  { %v691_v0 = vld [vmem:[#allocation2 + $0xfc8] sm:$0xff]  ;;  %v14224_v8 = vcombine.high %v563_v19, %v567_v2  ;;  %v14223_v22 = vcombine.low %v563_v19, %v567_v2 }
 0x240   :  { %10025 = vmatpush1.bf16.msra.mxu0 %v14135_v32  ;;  %10066 = vmatpush1.bf16.msra.mxu1 %v14263_v11  ;;  %v695_v1 = vld [vmem:[#allocation2 + $0xfe8] sm:$0xff] }
 0x241   :  { %10026 = vmatprep.subr.bf16.mxu0 %v14128_v12  ;;  %10067 = vmatprep.subr.bf16.mxu1 %v14256_v14  ;;  %v14352_v32 = vcombine.high %v691_v0, %v695_v1  ;;  %v555_v11 = vld [vmem:[#allocation2 + $0xb88] sm:$0xff]  ;;  %v14351_v23 = vcombine.low %v691_v0, %v695_v1 }
 0x242   :  { %v559_v12 = vld [vmem:[#allocation2 + $0xba8] sm:$0xff] }
 0x243   :  { %v683_v14 = vld [vmem:[#allocation2 + $0xf88] sm:$0xff]  ;;  %v14216_v24 = vcombine.high %v555_v11, %v559_v12  ;;  %v14215_v35 = vcombine.low %v555_v11, %v559_v12 }
 0x244   :  { %10027 = vmatpush1.bf16.msra.mxu0 %v14127_v27  ;;  %10068 = vmatpush1.bf16.msra.mxu1 %v14255_v29  ;;  %v687_v15 = vld [vmem:[#allocation2 + $0xfa8] sm:$0xff] }
 0x245   :  { %10028 = vmatprep.subr.bf16.mxu0 %v14120_v30  ;;  %10069 = vmatprep.subr.bf16.mxu1 %v14248_v33  ;;  %v14344_v27 = vcombine.high %v683_v14, %v687_v15  ;;  %v547_v29 = vld [vmem:[#allocation2 + $0xb48] sm:$0xff]  ;;  %v14343_v36 = vcombine.low %v683_v14, %v687_v15 }
 0x246   :  { %v551_v30 = vld [vmem:[#allocation2 + $0xb68] sm:$0xff] }
 0x247   :  { %v675_v33 = vld [vmem:[#allocation2 + $0xf48] sm:$0xff]  ;;  %v14208_v41 = vcombine.high %v547_v29, %v551_v30  ;;  %v14207_v45 = vcombine.low %v547_v29, %v551_v30 }
 0x248   :  { %10029 = vmatpush1.bf16.msra.mxu0 %v14119_v43  ;;  %10070 = vmatpush1.bf16.msra.mxu1 %v14247_v47  ;;  %v679_v34 = vld [vmem:[#allocation2 + $0xf68] sm:$0xff] }
 0x249   :  { %10030 = vmatprep.subr.bf16.mxu0 %v14112_v48  ;;  %10071 = vmatprep.subr.bf16.mxu1 %v14240_v52  ;;  %v14336_v43 = vcombine.high %v675_v33, %v679_v34  ;;  %v539_v47 = vld [vmem:[#allocation2 + $0xb08] sm:$0xff]  ;;  %v14335_v54 = vcombine.low %v675_v33, %v679_v34 }
 0x24a   :  { %v543_v48 = vld [vmem:[#allocation2 + $0xb28] sm:$0xff] }
 0x24b   :  { %v667_v52 = vld [vmem:[#allocation2 + $0xf08] sm:$0xff]  ;;  %v14200_v55 = vcombine.high %v539_v47, %v543_v48  ;;  %v14199_v2 = vcombine.low %v539_v47, %v543_v48 }
 0x24c   :  { %10031 = vmatpush1.bf16.msra.mxu0 %v14111_v60  ;;  %10072 = vmatpush1.bf16.msra.mxu1 %v14239_v62  ;;  %v671_v53 = vld [vmem:[#allocation2 + $0xf28] sm:$0xff] }
 0x24d   :  { %10032 = vmatprep.subr.bf16.mxu0 %v14104_v63  ;;  %10073 = vmatprep.subr.bf16.mxu1 %v14232_v61  ;;  %v14328_v60 = vcombine.high %v667_v52, %v671_v53  ;;  %v531_v62 = vld [vmem:[#allocation2 + $0xac8] sm:$0xff]  ;;  %v14327_v0 = vcombine.low %v667_v52, %v671_v53 }
 0x24e   :  { %v535_v63 = vld [vmem:[#allocation2 + $0xae8] sm:$0xff] }
 0x24f   :  { %v659_v61 = vld [vmem:[#allocation2 + $0xec8] sm:$0xff]  ;;  %v14192_v1 = vcombine.high %v531_v62, %v535_v63  ;;  %v14191_v12 = vcombine.low %v531_v62, %v535_v63 }
 0x250   :  { %10033 = vmatpush1.bf16.msra.mxu0 %v14103_v4  ;;  %10074 = vmatpush1.bf16.msra.mxu1 %v14231_v7  ;;  %v663_v19 = vld [vmem:[#allocation2 + $0xee8] sm:$0xff] }
 0x251   :  { %10034 = vmatprep.subr.bf16.mxu0 %v14224_v8  ;;  %10075 = vmatprep.subr.bf16.mxu1 %v14352_v32  ;;  %v14320_v4 = vcombine.high %v659_v61, %v663_v19  ;;  %v523_v7 = vld [vmem:[#allocation2 + $0xa88] sm:$0xff]  ;;  %v14319_v14 = vcombine.low %v659_v61, %v663_v19 }
 0x252   :  { %v527_v8 = vld [vmem:[#allocation2 + $0xaa8] sm:$0xff] }
 0x253   :  { %v651_v32 = vld [vmem:[#allocation2 + $0xe88] sm:$0xff]  ;;  %v14184_v15 = vcombine.high %v523_v7, %v527_v8  ;;  %v14183_v30 = vcombine.low %v523_v7, %v527_v8 }
 0x254   :  { %10035 = vmatpush2.bf16.msra.mxu0 %v14223_v22  ;;  %10076 = vmatpush2.bf16.msra.mxu1 %v14351_v23  ;;  %v655_v11 = vld [vmem:[#allocation2 + $0xea8] sm:$0xff] }
 0x255   :  { %10036 = vmatprep.subr.bf16.mxu0 %v14216_v24  ;;  %10077 = vmatprep.subr.bf16.mxu1 %v14344_v27  ;;  %v14312_v22 = vcombine.high %v651_v32, %v655_v11  ;;  %v515_v23 = vld [vmem:[#allocation2 + $0xa48] sm:$0xff]  ;;  %v14311_v33 = vcombine.low %v651_v32, %v655_v11 }
 0x256   :  { %v519_v24 = vld [vmem:[#allocation2 + $0xa68] sm:$0xff] }
 0x257   :  { %v643_v27 = vld [vmem:[#allocation2 + $0xe48] sm:$0xff]  ;;  %v14176_v34 = vcombine.high %v515_v23, %v519_v24  ;;  %v14175_v48 = vcombine.low %v515_v23, %v519_v24 }
 0x258   :  { %10037 = vmatpush2.bf16.msra.mxu0 %v14215_v35  ;;  %10078 = vmatpush2.bf16.msra.mxu1 %v14343_v36  ;;  %v647_v29 = vld [vmem:[#allocation2 + $0xe68] sm:$0xff] }
 0x259   :  { %10038 = vmatprep.subr.bf16.mxu0 %v14208_v41  ;;  %10079 = vmatprep.subr.bf16.mxu1 %v14336_v43  ;;  %v14304_v35 = vcombine.high %v643_v27, %v647_v29  ;;  %v507_v36 = vld [vmem:[#allocation2 + $0xa08] sm:$0xff]  ;;  %v14303_v52 = vcombine.low %v643_v27, %v647_v29 }
 0x25a   :  { %v511_v41 = vld [vmem:[#allocation2 + $0xa28] sm:$0xff] }
 0x25b   :  { %v635_v43 = vld [vmem:[#allocation2 + $0xe08] sm:$0xff]  ;;  %v14168_v53 = vcombine.high %v507_v36, %v511_v41  ;;  %v14167_v63 = vcombine.low %v507_v36, %v511_v41 }
 0x25c   :  { %10039 = vmatpush2.bf16.msra.mxu0 %v14207_v45  ;;  %10080 = vmatpush2.bf16.msra.mxu1 %v14335_v54  ;;  %v639_v47 = vld [vmem:[#allocation2 + $0xe28] sm:$0xff] }
 0x25d   :  { %10040 = vmatprep.subr.bf16.mxu0 %v14200_v55  ;;  %10081 = vmatprep.subr.bf16.mxu1 %v14328_v60  ;;  %v14296_v45 = vcombine.high %v635_v43, %v639_v47  ;;  %v755_v54 = vld [vmem:[#allocation2 + $0x11c8] sm:$0xff]  ;;  %v14295_v61 = vcombine.low %v635_v43, %v639_v47 }
 0x25e   :  { %v759_v55 = vld [vmem:[#allocation2 + $0x11e8] sm:$0xff] }
 0x25f   :  { %v883_v60 = vld [vmem:[#allocation2 + $0x15c8] sm:$0xff]  ;;  %v14416_v19 = vcombine.high %v755_v54, %v759_v55  ;;  %v14415_v8 = vcombine.low %v755_v54, %v759_v55 }
 0x260   :  { %10041 = vmatpush2.bf16.msra.mxu0 %v14199_v2  ;;  %10082 = vmatpush2.bf16.msra.mxu1 %v14327_v0  ;;  %v887_v62 = vld [vmem:[#allocation2 + $0x15e8] sm:$0xff] }
 0x261   :  { %10042 = vmatprep.subr.bf16.mxu0 %v14192_v1  ;;  %10083 = vmatprep.subr.bf16.mxu1 %v14320_v4  ;;  %v14544_v2 = vcombine.high %v883_v60, %v887_v62  ;;  %v747_v0 = vld [vmem:[#allocation2 + $0x1188] sm:$0xff]  ;;  %v14543_v32 = vcombine.low %v883_v60, %v887_v62 }
 0x262   :  { %v751_v1 = vld [vmem:[#allocation2 + $0x11a8] sm:$0xff] }
 0x263   :  { %v875_v4 = vld [vmem:[#allocation2 + $0x1588] sm:$0xff]  ;;  %v14408_v11 = vcombine.high %v747_v0, %v751_v1 }
 0x264   :  { %10043 = vmatpush2.bf16.msra.mxu0 %v14191_v12  ;;  %10084 = vmatpush2.bf16.msra.mxu1 %v14319_v14  ;;  %v879_v7 = vld [vmem:[#allocation2 + $0x15a8] sm:$0xff] }
 0x265   :  { %10044 = vmatprep.subr.bf16.mxu0 %v14184_v15  ;;  %10085 = vmatprep.subr.bf16.mxu1 %v14312_v22  ;;  %v14536_v12 = vcombine.high %v875_v4, %v879_v7  ;;  %v739_v14 = vld [vmem:[#allocation2 + $0x1148] sm:$0xff] }
 0x266   :  { %v743_v15 = vld [vmem:[#allocation2 + $0x1168] sm:$0xff] }
 0x267   :  { %v867_v23 = vld [vmem:[#allocation2 + $0x1548] sm:$0xff]  ;;  %v14399_v60 = vcombine.low %v739_v14, %v743_v15 }
 0x268   :  { %10045 = vmatpush2.bf16.msra.mxu0 %v14183_v30  ;;  %10086 = vmatpush2.bf16.msra.mxu1 %v14311_v33  ;;  %v871_v24 = vld [vmem:[#allocation2 + $0x1568] sm:$0xff]  ;;  %v14407_v30 = vcombine.low %v747_v0, %v751_v1 }
 0x269   :  { %10046 = vmatprep.subr.bf16.mxu0 %v14176_v34  ;;  %10087 = vmatprep.subr.bf16.mxu1 %v14304_v35  ;;  %v14535_v34 = vcombine.low %v875_v4, %v879_v7  ;;  %v14400_v35 = vcombine.high %v739_v14, %v743_v15  ;;  %v14528_v47 = vcombine.high %v867_v23, %v871_v24  ;;  %v727_v0 = vld [vmem:[#allocation2 + $0x10e8] sm:$0xff] }
 0x26a   :  { %v851_v1 = vld [vmem:[#allocation2 + $0x14c8] sm:$0xff] }
 0x26b   :  { %v855_v4 = vld [vmem:[#allocation2 + $0x14e8] sm:$0xff] }
 0x26c   :  { %10047 = vmatpush2.bf16.msra.mxu0 %v14175_v48  ;;  %10088 = vmatpush2.bf16.msra.mxu1 %v14303_v52  ;;  %v731_v48 = vld [vmem:[#allocation2 + $0x1108] sm:$0xff] }
 0x26d   :  { %10048 = vmatprep.subr.bf16.mxu0 %v14168_v53  ;;  %10089 = vmatprep.subr.bf16.mxu1 %v14296_v45  ;;  %v735_v52 = vld [vmem:[#allocation2 + $0x1128] sm:$0xff] }
 0x26e   :  { %v859_v53 = vld [vmem:[#allocation2 + $0x1508] sm:$0xff]  ;;  %v14391_v7 = vcombine.low %v731_v48, %v735_v52 }
 0x26f   :  { %v863_v45 = vld [vmem:[#allocation2 + $0x1528] sm:$0xff] }
 0x270   :  { %10049 = vmatpush2.bf16.msra.mxu0 %v14167_v63  ;;  %10090 = vmatpush2.bf16.msra.mxu1 %v14295_v61  ;;  %v14392_v63 = vcombine.high %v731_v48, %v735_v52  ;;  %v719_v14 = vld [vmem:[#allocation2 + $0x10a8] sm:$0xff] }
 0x271   :  { %10100 = vmatprep.subr.bf16.mxu0 %v14416_v19  ;;  %10141 = vmatprep.subr.bf16.mxu1 %v14544_v2  ;;  %v14520_v19 = vcombine.high %v859_v53, %v863_v45  ;;  %v723_v2 = vld [vmem:[#allocation2 + $0x10c8] sm:$0xff] }
 0x272   :  { %v9847_v29 = vpop.f32.mrf.mxu1  ;;  %v843_v15 = vld [vmem:[#allocation2 + $0x1488] sm:$0xff] }
 0x273   :  { %v9806_v22 = vpop.f32.mrf.mxu0  ;;  %10051 = vmatmul.mubr.bf16.vlgmr.msra.gmra.mxu0 %v16518_v39  ;;  %10092 = vmatmul.mubr.bf16.vlgmr.msra.gmra.mxu1 %v16520_v40  ;;  %v699_v52 = vld [vmem:[#allocation2 + $0x1008] sm:$0xff] }
 0x274   :  { %v9807_v27 = vadd.f32 %v9806_v22, %v16646_v42  ;;  %10101 = vmatpush1.bf16.msra.mxu0 %v14415_v8  ;;  %10142 = vmatpush1.bf16.msra.mxu1 %v14543_v32  ;;  %v9849_v43 = vpop.f32.mrf.mxu1  ;;  %v14519_v8 = vcombine.low %v859_v53, %v863_v45  ;;  %v14384_v32 = vcombine.high %v723_v2, %v727_v0  ;;  %v847_v22 = vld [vmem:[#allocation2 + $0x14a8] sm:$0xff] }
 0x275   :  { %v9808_v33 = vpop.f32.mrf.mxu0  ;;  %10102 = vmatprep.subr.bf16.mxu0 %v14408_v11  ;;  %10143 = vmatprep.subr.bf16.mxu1 %v14536_v12  ;;  %v14512_v11 = vcombine.high %v851_v1, %v855_v4  ;;  %v715_v12 = vld [vmem:[#allocation2 + $0x1088] sm:$0xff] }
 0x276   :  { %v16656_v36 = vadd.f32 %v9847_v29, %v9807_v27  ;;  %v9809_v41 = vadd.f32 %v9808_v33, %v16651_v57  ;;  %10132 = vmatprep.mubr.bf16.mxu0 %v16525_v49  ;;  %10173 = vmatprep.mubr.bf16.mxu1 %v16528_v51  ;;  %v9851_v55 = vpop.f32.mrf.mxu1  ;;  %v14527_v57 = vcombine.low %v867_v23, %v871_v24  ;;  %v711_v33 = vld [vmem:[#allocation2 + $0x1068] sm:$0xff] }
 0x277   :  { %v9810_v42 = vpop.f32.mrf.mxu0  ;;  %v14383_v23 = vcombine.low %v723_v2, %v727_v0  ;;  %v14511_v24 = vcombine.low %v851_v1, %v855_v4  ;;  %v14376_v27 = vcombine.high %v715_v12, %v719_v14  ;;  %v14504_v29 = vcombine.high %v843_v15, %v847_v22  ;;  %v827_v53 = vld [vmem:[#allocation2 + $0x1408] sm:$0xff] }
 0x278   :  { %v16661_v54 = vadd.f32 %v9849_v43, %v9809_v41  ;;  %10103 = vmatpush1.bf16.msra.mxu0 %v14407_v30  ;;  %10144 = vmatpush1.bf16.msra.mxu1 %v14535_v34  ;;  %v9852_v61 = vpop.f32.mrf.mxu1  ;;  %v707_v30 = vld [vmem:[#allocation2 + $0x1048] sm:$0xff]  ;;  %v14375_v41 = vcombine.low %v715_v12, %v719_v14  ;;  %v14503_v43 = vcombine.low %v843_v15, %v847_v22 }
 0x279   :  { %v9811_v62 = vpop.f32.mrf.mxu0  ;;  %10104 = vmatprep.subr.bf16.mxu0 %v14400_v35  ;;  %10145 = vmatprep.subr.bf16.mxu1 %v14528_v47  ;;  %v835_v34 = vld [vmem:[#allocation2 + $0x1448] sm:$0xff]  ;;  %v14368_v47 = vcombine.high %v707_v30, %v711_v33  ;;  %v14367_v55 = vcombine.low %v707_v30, %v711_v33 }
 0x27a   :  { %v839_v35 = vld [vmem:[#allocation2 + $0x1468] sm:$0xff] }
 0x27b   :  { %v14496_v48 = vcombine.high %v835_v34, %v839_v35  ;;  %v703_v42 = vld [vmem:[#allocation2 + $0x1028] sm:$0xff] }
 0x27c   :  { %10105 = vmatpush1.bf16.msra.mxu0 %v14399_v60  ;;  %10146 = vmatpush1.bf16.msra.mxu1 %v14527_v57  ;;  %v831_v45 = vld [vmem:[#allocation2 + $0x1428] sm:$0xff]  ;;  %v14495_v60 = vcombine.low %v835_v34, %v839_v35  ;;  %v14360_v62 = vcombine.high %v699_v52, %v703_v42  ;;  %v14359_v0 = vcombine.low %v699_v52, %v703_v42 }
 0x27d   :  { %10106 = vmatprep.subr.bf16.mxu0 %v14392_v63  ;;  %10147 = vmatprep.subr.bf16.mxu1 %v14520_v19  ;;  %v14488_v57 = vcombine.high %v827_v53, %v831_v45  ;;  %v819_v63 = vld [vmem:[#allocation2 + $0x13c8] sm:$0xff]  ;;  %v14487_v1 = vcombine.low %v827_v53, %v831_v45 }
 0x27e   :  { %v823_v61 = vld [vmem:[#allocation2 + $0x13e8] sm:$0xff] }
 0x27f   :  { %v947_v19 = vld [vmem:[#allocation2 + $0x17c8] sm:$0xff]  ;;  %v14480_v4 = vcombine.high %v819_v63, %v823_v61  ;;  %v14479_v14 = vcombine.low %v819_v63, %v823_v61 }
 0x280   :  { %10107 = vmatpush1.bf16.msra.mxu0 %v14391_v7  ;;  %10148 = vmatpush1.bf16.msra.mxu1 %v14519_v8  ;;  %v951_v2 = vld [vmem:[#allocation2 + $0x17e8] sm:$0xff] }
 0x281   :  { %10108 = vmatprep.subr.bf16.mxu0 %v14384_v32  ;;  %10149 = vmatprep.subr.bf16.mxu1 %v14512_v11  ;;  %v14608_v7 = vcombine.high %v947_v19, %v951_v2  ;;  %v811_v8 = vld [vmem:[#allocation2 + $0x1388] sm:$0xff]  ;;  %v14607_v15 = vcombine.low %v947_v19, %v951_v2 }
 0x282   :  { %v815_v32 = vld [vmem:[#allocation2 + $0x13a8] sm:$0xff] }
 0x283   :  { %v939_v11 = vld [vmem:[#allocation2 + $0x1788] sm:$0xff]  ;;  %v14472_v22 = vcombine.high %v811_v8, %v815_v32  ;;  %v14471_v33 = vcombine.low %v811_v8, %v815_v32 }
 0x284   :  { %10109 = vmatpush1.bf16.msra.mxu0 %v14383_v23  ;;  %10150 = vmatpush1.bf16.msra.mxu1 %v14511_v24  ;;  %v943_v12 = vld [vmem:[#allocation2 + $0x17a8] sm:$0xff] }
 0x285   :  { %10110 = vmatprep.subr.bf16.mxu0 %v14376_v27  ;;  %10151 = vmatprep.subr.bf16.mxu1 %v14504_v29  ;;  %v14600_v23 = vcombine.high %v939_v11, %v943_v12  ;;  %v803_v24 = vld [vmem:[#allocation2 + $0x1348] sm:$0xff]  ;;  %v14599_v34 = vcombine.low %v939_v11, %v943_v12 }
 0x286   :  { %v807_v27 = vld [vmem:[#allocation2 + $0x1368] sm:$0xff] }
 0x287   :  { %v931_v29 = vld [vmem:[#allocation2 + $0x1748] sm:$0xff]  ;;  %v14464_v35 = vcombine.high %v803_v24, %v807_v27  ;;  %v14463_v42 = vcombine.low %v803_v24, %v807_v27 }
 0x288   :  { %10111 = vmatpush1.bf16.msra.mxu0 %v14375_v41  ;;  %10152 = vmatpush1.bf16.msra.mxu1 %v14503_v43  ;;  %v935_v30 = vld [vmem:[#allocation2 + $0x1768] sm:$0xff] }
 0x289   :  { %10112 = vmatprep.subr.bf16.mxu0 %v14368_v47  ;;  %10153 = vmatprep.subr.bf16.mxu1 %v14496_v48  ;;  %v14592_v41 = vcombine.high %v931_v29, %v935_v30  ;;  %v795_v43 = vld [vmem:[#allocation2 + $0x1308] sm:$0xff]  ;;  %v14591_v53 = vcombine.low %v931_v29, %v935_v30 }
 0x28a   :  { %v799_v47 = vld [vmem:[#allocation2 + $0x1328] sm:$0xff] }
 0x28b   :  { %v923_v48 = vld [vmem:[#allocation2 + $0x1708] sm:$0xff]  ;;  %v14456_v45 = vcombine.high %v795_v43, %v799_v47  ;;  %v14455_v61 = vcombine.low %v795_v43, %v799_v47 }
 0x28c   :  { %10113 = vmatpush1.bf16.msra.mxu0 %v14367_v55  ;;  %10154 = vmatpush1.bf16.msra.mxu1 %v14495_v60  ;;  %v927_v52 = vld [vmem:[#allocation2 + $0x1728] sm:$0xff] }
 0x28d   :  { %10114 = vmatprep.subr.bf16.mxu0 %v14360_v62  ;;  %10155 = vmatprep.subr.bf16.mxu1 %v14488_v57  ;;  %v14584_v55 = vcombine.high %v923_v48, %v927_v52  ;;  %v787_v60 = vld [vmem:[#allocation2 + $0x12c8] sm:$0xff]  ;;  %v14583_v19 = vcombine.low %v923_v48, %v927_v52 }
 0x28e   :  { %v791_v62 = vld [vmem:[#allocation2 + $0x12e8] sm:$0xff] }
 0x28f   :  { %v915_v57 = vld [vmem:[#allocation2 + $0x16c8] sm:$0xff]  ;;  %v14448_v2 = vcombine.high %v787_v60, %v791_v62  ;;  %v14447_v32 = vcombine.low %v787_v60, %v791_v62 }
 0x290   :  { %10115 = vmatpush1.bf16.msra.mxu0 %v14359_v0  ;;  %10156 = vmatpush1.bf16.msra.mxu1 %v14487_v1  ;;  %v919_v63 = vld [vmem:[#allocation2 + $0x16e8] sm:$0xff] }
 0x291   :  { %10116 = vmatprep.subr.bf16.mxu0 %v14480_v4  ;;  %10157 = vmatprep.subr.bf16.mxu1 %v14608_v7  ;;  %v14576_v0 = vcombine.high %v915_v57, %v919_v63  ;;  %v779_v1 = vld [vmem:[#allocation2 + $0x1288] sm:$0xff]  ;;  %v14575_v11 = vcombine.low %v915_v57, %v919_v63 }
 0x292   :  { %v783_v4 = vld [vmem:[#allocation2 + $0x12a8] sm:$0xff] }
 0x293   :  { %v907_v7 = vld [vmem:[#allocation2 + $0x1688] sm:$0xff]  ;;  %v14440_v12 = vcombine.high %v779_v1, %v783_v4  ;;  %v14439_v27 = vcombine.low %v779_v1, %v783_v4 }
 0x294   :  { %10117 = vmatpush2.bf16.msra.mxu0 %v14479_v14  ;;  %10158 = vmatpush2.bf16.msra.mxu1 %v14607_v15  ;;  %v911_v8 = vld [vmem:[#allocation2 + $0x16a8] sm:$0xff] }
 0x295   :  { %10118 = vmatprep.subr.bf16.mxu0 %v14472_v22  ;;  %10159 = vmatprep.subr.bf16.mxu1 %v14600_v23  ;;  %v14568_v14 = vcombine.high %v907_v7, %v911_v8  ;;  %v771_v15 = vld [vmem:[#allocation2 + $0x1248] sm:$0xff]  ;;  %v14567_v29 = vcombine.low %v907_v7, %v911_v8 }
 0x296   :  { %v775_v22 = vld [vmem:[#allocation2 + $0x1268] sm:$0xff] }
 0x297   :  { %v899_v23 = vld [vmem:[#allocation2 + $0x1648] sm:$0xff]  ;;  %v14432_v30 = vcombine.high %v771_v15, %v775_v22  ;;  %v14431_v47 = vcombine.low %v771_v15, %v775_v22 }
 0x298   :  { %10119 = vmatpush2.bf16.msra.mxu0 %v14471_v33  ;;  %10160 = vmatpush2.bf16.msra.mxu1 %v14599_v34  ;;  %v903_v24 = vld [vmem:[#allocation2 + $0x1668] sm:$0xff] }
 0x299   :  { %10120 = vmatprep.subr.bf16.mxu0 %v14464_v35  ;;  %10161 = vmatprep.subr.bf16.mxu1 %v14592_v41  ;;  %v14560_v33 = vcombine.high %v899_v23, %v903_v24  ;;  %v763_v34 = vld [vmem:[#allocation2 + $0x1208] sm:$0xff]  ;;  %v14559_v48 = vcombine.low %v899_v23, %v903_v24 }
 0x29a   :  { %v767_v35 = vld [vmem:[#allocation2 + $0x1228] sm:$0xff] }
 0x29b   :  { %v891_v41 = vld [vmem:[#allocation2 + $0x1608] sm:$0xff]  ;;  %v14424_v52 = vcombine.high %v763_v34, %v767_v35  ;;  %v14423_v62 = vcombine.low %v763_v34, %v767_v35 }
 0x29c   :  { %10121 = vmatpush2.bf16.msra.mxu0 %v14463_v42  ;;  %10162 = vmatpush2.bf16.msra.mxu1 %v14591_v53  ;;  %v895_v43 = vld [vmem:[#allocation2 + $0x1628] sm:$0xff] }
 0x29d   :  { %10122 = vmatprep.subr.bf16.mxu0 %v14456_v45  ;;  %10163 = vmatprep.subr.bf16.mxu1 %v14584_v55  ;;  %v14552_v42 = vcombine.high %v891_v41, %v895_v43  ;;  %v1011_v53 = vld [vmem:[#allocation2 + $0x19c8] sm:$0xff]  ;;  %v14551_v57 = vcombine.low %v891_v41, %v895_v43 }
 0x29e   :  { %v1015_v45 = vld [vmem:[#allocation2 + $0x19e8] sm:$0xff] }
 0x29f   :  { %v1139_v55 = vld [vmem:[#allocation2 + $0x1dc8] sm:$0xff]  ;;  %v14672_v63 = vcombine.high %v1011_v53, %v1015_v45  ;;  %v14671_v4 = vcombine.low %v1011_v53, %v1015_v45 }
 0x2a0   :  { %10123 = vmatpush2.bf16.msra.mxu0 %v14455_v61  ;;  %10164 = vmatpush2.bf16.msra.mxu1 %v14583_v19  ;;  %v1143_v60 = vld [vmem:[#allocation2 + $0x1de8] sm:$0xff] }
 0x2a1   :  { %10124 = vmatprep.subr.bf16.mxu0 %v14448_v2  ;;  %10165 = vmatprep.subr.bf16.mxu1 %v14576_v0  ;;  %v14800_v61 = vcombine.high %v1139_v55, %v1143_v60  ;;  %v1003_v19 = vld [vmem:[#allocation2 + $0x1988] sm:$0xff]  ;;  %v14799_v7 = vcombine.low %v1139_v55, %v1143_v60 }
 0x2a2   :  { %v1007_v2 = vld [vmem:[#allocation2 + $0x19a8] sm:$0xff] }
 0x2a3   :  { %v1131_v0 = vld [vmem:[#allocation2 + $0x1d88] sm:$0xff]  ;;  %v14664_v8 = vcombine.high %v1003_v19, %v1007_v2 }
 0x2a4   :  { %10125 = vmatpush2.bf16.msra.mxu0 %v14447_v32  ;;  %10166 = vmatpush2.bf16.msra.mxu1 %v14575_v11  ;;  %v1135_v1 = vld [vmem:[#allocation2 + $0x1da8] sm:$0xff] }
 0x2a5   :  { %10126 = vmatprep.subr.bf16.mxu0 %v14440_v12  ;;  %10167 = vmatprep.subr.bf16.mxu1 %v14568_v14  ;;  %v14792_v32 = vcombine.high %v1131_v0, %v1135_v1  ;;  %v995_v11 = vld [vmem:[#allocation2 + $0x1948] sm:$0xff] }
 0x2a6   :  { %v999_v12 = vld [vmem:[#allocation2 + $0x1968] sm:$0xff] }
 0x2a7   :  { %v1123_v15 = vld [vmem:[#allocation2 + $0x1d48] sm:$0xff]  ;;  %v14655_v55 = vcombine.low %v995_v11, %v999_v12 }
 0x2a8   :  { %10127 = vmatpush2.bf16.msra.mxu0 %v14439_v27  ;;  %10168 = vmatpush2.bf16.msra.mxu1 %v14567_v29  ;;  %v1127_v22 = vld [vmem:[#allocation2 + $0x1d68] sm:$0xff]  ;;  %v14663_v27 = vcombine.low %v1003_v19, %v1007_v2 }
 0x2a9   :  { %10128 = vmatprep.subr.bf16.mxu0 %v14432_v30  ;;  %10169 = vmatprep.subr.bf16.mxu1 %v14560_v33  ;;  %v14791_v30 = vcombine.low %v1131_v0, %v1135_v1  ;;  %v14656_v33 = vcombine.high %v995_v11, %v999_v12  ;;  %v14784_v43 = vcombine.high %v1123_v15, %v1127_v22  ;;  %v983_v19 = vld [vmem:[#allocation2 + $0x18e8] sm:$0xff] }
 0x2aa   :  { %v1107_v2 = vld [vmem:[#allocation2 + $0x1cc8] sm:$0xff] }
 0x2ab   :  { %v1111_v0 = vld [vmem:[#allocation2 + $0x1ce8] sm:$0xff] }
 0x2ac   :  { %10129 = vmatpush2.bf16.msra.mxu0 %v14431_v47  ;;  %10170 = vmatpush2.bf16.msra.mxu1 %v14559_v48  ;;  %v987_v47 = vld [vmem:[#allocation2 + $0x1908] sm:$0xff] }
 0x2ad   :  { %10130 = vmatprep.subr.bf16.mxu0 %v14424_v52  ;;  %10171 = vmatprep.subr.bf16.mxu1 %v14552_v42  ;;  %v991_v48 = vld [vmem:[#allocation2 + $0x1928] sm:$0xff] }
 0x2ae   :  { %v1115_v52 = vld [vmem:[#allocation2 + $0x1d08] sm:$0xff]  ;;  %v14647_v1 = vcombine.low %v987_v47, %v991_v48 }
 0x2af   :  { %v1119_v42 = vld [vmem:[#allocation2 + $0x1d28] sm:$0xff] }
 0x2b0   :  { %10131 = vmatpush2.bf16.msra.mxu0 %v14423_v62  ;;  %10172 = vmatpush2.bf16.msra.mxu1 %v14551_v57  ;;  %v14648_v62 = vcombine.high %v987_v47, %v991_v48  ;;  %v975_v11 = vld [vmem:[#allocation2 + $0x18a8] sm:$0xff] }
 0x2b1   :  { %10182 = vmatprep.subr.bf16.mxu0 %v14672_v63  ;;  %10223 = vmatprep.subr.bf16.mxu1 %v14800_v61  ;;  %v14776_v63 = vcombine.high %v1115_v52, %v1119_v42  ;;  %v979_v61 = vld [vmem:[#allocation2 + $0x18c8] sm:$0xff] }
 0x2b2   :  { %v1099_v12 = vld [vmem:[#allocation2 + $0x1c88] sm:$0xff] }
 0x2b3   :  { %v9888_v14 = vpop.f32.mrf.mxu0  ;;  %10133 = vmatmul.mubr.bf16.vlgmr.msra.gmra.mxu0 %v16542_v5  ;;  %v9929_v24 = vpop.f32.mrf.mxu1  ;;  %10174 = vmatmul.mubr.bf16.vlgmr.msra.gmra.mxu1 %v16544_v6  ;;  %v955_v48 = vld [vmem:[#allocation2 + $0x1808] sm:$0xff] }
 0x2b4   :  { %v9889_v23 = vadd.f32 %v9888_v14, %v16656_v36  ;;  %10183 = vmatpush1.bf16.msra.mxu0 %v14671_v4  ;;  %10224 = vmatpush1.bf16.msra.mxu1 %v14799_v7  ;;  %v14775_v4 = vcombine.low %v1115_v52, %v1119_v42  ;;  %v14640_v7 = vcombine.high %v979_v61, %v983_v19  ;;  %v1103_v14 = vld [vmem:[#allocation2 + $0x1ca8] sm:$0xff] }
 0x2b5   :  { %v9890_v29 = vpop.f32.mrf.mxu0  ;;  %10184 = vmatprep.subr.bf16.mxu0 %v14664_v8  ;;  %v9931_v41 = vpop.f32.mrf.mxu1  ;;  %10225 = vmatprep.subr.bf16.mxu1 %v14792_v32  ;;  %v14768_v8 = vcombine.high %v1107_v2, %v1111_v0  ;;  %v971_v32 = vld [vmem:[#allocation2 + $0x1888] sm:$0xff] }
 0x2b6   :  { %v16666_v34 = vadd.f32 %v9929_v24, %v9889_v23  ;;  %v9891_v35 = vadd.f32 %v9890_v29, %v16661_v54  ;;  %10214 = vmatprep.mubr.bf16.mxu0 %v16549_v17  ;;  %10255 = vmatprep.mubr.bf16.mxu1 %v16552_v18  ;;  %v14783_v54 = vcombine.low %v1123_v15, %v1127_v22  ;;  %v967_v29 = vld [vmem:[#allocation2 + $0x1868] sm:$0xff] }
 0x2b7   :  { %v9892_v36 = vpop.f32.mrf.mxu0  ;;  %v9933_v45 = vpop.f32.mrf.mxu1  ;;  %v14639_v15 = vcombine.low %v979_v61, %v983_v19  ;;  %v14767_v22 = vcombine.low %v1107_v2, %v1111_v0  ;;  %v14632_v23 = vcombine.high %v971_v32, %v975_v11  ;;  %v14760_v24 = vcombine.high %v1099_v12, %v1103_v14  ;;  %v1083_v52 = vld [vmem:[#allocation2 + $0x1c08] sm:$0xff] }
 0x2b8   :  { %v16671_v53 = vadd.f32 %v9931_v41, %v9891_v35  ;;  %10185 = vmatpush1.bf16.msra.mxu0 %v14663_v27  ;;  %10226 = vmatpush1.bf16.msra.mxu1 %v14791_v30  ;;  %v963_v27 = vld [vmem:[#allocation2 + $0x1848] sm:$0xff]  ;;  %v14631_v35 = vcombine.low %v971_v32, %v975_v11  ;;  %v14759_v41 = vcombine.low %v1099_v12, %v1103_v14 }
 0x2b9   :  { %v9893_v60 = vpop.f32.mrf.mxu0  ;;  %10186 = vmatprep.subr.bf16.mxu0 %v14656_v33  ;;  %v9934_v57 = vpop.f32.mrf.mxu1  ;;  %10227 = vmatprep.subr.bf16.mxu1 %v14784_v43  ;;  %v1091_v30 = vld [vmem:[#allocation2 + $0x1c48] sm:$0xff]  ;;  %v14624_v43 = vcombine.high %v963_v27, %v967_v29  ;;  %v14623_v45 = vcombine.low %v963_v27, %v967_v29 }
 0x2ba   :  { %v1095_v33 = vld [vmem:[#allocation2 + $0x1c68] sm:$0xff] }
 0x2bb   :  { %v14752_v47 = vcombine.high %v1091_v30, %v1095_v33  ;;  %v959_v36 = vld [vmem:[#allocation2 + $0x1828] sm:$0xff] }
 0x2bc   :  { %10187 = vmatpush1.bf16.msra.mxu0 %v14655_v55  ;;  %10228 = vmatpush1.bf16.msra.mxu1 %v14783_v54  ;;  %v1087_v42 = vld [vmem:[#allocation2 + $0x1c28] sm:$0xff]  ;;  %v14751_v55 = vcombine.low %v1091_v30, %v1095_v33  ;;  %v14616_v60 = vcombine.high %v955_v48, %v959_v36  ;;  %v14615_v19 = vcombine.low %v955_v48, %v959_v36 }
 0x2bd   :  { %10188 = vmatprep.subr.bf16.mxu0 %v14648_v62  ;;  %10229 = vmatprep.subr.bf16.mxu1 %v14776_v63  ;;  %v14744_v54 = vcombine.high %v1083_v52, %v1087_v42  ;;  %v1075_v62 = vld [vmem:[#allocation2 + $0x1bc8] sm:$0xff]  ;;  %v14743_v2 = vcombine.low %v1083_v52, %v1087_v42 }
 0x2be   :  { %v1079_v57 = vld [vmem:[#allocation2 + $0x1be8] sm:$0xff] }
 0x2bf   :  { %v1203_v63 = vld [vmem:[#allocation2 + $0x1fc8] sm:$0xff]  ;;  %v14736_v0 = vcombine.high %v1075_v62, %v1079_v57  ;;  %v14735_v11 = vcombine.low %v1075_v62, %v1079_v57 }
 0x2c0   :  { %10189 = vmatpush1.bf16.msra.mxu0 %v14647_v1  ;;  %10230 = vmatpush1.bf16.msra.mxu1 %v14775_v4  ;;  %v1207_v61 = vld [vmem:[#allocation2 + $0x1fe8] sm:$0xff] }
 0x2c1   :  { %10190 = vmatprep.subr.bf16.mxu0 %v14640_v7  ;;  %10231 = vmatprep.subr.bf16.mxu1 %v14768_v8  ;;  %v14864_v1 = vcombine.high %v1203_v63, %v1207_v61  ;;  %v1067_v4 = vld [vmem:[#allocation2 + $0x1b88] sm:$0xff]  ;;  %v14863_v12 = vcombine.low %v1203_v63, %v1207_v61 }
 0x2c2   :  { %v1071_v7 = vld [vmem:[#allocation2 + $0x1ba8] sm:$0xff] }
 0x2c3   :  { %v1195_v8 = vld [vmem:[#allocation2 + $0x1f88] sm:$0xff]  ;;  %v14728_v14 = vcombine.high %v1067_v4, %v1071_v7  ;;  %v14727_v29 = vcombine.low %v1067_v4, %v1071_v7 }
 0x2c4   :  { %10191 = vmatpush1.bf16.msra.mxu0 %v14639_v15  ;;  %10232 = vmatpush1.bf16.msra.mxu1 %v14767_v22  ;;  %v1199_v32 = vld [vmem:[#allocation2 + $0x1fa8] sm:$0xff] }
 0x2c5   :  { %10192 = vmatprep.subr.bf16.mxu0 %v14632_v23  ;;  %10233 = vmatprep.subr.bf16.mxu1 %v14760_v24  ;;  %v14856_v15 = vcombine.high %v1195_v8, %v1199_v32  ;;  %v1059_v22 = vld [vmem:[#allocation2 + $0x1b48] sm:$0xff]  ;;  %v14855_v30 = vcombine.low %v1195_v8, %v1199_v32 }
 0x2c6   :  { %v1063_v23 = vld [vmem:[#allocation2 + $0x1b68] sm:$0xff] }
 0x2c7   :  { %v1187_v24 = vld [vmem:[#allocation2 + $0x1f48] sm:$0xff]  ;;  %v14720_v33 = vcombine.high %v1059_v22, %v1063_v23  ;;  %v14719_v36 = vcombine.low %v1059_v22, %v1063_v23 }
 0x2c8   :  { %10193 = vmatpush1.bf16.msra.mxu0 %v14631_v35  ;;  %10234 = vmatpush1.bf16.msra.mxu1 %v14759_v41  ;;  %v1191_v27 = vld [vmem:[#allocation2 + $0x1f68] sm:$0xff] }
 0x2c9   :  { %10194 = vmatprep.subr.bf16.mxu0 %v14624_v43  ;;  %10235 = vmatprep.subr.bf16.mxu1 %v14752_v47  ;;  %v14848_v35 = vcombine.high %v1187_v24, %v1191_v27  ;;  %v1051_v41 = vld [vmem:[#allocation2 + $0x1b08] sm:$0xff]  ;;  %v14847_v52 = vcombine.low %v1187_v24, %v1191_v27 }
 0x2ca   :  { %v1055_v43 = vld [vmem:[#allocation2 + $0x1b28] sm:$0xff] }
 0x2cb   :  { %v1179_v47 = vld [vmem:[#allocation2 + $0x1f08] sm:$0xff]  ;;  %v14712_v42 = vcombine.high %v1051_v41, %v1055_v43  ;;  %v14711_v57 = vcombine.low %v1051_v41, %v1055_v43 }
 0x2cc   :  { %10195 = vmatpush1.bf16.msra.mxu0 %v14623_v45  ;;  %10236 = vmatpush1.bf16.msra.mxu1 %v14751_v55  ;;  %v1183_v48 = vld [vmem:[#allocation2 + $0x1f28] sm:$0xff] }
 0x2cd   :  { %10196 = vmatprep.subr.bf16.mxu0 %v14616_v60  ;;  %10237 = vmatprep.subr.bf16.mxu1 %v14744_v54  ;;  %v14840_v45 = vcombine.high %v1179_v47, %v1183_v48  ;;  %v1043_v55 = vld [vmem:[#allocation2 + $0x1ac8] sm:$0xff]  ;;  %v14839_v63 = vcombine.low %v1179_v47, %v1183_v48 }
 0x2ce   :  { %v1047_v60 = vld [vmem:[#allocation2 + $0x1ae8] sm:$0xff] }
 0x2cf   :  { %v1171_v54 = vld [vmem:[#allocation2 + $0x1ec8] sm:$0xff]  ;;  %v14704_v61 = vcombine.high %v1043_v55, %v1047_v60  ;;  %v14703_v7 = vcombine.low %v1043_v55, %v1047_v60 }
 0x2d0   :  { %10197 = vmatpush1.bf16.msra.mxu0 %v14615_v19  ;;  %10238 = vmatpush1.bf16.msra.mxu1 %v14743_v2  ;;  %v1175_v62 = vld [vmem:[#allocation2 + $0x1ee8] sm:$0xff] }
 0x2d1   :  { %10198 = vmatprep.subr.bf16.mxu0 %v14736_v0  ;;  %10239 = vmatprep.subr.bf16.mxu1 %v14864_v1  ;;  %v14832_v19 = vcombine.high %v1171_v54, %v1175_v62  ;;  %v1035_v2 = vld [vmem:[#allocation2 + $0x1a88] sm:$0xff]  ;;  %v14831_v8 = vcombine.low %v1171_v54, %v1175_v62  ;;  %v1734_v54 = vsub.s32 2, %v16557_v26 }
 0x2d2   :  { %v1039_v0 = vld [vmem:[#allocation2 + $0x1aa8] sm:$0xff] }
 0x2d3   :  { %v1163_v1 = vld [vmem:[#allocation2 + $0x1e88] sm:$0xff]  ;;  %v14696_v32 = vcombine.high %v1035_v2, %v1039_v0  ;;  %v14695_v23 = vcombine.low %v1035_v2, %v1039_v0 }
 0x2d4   :  { %10199 = vmatpush2.bf16.msra.mxu0 %v14735_v11  ;;  %10240 = vmatpush2.bf16.msra.mxu1 %v14863_v12  ;;  %v1167_v4 = vld [vmem:[#allocation2 + $0x1ea8] sm:$0xff] }
 0x2d5   :  { %10200 = vmatprep.subr.bf16.mxu0 %v14728_v14  ;;  %10241 = vmatprep.subr.bf16.mxu1 %v14856_v15  ;;  %v14824_v11 = vcombine.high %v1163_v1, %v1167_v4  ;;  %v1027_v12 = vld [vmem:[#allocation2 + $0x1a48] sm:$0xff]  ;;  %v14823_v24 = vcombine.low %v1163_v1, %v1167_v4  ;;  %v16200_v4 = vld [vmem:[#allocation4] sm:$0xff] }
 0x2d6   :  { %v1031_v14 = vld [vmem:[#allocation2 + $0x1a68] sm:$0xff] }
 0x2d7   :  { %v1155_v15 = vld [vmem:[#allocation2 + $0x1e48] sm:$0xff]  ;;  %v14688_v27 = vcombine.high %v1027_v12, %v1031_v14  ;;  %v14687_v43 = vcombine.low %v1027_v12, %v1031_v14 }
 0x2d8   :  { %10201 = vmatpush2.bf16.msra.mxu0 %v14727_v29  ;;  %10242 = vmatpush2.bf16.msra.mxu1 %v14855_v30  ;;  %v1159_v22 = vld [vmem:[#allocation2 + $0x1e68] sm:$0xff] }
 0x2d9   :  { %10202 = vmatprep.subr.bf16.mxu0 %v14720_v33  ;;  %10243 = vmatprep.subr.bf16.mxu1 %v14848_v35  ;;  %v14816_v29 = vcombine.high %v1155_v15, %v1159_v22  ;;  %v1019_v30 = vld [vmem:[#allocation2 + $0x1a08] sm:$0xff]  ;;  %v14815_v47 = vcombine.low %v1155_v15, %v1159_v22 }
 0x2da   :  { %v1023_v33 = vld [vmem:[#allocation2 + $0x1a28] sm:$0xff] }
 0x2db   :  { %v1147_v35 = vld [vmem:[#allocation2 + $0x1e08] sm:$0xff]  ;;  %v14680_v48 = vcombine.high %v1019_v30, %v1023_v33  ;;  %v14679_v60 = vcombine.low %v1019_v30, %v1023_v33 }
 0x2dc   :  { %10203 = vmatpush2.bf16.msra.mxu0 %v14719_v36  ;;  %10244 = vmatpush2.bf16.msra.mxu1 %v14847_v52  ;;  %v1151_v41 = vld [vmem:[#allocation2 + $0x1e28] sm:$0xff] }
 0x2dd   :  { %10204 = vmatprep.subr.bf16.mxu0 %v14712_v42  ;;  %10245 = vmatprep.subr.bf16.mxu1 %v14840_v45  ;;  %v14808_v36 = vcombine.high %v1147_v35, %v1151_v41  ;;  %v1267_v52 = vld [vmem:[#allocation2 + $0x21c8] sm:$0xff]  ;;  %v14807_v62 = vcombine.low %v1147_v35, %v1151_v41 }
 0x2de   :  { %v1271_v42 = vld [vmem:[#allocation2 + $0x21e8] sm:$0xff] }
 0x2df   :  { %v1395_v45 = vld [vmem:[#allocation2 + $0x25c8] sm:$0xff] }
 0x2e0   :  { %10205 = vmatpush2.bf16.msra.mxu0 %v14711_v57  ;;  %10246 = vmatpush2.bf16.msra.mxu1 %v14839_v63  ;;  %v1399_v55 = vld [vmem:[#allocation2 + $0x25e8] sm:$0xff]  ;;  %v14928_v57 = vcombine.high %v1267_v52, %v1271_v42 }
 0x2e1   :  { %10206 = vmatprep.subr.bf16.mxu0 %v14704_v61  ;;  %10247 = vmatprep.subr.bf16.mxu1 %v14832_v19  ;;  %v15056_v63 = vcombine.high %v1395_v45, %v1399_v55  ;;  %v1738_v61 = vsub.s32 3, %v16557_v26  ;;  %v1259_v19 = vld [vmem:[#allocation2 + $0x2188] sm:$0xff] }
 0x2e2   :  { %v1263_v2 = vld [vmem:[#allocation2 + $0x21a8] sm:$0xff] }
 0x2e3   :  { %v1387_v0 = vld [vmem:[#allocation2 + $0x2588] sm:$0xff]  ;;  %v1739_v12 = vrot.slane %v16200_v4, %v1738_v61  ;;  %v14919_v33 = vcombine.low %v1259_v19, %v1263_v2 }
 0x2e4   :  { %10207 = vmatpush2.bf16.msra.mxu0 %v14703_v7  ;;  %10248 = vmatpush2.bf16.msra.mxu1 %v14831_v8  ;;  %v1391_v1 = vld [vmem:[#allocation2 + $0x25a8] sm:$0xff]  ;;  %v1735_v7 = vrot.slane %v16200_v4, %v1734_v54  ;;  %v14927_v8 = vcombine.low %v1267_v52, %v1271_v42 }
 0x2e5   :  { %10208 = vmatprep.subr.bf16.mxu0 %v14696_v32  ;;  %10249 = vmatprep.subr.bf16.mxu1 %v14824_v11  ;;  %v15055_v32 = vcombine.low %v1395_v45, %v1399_v55  ;;  %v14920_v11 = vcombine.high %v1259_v19, %v1263_v2  ;;  %v15048_v14 = vcombine.high %v1387_v0, %v1391_v1  ;;  %v1251_v15 = vld [vmem:[#allocation2 + $0x2148] sm:$0xff] }
 0x2e6   :  { %v1255_v22 = vld [vmem:[#allocation2 + $0x2168] sm:$0xff]  ;;  %v15047_v41 = vcombine.low %v1387_v0, %v1391_v1 }
 0x2e7   :  { %v1243_v42 = vld [vmem:[#allocation2 + $0x2108] sm:$0xff]  ;;  %v14911_v19 = vcombine.low %v1251_v15, %v1255_v22 }
 0x2e8   :  { %10209 = vmatpush2.bf16.msra.mxu0 %v14695_v23  ;;  %10250 = vmatpush2.bf16.msra.mxu1 %v14823_v24  ;;  %v1379_v24 = vld [vmem:[#allocation2 + $0x2548] sm:$0xff] }
 0x2e9   :  { %10210 = vmatprep.subr.bf16.mxu0 %v14688_v27  ;;  %10251 = vmatprep.subr.bf16.mxu1 %v14816_v29  ;;  %v1383_v27 = vld [vmem:[#allocation2 + $0x2568] sm:$0xff] }
 0x2ea   :  { %v15040_v52 = vcombine.high %v1379_v24, %v1383_v27  ;;  %v1247_v45 = vld [vmem:[#allocation2 + $0x2128] sm:$0xff]  ;;  %v15039_v0 = vcombine.low %v1379_v24, %v1383_v27 }
 0x2eb   :  { %v14904_v1 = vcombine.high %v1243_v42, %v1247_v45  ;;  %v1359_v24 = vld [vmem:[#allocation2 + $0x24a8] sm:$0xff] }
 0x2ec   :  { %10211 = vmatpush2.bf16.msra.mxu0 %v14687_v43  ;;  %10252 = vmatpush2.bf16.msra.mxu1 %v14815_v47  ;;  %v14912_v43 = vcombine.high %v1251_v15, %v1255_v22  ;;  %v1227_v22 = vld [vmem:[#allocation2 + $0x2088] sm:$0xff] }
 0x2ed   :  { %10212 = vmatprep.subr.bf16.mxu0 %v14680_v48  ;;  %10253 = vmatprep.subr.bf16.mxu1 %v14808_v36 }
 0x2f0   :  { %10213 = vmatpush2.bf16.msra.mxu0 %v14679_v60  ;;  %10254 = vmatpush2.bf16.msra.mxu1 %v14807_v62  ;;  %v1371_v60 = vld [vmem:[#allocation2 + $0x2508] sm:$0xff] }
 0x2f1   :  { %10264 = vmatprep.subr.bf16.mxu0 %v14928_v57  ;;  %10305 = vmatprep.subr.bf16.mxu1 %v15056_v63  ;;  %v1375_v62 = vld [vmem:[#allocation2 + $0x2528] sm:$0xff] }
 0x2f3   :  { %v9970_v23 = vpop.f32.mrf.mxu0  ;;  %10215 = vmatmul.mubr.bf16.vlgmr.msra.gmra.mxu0 %v16567_v50  ;;  %v10011_v30 = vpop.f32.mrf.mxu1  ;;  %10256 = vmatmul.mubr.bf16.vlgmr.msra.gmra.mxu1 %v16574_v56 }
 0x2f4   :  { %v9971_v29 = vadd.f32 %v9970_v23, %v1735_v7  ;;  %10265 = vmatpush1.bf16.msra.mxu0 %v14927_v8  ;;  %10306 = vmatpush1.bf16.msra.mxu1 %v15055_v32  ;;  %v15032_v7 = vcombine.high %v1371_v60, %v1375_v62  ;;  %v1235_v8 = vld [vmem:[#allocation2 + $0x20c8] sm:$0xff]  ;;  %v15031_v23 = vcombine.low %v1371_v60, %v1375_v62 }
 0x2f5   :  { %v9972_v35 = vpop.f32.mrf.mxu0  ;;  %10266 = vmatprep.subr.bf16.mxu0 %v14920_v11  ;;  %v10013_v36 = vpop.f32.mrf.mxu1  ;;  %10307 = vmatprep.subr.bf16.mxu1 %v15048_v14  ;;  %v1239_v32 = vld [vmem:[#allocation2 + $0x20e8] sm:$0xff]  ;;  %v14903_v14 = vcombine.low %v1243_v42, %v1247_v45 }
 0x2f6   :  { %v16681_v47 = vadd.f32 %v10011_v30, %v9971_v29  ;;  %v9973_v48 = vadd.f32 %v9972_v35, %v1739_v12  ;;  %10296 = vmatprep.mubr.bf16.mxu0 %v16581_v3  ;;  %10337 = vmatprep.mubr.bf16.mxu1 %v16584_v9  ;;  %v1363_v11 = vld [vmem:[#allocation2 + $0x24c8] sm:$0xff]  ;;  %v14896_v29 = vcombine.high %v1235_v8, %v1239_v32 }
 0x2f7   :  { %v9974_v55 = vpop.f32.mrf.mxu0  ;;  %v10015_v63 = vpop.f32.mrf.mxu1  ;;  %v1367_v12 = vld [vmem:[#allocation2 + $0x24e8] sm:$0xff]  ;;  %v14895_v27 = vcombine.low %v1235_v8, %v1239_v32 }
 0x2f8   :  { %v16685_v57 = vadd.f32 %v10013_v36, %v9973_v48  ;;  %10267 = vmatpush1.bf16.msra.mxu0 %v14919_v33  ;;  %10308 = vmatpush1.bf16.msra.mxu1 %v15047_v41  ;;  %v15024_v15 = vcombine.high %v1363_v11, %v1367_v12  ;;  %v1231_v30 = vld [vmem:[#allocation2 + $0x20a8] sm:$0xff]  ;;  %v15023_v35 = vcombine.low %v1363_v11, %v1367_v12 }
 0x2f9   :  { %v9975_v2 = vpop.f32.mrf.mxu0  ;;  %10268 = vmatprep.subr.bf16.mxu0 %v14912_v43  ;;  %v10016_v4 = vpop.f32.mrf.mxu1  ;;  %10309 = vmatprep.subr.bf16.mxu1 %v15040_v52  ;;  %v1355_v33 = vld [vmem:[#allocation2 + $0x2488] sm:$0xff]  ;;  %v14888_v41 = vcombine.high %v1227_v22, %v1231_v30  ;;  %v14887_v45 = vcombine.low %v1227_v22, %v1231_v30 }
 0x2fa   :  { %v15016_v43 = vcombine.high %v1355_v33, %v1359_v24  ;;  %v1219_v48 = vld [vmem:[#allocation2 + $0x2048] sm:$0xff]  ;;  %v15015_v55 = vcombine.low %v1355_v33, %v1359_v24 }
 0x2fb   :  { %v1223_v36 = vld [vmem:[#allocation2 + $0x2068] sm:$0xff] }
 0x2fc   :  { %10269 = vmatpush1.bf16.msra.mxu0 %v14911_v19  ;;  %10310 = vmatpush1.bf16.msra.mxu1 %v15039_v0  ;;  %v1347_v52 = vld [vmem:[#allocation2 + $0x2448] sm:$0xff]  ;;  %v14880_v60 = vcombine.high %v1219_v48, %v1223_v36 }
 0x2fd   :  { %10270 = vmatprep.subr.bf16.mxu0 %v14904_v1  ;;  %10311 = vmatprep.subr.bf16.mxu1 %v15032_v7  ;;  %v1351_v42 = vld [vmem:[#allocation2 + $0x2468] sm:$0xff]  ;;  %v14879_v1 = vcombine.low %v1219_v48, %v1223_v36 }
 0x2fe   :  { %v15008_v62 = vcombine.high %v1347_v52, %v1351_v42  ;;  %v1211_v63 = vld [vmem:[#allocation2 + $0x2008] sm:$0xff]  ;;  %v15007_v4 = vcombine.low %v1347_v52, %v1351_v42 }
 0x2ff   :  { %v1215_v19 = vld [vmem:[#allocation2 + $0x2028] sm:$0xff] }
 0x300   :  { %10271 = vmatpush1.bf16.msra.mxu0 %v14903_v14  ;;  %10312 = vmatpush1.bf16.msra.mxu1 %v15031_v23  ;;  %v1339_v2 = vld [vmem:[#allocation2 + $0x2408] sm:$0xff]  ;;  %v14872_v7 = vcombine.high %v1211_v63, %v1215_v19  ;;  %v14871_v23 = vcombine.low %v1211_v63, %v1215_v19 }
 0x301   :  { %10272 = vmatprep.subr.bf16.mxu0 %v14896_v29  ;;  %10313 = vmatprep.subr.bf16.mxu1 %v15024_v15  ;;  %v1343_v0 = vld [vmem:[#allocation2 + $0x2428] sm:$0xff] }
 0x302   :  { %v15000_v8 = vcombine.high %v1339_v2, %v1343_v0  ;;  %v1331_v32 = vld [vmem:[#allocation2 + $0x23c8] sm:$0xff]  ;;  %v14999_v29 = vcombine.low %v1339_v2, %v1343_v0 }
 0x303   :  { %v1335_v11 = vld [vmem:[#allocation2 + $0x23e8] sm:$0xff] }
 0x304   :  { %10273 = vmatpush1.bf16.msra.mxu0 %v14895_v27  ;;  %10314 = vmatpush1.bf16.msra.mxu1 %v15023_v35  ;;  %v1459_v12 = vld [vmem:[#allocation2 + $0x27c8] sm:$0xff]  ;;  %v14992_v15 = vcombine.high %v1331_v32, %v1335_v11  ;;  %v14991_v35 = vcombine.low %v1331_v32, %v1335_v11 }
 0x305   :  { %10274 = vmatprep.subr.bf16.mxu0 %v14888_v41  ;;  %10315 = vmatprep.subr.bf16.mxu1 %v15016_v43  ;;  %v1463_v14 = vld [vmem:[#allocation2 + $0x27e8] sm:$0xff] }
 0x306   :  { %v15120_v22 = vcombine.high %v1459_v12, %v1463_v14  ;;  %v1323_v30 = vld [vmem:[#allocation2 + $0x2388] sm:$0xff]  ;;  %v15119_v41 = vcombine.low %v1459_v12, %v1463_v14 }
 0x307   :  { %v1327_v33 = vld [vmem:[#allocation2 + $0x23a8] sm:$0xff] }
 0x308   :  { %10275 = vmatpush1.bf16.msra.mxu0 %v14887_v45  ;;  %10316 = vmatpush1.bf16.msra.mxu1 %v15015_v55  ;;  %v1451_v24 = vld [vmem:[#allocation2 + $0x2788] sm:$0xff]  ;;  %v14984_v43 = vcombine.high %v1323_v30, %v1327_v33  ;;  %v14983_v55 = vcombine.low %v1323_v30, %v1327_v33 }
 0x309   :  { %10276 = vmatprep.subr.bf16.mxu0 %v14880_v60  ;;  %10317 = vmatprep.subr.bf16.mxu1 %v15008_v62  ;;  %v1455_v27 = vld [vmem:[#allocation2 + $0x27a8] sm:$0xff] }
 0x30a   :  { %v15112_v48 = vcombine.high %v1451_v24, %v1455_v27  ;;  %v1315_v36 = vld [vmem:[#allocation2 + $0x2348] sm:$0xff]  ;;  %v15111_v60 = vcombine.low %v1451_v24, %v1455_v27 }
 0x30b   :  { %v1319_v52 = vld [vmem:[#allocation2 + $0x2368] sm:$0xff] }
 0x30c   :  { %10277 = vmatpush1.bf16.msra.mxu0 %v14879_v1  ;;  %10318 = vmatpush1.bf16.msra.mxu1 %v15007_v4  ;;  %v1443_v42 = vld [vmem:[#allocation2 + $0x2748] sm:$0xff]  ;;  %v14976_v62 = vcombine.high %v1315_v36, %v1319_v52  ;;  %v14975_v4 = vcombine.low %v1315_v36, %v1319_v52 }
 0x30d   :  { %10278 = vmatprep.subr.bf16.mxu0 %v14872_v7  ;;  %10319 = vmatprep.subr.bf16.mxu1 %v15000_v8  ;;  %v1447_v45 = vld [vmem:[#allocation2 + $0x2768] sm:$0xff] }
 0x30e   :  { %v15104_v63 = vcombine.high %v1443_v42, %v1447_v45  ;;  %v1307_v19 = vld [vmem:[#allocation2 + $0x2308] sm:$0xff]  ;;  %v15103_v7 = vcombine.low %v1443_v42, %v1447_v45 }
 0x30f   :  { %v1311_v2 = vld [vmem:[#allocation2 + $0x2328] sm:$0xff] }
 0x310   :  { %10279 = vmatpush1.bf16.msra.mxu0 %v14871_v23  ;;  %10320 = vmatpush1.bf16.msra.mxu1 %v14999_v29  ;;  %v1435_v0 = vld [vmem:[#allocation2 + $0x2708] sm:$0xff]  ;;  %v14968_v8 = vcombine.high %v1307_v19, %v1311_v2  ;;  %v14967_v29 = vcombine.low %v1307_v19, %v1311_v2 }
 0x311   :  { %10280 = vmatprep.subr.bf16.mxu0 %v14992_v15  ;;  %10321 = vmatprep.subr.bf16.mxu1 %v15120_v22  ;;  %v1439_v1 = vld [vmem:[#allocation2 + $0x2728] sm:$0xff] }
 0x312   :  { %v15096_v32 = vcombine.high %v1435_v0, %v1439_v1  ;;  %v1299_v11 = vld [vmem:[#allocation2 + $0x22c8] sm:$0xff]  ;;  %v15095_v15 = vcombine.low %v1435_v0, %v1439_v1 }
 0x313   :  { %v1303_v12 = vld [vmem:[#allocation2 + $0x22e8] sm:$0xff] }
 0x314   :  { %10281 = vmatpush2.bf16.msra.mxu0 %v14991_v35  ;;  %10322 = vmatpush2.bf16.msra.mxu1 %v15119_v41  ;;  %v1427_v14 = vld [vmem:[#allocation2 + $0x26c8] sm:$0xff]  ;;  %v14960_v22 = vcombine.high %v1299_v11, %v1303_v12  ;;  %v14959_v41 = vcombine.low %v1299_v11, %v1303_v12 }
 0x315   :  { %10282 = vmatprep.subr.bf16.mxu0 %v14984_v43  ;;  %10323 = vmatprep.subr.bf16.mxu1 %v15112_v48  ;;  %v1431_v23 = vld [vmem:[#allocation2 + $0x26e8] sm:$0xff] }
 0x316   :  { %v15088_v30 = vcombine.high %v1427_v14, %v1431_v23  ;;  %v1291_v33 = vld [vmem:[#allocation2 + $0x2288] sm:$0xff]  ;;  %v15087_v43 = vcombine.low %v1427_v14, %v1431_v23 }
 0x317   :  { %v1295_v24 = vld [vmem:[#allocation2 + $0x22a8] sm:$0xff] }
 0x318   :  { %10283 = vmatpush2.bf16.msra.mxu0 %v14983_v55  ;;  %10324 = vmatpush2.bf16.msra.mxu1 %v15111_v60  ;;  %v1419_v27 = vld [vmem:[#allocation2 + $0x2688] sm:$0xff]  ;;  %v14952_v48 = vcombine.high %v1291_v33, %v1295_v24  ;;  %v14951_v60 = vcombine.low %v1291_v33, %v1295_v24 }
 0x319   :  { %10284 = vmatprep.subr.bf16.mxu0 %v14976_v62  ;;  %10325 = vmatprep.subr.bf16.mxu1 %v15104_v63  ;;  %v1423_v35 = vld [vmem:[#allocation2 + $0x26a8] sm:$0xff] }
 0x31a   :  { %v15080_v36 = vcombine.high %v1419_v27, %v1423_v35  ;;  %v1283_v52 = vld [vmem:[#allocation2 + $0x2248] sm:$0xff]  ;;  %v15079_v62 = vcombine.low %v1419_v27, %v1423_v35 }
 0x31b   :  { %v1287_v42 = vld [vmem:[#allocation2 + $0x2268] sm:$0xff] }
 0x31c   :  { %10285 = vmatpush2.bf16.msra.mxu0 %v14975_v4  ;;  %10326 = vmatpush2.bf16.msra.mxu1 %v15103_v7  ;;  %v1411_v45 = vld [vmem:[#allocation2 + $0x2648] sm:$0xff]  ;;  %v14944_v63 = vcombine.high %v1283_v52, %v1287_v42  ;;  %v14943_v7 = vcombine.low %v1283_v52, %v1287_v42 }
 0x31d   :  { %10286 = vmatprep.subr.bf16.mxu0 %v14968_v8  ;;  %10327 = vmatprep.subr.bf16.mxu1 %v15096_v32  ;;  %v1415_v55 = vld [vmem:[#allocation2 + $0x2668] sm:$0xff] }
 0x31e   :  { %v15072_v19 = vcombine.high %v1411_v45, %v1415_v55  ;;  %v1275_v2 = vld [vmem:[#allocation2 + $0x2208] sm:$0xff]  ;;  %v15071_v8 = vcombine.low %v1411_v45, %v1415_v55 }
 0x31f   :  { %v1279_v0 = vld [vmem:[#allocation2 + $0x2228] sm:$0xff] }
 0x320   :  { %10287 = vmatpush2.bf16.msra.mxu0 %v14967_v29  ;;  %10328 = vmatpush2.bf16.msra.mxu1 %v15095_v15  ;;  %v1403_v1 = vld [vmem:[#allocation2 + $0x2608] sm:$0xff]  ;;  %v14936_v32 = vcombine.high %v1275_v2, %v1279_v0  ;;  %v14935_v15 = vcombine.low %v1275_v2, %v1279_v0 }
 0x321   :  { %10288 = vmatprep.subr.bf16.mxu0 %v14960_v22  ;;  %10329 = vmatprep.subr.bf16.mxu1 %v15088_v30  ;;  %v1407_v4 = vld [vmem:[#allocation2 + $0x2628] sm:$0xff] }
 0x322   :  { %v15064_v11 = vcombine.high %v1403_v1, %v1407_v4  ;;  %v1523_v12 = vld [vmem:[#allocation2 + $0x29c8] sm:$0xff]  ;;  %v15063_v22 = vcombine.low %v1403_v1, %v1407_v4 }
 0x323   :  { %v1527_v14 = vld [vmem:[#allocation2 + $0x29e8] sm:$0xff] }
 0x324   :  { %10289 = vmatpush2.bf16.msra.mxu0 %v14959_v41  ;;  %10330 = vmatpush2.bf16.msra.mxu1 %v15087_v43  ;;  %v1651_v23 = vld [vmem:[#allocation2 + $0x2dc8] sm:$0xff]  ;;  %v15184_v30 = vcombine.high %v1523_v12, %v1527_v14  ;;  %v15183_v43 = vcombine.low %v1523_v12, %v1527_v14 }
 0x325   :  { %10290 = vmatprep.subr.bf16.mxu0 %v14952_v48  ;;  %10331 = vmatprep.subr.bf16.mxu1 %v15080_v36  ;;  %v1655_v29 = vld [vmem:[#allocation2 + $0x2de8] sm:$0xff] }
 0x326   :  { %v15312_v33 = vcombine.high %v1651_v23, %v1655_v29  ;;  %v1515_v24 = vld [vmem:[#allocation2 + $0x2988] sm:$0xff]  ;;  %v15311_v48 = vcombine.low %v1651_v23, %v1655_v29 }
 0x327   :  { %v1519_v27 = vld [vmem:[#allocation2 + $0x29a8] sm:$0xff] }
 0x328   :  { %10291 = vmatpush2.bf16.msra.mxu0 %v14951_v60  ;;  %10332 = vmatpush2.bf16.msra.mxu1 %v15079_v62  ;;  %v1643_v35 = vld [vmem:[#allocation2 + $0x2d88] sm:$0xff]  ;;  %v15176_v36 = vcombine.high %v1515_v24, %v1519_v27  ;;  %v15175_v2 = vcombine.low %v1515_v24, %v1519_v27 }
 0x329   :  { %10292 = vmatprep.subr.bf16.mxu0 %v14944_v63  ;;  %10333 = vmatprep.subr.bf16.mxu1 %v15072_v19  ;;  %v1647_v41 = vld [vmem:[#allocation2 + $0x2da8] sm:$0xff] }
 0x32a   :  { %v15304_v52 = vcombine.high %v1643_v35, %v1647_v41  ;;  %v1507_v42 = vld [vmem:[#allocation2 + $0x2948] sm:$0xff]  ;;  %v15303_v1 = vcombine.low %v1643_v35, %v1647_v41 }
 0x32b   :  { %v1511_v45 = vld [vmem:[#allocation2 + $0x2968] sm:$0xff] }
 0x32c   :  { %10293 = vmatpush2.bf16.msra.mxu0 %v14943_v7  ;;  %10334 = vmatpush2.bf16.msra.mxu1 %v15071_v8  ;;  %v1635_v60 = vld [vmem:[#allocation2 + $0x2d48] sm:$0xff]  ;;  %v15168_v4 = vcombine.high %v1507_v42, %v1511_v45 }
 0x32d   :  { %10294 = vmatprep.subr.bf16.mxu0 %v14936_v32  ;;  %10335 = vmatprep.subr.bf16.mxu1 %v15064_v11  ;;  %v1639_v62 = vld [vmem:[#allocation2 + $0x2d68] sm:$0xff] }
 0x32e   :  { %v15296_v11 = vcombine.high %v1635_v60, %v1639_v62  ;;  %v1499_v12 = vld [vmem:[#allocation2 + $0x2908] sm:$0xff] }
 0x32f   :  { %v1503_v14 = vld [vmem:[#allocation2 + $0x2928] sm:$0xff] }
 0x330   :  { %10295 = vmatpush2.bf16.msra.mxu0 %v14935_v15  ;;  %10336 = vmatpush2.bf16.msra.mxu1 %v15063_v22  ;;  %v1627_v23 = vld [vmem:[#allocation2 + $0x2d08] sm:$0xff]  ;;  %v15160_v24 = vcombine.high %v1499_v12, %v1503_v14 }
 0x331   :  { %10346 = vmatprep.subr.bf16.mxu0 %v15184_v30  ;;  %10387 = vmatprep.subr.bf16.mxu1 %v15312_v33  ;;  %v1631_v29 = vld [vmem:[#allocation2 + $0x2d28] sm:$0xff]  ;;  %v15167_v30 = vcombine.low %v1507_v42, %v1511_v45 }
 0x332   :  { %v15288_v35 = vcombine.high %v1627_v23, %v1631_v29  ;;  %v1491_v41 = vld [vmem:[#allocation2 + $0x28c8] sm:$0xff] }
 0x333   :  { %v10052_v55 = vpop.f32.mrf.mxu0  ;;  %10297 = vmatmul.mubr.bf16.vlgmr.msra.gmra.mxu0 %v16599_v21  ;;  %v10093_v19 = vpop.f32.mrf.mxu1  ;;  %10338 = vmatmul.mubr.bf16.vlgmr.msra.gmra.mxu1 %v16604_v25  ;;  %v1483_v45 = vld [vmem:[#allocation2 + $0x2888] sm:$0xff] }
 0x334   :  { %v10053_v63 = vadd.f32 %v10052_v55, %v16681_v47  ;;  %10347 = vmatpush1.bf16.msra.mxu0 %v15183_v43  ;;  %10388 = vmatpush1.bf16.msra.mxu1 %v15311_v48  ;;  %v1495_v43 = vld [vmem:[#allocation2 + $0x28e8] sm:$0xff]  ;;  %v15287_v55 = vcombine.low %v1627_v23, %v1631_v29 }
 0x335   :  { %v10054_v0 = vpop.f32.mrf.mxu0  ;;  %10348 = vmatprep.subr.bf16.mxu0 %v15176_v36  ;;  %v10095_v32 = vpop.f32.mrf.mxu1  ;;  %10389 = vmatprep.subr.bf16.mxu1 %v15304_v52  ;;  %v1619_v48 = vld [vmem:[#allocation2 + $0x2cc8] sm:$0xff]  ;;  %v15159_v52 = vcombine.low %v1499_v12, %v1503_v14 }
 0x336   :  { %v16690_v7 = vadd.f32 %v10093_v19, %v10053_v63  ;;  %v10055_v8 = vadd.f32 %v10054_v0, %v16685_v57  ;;  %10378 = vmatprep.mubr.bf16.mxu0 %v16609_v38  ;;  %10419 = vmatprep.mubr.bf16.mxu1 %v16612_v44  ;;  %v15295_v57 = vcombine.low %v1635_v60, %v1639_v62  ;;  %v1623_v36 = vld [vmem:[#allocation2 + $0x2ce8] sm:$0xff] }
 0x337   :  { %v10056_v47 = vpop.f32.mrf.mxu0  ;;  %v10097_v22 = vpop.f32.mrf.mxu1  ;;  %v15152_v63 = vcombine.high %v1491_v41, %v1495_v43  ;;  %v15280_v42 = vcombine.high %v1619_v48, %v1623_v36  ;;  %v1487_v19 = vld [vmem:[#allocation2 + $0x28a8] sm:$0xff]  ;;  %v15151_v62 = vcombine.low %v1491_v41, %v1495_v43  ;;  %v15279_v0 = vcombine.low %v1619_v48, %v1623_v36 }
 0x338   :  { %v16695_v15 = vadd.f32 %v10095_v32, %v10055_v8  ;;  %10349 = vmatpush1.bf16.msra.mxu0 %v15175_v2  ;;  %10390 = vmatpush1.bf16.msra.mxu1 %v15303_v1  ;;  %v1611_v2 = vld [vmem:[#allocation2 + $0x2c88] sm:$0xff]  ;;  %v15144_v1 = vcombine.high %v1483_v45, %v1487_v19  ;;  %v15143_v14 = vcombine.low %v1483_v45, %v1487_v19 }
 0x339   :  { %v10057_v33 = vpop.f32.mrf.mxu0  ;;  %10350 = vmatprep.subr.bf16.mxu0 %v15168_v4  ;;  %v10098_v27 = vpop.f32.mrf.mxu1  ;;  %10391 = vmatprep.subr.bf16.mxu1 %v15296_v11  ;;  %v1615_v60 = vld [vmem:[#allocation2 + $0x2ca8] sm:$0xff] }
 0x33a   :  { %v15272_v4 = vcombine.high %v1611_v2, %v1615_v60  ;;  %v1475_v8 = vld [vmem:[#allocation2 + $0x2848] sm:$0xff]  ;;  %v15271_v47 = vcombine.low %v1611_v2, %v1615_v60 }
 0x33b   :  { %v1479_v32 = vld [vmem:[#allocation2 + $0x2868] sm:$0xff] }
 0x33c   :  { %10351 = vmatpush1.bf16.msra.mxu0 %v15167_v30  ;;  %10392 = vmatpush1.bf16.msra.mxu1 %v15295_v57  ;;  %v1603_v11 = vld [vmem:[#allocation2 + $0x2c48] sm:$0xff]  ;;  %v15136_v23 = vcombine.high %v1475_v8, %v1479_v32 }
 0x33d   :  { %10352 = vmatprep.subr.bf16.mxu0 %v15160_v24  ;;  %10393 = vmatprep.subr.bf16.mxu1 %v15288_v35  ;;  %v1607_v12 = vld [vmem:[#allocation2 + $0x2c68] sm:$0xff]  ;;  %v15135_v24 = vcombine.low %v1475_v8, %v1479_v32 }
 0x33e   :  { %v15264_v29 = vcombine.high %v1603_v11, %v1607_v12  ;;  %v1467_v22 = vld [vmem:[#allocation2 + $0x2808] sm:$0xff]  ;;  %v15263_v27 = vcombine.low %v1603_v11, %v1607_v12 }
 0x33f   :  { %v1471_v30 = vld [vmem:[#allocation2 + $0x2828] sm:$0xff] }
 0x340   :  { %10353 = vmatpush1.bf16.msra.mxu0 %v15159_v52  ;;  %10394 = vmatpush1.bf16.msra.mxu1 %v15287_v55  ;;  %v1595_v33 = vld [vmem:[#allocation2 + $0x2c08] sm:$0xff]  ;;  %v15128_v35 = vcombine.high %v1467_v22, %v1471_v30  ;;  %v15127_v55 = vcombine.low %v1467_v22, %v1471_v30 }
 0x341   :  { %10354 = vmatprep.subr.bf16.mxu0 %v15152_v63  ;;  %10395 = vmatprep.subr.bf16.mxu1 %v15280_v42  ;;  %v1599_v57 = vld [vmem:[#allocation2 + $0x2c28] sm:$0xff] }
 0x342   :  { %v15256_v41 = vcombine.high %v1595_v33, %v1599_v57  ;;  %v1587_v43 = vld [vmem:[#allocation2 + $0x2bc8] sm:$0xff]  ;;  %v15255_v63 = vcombine.low %v1595_v33, %v1599_v57 }
 0x343   :  { %v1591_v48 = vld [vmem:[#allocation2 + $0x2be8] sm:$0xff] }
 0x344   :  { %10355 = vmatpush1.bf16.msra.mxu0 %v15151_v62  ;;  %10396 = vmatpush1.bf16.msra.mxu1 %v15279_v0  ;;  %v1715_v36 = vld [vmem:[#allocation2 + $0x2fc8] sm:$0xff]  ;;  %v15248_v42 = vcombine.high %v1587_v43, %v1591_v48  ;;  %v15247_v0 = vcombine.low %v1587_v43, %v1591_v48 }
 0x345   :  { %10356 = vmatprep.subr.bf16.mxu0 %v15144_v1  ;;  %10397 = vmatprep.subr.bf16.mxu1 %v15272_v4  ;;  %v1719_v52 = vld [vmem:[#allocation2 + $0x2fe8] sm:$0xff] }
 0x346   :  { %v15376_v45 = vcombine.high %v1715_v36, %v1719_v52  ;;  %v1579_v19 = vld [vmem:[#allocation2 + $0x2b88] sm:$0xff]  ;;  %v15375_v1 = vcombine.low %v1715_v36, %v1719_v52 }
 0x347   :  { %v1583_v2 = vld [vmem:[#allocation2 + $0x2ba8] sm:$0xff] }
 0x348   :  { %10357 = vmatpush1.bf16.msra.mxu0 %v15143_v14  ;;  %10398 = vmatpush1.bf16.msra.mxu1 %v15271_v47  ;;  %v1707_v60 = vld [vmem:[#allocation2 + $0x2f88] sm:$0xff]  ;;  %v15240_v4 = vcombine.high %v1579_v19, %v1583_v2  ;;  %v15239_v47 = vcombine.low %v1579_v19, %v1583_v2 }
 0x349   :  { %10358 = vmatprep.subr.bf16.mxu0 %v15136_v23  ;;  %10399 = vmatprep.subr.bf16.mxu1 %v15264_v29  ;;  %v1711_v62 = vld [vmem:[#allocation2 + $0x2fa8] sm:$0xff] }
 0x34a   :  { %v15368_v8 = vcombine.high %v1707_v60, %v1711_v62  ;;  %v1571_v32 = vld [vmem:[#allocation2 + $0x2b48] sm:$0xff]  ;;  %v15367_v23 = vcombine.low %v1707_v60, %v1711_v62 }
 0x34b   :  { %v1575_v11 = vld [vmem:[#allocation2 + $0x2b68] sm:$0xff] }
 0x34c   :  { %10359 = vmatpush1.bf16.msra.mxu0 %v15135_v24  ;;  %10400 = vmatpush1.bf16.msra.mxu1 %v15263_v27  ;;  %v1699_v12 = vld [vmem:[#allocation2 + $0x2f48] sm:$0xff]  ;;  %v15232_v29 = vcombine.high %v1571_v32, %v1575_v11  ;;  %v15231_v27 = vcombine.low %v1571_v32, %v1575_v11 }
 0x34d   :  { %10360 = vmatprep.subr.bf16.mxu0 %v15128_v35  ;;  %10401 = vmatprep.subr.bf16.mxu1 %v15256_v41  ;;  %v1703_v14 = vld [vmem:[#allocation2 + $0x2f68] sm:$0xff] }
 0x34e   :  { %v15360_v22 = vcombine.high %v1699_v12, %v1703_v14  ;;  %v1563_v30 = vld [vmem:[#allocation2 + $0x2b08] sm:$0xff]  ;;  %v15359_v35 = vcombine.low %v1699_v12, %v1703_v14 }
 0x34f   :  { %v1567_v33 = vld [vmem:[#allocation2 + $0x2b28] sm:$0xff] }
 0x350   :  { %10361 = vmatpush1.bf16.msra.mxu0 %v15127_v55  ;;  %10402 = vmatpush1.bf16.msra.mxu1 %v15255_v63  ;;  %v1691_v57 = vld [vmem:[#allocation2 + $0x2f08] sm:$0xff]  ;;  %v15224_v41 = vcombine.high %v1563_v30, %v1567_v33  ;;  %v15223_v63 = vcombine.low %v1563_v30, %v1567_v33 }
 0x351   :  { %10362 = vmatprep.subr.bf16.mxu0 %v15248_v42  ;;  %10403 = vmatprep.subr.bf16.mxu1 %v15376_v45  ;;  %v1695_v24 = vld [vmem:[#allocation2 + $0x2f28] sm:$0xff] }
 0x352   :  { %v15352_v43 = vcombine.high %v1691_v57, %v1695_v24  ;;  %v1555_v48 = vld [vmem:[#allocation2 + $0x2ac8] sm:$0xff]  ;;  %v15351_v42 = vcombine.low %v1691_v57, %v1695_v24 }
 0x353   :  { %v1559_v36 = vld [vmem:[#allocation2 + $0x2ae8] sm:$0xff] }
 0x354   :  { %10363 = vmatpush2.bf16.msra.mxu0 %v15247_v0  ;;  %10404 = vmatpush2.bf16.msra.mxu1 %v15375_v1  ;;  %v1683_v52 = vld [vmem:[#allocation2 + $0x2ec8] sm:$0xff]  ;;  %v15216_v45 = vcombine.high %v1555_v48, %v1559_v36  ;;  %v15215_v1 = vcombine.low %v1555_v48, %v1559_v36  ;;  %v244_v36 = vld [vmem:[#allocation2 + $0x1d0] sm:$0xff] }
 0x355   :  { %10364 = vmatprep.subr.bf16.mxu0 %v15240_v4  ;;  %10405 = vmatprep.subr.bf16.mxu1 %v15368_v8  ;;  %v1687_v55 = vld [vmem:[#allocation2 + $0x2ee8] sm:$0xff] }
 0x356   :  { %v15344_v19 = vcombine.high %v1683_v52, %v1687_v55  ;;  %v1547_v2 = vld [vmem:[#allocation2 + $0x2a88] sm:$0xff]  ;;  %v15343_v4 = vcombine.low %v1683_v52, %v1687_v55  ;;  %v248_v52 = vld [vmem:[#allocation2 + $0x1f0] sm:$0xff] }
 0x357   :  { %v1551_v60 = vld [vmem:[#allocation2 + $0x2aa8] sm:$0xff]  ;;  %v372_v55 = vld [vmem:[#allocation2 + $0x5d0] sm:$0xff] }
 0x358   :  { %10365 = vmatpush2.bf16.msra.mxu0 %v15239_v47  ;;  %10406 = vmatpush2.bf16.msra.mxu1 %v15367_v23  ;;  %v1675_v62 = vld [vmem:[#allocation2 + $0x2e88] sm:$0xff]  ;;  %v15208_v8 = vcombine.high %v1547_v2, %v1551_v60  ;;  %v15207_v23 = vcombine.low %v1547_v2, %v1551_v60  ;;  %v236_v60 = vld [vmem:[#allocation2 + $0x190] sm:$0xff] }
 0x359   :  { %10366 = vmatprep.subr.bf16.mxu0 %v15232_v29  ;;  %10407 = vmatprep.subr.bf16.mxu1 %v15360_v22  ;;  %v1679_v0 = vld [vmem:[#allocation2 + $0x2ea8] sm:$0xff] }
 0x35a   :  { %v15336_v32 = vcombine.high %v1675_v62, %v1679_v0  ;;  %v1539_v11 = vld [vmem:[#allocation2 + $0x2a48] sm:$0xff]  ;;  %v15335_v29 = vcombine.low %v1675_v62, %v1679_v0  ;;  %v240_v62 = vld [vmem:[#allocation2 + $0x1b0] sm:$0xff] }
 0x35b   :  { %v1543_v12 = vld [vmem:[#allocation2 + $0x2a68] sm:$0xff]  ;;  %v364_v0 = vld [vmem:[#allocation2 + $0x590] sm:$0xff] }
 0x35c   :  { %10367 = vmatpush2.bf16.msra.mxu0 %v15231_v27  ;;  %10408 = vmatpush2.bf16.msra.mxu1 %v15359_v35  ;;  %v1667_v14 = vld [vmem:[#allocation2 + $0x2e48] sm:$0xff]  ;;  %v15200_v22 = vcombine.high %v1539_v11, %v1543_v12  ;;  %v15199_v35 = vcombine.low %v1539_v11, %v1543_v12  ;;  %v228_v12 = vld [vmem:[#allocation2 + $0x150] sm:$0xff] }
 0x35d   :  { %10368 = vmatprep.subr.bf16.mxu0 %v15224_v41  ;;  %10409 = vmatprep.subr.bf16.mxu1 %v15352_v43  ;;  %v1671_v47 = vld [vmem:[#allocation2 + $0x2e68] sm:$0xff] }
 0x35e   :  { %v15328_v30 = vcombine.high %v1667_v14, %v1671_v47  ;;  %v1531_v33 = vld [vmem:[#allocation2 + $0x2a08] sm:$0xff]  ;;  %v15327_v41 = vcombine.low %v1667_v14, %v1671_v47  ;;  %v232_v14 = vld [vmem:[#allocation2 + $0x170] sm:$0xff] }
 0x35f   :  { %v1535_v57 = vld [vmem:[#allocation2 + $0x2a28] sm:$0xff] }
 0x360   :  { %10369 = vmatpush2.bf16.msra.mxu0 %v15223_v63  ;;  %10410 = vmatpush2.bf16.msra.mxu1 %v15351_v42  ;;  %v1659_v24 = vld [vmem:[#allocation2 + $0x2e08] sm:$0xff]  ;;  %v15192_v43 = vcombine.high %v1531_v33, %v1535_v57  ;;  %v376_v63 = vld [vmem:[#allocation2 + $0x5f0] sm:$0xff]  ;;  %v15191_v42 = vcombine.low %v1531_v33, %v1535_v57  ;;  %v13897_v33 = vcombine.low %v236_v60, %v240_v62 }
 0x361   :  { %10370 = vmatprep.subr.bf16.mxu0 %v15216_v45  ;;  %10411 = vmatprep.subr.bf16.mxu1 %v15344_v19  ;;  %v1663_v27 = vld [vmem:[#allocation2 + $0x2e28] sm:$0xff]  ;;  %v13906_v19 = vcombine.high %v244_v36, %v248_v52  ;;  %v14034_v2 = vcombine.high %v372_v55, %v376_v63 }
 0x362   :  { %v15320_v48 = vcombine.high %v1659_v24, %v1663_v27  ;;  %v15319_v45 = vcombine.low %v1659_v24, %v1663_v27  ;;  %v13890_v27 = vcombine.high %v228_v12, %v232_v14 }
 0x364   :  { %10371 = vmatpush2.bf16.msra.mxu0 %v15215_v1  ;;  %10412 = vmatpush2.bf16.msra.mxu1 %v15343_v4  ;;  %v368_v1 = vld [vmem:[#allocation2 + $0x5b0] sm:$0xff]  ;;  %v13905_v4 = vcombine.low %v244_v36, %v248_v52 }
 0x365   :  { %10372 = vmatprep.subr.bf16.mxu0 %v15208_v8  ;;  %10413 = vmatprep.subr.bf16.mxu1 %v15336_v32  ;;  %v14033_v8 = vcombine.low %v372_v55, %v376_v63  ;;  %v13898_v32 = vcombine.high %v236_v60, %v240_v62  ;;  %v14026_v11 = vcombine.high %v364_v0, %v368_v1  ;;  %v220_v36 = vld [vmem:[#allocation2 + $0x110] sm:$0xff] }
 0x366   :  { %v14025_v24 = vcombine.low %v364_v0, %v368_v1  ;;  %v224_v52 = vld [vmem:[#allocation2 + $0x130] sm:$0xff] }
 0x367   :  { %v348_v55 = vld [vmem:[#allocation2 + $0x510] sm:$0xff]  ;;  %v13882_v60 = vcombine.high %v220_v36, %v224_v52 }
 0x368   :  { %10373 = vmatpush2.bf16.msra.mxu0 %v15207_v23  ;;  %10414 = vmatpush2.bf16.msra.mxu1 %v15335_v29  ;;  %v356_v23 = vld [vmem:[#allocation2 + $0x550] sm:$0xff] }
 0x369   :  { %10374 = vmatprep.subr.bf16.mxu0 %v15200_v22  ;;  %10415 = vmatprep.subr.bf16.mxu1 %v15328_v30  ;;  %v360_v29 = vld [vmem:[#allocation2 + $0x570] sm:$0xff] }
 0x36a   :  { %v352_v63 = vld [vmem:[#allocation2 + $0x530] sm:$0xff] }
 0x36b   :  { %v14010_v0 = vcombine.high %v348_v55, %v352_v63  ;;  %v212_v1 = vld [vmem:[#allocation2 + $0xd0] sm:$0xff] }
 0x36c   :  { %10375 = vmatpush2.bf16.msra.mxu0 %v15199_v35  ;;  %10416 = vmatpush2.bf16.msra.mxu1 %v15327_v41 }
 0x36d   :  { %10376 = vmatprep.subr.bf16.mxu0 %v15192_v43  ;;  %10417 = vmatprep.subr.bf16.mxu1 %v15320_v48  ;;  %v14018_v48 = vcombine.high %v356_v23, %v360_v29 }
 0x370   :  { %10377 = vmatpush2.bf16.msra.mxu0 %v15191_v42  ;;  %10418 = vmatpush2.bf16.msra.mxu1 %v15319_v45 }
 0x371   :  { %10428 = vmatprep.subr.bf16.mxu0 %v13906_v19  ;;  %10469 = vmatprep.subr.bf16.mxu1 %v14034_v2  ;;  %v13889_v19 = vcombine.low %v228_v12, %v232_v14  ;;  %v204_v14 = vld [vmem:[#allocation2 + $0x90] sm:$0xff] }
 0x373   :  { %v10134_v47 = vpop.f32.mrf.mxu0  ;;  %10379 = vmatmul.mubr.bf16.vlgmr.msra.gmra.mxu0 %v16629_v10  ;;  %v10175_v30 = vpop.f32.mrf.mxu1  ;;  %10420 = vmatmul.mubr.bf16.vlgmr.msra.gmra.mxu1 %v16631_v13 }
 0x374   :  { %v10135_v22 = vadd.f32 %v10134_v47, %v16690_v7  ;;  %10429 = vmatpush1.bf16.msra.mxu0 %v13905_v4  ;;  %10470 = vmatpush1.bf16.msra.mxu1 %v14033_v8  ;;  %v216_v4 = vld [vmem:[#allocation2 + $0xf0] sm:$0xff]  ;;  %v14009_v47 = vcombine.low %v348_v55, %v352_v63 }
 0x375   :  { %v10136_v57 = vpop.f32.mrf.mxu0  ;;  %10430 = vmatprep.subr.bf16.mxu0 %v13898_v32  ;;  %v10177_v43 = vpop.f32.mrf.mxu1  ;;  %10471 = vmatprep.subr.bf16.mxu1 %v14026_v11  ;;  %v340_v8 = vld [vmem:[#allocation2 + $0x4d0] sm:$0xff]  ;;  %v13881_v11 = vcombine.low %v220_v36, %v224_v52 }
 0x376   :  { %v16700_v35 = vadd.f32 %v10175_v30, %v10135_v22  ;;  %v10137_v41 = vadd.f32 %v10136_v57, %v16695_v15  ;;  %10460 = vmatprep.mubr.bf16.mxu0 %v16479_v58  ;;  %10501 = vmatprep.mubr.bf16.mxu1 %v16481_v59  ;;  %v14017_v15 = vcombine.low %v356_v23, %v360_v29  ;;  %v344_v32 = vld [vmem:[#allocation2 + $0x4f0] sm:$0xff] }
 0x377   :  { %v10138_v7 = vpop.f32.mrf.mxu0  ;;  %v10179_v45 = vpop.f32.mrf.mxu1  ;;  %v13874_v22 = vcombine.high %v212_v1, %v216_v4  ;;  %v14002_v12 = vcombine.high %v340_v8, %v344_v32  ;;  %v208_v30 = vld [vmem:[#allocation2 + $0xb0] sm:$0xff]  ;;  %v13873_v29 = vcombine.low %v212_v1, %v216_v4  ;;  %v14001_v57 = vcombine.low %v340_v8, %v344_v32 }
 0x378   :  { %v16705_v42 = vadd.f32 %v10177_v43, %v10137_v41  ;;  %10431 = vmatpush1.bf16.msra.mxu0 %v13897_v33  ;;  %10472 = vmatpush1.bf16.msra.mxu1 %v14025_v24  ;;  %v332_v33 = vld [vmem:[#allocation2 + $0x490] sm:$0xff]  ;;  %v13866_v24 = vcombine.high %v204_v14, %v208_v30  ;;  %v13865_v52 = vcombine.low %v204_v14, %v208_v30 }
 0x379   :  { %v10139_v2 = vpop.f32.mrf.mxu0  ;;  %10432 = vmatprep.subr.bf16.mxu0 %v13890_v27  ;;  %v10180_v62 = vpop.f32.mrf.mxu1  ;;  %10473 = vmatprep.subr.bf16.mxu1 %v14018_v48  ;;  %v336_v23 = vld [vmem:[#allocation2 + $0x4b0] sm:$0xff] }
 0x37a   :  { %v13994_v27 = vcombine.high %v332_v33, %v336_v23  ;;  %v196_v41 = vld [vmem:[#allocation2 + $0x50] sm:$0xff]  ;;  %v13993_v7 = vcombine.low %v332_v33, %v336_v23 }
 0x37b   :  { %v200_v43 = vld [vmem:[#allocation2 + $0x70] sm:$0xff] }
 0x37c   :  { %10433 = vmatpush1.bf16.msra.mxu0 %v13889_v19  ;;  %10474 = vmatpush1.bf16.msra.mxu1 %v14017_v15  ;;  %v324_v48 = vld [vmem:[#allocation2 + $0x450] sm:$0xff]  ;;  %v13858_v55 = vcombine.high %v196_v41, %v200_v43 }
 0x37d   :  { %10434 = vmatprep.subr.bf16.mxu0 %v13882_v60  ;;  %10475 = vmatprep.subr.bf16.mxu1 %v14010_v0  ;;  %v328_v36 = vld [vmem:[#allocation2 + $0x470] sm:$0xff]  ;;  %v13857_v60 = vcombine.low %v196_v41, %v200_v43 }
 0x37e   :  { %v13986_v63 = vcombine.high %v324_v48, %v328_v36  ;;  %v188_v45 = vld [vmem:[#allocation2 + $0x10] sm:$0xff]  ;;  %v13985_v62 = vcombine.low %v324_v48, %v328_v36 }
 0x37f   :  { %v192_v19 = vld [vmem:[#allocation2 + $0x30] sm:$0xff] }
 0x380   :  { %10435 = vmatpush1.bf16.msra.mxu0 %v13881_v11  ;;  %10476 = vmatpush1.bf16.msra.mxu1 %v14009_v47  ;;  %v316_v2 = vld [vmem:[#allocation2 + $0x410] sm:$0xff]  ;;  %v13850_v0 = vcombine.high %v188_v45, %v192_v19  ;;  %v13849_v47 = vcombine.low %v188_v45, %v192_v19 }
 0x381   :  { %10436 = vmatprep.subr.bf16.mxu0 %v13874_v22  ;;  %10477 = vmatprep.subr.bf16.mxu1 %v14002_v12  ;;  %v320_v15 = vld [vmem:[#allocation2 + $0x430] sm:$0xff] }
 0x382   :  { %v13978_v1 = vcombine.high %v316_v2, %v320_v15  ;;  %v308_v4 = vld [vmem:[#allocation2 + $0x3d0] sm:$0xff]  ;;  %v13977_v22 = vcombine.low %v316_v2, %v320_v15 }
 0x383   :  { %v312_v8 = vld [vmem:[#allocation2 + $0x3f0] sm:$0xff] }
 0x384   :  { %10437 = vmatpush1.bf16.msra.mxu0 %v13873_v29  ;;  %10478 = vmatpush1.bf16.msra.mxu1 %v14001_v57  ;;  %v436_v32 = vld [vmem:[#allocation2 + $0x7d0] sm:$0xff]  ;;  %v13970_v12 = vcombine.high %v308_v4, %v312_v8  ;;  %v13969_v57 = vcombine.low %v308_v4, %v312_v8 }
 0x385   :  { %10438 = vmatprep.subr.bf16.mxu0 %v13866_v24  ;;  %10479 = vmatprep.subr.bf16.mxu1 %v13994_v27  ;;  %v440_v11 = vld [vmem:[#allocation2 + $0x7f0] sm:$0xff] }
 0x386   :  { %v14098_v14 = vcombine.high %v436_v32, %v440_v11  ;;  %v300_v30 = vld [vmem:[#allocation2 + $0x390] sm:$0xff]  ;;  %v14097_v24 = vcombine.low %v436_v32, %v440_v11 }
 0x387   :  { %v304_v33 = vld [vmem:[#allocation2 + $0x3b0] sm:$0xff] }
 0x388   :  { %10439 = vmatpush1.bf16.msra.mxu0 %v13865_v52  ;;  %10480 = vmatpush1.bf16.msra.mxu1 %v13993_v7  ;;  %v428_v23 = vld [vmem:[#allocation2 + $0x790] sm:$0xff]  ;;  %v13962_v27 = vcombine.high %v300_v30, %v304_v33  ;;  %v13961_v7 = vcombine.low %v300_v30, %v304_v33 }
 0x389   :  { %10440 = vmatprep.subr.bf16.mxu0 %v13858_v55  ;;  %10481 = vmatprep.subr.bf16.mxu1 %v13986_v63  ;;  %v432_v29 = vld [vmem:[#allocation2 + $0x7b0] sm:$0xff] }
 0x38a   :  { %v14090_v41 = vcombine.high %v428_v23, %v432_v29  ;;  %v292_v43 = vld [vmem:[#allocation2 + $0x350] sm:$0xff]  ;;  %v14089_v55 = vcombine.low %v428_v23, %v432_v29 }
 0x38b   :  { %v296_v48 = vld [vmem:[#allocation2 + $0x370] sm:$0xff] }
 0x38c   :  { %10441 = vmatpush1.bf16.msra.mxu0 %v13857_v60  ;;  %10482 = vmatpush1.bf16.msra.mxu1 %v13985_v62  ;;  %v420_v36 = vld [vmem:[#allocation2 + $0x750] sm:$0xff]  ;;  %v13954_v63 = vcombine.high %v292_v43, %v296_v48  ;;  %v13953_v62 = vcombine.low %v292_v43, %v296_v48 }
 0x38d   :  { %10442 = vmatprep.subr.bf16.mxu0 %v13850_v0  ;;  %10483 = vmatprep.subr.bf16.mxu1 %v13978_v1  ;;  %v424_v52 = vld [vmem:[#allocation2 + $0x770] sm:$0xff] }
 0x38e   :  { %v14082_v45 = vcombine.high %v420_v36, %v424_v52  ;;  %v284_v19 = vld [vmem:[#allocation2 + $0x310] sm:$0xff]  ;;  %v14081_v0 = vcombine.low %v420_v36, %v424_v52 }
 0x38f   :  { %v288_v2 = vld [vmem:[#allocation2 + $0x330] sm:$0xff] }
 0x390   :  { %10443 = vmatpush1.bf16.msra.mxu0 %v13849_v47  ;;  %10484 = vmatpush1.bf16.msra.mxu1 %v13977_v22  ;;  %v412_v15 = vld [vmem:[#allocation2 + $0x710] sm:$0xff]  ;;  %v13946_v1 = vcombine.high %v284_v19, %v288_v2  ;;  %v13945_v22 = vcombine.low %v284_v19, %v288_v2 }
 0x391   :  { %10444 = vmatprep.subr.bf16.mxu0 %v13970_v12  ;;  %10485 = vmatprep.subr.bf16.mxu1 %v14098_v14  ;;  %v416_v60 = vld [vmem:[#allocation2 + $0x730] sm:$0xff] }
 0x392   :  { %v14074_v4 = vcombine.high %v412_v15, %v416_v60  ;;  %v276_v8 = vld [vmem:[#allocation2 + $0x2d0] sm:$0xff]  ;;  %v14073_v12 = vcombine.low %v412_v15, %v416_v60 }
 0x393   :  { %v280_v32 = vld [vmem:[#allocation2 + $0x2f0] sm:$0xff] }
 0x394   :  { %10445 = vmatpush2.bf16.msra.mxu0 %v13969_v57  ;;  %10486 = vmatpush2.bf16.msra.mxu1 %v14097_v24  ;;  %v404_v11 = vld [vmem:[#allocation2 + $0x6d0] sm:$0xff]  ;;  %v13938_v14 = vcombine.high %v276_v8, %v280_v32  ;;  %v13937_v24 = vcombine.low %v276_v8, %v280_v32 }
 0x395   :  { %10446 = vmatprep.subr.bf16.mxu0 %v13962_v27  ;;  %10487 = vmatprep.subr.bf16.mxu1 %v14090_v41  ;;  %v408_v47 = vld [vmem:[#allocation2 + $0x6f0] sm:$0xff] }
 0x396   :  { %v14066_v30 = vcombine.high %v404_v11, %v408_v47  ;;  %v268_v33 = vld [vmem:[#allocation2 + $0x290] sm:$0xff]  ;;  %v14065_v27 = vcombine.low %v404_v11, %v408_v47 }
 0x397   :  { %v272_v23 = vld [vmem:[#allocation2 + $0x2b0] sm:$0xff] }
 0x398   :  { %10447 = vmatpush2.bf16.msra.mxu0 %v13961_v7  ;;  %10488 = vmatpush2.bf16.msra.mxu1 %v14089_v55  ;;  %v396_v29 = vld [vmem:[#allocation2 + $0x690] sm:$0xff]  ;;  %v13930_v41 = vcombine.high %v268_v33, %v272_v23  ;;  %v13929_v55 = vcombine.low %v268_v33, %v272_v23 }
 0x399   :  { %10448 = vmatprep.subr.bf16.mxu0 %v13954_v63  ;;  %10489 = vmatprep.subr.bf16.mxu1 %v14082_v45  ;;  %v400_v57 = vld [vmem:[#allocation2 + $0x6b0] sm:$0xff] }
 0x39a   :  { %v14058_v43 = vcombine.high %v396_v29, %v400_v57  ;;  %v260_v48 = vld [vmem:[#allocation2 + $0x250] sm:$0xff]  ;;  %v14057_v63 = vcombine.low %v396_v29, %v400_v57 }
 0x39b   :  { %v264_v36 = vld [vmem:[#allocation2 + $0x270] sm:$0xff] }
 0x39c   :  { %10449 = vmatpush2.bf16.msra.mxu0 %v13953_v62  ;;  %10490 = vmatpush2.bf16.msra.mxu1 %v14081_v0  ;;  %v388_v52 = vld [vmem:[#allocation2 + $0x650] sm:$0xff]  ;;  %v13922_v45 = vcombine.high %v260_v48, %v264_v36  ;;  %v13921_v0 = vcombine.low %v260_v48, %v264_v36 }
 0x39d   :  { %10450 = vmatprep.subr.bf16.mxu0 %v13946_v1  ;;  %10491 = vmatprep.subr.bf16.mxu1 %v14074_v4  ;;  %v392_v7 = vld [vmem:[#allocation2 + $0x670] sm:$0xff] }
 0x39e   :  { %v14050_v19 = vcombine.high %v388_v52, %v392_v7  ;;  %v252_v2 = vld [vmem:[#allocation2 + $0x210] sm:$0xff]  ;;  %v14049_v1 = vcombine.low %v388_v52, %v392_v7 }
 0x39f   :  { %v256_v15 = vld [vmem:[#allocation2 + $0x230] sm:$0xff] }
 0x3a0   :  { %10451 = vmatpush2.bf16.msra.mxu0 %v13945_v22  ;;  %10492 = vmatpush2.bf16.msra.mxu1 %v14073_v12  ;;  %v380_v60 = vld [vmem:[#allocation2 + $0x610] sm:$0xff]  ;;  %v13914_v4 = vcombine.high %v252_v2, %v256_v15  ;;  %v13913_v12 = vcombine.low %v252_v2, %v256_v15 }
 0x3a1   :  { %10452 = vmatprep.subr.bf16.mxu0 %v13938_v14  ;;  %10493 = vmatprep.subr.bf16.mxu1 %v14066_v30  ;;  %v384_v62 = vld [vmem:[#allocation2 + $0x630] sm:$0xff] }
 0x3a2   :  { %v14042_v8 = vcombine.high %v380_v60, %v384_v62  ;;  %v500_v32 = vld [vmem:[#allocation2 + $0x9d0] sm:$0xff]  ;;  %v14041_v14 = vcombine.low %v380_v60, %v384_v62 }
 0x3a3   :  { %v504_v11 = vld [vmem:[#allocation2 + $0x9f0] sm:$0xff] }
 0x3a4   :  { %10453 = vmatpush2.bf16.msra.mxu0 %v13937_v24  ;;  %10494 = vmatpush2.bf16.msra.mxu1 %v14065_v27  ;;  %v628_v47 = vld [vmem:[#allocation2 + $0xdd0] sm:$0xff]  ;;  %v14162_v30 = vcombine.high %v500_v32, %v504_v11  ;;  %v14161_v27 = vcombine.low %v500_v32, %v504_v11 }
 0x3a5   :  { %10454 = vmatprep.subr.bf16.mxu0 %v13930_v41  ;;  %10495 = vmatprep.subr.bf16.mxu1 %v14058_v43  ;;  %v632_v22 = vld [vmem:[#allocation2 + $0xdf0] sm:$0xff] }
 0x3a6   :  { %v14290_v33 = vcombine.high %v628_v47, %v632_v22  ;;  %v492_v23 = vld [vmem:[#allocation2 + $0x990] sm:$0xff]  ;;  %v14289_v41 = vcombine.low %v628_v47, %v632_v22 }
 0x3a7   :  { %v496_v29 = vld [vmem:[#allocation2 + $0x9b0] sm:$0xff] }
 0x3a8   :  { %10455 = vmatpush2.bf16.msra.mxu0 %v13929_v55  ;;  %10496 = vmatpush2.bf16.msra.mxu1 %v14057_v63  ;;  %v620_v57 = vld [vmem:[#allocation2 + $0xd90] sm:$0xff]  ;;  %v14154_v43 = vcombine.high %v492_v23, %v496_v29  ;;  %v14153_v2 = vcombine.low %v492_v23, %v496_v29 }
 0x3a9   :  { %10456 = vmatprep.subr.bf16.mxu0 %v13922_v45  ;;  %10497 = vmatprep.subr.bf16.mxu1 %v14050_v19  ;;  %v624_v24 = vld [vmem:[#allocation2 + $0xdb0] sm:$0xff] }
 0x3aa   :  { %v14282_v48 = vcombine.high %v620_v57, %v624_v24  ;;  %v484_v36 = vld [vmem:[#allocation2 + $0x950] sm:$0xff]  ;;  %v14281_v60 = vcombine.low %v620_v57, %v624_v24 }
 0x3ab   :  { %v488_v52 = vld [vmem:[#allocation2 + $0x970] sm:$0xff] }
 0x3ac   :  { %10457 = vmatpush2.bf16.msra.mxu0 %v13921_v0  ;;  %10498 = vmatpush2.bf16.msra.mxu1 %v14049_v1  ;;  %v612_v55 = vld [vmem:[#allocation2 + $0xd50] sm:$0xff]  ;;  %v14146_v62 = vcombine.high %v484_v36, %v488_v52 }
 0x3ad   :  { %10458 = vmatprep.subr.bf16.mxu0 %v13914_v4  ;;  %10499 = vmatprep.subr.bf16.mxu1 %v14042_v8  ;;  %v616_v63 = vld [vmem:[#allocation2 + $0xd70] sm:$0xff] }
 0x3ae   :  { %v14274_v8 = vcombine.high %v612_v55, %v616_v63  ;;  %v476_v32 = vld [vmem:[#allocation2 + $0x910] sm:$0xff] }
 0x3af   :  { %v480_v11 = vld [vmem:[#allocation2 + $0x930] sm:$0xff] }
 0x3b0   :  { %10459 = vmatpush2.bf16.msra.mxu0 %v13913_v12  ;;  %10500 = vmatpush2.bf16.msra.mxu1 %v14041_v14  ;;  %v604_v47 = vld [vmem:[#allocation2 + $0xd10] sm:$0xff]  ;;  %v14138_v23 = vcombine.high %v476_v32, %v480_v11 }
 0x3b1   :  { %10510 = vmatprep.subr.bf16.mxu0 %v14162_v30  ;;  %10551 = vmatprep.subr.bf16.mxu1 %v14290_v33  ;;  %v608_v22 = vld [vmem:[#allocation2 + $0xd30] sm:$0xff]  ;;  %v14145_v30 = vcombine.low %v484_v36, %v488_v52 }
 0x3b2   :  { %v14266_v57 = vcombine.high %v604_v47, %v608_v22  ;;  %v468_v24 = vld [vmem:[#allocation2 + $0x8d0] sm:$0xff] }
 0x3b3   :  { %v10216_v7 = vpop.f32.mrf.mxu0  ;;  %10461 = vmatmul.mubr.bf16.vlgmr.msra.gmra.mxu0 %v16491_v16  ;;  %v10257_v19 = vpop.f32.mrf.mxu1  ;;  %10502 = vmatmul.mubr.bf16.vlgmr.msra.gmra.mxu1 %v16496_v20  ;;  %v460_v52 = vld [vmem:[#allocation2 + $0x890] sm:$0xff] }
 0x3b4   :  { %v10217_v45 = vadd.f32 %v10216_v7, %v16700_v35  ;;  %10511 = vmatpush1.bf16.msra.mxu0 %v14161_v27  ;;  %10552 = vmatpush1.bf16.msra.mxu1 %v14289_v41  ;;  %v472_v27 = vld [vmem:[#allocation2 + $0x8f0] sm:$0xff]  ;;  %v14265_v7 = vcombine.low %v604_v47, %v608_v22 }
 0x3b5   :  { %v10218_v15 = vpop.f32.mrf.mxu0  ;;  %10512 = vmatprep.subr.bf16.mxu0 %v14154_v43  ;;  %v10259_v4 = vpop.f32.mrf.mxu1  ;;  %10553 = vmatprep.subr.bf16.mxu1 %v14282_v48  ;;  %v596_v41 = vld [vmem:[#allocation2 + $0xcd0] sm:$0xff]  ;;  %v14137_v48 = vcombine.low %v476_v32, %v480_v11 }
 0x3b6   :  { %v16710_v0 = vadd.f32 %v10257_v19, %v10217_v45  ;;  %v10219_v1 = vadd.f32 %v10218_v15, %v16705_v42  ;;  %10542 = vmatprep.mubr.bf16.mxu0 %v16501_v28  ;;  %10583 = vmatprep.mubr.bf16.mxu1 %v16504_v31  ;;  %v14273_v42 = vcombine.low %v612_v55, %v616_v63  ;;  %v600_v43 = vld [vmem:[#allocation2 + $0xcf0] sm:$0xff] }
 0x3b7   :  { %v10220_v35 = vpop.f32.mrf.mxu0  ;;  %v10261_v14 = vpop.f32.mrf.mxu1  ;;  %v14130_v45 = vcombine.high %v468_v24, %v472_v27  ;;  %v14258_v36 = vcombine.high %v596_v41, %v600_v43  ;;  %v464_v19 = vld [vmem:[#allocation2 + $0x8b0] sm:$0xff]  ;;  %v14129_v63 = vcombine.low %v468_v24, %v472_v27  ;;  %v14257_v15 = vcombine.low %v596_v41, %v600_v43 }
 0x3b8   :  { %v16715_v12 = vadd.f32 %v10259_v4, %v10219_v1  ;;  %10513 = vmatpush1.bf16.msra.mxu0 %v14153_v2  ;;  %10554 = vmatpush1.bf16.msra.mxu1 %v14281_v60  ;;  %v588_v2 = vld [vmem:[#allocation2 + $0xc90] sm:$0xff]  ;;  %v14122_v60 = vcombine.high %v460_v52, %v464_v19  ;;  %v14121_v11 = vcombine.low %v460_v52, %v464_v19 }
 0x3b9   :  { %v10221_v33 = vpop.f32.mrf.mxu0  ;;  %10514 = vmatprep.subr.bf16.mxu0 %v14146_v62  ;;  %v10262_v29 = vpop.f32.mrf.mxu1  ;;  %10555 = vmatprep.subr.bf16.mxu1 %v14274_v8  ;;  %v592_v55 = vld [vmem:[#allocation2 + $0xcb0] sm:$0xff] }
 0x3ba   :  { %v14250_v62 = vcombine.high %v588_v2, %v592_v55  ;;  %v452_v1 = vld [vmem:[#allocation2 + $0x850] sm:$0xff]  ;;  %v14249_v35 = vcombine.low %v588_v2, %v592_v55 }
 0x3bb   :  { %v456_v4 = vld [vmem:[#allocation2 + $0x870] sm:$0xff] }
 0x3bc   :  { %10515 = vmatpush1.bf16.msra.mxu0 %v14145_v30  ;;  %10556 = vmatpush1.bf16.msra.mxu1 %v14273_v42  ;;  %v580_v8 = vld [vmem:[#allocation2 + $0xc50] sm:$0xff]  ;;  %v14114_v47 = vcombine.high %v452_v1, %v456_v4 }
 0x3bd   :  { %10516 = vmatprep.subr.bf16.mxu0 %v14138_v23  ;;  %10557 = vmatprep.subr.bf16.mxu1 %v14266_v57  ;;  %v584_v32 = vld [vmem:[#allocation2 + $0xc70] sm:$0xff]  ;;  %v14113_v23 = vcombine.low %v452_v1, %v456_v4 }
 0x3be   :  { %v14242_v22 = vcombine.high %v580_v8, %v584_v32  ;;  %v444_v14 = vld [vmem:[#allocation2 + $0x810] sm:$0xff]  ;;  %v14241_v29 = vcombine.low %v580_v8, %v584_v32 }
 0x3bf   :  { %v448_v30 = vld [vmem:[#allocation2 + $0x830] sm:$0xff] }
 0x3c0   :  { %10517 = vmatpush1.bf16.msra.mxu0 %v14137_v48  ;;  %10558 = vmatpush1.bf16.msra.mxu1 %v14265_v7  ;;  %v572_v33 = vld [vmem:[#allocation2 + $0xc10] sm:$0xff]  ;;  %v14106_v57 = vcombine.high %v444_v14, %v448_v30  ;;  %v14105_v7 = vcombine.low %v444_v14, %v448_v30 }
 0x3c1   :  { %10518 = vmatprep.subr.bf16.mxu0 %v14130_v45  ;;  %10559 = vmatprep.subr.bf16.mxu1 %v14258_v36  ;;  %v576_v42 = vld [vmem:[#allocation2 + $0xc30] sm:$0xff] }
 0x3c2   :  { %v14234_v24 = vcombine.high %v572_v33, %v576_v42  ;;  %v564_v27 = vld [vmem:[#allocation2 + $0xbd0] sm:$0xff]  ;;  %v14233_v45 = vcombine.low %v572_v33, %v576_v42 }
 0x3c3   :  { %v568_v41 = vld [vmem:[#allocation2 + $0xbf0] sm:$0xff] }
 0x3c4   :  { %10519 = vmatpush1.bf16.msra.mxu0 %v14129_v63  ;;  %10560 = vmatpush1.bf16.msra.mxu1 %v14257_v15  ;;  %v692_v43 = vld [vmem:[#allocation2 + $0xfd0] sm:$0xff]  ;;  %v14226_v36 = vcombine.high %v564_v27, %v568_v41  ;;  %v14225_v15 = vcombine.low %v564_v27, %v568_v41 }
 0x3c5   :  { %10520 = vmatprep.subr.bf16.mxu0 %v14122_v60  ;;  %10561 = vmatprep.subr.bf16.mxu1 %v14250_v62  ;;  %v696_v48 = vld [vmem:[#allocation2 + $0xff0] sm:$0xff] }
 0x3c6   :  { %v14354_v52 = vcombine.high %v692_v43, %v696_v48  ;;  %v556_v19 = vld [vmem:[#allocation2 + $0xb90] sm:$0xff]  ;;  %v14353_v60 = vcombine.low %v692_v43, %v696_v48 }
 0x3c7   :  { %v560_v2 = vld [vmem:[#allocation2 + $0xbb0] sm:$0xff] }
 0x3c8   :  { %10521 = vmatpush1.bf16.msra.mxu0 %v14121_v11  ;;  %10562 = vmatpush1.bf16.msra.mxu1 %v14249_v35  ;;  %v684_v55 = vld [vmem:[#allocation2 + $0xf90] sm:$0xff]  ;;  %v14218_v62 = vcombine.high %v556_v19, %v560_v2  ;;  %v14217_v35 = vcombine.low %v556_v19, %v560_v2 }
 0x3c9   :  { %10522 = vmatprep.subr.bf16.mxu0 %v14114_v47  ;;  %10563 = vmatprep.subr.bf16.mxu1 %v14242_v22  ;;  %v688_v63 = vld [vmem:[#allocation2 + $0xfb0] sm:$0xff] }
 0x3ca   :  { %v14346_v1 = vcombine.high %v684_v55, %v688_v63  ;;  %v548_v4 = vld [vmem:[#allocation2 + $0xb50] sm:$0xff]  ;;  %v14345_v47 = vcombine.low %v684_v55, %v688_v63 }
 0x3cb   :  { %v552_v8 = vld [vmem:[#allocation2 + $0xb70] sm:$0xff] }
 0x3cc   :  { %10523 = vmatpush1.bf16.msra.mxu0 %v14113_v23  ;;  %10564 = vmatpush1.bf16.msra.mxu1 %v14241_v29  ;;  %v676_v32 = vld [vmem:[#allocation2 + $0xf50] sm:$0xff]  ;;  %v14210_v22 = vcombine.high %v548_v4, %v552_v8  ;;  %v14209_v29 = vcombine.low %v548_v4, %v552_v8 }
 0x3cd   :  { %10524 = vmatprep.subr.bf16.mxu0 %v14106_v57  ;;  %10565 = vmatprep.subr.bf16.mxu1 %v14234_v24  ;;  %v680_v11 = vld [vmem:[#allocation2 + $0xf70] sm:$0xff] }
 0x3ce   :  { %v14338_v14 = vcombine.high %v676_v32, %v680_v11  ;;  %v540_v30 = vld [vmem:[#allocation2 + $0xb10] sm:$0xff]  ;;  %v14337_v57 = vcombine.low %v676_v32, %v680_v11 }
 0x3cf   :  { %v544_v33 = vld [vmem:[#allocation2 + $0xb30] sm:$0xff] }
 0x3d0   :  { %10525 = vmatpush1.bf16.msra.mxu0 %v14105_v7  ;;  %10566 = vmatpush1.bf16.msra.mxu1 %v14233_v45  ;;  %v668_v42 = vld [vmem:[#allocation2 + $0xf10] sm:$0xff]  ;;  %v14202_v24 = vcombine.high %v540_v30, %v544_v33  ;;  %v14201_v45 = vcombine.low %v540_v30, %v544_v33 }
 0x3d1   :  { %10526 = vmatprep.subr.bf16.mxu0 %v14226_v36  ;;  %10567 = vmatprep.subr.bf16.mxu1 %v14354_v52  ;;  %v672_v23 = vld [vmem:[#allocation2 + $0xf30] sm:$0xff] }
 0x3d2   :  { %v14330_v27 = vcombine.high %v668_v42, %v672_v23  ;;  %v532_v41 = vld [vmem:[#allocation2 + $0xad0] sm:$0xff]  ;;  %v14329_v36 = vcombine.low %v668_v42, %v672_v23 }
 0x3d3   :  { %v536_v43 = vld [vmem:[#allocation2 + $0xaf0] sm:$0xff] }
 0x3d4   :  { %10527 = vmatpush2.bf16.msra.mxu0 %v14225_v15  ;;  %10568 = vmatpush2.bf16.msra.mxu1 %v14353_v60  ;;  %v660_v48 = vld [vmem:[#allocation2 + $0xed0] sm:$0xff]  ;;  %v14194_v52 = vcombine.high %v532_v41, %v536_v43  ;;  %v14193_v60 = vcombine.low %v532_v41, %v536_v43 }
 0x3d5   :  { %10528 = vmatprep.subr.bf16.mxu0 %v14218_v62  ;;  %10569 = vmatprep.subr.bf16.mxu1 %v14346_v1  ;;  %v664_v7 = vld [vmem:[#allocation2 + $0xef0] sm:$0xff] }
 0x3d6   :  { %v14322_v19 = vcombine.high %v660_v48, %v664_v7  ;;  %v524_v2 = vld [vmem:[#allocation2 + $0xa90] sm:$0xff]  ;;  %v14321_v62 = vcombine.low %v660_v48, %v664_v7 }
 0x3d7   :  { %v528_v55 = vld [vmem:[#allocation2 + $0xab0] sm:$0xff] }
 0x3d8   :  { %10529 = vmatpush2.bf16.msra.mxu0 %v14217_v35  ;;  %10570 = vmatpush2.bf16.msra.mxu1 %v14345_v47  ;;  %v652_v63 = vld [vmem:[#allocation2 + $0xe90] sm:$0xff]  ;;  %v14186_v1 = vcombine.high %v524_v2, %v528_v55  ;;  %v14185_v47 = vcombine.low %v524_v2, %v528_v55 }
 0x3d9   :  { %10530 = vmatprep.subr.bf16.mxu0 %v14210_v22  ;;  %10571 = vmatprep.subr.bf16.mxu1 %v14338_v14  ;;  %v656_v15 = vld [vmem:[#allocation2 + $0xeb0] sm:$0xff] }
 0x3da   :  { %v14314_v4 = vcombine.high %v652_v63, %v656_v15  ;;  %v516_v8 = vld [vmem:[#allocation2 + $0xa50] sm:$0xff]  ;;  %v14313_v22 = vcombine.low %v652_v63, %v656_v15 }
 0x3db   :  { %v520_v32 = vld [vmem:[#allocation2 + $0xa70] sm:$0xff] }
 0x3dc   :  { %10531 = vmatpush2.bf16.msra.mxu0 %v14209_v29  ;;  %10572 = vmatpush2.bf16.msra.mxu1 %v14337_v57  ;;  %v644_v11 = vld [vmem:[#allocation2 + $0xe50] sm:$0xff]  ;;  %v14178_v14 = vcombine.high %v516_v8, %v520_v32  ;;  %v14177_v57 = vcombine.low %v516_v8, %v520_v32 }
 0x3dd   :  { %10532 = vmatprep.subr.bf16.mxu0 %v14202_v24  ;;  %10573 = vmatprep.subr.bf16.mxu1 %v14330_v27  ;;  %v648_v35 = vld [vmem:[#allocation2 + $0xe70] sm:$0xff] }
 0x3de   :  { %v14306_v30 = vcombine.high %v644_v11, %v648_v35  ;;  %v508_v33 = vld [vmem:[#allocation2 + $0xa10] sm:$0xff]  ;;  %v14305_v24 = vcombine.low %v644_v11, %v648_v35 }
 0x3df   :  { %v512_v42 = vld [vmem:[#allocation2 + $0xa30] sm:$0xff] }
 0x3e0   :  { %10533 = vmatpush2.bf16.msra.mxu0 %v14201_v45  ;;  %10574 = vmatpush2.bf16.msra.mxu1 %v14329_v36  ;;  %v636_v23 = vld [vmem:[#allocation2 + $0xe10] sm:$0xff]  ;;  %v14170_v27 = vcombine.high %v508_v33, %v512_v42  ;;  %v14169_v36 = vcombine.low %v508_v33, %v512_v42 }
 0x3e1   :  { %10534 = vmatprep.subr.bf16.mxu0 %v14194_v52  ;;  %10575 = vmatprep.subr.bf16.mxu1 %v14322_v19  ;;  %v640_v29 = vld [vmem:[#allocation2 + $0xe30] sm:$0xff] }
 0x3e2   :  { %v14298_v41 = vcombine.high %v636_v23, %v640_v29  ;;  %v756_v43 = vld [vmem:[#allocation2 + $0x11d0] sm:$0xff]  ;;  %v14297_v52 = vcombine.low %v636_v23, %v640_v29 }
 0x3e3   :  { %v760_v48 = vld [vmem:[#allocation2 + $0x11f0] sm:$0xff] }
 0x3e4   :  { %10535 = vmatpush2.bf16.msra.mxu0 %v14193_v60  ;;  %10576 = vmatpush2.bf16.msra.mxu1 %v14321_v62  ;;  %v884_v7 = vld [vmem:[#allocation2 + $0x15d0] sm:$0xff]  ;;  %v14418_v19 = vcombine.high %v756_v43, %v760_v48  ;;  %v14417_v62 = vcombine.low %v756_v43, %v760_v48 }
 0x3e5   :  { %10536 = vmatprep.subr.bf16.mxu0 %v14186_v1  ;;  %10577 = vmatprep.subr.bf16.mxu1 %v14314_v4  ;;  %v888_v45 = vld [vmem:[#allocation2 + $0x15f0] sm:$0xff] }
 0x3e6   :  { %v14546_v2 = vcombine.high %v884_v7, %v888_v45  ;;  %v748_v55 = vld [vmem:[#allocation2 + $0x1190] sm:$0xff]  ;;  %v14545_v1 = vcombine.low %v884_v7, %v888_v45 }
 0x3e7   :  { %v752_v63 = vld [vmem:[#allocation2 + $0x11b0] sm:$0xff] }
 0x3e8   :  { %10537 = vmatpush2.bf16.msra.mxu0 %v14185_v47  ;;  %10578 = vmatpush2.bf16.msra.mxu1 %v14313_v22  ;;  %v876_v15 = vld [vmem:[#allocation2 + $0x1590] sm:$0xff]  ;;  %v14410_v4 = vcombine.high %v748_v55, %v752_v63  ;;  %v14409_v33 = vcombine.low %v748_v55, %v752_v63 }
 0x3e9   :  { %10538 = vmatprep.subr.bf16.mxu0 %v14178_v14  ;;  %10579 = vmatprep.subr.bf16.mxu1 %v14306_v30  ;;  %v880_v60 = vld [vmem:[#allocation2 + $0x15b0] sm:$0xff] }
 0x3ea   :  { %v14538_v8 = vcombine.high %v876_v15, %v880_v60  ;;  %v740_v32 = vld [vmem:[#allocation2 + $0x1150] sm:$0xff]  ;;  %v14537_v23 = vcombine.low %v876_v15, %v880_v60 }
 0x3eb   :  { %v744_v11 = vld [vmem:[#allocation2 + $0x1170] sm:$0xff] }
 0x3ec   :  { %10539 = vmatpush2.bf16.msra.mxu0 %v14177_v57  ;;  %10580 = vmatpush2.bf16.msra.mxu1 %v14305_v24  ;;  %v868_v47 = vld [vmem:[#allocation2 + $0x1550] sm:$0xff]  ;;  %v14402_v29 = vcombine.high %v740_v32, %v744_v11 }
 0x3ed   :  { %10540 = vmatprep.subr.bf16.mxu0 %v14170_v27  ;;  %10581 = vmatprep.subr.bf16.mxu1 %v14298_v41  ;;  %v872_v22 = vld [vmem:[#allocation2 + $0x1570] sm:$0xff] }
 0x3ee   :  { %v14530_v41 = vcombine.high %v868_v47, %v872_v22  ;;  %v732_v43 = vld [vmem:[#allocation2 + $0x1110] sm:$0xff] }
 0x3ef   :  { %v736_v48 = vld [vmem:[#allocation2 + $0x1130] sm:$0xff] }
 0x3f0   :  { %10541 = vmatpush2.bf16.msra.mxu0 %v14169_v36  ;;  %10582 = vmatpush2.bf16.msra.mxu1 %v14297_v52  ;;  %v860_v7 = vld [vmem:[#allocation2 + $0x1510] sm:$0xff]  ;;  %v14394_v55 = vcombine.high %v732_v43, %v736_v48 }
 0x3f1   :  { %10592 = vmatprep.subr.bf16.mxu0 %v14418_v19  ;;  %10633 = vmatprep.subr.bf16.mxu1 %v14546_v2  ;;  %v864_v45 = vld [vmem:[#allocation2 + $0x1530] sm:$0xff]  ;;  %v14401_v19 = vcombine.low %v740_v32, %v744_v11 }
 0x3f2   :  { %v14522_v15 = vcombine.high %v860_v7, %v864_v45  ;;  %v724_v60 = vld [vmem:[#allocation2 + $0x10d0] sm:$0xff] }
 0x3f3   :  { %v10298_v35 = vpop.f32.mrf.mxu0  ;;  %10543 = vmatmul.mubr.bf16.vlgmr.msra.gmra.mxu0 %v16518_v39  ;;  %v10339_v30 = vpop.f32.mrf.mxu1  ;;  %10584 = vmatmul.mubr.bf16.vlgmr.msra.gmra.mxu1 %v16520_v40  ;;  %v716_v11 = vld [vmem:[#allocation2 + $0x1090] sm:$0xff] }
 0x3f4   :  { %v10299_v14 = vadd.f32 %v10298_v35, %v16710_v0  ;;  %10593 = vmatpush1.bf16.msra.mxu0 %v14417_v62  ;;  %10634 = vmatpush1.bf16.msra.mxu1 %v14545_v1  ;;  %v728_v62 = vld [vmem:[#allocation2 + $0x10f0] sm:$0xff]  ;;  %v14521_v35 = vcombine.low %v860_v7, %v864_v45 }
 0x3f5   :  { %v10300_v42 = vpop.f32.mrf.mxu0  ;;  %10594 = vmatprep.subr.bf16.mxu0 %v14410_v4  ;;  %v10341_v27 = vpop.f32.mrf.mxu1  ;;  %10635 = vmatprep.subr.bf16.mxu1 %v14538_v8  ;;  %v852_v1 = vld [vmem:[#allocation2 + $0x14d0] sm:$0xff]  ;;  %v14393_v8 = vcombine.low %v732_v43, %v736_v48 }
 0x3f6   :  { %v16720_v57 = vadd.f32 %v10339_v30, %v10299_v14  ;;  %v10301_v24 = vadd.f32 %v10300_v42, %v16715_v12  ;;  %10624 = vmatprep.mubr.bf16.mxu0 %v16525_v49  ;;  %10665 = vmatprep.mubr.bf16.mxu1 %v16528_v51  ;;  %v14529_v12 = vcombine.low %v868_v47, %v872_v22  ;;  %v856_v4 = vld [vmem:[#allocation2 + $0x14f0] sm:$0xff] }
 0x3f7   :  { %v10302_v0 = vpop.f32.mrf.mxu0  ;;  %v10343_v52 = vpop.f32.mrf.mxu1  ;;  %v14386_v14 = vcombine.high %v724_v60, %v728_v62  ;;  %v14514_v32 = vcombine.high %v852_v1, %v856_v4  ;;  %v720_v30 = vld [vmem:[#allocation2 + $0x10b0] sm:$0xff]  ;;  %v14385_v22 = vcombine.low %v724_v60, %v728_v62  ;;  %v14513_v42 = vcombine.low %v852_v1, %v856_v4 }
 0x3f8   :  { %v16725_v36 = vadd.f32 %v10341_v27, %v10301_v24  ;;  %10595 = vmatpush1.bf16.msra.mxu0 %v14409_v33  ;;  %10636 = vmatpush1.bf16.msra.mxu1 %v14537_v23  ;;  %v844_v33 = vld [vmem:[#allocation2 + $0x1490] sm:$0xff]  ;;  %v14378_v23 = vcombine.high %v716_v11, %v720_v30  ;;  %v14377_v48 = vcombine.low %v716_v11, %v720_v30 }
 0x3f9   :  { %v10303_v2 = vpop.f32.mrf.mxu0  ;;  %10596 = vmatprep.subr.bf16.mxu0 %v14402_v29  ;;  %v10344_v63 = vpop.f32.mrf.mxu1  ;;  %10637 = vmatprep.subr.bf16.mxu1 %v14530_v41  ;;  %v848_v47 = vld [vmem:[#allocation2 + $0x14b0] sm:$0xff] }
 0x3fa   :  { %v14506_v29 = vcombine.high %v844_v33, %v848_v47  ;;  %v708_v24 = vld [vmem:[#allocation2 + $0x1050] sm:$0xff]  ;;  %v14505_v0 = vcombine.low %v844_v33, %v848_v47 }
 0x3fb   :  { %v712_v27 = vld [vmem:[#allocation2 + $0x1070] sm:$0xff] }
 0x3fc   :  { %10597 = vmatpush1.bf16.msra.mxu0 %v14401_v19  ;;  %10638 = vmatpush1.bf16.msra.mxu1 %v14529_v12  ;;  %v836_v41 = vld [vmem:[#allocation2 + $0x1450] sm:$0xff]  ;;  %v14370_v7 = vcombine.high %v708_v24, %v712_v27 }
 0x3fd   :  { %10598 = vmatprep.subr.bf16.mxu0 %v14394_v55  ;;  %10639 = vmatprep.subr.bf16.mxu1 %v14522_v15  ;;  %v840_v43 = vld [vmem:[#allocation2 + $0x1470] sm:$0xff]  ;;  %v14369_v55 = vcombine.low %v708_v24, %v712_v27 }
 0x3fe   :  { %v14498_v45 = vcombine.high %v836_v41, %v840_v43  ;;  %v700_v52 = vld [vmem:[#allocation2 + $0x1010] sm:$0xff]  ;;  %v14497_v63 = vcombine.low %v836_v41, %v840_v43 }
 0x3ff   :  { %v704_v19 = vld [vmem:[#allocation2 + $0x1030] sm:$0xff] }
 0x400   :  { %10599 = vmatpush1.bf16.msra.mxu0 %v14393_v8  ;;  %10640 = vmatpush1.bf16.msra.mxu1 %v14521_v35  ;;  %v828_v2 = vld [vmem:[#allocation2 + $0x1410] sm:$0xff]  ;;  %v14362_v15 = vcombine.high %v700_v52, %v704_v19  ;;  %v14361_v35 = vcombine.low %v700_v52, %v704_v19 }
 0x401   :  { %10600 = vmatprep.subr.bf16.mxu0 %v14386_v14  ;;  %10641 = vmatprep.subr.bf16.mxu1 %v14514_v32  ;;  %v832_v12 = vld [vmem:[#allocation2 + $0x1430] sm:$0xff] }
 0x402   :  { %v14490_v60 = vcombine.high %v828_v2, %v832_v12  ;;  %v820_v62 = vld [vmem:[#allocation2 + $0x13d0] sm:$0xff]  ;;  %v14489_v14 = vcombine.low %v828_v2, %v832_v12 }
 0x403   :  { %v824_v1 = vld [vmem:[#allocation2 + $0x13f0] sm:$0xff] }
 0x404   :  { %10601 = vmatpush1.bf16.msra.mxu0 %v14385_v22  ;;  %10642 = vmatpush1.bf16.msra.mxu1 %v14513_v42  ;;  %v948_v4 = vld [vmem:[#allocation2 + $0x17d0] sm:$0xff]  ;;  %v14482_v32 = vcombine.high %v820_v62, %v824_v1  ;;  %v14481_v42 = vcombine.low %v820_v62, %v824_v1 }
 0x405   :  { %10602 = vmatprep.subr.bf16.mxu0 %v14378_v23  ;;  %10643 = vmatprep.subr.bf16.mxu1 %v14506_v29  ;;  %v952_v8 = vld [vmem:[#allocation2 + $0x17f0] sm:$0xff] }
 0x406   :  { %v14610_v11 = vcombine.high %v948_v4, %v952_v8  ;;  %v812_v30 = vld [vmem:[#allocation2 + $0x1390] sm:$0xff]  ;;  %v14609_v23 = vcombine.low %v948_v4, %v952_v8 }
 0x407   :  { %v816_v33 = vld [vmem:[#allocation2 + $0x13b0] sm:$0xff] }
 0x408   :  { %10603 = vmatpush1.bf16.msra.mxu0 %v14377_v48  ;;  %10644 = vmatpush1.bf16.msra.mxu1 %v14505_v0  ;;  %v940_v47 = vld [vmem:[#allocation2 + $0x1790] sm:$0xff]  ;;  %v14474_v29 = vcombine.high %v812_v30, %v816_v33  ;;  %v14473_v0 = vcombine.low %v812_v30, %v816_v33 }
 0x409   :  { %10604 = vmatprep.subr.bf16.mxu0 %v14370_v7  ;;  %10645 = vmatprep.subr.bf16.mxu1 %v14498_v45  ;;  %v944_v22 = vld [vmem:[#allocation2 + $0x17b0] sm:$0xff] }
 0x40a   :  { %v14602_v24 = vcombine.high %v940_v47, %v944_v22  ;;  %v804_v27 = vld [vmem:[#allocation2 + $0x1350] sm:$0xff]  ;;  %v14601_v7 = vcombine.low %v940_v47, %v944_v22 }
 0x40b   :  { %v808_v41 = vld [vmem:[#allocation2 + $0x1370] sm:$0xff] }
 0x40c   :  { %10605 = vmatpush1.bf16.msra.mxu0 %v14369_v55  ;;  %10646 = vmatpush1.bf16.msra.mxu1 %v14497_v63  ;;  %v932_v43 = vld [vmem:[#allocation2 + $0x1750] sm:$0xff]  ;;  %v14466_v45 = vcombine.high %v804_v27, %v808_v41  ;;  %v14465_v63 = vcombine.low %v804_v27, %v808_v41 }
 0x40d   :  { %10606 = vmatprep.subr.bf16.mxu0 %v14362_v15  ;;  %10647 = vmatprep.subr.bf16.mxu1 %v14490_v60  ;;  %v936_v48 = vld [vmem:[#allocation2 + $0x1770] sm:$0xff] }
 0x40e   :  { %v14594_v52 = vcombine.high %v932_v43, %v936_v48  ;;  %v796_v19 = vld [vmem:[#allocation2 + $0x1310] sm:$0xff]  ;;  %v14593_v15 = vcombine.low %v932_v43, %v936_v48 }
 0x40f   :  { %v800_v2 = vld [vmem:[#allocation2 + $0x1330] sm:$0xff] }
 0x410   :  { %10607 = vmatpush1.bf16.msra.mxu0 %v14361_v35  ;;  %10648 = vmatpush1.bf16.msra.mxu1 %v14489_v14  ;;  %v924_v12 = vld [vmem:[#allocation2 + $0x1710] sm:$0xff]  ;;  %v14458_v60 = vcombine.high %v796_v19, %v800_v2  ;;  %v14457_v14 = vcombine.low %v796_v19, %v800_v2 }
 0x411   :  { %10608 = vmatprep.subr.bf16.mxu0 %v14482_v32  ;;  %10649 = vmatprep.subr.bf16.mxu1 %v14610_v11  ;;  %v928_v55 = vld [vmem:[#allocation2 + $0x1730] sm:$0xff] }
 0x412   :  { %v14586_v62 = vcombine.high %v924_v12, %v928_v55  ;;  %v788_v1 = vld [vmem:[#allocation2 + $0x12d0] sm:$0xff]  ;;  %v14585_v32 = vcombine.low %v924_v12, %v928_v55 }
 0x413   :  { %v792_v4 = vld [vmem:[#allocation2 + $0x12f0] sm:$0xff] }
 0x414   :  { %10609 = vmatpush2.bf16.msra.mxu0 %v14481_v42  ;;  %10650 = vmatpush2.bf16.msra.mxu1 %v14609_v23  ;;  %v916_v8 = vld [vmem:[#allocation2 + $0x16d0] sm:$0xff]  ;;  %v14450_v11 = vcombine.high %v788_v1, %v792_v4  ;;  %v14449_v23 = vcombine.low %v788_v1, %v792_v4 }
 0x415   :  { %10610 = vmatprep.subr.bf16.mxu0 %v14474_v29  ;;  %10651 = vmatprep.subr.bf16.mxu1 %v14602_v24  ;;  %v920_v35 = vld [vmem:[#allocation2 + $0x16f0] sm:$0xff] }
 0x416   :  { %v14578_v30 = vcombine.high %v916_v8, %v920_v35  ;;  %v780_v33 = vld [vmem:[#allocation2 + $0x1290] sm:$0xff]  ;;  %v14577_v29 = vcombine.low %v916_v8, %v920_v35 }
 0x417   :  { %v784_v47 = vld [vmem:[#allocation2 + $0x12b0] sm:$0xff] }
 0x418   :  { %10611 = vmatpush2.bf16.msra.mxu0 %v14473_v0  ;;  %10652 = vmatpush2.bf16.msra.mxu1 %v14601_v7  ;;  %v908_v22 = vld [vmem:[#allocation2 + $0x1690] sm:$0xff]  ;;  %v14442_v24 = vcombine.high %v780_v33, %v784_v47  ;;  %v14441_v7 = vcombine.low %v780_v33, %v784_v47 }
 0x419   :  { %10612 = vmatprep.subr.bf16.mxu0 %v14466_v45  ;;  %10653 = vmatprep.subr.bf16.mxu1 %v14594_v52  ;;  %v912_v42 = vld [vmem:[#allocation2 + $0x16b0] sm:$0xff] }
 0x41a   :  { %v14570_v27 = vcombine.high %v908_v22, %v912_v42  ;;  %v772_v41 = vld [vmem:[#allocation2 + $0x1250] sm:$0xff]  ;;  %v14569_v45 = vcombine.low %v908_v22, %v912_v42 }
 0x41b   :  { %v776_v43 = vld [vmem:[#allocation2 + $0x1270] sm:$0xff] }
 0x41c   :  { %10613 = vmatpush2.bf16.msra.mxu0 %v14465_v63  ;;  %10654 = vmatpush2.bf16.msra.mxu1 %v14593_v15  ;;  %v900_v48 = vld [vmem:[#allocation2 + $0x1650] sm:$0xff]  ;;  %v14434_v52 = vcombine.high %v772_v41, %v776_v43  ;;  %v14433_v15 = vcombine.low %v772_v41, %v776_v43 }
 0x41d   :  { %10614 = vmatprep.subr.bf16.mxu0 %v14458_v60  ;;  %10655 = vmatprep.subr.bf16.mxu1 %v14586_v62  ;;  %v904_v0 = vld [vmem:[#allocation2 + $0x1670] sm:$0xff] }
 0x41e   :  { %v14562_v19 = vcombine.high %v900_v48, %v904_v0  ;;  %v764_v2 = vld [vmem:[#allocation2 + $0x1210] sm:$0xff]  ;;  %v14561_v60 = vcombine.low %v900_v48, %v904_v0 }
 0x41f   :  { %v768_v12 = vld [vmem:[#allocation2 + $0x1230] sm:$0xff] }
 0x420   :  { %10615 = vmatpush2.bf16.msra.mxu0 %v14457_v14  ;;  %10656 = vmatpush2.bf16.msra.mxu1 %v14585_v32  ;;  %v892_v55 = vld [vmem:[#allocation2 + $0x1610] sm:$0xff]  ;;  %v14426_v62 = vcombine.high %v764_v2, %v768_v12  ;;  %v14425_v32 = vcombine.low %v764_v2, %v768_v12 }
 0x421   :  { %10616 = vmatprep.subr.bf16.mxu0 %v14450_v11  ;;  %10657 = vmatprep.subr.bf16.mxu1 %v14578_v30  ;;  %v896_v63 = vld [vmem:[#allocation2 + $0x1630] sm:$0xff] }
 0x422   :  { %v14554_v1 = vcombine.high %v892_v55, %v896_v63  ;;  %v1012_v4 = vld [vmem:[#allocation2 + $0x19d0] sm:$0xff]  ;;  %v14553_v11 = vcombine.low %v892_v55, %v896_v63 }
 0x423   :  { %v1016_v8 = vld [vmem:[#allocation2 + $0x19f0] sm:$0xff] }
 0x424   :  { %10617 = vmatpush2.bf16.msra.mxu0 %v14449_v23  ;;  %10658 = vmatpush2.bf16.msra.mxu1 %v14577_v29  ;;  %v1140_v35 = vld [vmem:[#allocation2 + $0x1dd0] sm:$0xff]  ;;  %v14674_v30 = vcombine.high %v1012_v4, %v1016_v8  ;;  %v14673_v29 = vcombine.low %v1012_v4, %v1016_v8 }
 0x425   :  { %10618 = vmatprep.subr.bf16.mxu0 %v14442_v24  ;;  %10659 = vmatprep.subr.bf16.mxu1 %v14570_v27  ;;  %v1144_v14 = vld [vmem:[#allocation2 + $0x1df0] sm:$0xff] }
 0x426   :  { %v14802_v33 = vcombine.high %v1140_v35, %v1144_v14  ;;  %v1004_v47 = vld [vmem:[#allocation2 + $0x1990] sm:$0xff]  ;;  %v14801_v24 = vcombine.low %v1140_v35, %v1144_v14 }
 0x427   :  { %v1008_v22 = vld [vmem:[#allocation2 + $0x19b0] sm:$0xff] }
 0x428   :  { %10619 = vmatpush2.bf16.msra.mxu0 %v14441_v7  ;;  %10660 = vmatpush2.bf16.msra.mxu1 %v14569_v45  ;;  %v1132_v42 = vld [vmem:[#allocation2 + $0x1d90] sm:$0xff]  ;;  %v14666_v27 = vcombine.high %v1004_v47, %v1008_v22  ;;  %v14665_v2 = vcombine.low %v1004_v47, %v1008_v22 }
 0x429   :  { %10620 = vmatprep.subr.bf16.mxu0 %v14434_v52  ;;  %10661 = vmatprep.subr.bf16.mxu1 %v14562_v19  ;;  %v1136_v23 = vld [vmem:[#allocation2 + $0x1db0] sm:$0xff] }
 0x42a   :  { %v14794_v41 = vcombine.high %v1132_v42, %v1136_v23  ;;  %v996_v43 = vld [vmem:[#allocation2 + $0x1950] sm:$0xff]  ;;  %v14793_v55 = vcombine.low %v1132_v42, %v1136_v23 }
 0x42b   :  { %v1000_v48 = vld [vmem:[#allocation2 + $0x1970] sm:$0xff] }
 0x42c   :  { %10621 = vmatpush2.bf16.msra.mxu0 %v14433_v15  ;;  %10662 = vmatpush2.bf16.msra.mxu1 %v14561_v60  ;;  %v1124_v7 = vld [vmem:[#allocation2 + $0x1d50] sm:$0xff]  ;;  %v14658_v63 = vcombine.high %v996_v43, %v1000_v48 }
 0x42d   :  { %10622 = vmatprep.subr.bf16.mxu0 %v14426_v62  ;;  %10663 = vmatprep.subr.bf16.mxu1 %v14554_v1  ;;  %v1128_v45 = vld [vmem:[#allocation2 + $0x1d70] sm:$0xff] }
 0x42e   :  { %v14786_v1 = vcombine.high %v1124_v7, %v1128_v45  ;;  %v988_v4 = vld [vmem:[#allocation2 + $0x1910] sm:$0xff] }
 0x42f   :  { %v992_v8 = vld [vmem:[#allocation2 + $0x1930] sm:$0xff] }
 0x430   :  { %10623 = vmatpush2.bf16.msra.mxu0 %v14425_v32  ;;  %10664 = vmatpush2.bf16.msra.mxu1 %v14553_v11  ;;  %v1116_v35 = vld [vmem:[#allocation2 + $0x1d10] sm:$0xff]  ;;  %v14650_v47 = vcombine.high %v988_v4, %v992_v8 }
 0x431   :  { %10674 = vmatprep.subr.bf16.mxu0 %v14674_v30  ;;  %10715 = vmatprep.subr.bf16.mxu1 %v14802_v33  ;;  %v1120_v14 = vld [vmem:[#allocation2 + $0x1d30] sm:$0xff]  ;;  %v14657_v30 = vcombine.low %v996_v43, %v1000_v48 }
 0x432   :  { %v14778_v42 = vcombine.high %v1116_v35, %v1120_v14  ;;  %v980_v23 = vld [vmem:[#allocation2 + $0x18d0] sm:$0xff] }
 0x433   :  { %v10380_v0 = vpop.f32.mrf.mxu0  ;;  %10625 = vmatmul.mubr.bf16.vlgmr.msra.gmra.mxu0 %v16542_v5  ;;  %v10421_v19 = vpop.f32.mrf.mxu1  ;;  %10666 = vmatmul.mubr.bf16.vlgmr.msra.gmra.mxu1 %v16544_v6  ;;  %v972_v48 = vld [vmem:[#allocation2 + $0x1890] sm:$0xff] }
 0x434   :  { %v10381_v52 = vadd.f32 %v10380_v0, %v16720_v57  ;;  %10675 = vmatpush1.bf16.msra.mxu0 %v14673_v29  ;;  %10716 = vmatpush1.bf16.msra.mxu1 %v14801_v24  ;;  %v984_v29 = vld [vmem:[#allocation2 + $0x18f0] sm:$0xff]  ;;  %v14777_v0 = vcombine.low %v1116_v35, %v1120_v14 }
 0x435   :  { %v10382_v12 = vpop.f32.mrf.mxu0  ;;  %10676 = vmatprep.subr.bf16.mxu0 %v14666_v27  ;;  %v10423_v62 = vpop.f32.mrf.mxu1  ;;  %10717 = vmatprep.subr.bf16.mxu1 %v14794_v41  ;;  %v1108_v24 = vld [vmem:[#allocation2 + $0x1cd0] sm:$0xff]  ;;  %v14649_v41 = vcombine.low %v988_v4, %v992_v8 }
 0x436   :  { %v16730_v15 = vadd.f32 %v10421_v19, %v10381_v52  ;;  %v10383_v60 = vadd.f32 %v10382_v12, %v16725_v36  ;;  %10706 = vmatprep.mubr.bf16.mxu0 %v16549_v17  ;;  %10747 = vmatprep.mubr.bf16.mxu1 %v16552_v18  ;;  %v14785_v36 = vcombine.low %v1124_v7, %v1128_v45  ;;  %v1112_v27 = vld [vmem:[#allocation2 + $0x1cf0] sm:$0xff] }
 0x437   :  { %v10384_v57 = vpop.f32.mrf.mxu0  ;;  %v10425_v11 = vpop.f32.mrf.mxu1  ;;  %v14642_v52 = vcombine.high %v980_v23, %v984_v29  ;;  %v14770_v43 = vcombine.high %v1108_v24, %v1112_v27  ;;  %v976_v19 = vld [vmem:[#allocation2 + $0x18b0] sm:$0xff]  ;;  %v14641_v45 = vcombine.low %v980_v23, %v984_v29  ;;  %v14769_v12 = vcombine.low %v1108_v24, %v1112_v27 }
 0x438   :  { %v16735_v32 = vadd.f32 %v10423_v62, %v10383_v60  ;;  %10677 = vmatpush1.bf16.msra.mxu0 %v14665_v2  ;;  %10718 = vmatpush1.bf16.msra.mxu1 %v14793_v55  ;;  %v1100_v2 = vld [vmem:[#allocation2 + $0x1c90] sm:$0xff]  ;;  %v14634_v55 = vcombine.high %v972_v48, %v976_v19  ;;  %v14633_v8 = vcombine.low %v972_v48, %v976_v19 }
 0x439   :  { %v10385_v33 = vpop.f32.mrf.mxu0  ;;  %10678 = vmatprep.subr.bf16.mxu0 %v14658_v63  ;;  %v10426_v22 = vpop.f32.mrf.mxu1  ;;  %10719 = vmatprep.subr.bf16.mxu1 %v14786_v1  ;;  %v1104_v7 = vld [vmem:[#allocation2 + $0x1cb0] sm:$0xff] }
 0x43a   :  { %v14762_v63 = vcombine.high %v1100_v2, %v1104_v7  ;;  %v964_v60 = vld [vmem:[#allocation2 + $0x1850] sm:$0xff]  ;;  %v14761_v57 = vcombine.low %v1100_v2, %v1104_v7 }
 0x43b   :  { %v968_v62 = vld [vmem:[#allocation2 + $0x1870] sm:$0xff] }
 0x43c   :  { %10679 = vmatpush1.bf16.msra.mxu0 %v14657_v30  ;;  %10720 = vmatpush1.bf16.msra.mxu1 %v14785_v36  ;;  %v1092_v1 = vld [vmem:[#allocation2 + $0x1c50] sm:$0xff]  ;;  %v14626_v35 = vcombine.high %v964_v60, %v968_v62 }
 0x43d   :  { %10680 = vmatprep.subr.bf16.mxu0 %v14650_v47  ;;  %10721 = vmatprep.subr.bf16.mxu1 %v14778_v42  ;;  %v1096_v4 = vld [vmem:[#allocation2 + $0x1c70] sm:$0xff]  ;;  %v14625_v47 = vcombine.low %v964_v60, %v968_v62 }
 0x43e   :  { %v14754_v14 = vcombine.high %v1092_v1, %v1096_v4  ;;  %v956_v11 = vld [vmem:[#allocation2 + $0x1810] sm:$0xff]  ;;  %v14753_v22 = vcombine.low %v1092_v1, %v1096_v4 }
 0x43f   :  { %v960_v30 = vld [vmem:[#allocation2 + $0x1830] sm:$0xff] }
 0x440   :  { %10681 = vmatpush1.bf16.msra.mxu0 %v14649_v41  ;;  %10722 = vmatpush1.bf16.msra.mxu1 %v14777_v0  ;;  %v1084_v33 = vld [vmem:[#allocation2 + $0x1c10] sm:$0xff]  ;;  %v14618_v42 = vcombine.high %v956_v11, %v960_v30  ;;  %v14617_v0 = vcombine.low %v956_v11, %v960_v30 }
 0x441   :  { %10682 = vmatprep.subr.bf16.mxu0 %v14642_v52  ;;  %10723 = vmatprep.subr.bf16.mxu1 %v14770_v43  ;;  %v1088_v36 = vld [vmem:[#allocation2 + $0x1c30] sm:$0xff] }
 0x442   :  { %v14746_v23 = vcombine.high %v1084_v33, %v1088_v36  ;;  %v1076_v29 = vld [vmem:[#allocation2 + $0x1bd0] sm:$0xff]  ;;  %v14745_v52 = vcombine.low %v1084_v33, %v1088_v36 }
 0x443   :  { %v1080_v24 = vld [vmem:[#allocation2 + $0x1bf0] sm:$0xff] }
 0x444   :  { %10683 = vmatpush1.bf16.msra.mxu0 %v14641_v45  ;;  %10724 = vmatpush1.bf16.msra.mxu1 %v14769_v12  ;;  %v1204_v27 = vld [vmem:[#allocation2 + $0x1fd0] sm:$0xff]  ;;  %v14738_v43 = vcombine.high %v1076_v29, %v1080_v24  ;;  %v14737_v12 = vcombine.low %v1076_v29, %v1080_v24 }
 0x445   :  { %10684 = vmatprep.subr.bf16.mxu0 %v14634_v55  ;;  %10725 = vmatprep.subr.bf16.mxu1 %v14762_v63  ;;  %v1208_v41 = vld [vmem:[#allocation2 + $0x1ff0] sm:$0xff] }
 0x446   :  { %v14866_v48 = vcombine.high %v1204_v27, %v1208_v41  ;;  %v1068_v19 = vld [vmem:[#allocation2 + $0x1b90] sm:$0xff]  ;;  %v14865_v55 = vcombine.low %v1204_v27, %v1208_v41 }
 0x447   :  { %v1072_v2 = vld [vmem:[#allocation2 + $0x1bb0] sm:$0xff] }
 0x448   :  { %10685 = vmatpush1.bf16.msra.mxu0 %v14633_v8  ;;  %10726 = vmatpush1.bf16.msra.mxu1 %v14761_v57  ;;  %v1196_v7 = vld [vmem:[#allocation2 + $0x1f90] sm:$0xff]  ;;  %v14730_v63 = vcombine.high %v1068_v19, %v1072_v2  ;;  %v14729_v57 = vcombine.low %v1068_v19, %v1072_v2 }
 0x449   :  { %10686 = vmatprep.subr.bf16.mxu0 %v14626_v35  ;;  %10727 = vmatprep.subr.bf16.mxu1 %v14754_v14  ;;  %v1200_v45 = vld [vmem:[#allocation2 + $0x1fb0] sm:$0xff] }
 0x44a   :  { %v14858_v60 = vcombine.high %v1196_v7, %v1200_v45  ;;  %v1060_v62 = vld [vmem:[#allocation2 + $0x1b50] sm:$0xff]  ;;  %v14857_v35 = vcombine.low %v1196_v7, %v1200_v45 }
 0x44b   :  { %v1064_v1 = vld [vmem:[#allocation2 + $0x1b70] sm:$0xff] }
 0x44c   :  { %10687 = vmatpush1.bf16.msra.mxu0 %v14625_v47  ;;  %10728 = vmatpush1.bf16.msra.mxu1 %v14753_v22  ;;  %v1188_v4 = vld [vmem:[#allocation2 + $0x1f50] sm:$0xff]  ;;  %v14722_v14 = vcombine.high %v1060_v62, %v1064_v1  ;;  %v14721_v22 = vcombine.low %v1060_v62, %v1064_v1 }
 0x44d   :  { %10688 = vmatprep.subr.bf16.mxu0 %v14618_v42  ;;  %10729 = vmatprep.subr.bf16.mxu1 %v14746_v23  ;;  %v1192_v8 = vld [vmem:[#allocation2 + $0x1f70] sm:$0xff] }
 0x44e   :  { %v14850_v11 = vcombine.high %v1188_v4, %v1192_v8  ;;  %v1052_v30 = vld [vmem:[#allocation2 + $0x1b10] sm:$0xff]  ;;  %v14849_v42 = vcombine.low %v1188_v4, %v1192_v8 }
 0x44f   :  { %v1056_v33 = vld [vmem:[#allocation2 + $0x1b30] sm:$0xff] }
 0x450   :  { %10689 = vmatpush1.bf16.msra.mxu0 %v14617_v0  ;;  %10730 = vmatpush1.bf16.msra.mxu1 %v14745_v52  ;;  %v1180_v36 = vld [vmem:[#allocation2 + $0x1f10] sm:$0xff]  ;;  %v14714_v23 = vcombine.high %v1052_v30, %v1056_v33  ;;  %v14713_v52 = vcombine.low %v1052_v30, %v1056_v33 }
 0x451   :  { %10690 = vmatprep.subr.bf16.mxu0 %v14738_v43  ;;  %10731 = vmatprep.subr.bf16.mxu1 %v14866_v48  ;;  %v1184_v47 = vld [vmem:[#allocation2 + $0x1f30] sm:$0xff] }
 0x452   :  { %v14842_v29 = vcombine.high %v1180_v36, %v1184_v47  ;;  %v1044_v24 = vld [vmem:[#allocation2 + $0x1ad0] sm:$0xff]  ;;  %v14841_v43 = vcombine.low %v1180_v36, %v1184_v47 }
 0x453   :  { %v1048_v27 = vld [vmem:[#allocation2 + $0x1af0] sm:$0xff] }
 0x454   :  { %10691 = vmatpush2.bf16.msra.mxu0 %v14737_v12  ;;  %10732 = vmatpush2.bf16.msra.mxu1 %v14865_v55  ;;  %v1172_v41 = vld [vmem:[#allocation2 + $0x1ed0] sm:$0xff]  ;;  %v14706_v48 = vcombine.high %v1044_v24, %v1048_v27  ;;  %v14705_v55 = vcombine.low %v1044_v24, %v1048_v27 }
 0x455   :  { %10692 = vmatprep.subr.bf16.mxu0 %v14730_v63  ;;  %10733 = vmatprep.subr.bf16.mxu1 %v14858_v60  ;;  %v1176_v0 = vld [vmem:[#allocation2 + $0x1ef0] sm:$0xff] }
 0x456   :  { %v14834_v19 = vcombine.high %v1172_v41, %v1176_v0  ;;  %v1036_v2 = vld [vmem:[#allocation2 + $0x1a90] sm:$0xff]  ;;  %v14833_v63 = vcombine.low %v1172_v41, %v1176_v0 }
 0x457   :  { %v1040_v7 = vld [vmem:[#allocation2 + $0x1ab0] sm:$0xff] }
 0x458   :  { %10693 = vmatpush2.bf16.msra.mxu0 %v14729_v57  ;;  %10734 = vmatpush2.bf16.msra.mxu1 %v14857_v35  ;;  %v1164_v45 = vld [vmem:[#allocation2 + $0x1e90] sm:$0xff]  ;;  %v14698_v60 = vcombine.high %v1036_v2, %v1040_v7  ;;  %v14697_v35 = vcombine.low %v1036_v2, %v1040_v7 }
 0x459   :  { %10694 = vmatprep.subr.bf16.mxu0 %v14722_v14  ;;  %10735 = vmatprep.subr.bf16.mxu1 %v14850_v11  ;;  %v1168_v12 = vld [vmem:[#allocation2 + $0x1eb0] sm:$0xff] }
 0x45a   :  { %v14826_v62 = vcombine.high %v1164_v45, %v1168_v12  ;;  %v1028_v1 = vld [vmem:[#allocation2 + $0x1a50] sm:$0xff]  ;;  %v14825_v14 = vcombine.low %v1164_v45, %v1168_v12  ;;  %v1746_v45 = vsub.s32 5, %v16557_v26 }
 0x45b   :  { %v1032_v4 = vld [vmem:[#allocation2 + $0x1a70] sm:$0xff] }
 0x45c   :  { %10695 = vmatpush2.bf16.msra.mxu0 %v14721_v22  ;;  %10736 = vmatpush2.bf16.msra.mxu1 %v14849_v42  ;;  %v1156_v8 = vld [vmem:[#allocation2 + $0x1e50] sm:$0xff]  ;;  %v14690_v11 = vcombine.high %v1028_v1, %v1032_v4  ;;  %v14689_v42 = vcombine.low %v1028_v1, %v1032_v4 }
 0x45d   :  { %10696 = vmatprep.subr.bf16.mxu0 %v14714_v23  ;;  %10737 = vmatprep.subr.bf16.mxu1 %v14842_v29  ;;  %v1160_v57 = vld [vmem:[#allocation2 + $0x1e70] sm:$0xff] }
 0x45e   :  { %v14818_v30 = vcombine.high %v1156_v8, %v1160_v57  ;;  %v1020_v33 = vld [vmem:[#allocation2 + $0x1a10] sm:$0xff]  ;;  %v14817_v23 = vcombine.low %v1156_v8, %v1160_v57 }
 0x45f   :  { %v1024_v36 = vld [vmem:[#allocation2 + $0x1a30] sm:$0xff] }
 0x460   :  { %10697 = vmatpush2.bf16.msra.mxu0 %v14713_v52  ;;  %10738 = vmatpush2.bf16.msra.mxu1 %v14841_v43  ;;  %v1148_v47 = vld [vmem:[#allocation2 + $0x1e10] sm:$0xff]  ;;  %v14682_v29 = vcombine.high %v1020_v33, %v1024_v36  ;;  %v14681_v43 = vcombine.low %v1020_v33, %v1024_v36 }
 0x461   :  { %10698 = vmatprep.subr.bf16.mxu0 %v14706_v48  ;;  %10739 = vmatprep.subr.bf16.mxu1 %v14834_v19  ;;  %v1152_v22 = vld [vmem:[#allocation2 + $0x1e30] sm:$0xff]  ;;  %v1742_v48 = vsub.s32 4, %v16557_v26 }
 0x462   :  { %v14810_v24 = vcombine.high %v1148_v47, %v1152_v22  ;;  %v1268_v27 = vld [vmem:[#allocation2 + $0x21d0] sm:$0xff]  ;;  %v14809_v19 = vcombine.low %v1148_v47, %v1152_v22 }
 0x463   :  { %v1272_v41 = vld [vmem:[#allocation2 + $0x21f0] sm:$0xff] }
 0x464   :  { %10699 = vmatpush2.bf16.msra.mxu0 %v14705_v55  ;;  %10740 = vmatpush2.bf16.msra.mxu1 %v14833_v63  ;;  %v1396_v0 = vld [vmem:[#allocation2 + $0x25d0] sm:$0xff]  ;;  %v14930_v2 = vcombine.high %v1268_v27, %v1272_v41  ;;  %v14929_v4 = vcombine.low %v1268_v27, %v1272_v41 }
 0x465   :  { %10700 = vmatprep.subr.bf16.mxu0 %v14698_v60  ;;  %10741 = vmatprep.subr.bf16.mxu1 %v14826_v62  ;;  %v1400_v52 = vld [vmem:[#allocation2 + $0x25f0] sm:$0xff]  ;;  %v16201_v62 = vld [vmem:[#allocation4] sm:$0xff] }
 0x466   :  { %v15058_v7 = vcombine.high %v1396_v0, %v1400_v52  ;;  %v1260_v12 = vld [vmem:[#allocation2 + $0x2190] sm:$0xff]  ;;  %v1743_v1 = vrot.slane %v16201_v62, %v1742_v48  ;;  %v15057_v8 = vcombine.low %v1396_v0, %v1400_v52 }
 0x467   :  { %v1264_v55 = vld [vmem:[#allocation2 + $0x21b0] sm:$0xff] }
 0x468   :  { %10701 = vmatpush2.bf16.msra.mxu0 %v14697_v35  ;;  %10742 = vmatpush2.bf16.msra.mxu1 %v14825_v14  ;;  %v1388_v63 = vld [vmem:[#allocation2 + $0x2590] sm:$0xff]  ;;  %v14922_v57 = vcombine.high %v1260_v12, %v1264_v55  ;;  %v1747_v35 = vrot.slane %v16201_v62, %v1746_v45 }
 0x469   :  { %10702 = vmatprep.subr.bf16.mxu0 %v14690_v11  ;;  %10743 = vmatprep.subr.bf16.mxu1 %v14818_v30  ;;  %v1392_v60 = vld [vmem:[#allocation2 + $0x25b0] sm:$0xff] }
 0x46a   :  { %v15050_v14 = vcombine.high %v1388_v63, %v1392_v60  ;;  %v1252_v11 = vld [vmem:[#allocation2 + $0x2150] sm:$0xff] }
 0x46b   :  { %v1256_v30 = vld [vmem:[#allocation2 + $0x2170] sm:$0xff] }
 0x46c   :  { %10703 = vmatpush2.bf16.msra.mxu0 %v14689_v42  ;;  %10744 = vmatpush2.bf16.msra.mxu1 %v14817_v23  ;;  %v1380_v36 = vld [vmem:[#allocation2 + $0x2550] sm:$0xff]  ;;  %v14921_v23 = vcombine.low %v1260_v12, %v1264_v55  ;;  %v14914_v27 = vcombine.high %v1252_v11, %v1256_v30 }
 0x46d   :  { %10704 = vmatprep.subr.bf16.mxu0 %v14682_v29  ;;  %10745 = vmatprep.subr.bf16.mxu1 %v14810_v24  ;;  %v1384_v47 = vld [vmem:[#allocation2 + $0x2570] sm:$0xff]  ;;  %v15049_v24 = vcombine.low %v1388_v63, %v1392_v60  ;;  %v14913_v63 = vcombine.low %v1252_v11, %v1256_v30 }
 0x46e   :  { %v1244_v48 = vld [vmem:[#allocation2 + $0x2110] sm:$0xff]  ;;  %v15041_v62 = vcombine.low %v1380_v36, %v1384_v47 }
 0x46f   :  { %v1376_v45 = vld [vmem:[#allocation2 + $0x2530] sm:$0xff] }
 0x470   :  { %10705 = vmatpush2.bf16.msra.mxu0 %v14681_v43  ;;  %10746 = vmatpush2.bf16.msra.mxu1 %v14809_v19  ;;  %v15042_v43 = vcombine.high %v1380_v36, %v1384_v47  ;;  %v1248_v19 = vld [vmem:[#allocation2 + $0x2130] sm:$0xff] }
 0x471   :  { %10756 = vmatprep.subr.bf16.mxu0 %v14930_v2  ;;  %10797 = vmatprep.subr.bf16.mxu1 %v15058_v7  ;;  %v1372_v7 = vld [vmem:[#allocation2 + $0x2510] sm:$0xff] }
 0x472   :  { %v1228_v30 = vld [vmem:[#allocation2 + $0x2090] sm:$0xff] }
 0x473   :  { %v10462_v33 = vpop.f32.mrf.mxu0  ;;  %10707 = vmatmul.mubr.bf16.vlgmr.msra.gmra.mxu0 %v16567_v50  ;;  %v10503_v42 = vpop.f32.mrf.mxu1  ;;  %10748 = vmatmul.mubr.bf16.vlgmr.msra.gmra.mxu1 %v16574_v56  ;;  %v1360_v36 = vld [vmem:[#allocation2 + $0x24b0] sm:$0xff] }
 0x474   :  { %v10463_v22 = vadd.f32 %v10462_v33, %v1743_v1  ;;  %10757 = vmatpush1.bf16.msra.mxu0 %v14929_v4  ;;  %10798 = vmatpush1.bf16.msra.mxu1 %v15057_v8  ;;  %v14906_v1 = vcombine.high %v1244_v48, %v1248_v19  ;;  %v15034_v8 = vcombine.high %v1372_v7, %v1376_v45  ;;  %v1368_v33 = vld [vmem:[#allocation2 + $0x24f0] sm:$0xff] }
 0x475   :  { %v10464_v29 = vpop.f32.mrf.mxu0  ;;  %10758 = vmatprep.subr.bf16.mxu0 %v14922_v57  ;;  %v10505_v52 = vpop.f32.mrf.mxu1  ;;  %10799 = vmatprep.subr.bf16.mxu1 %v15050_v14  ;;  %v1236_v57 = vld [vmem:[#allocation2 + $0x20d0] sm:$0xff] }
 0x476   :  { %v16741_v41 = vadd.f32 %v10503_v42, %v10463_v22  ;;  %v10465_v0 = vadd.f32 %v10464_v29, %v1747_v35  ;;  %10788 = vmatprep.mubr.bf16.mxu0 %v16581_v3  ;;  %10829 = vmatprep.mubr.bf16.mxu1 %v16584_v9  ;;  %v1240_v35 = vld [vmem:[#allocation2 + $0x20f0] sm:$0xff]  ;;  %v14905_v22 = vcombine.low %v1244_v48, %v1248_v19 }
 0x477   :  { %v10466_v2 = vpop.f32.mrf.mxu0  ;;  %v10507_v55 = vpop.f32.mrf.mxu1  ;;  %v1364_v14 = vld [vmem:[#allocation2 + $0x24d0] sm:$0xff]  ;;  %v15033_v42 = vcombine.low %v1372_v7, %v1376_v45  ;;  %v14898_v29 = vcombine.high %v1236_v57, %v1240_v35  ;;  %v14897_v47 = vcombine.low %v1236_v57, %v1240_v35 }
 0x478   :  { %v16745_v12 = vadd.f32 %v10505_v52, %v10465_v0  ;;  %10759 = vmatpush1.bf16.msra.mxu0 %v14921_v23  ;;  %10800 = vmatpush1.bf16.msra.mxu1 %v15049_v24  ;;  %v15026_v11 = vcombine.high %v1364_v14, %v1368_v33  ;;  %v1232_v23 = vld [vmem:[#allocation2 + $0x20b0] sm:$0xff] }
 0x479   :  { %v10467_v60 = vpop.f32.mrf.mxu0  ;;  %10760 = vmatprep.subr.bf16.mxu0 %v14914_v27  ;;  %v10508_v4 = vpop.f32.mrf.mxu1  ;;  %10801 = vmatprep.subr.bf16.mxu1 %v15042_v43  ;;  %v1356_v24 = vld [vmem:[#allocation2 + $0x2490] sm:$0xff]  ;;  %v15025_v27 = vcombine.low %v1364_v14, %v1368_v33  ;;  %v14890_v0 = vcombine.high %v1228_v30, %v1232_v23  ;;  %v14889_v7 = vcombine.low %v1228_v30, %v1232_v23 }
 0x47a   :  { %v15018_v52 = vcombine.high %v1356_v24, %v1360_v36  ;;  %v1220_v43 = vld [vmem:[#allocation2 + $0x2050] sm:$0xff]  ;;  %v15017_v45 = vcombine.low %v1356_v24, %v1360_v36 }
 0x47b   :  { %v1224_v48 = vld [vmem:[#allocation2 + $0x2070] sm:$0xff] }
 0x47c   :  { %10761 = vmatpush1.bf16.msra.mxu0 %v14913_v63  ;;  %10802 = vmatpush1.bf16.msra.mxu1 %v15041_v62  ;;  %v1348_v19 = vld [vmem:[#allocation2 + $0x2450] sm:$0xff]  ;;  %v14882_v55 = vcombine.high %v1220_v43, %v1224_v48 }
 0x47d   :  { %10762 = vmatprep.subr.bf16.mxu0 %v14906_v1  ;;  %10803 = vmatprep.subr.bf16.mxu1 %v15034_v8  ;;  %v1352_v2 = vld [vmem:[#allocation2 + $0x2470] sm:$0xff]  ;;  %v14881_v8 = vcombine.low %v1220_v43, %v1224_v48 }
 0x47e   :  { %v15010_v63 = vcombine.high %v1348_v19, %v1352_v2  ;;  %v1212_v60 = vld [vmem:[#allocation2 + $0x2010] sm:$0xff]  ;;  %v15009_v57 = vcombine.low %v1348_v19, %v1352_v2 }
 0x47f   :  { %v1216_v62 = vld [vmem:[#allocation2 + $0x2030] sm:$0xff] }
 0x480   :  { %10763 = vmatpush1.bf16.msra.mxu0 %v14905_v22  ;;  %10804 = vmatpush1.bf16.msra.mxu1 %v15033_v42  ;;  %v1340_v1 = vld [vmem:[#allocation2 + $0x2410] sm:$0xff]  ;;  %v14874_v35 = vcombine.high %v1212_v60, %v1216_v62 }
 0x481   :  { %10764 = vmatprep.subr.bf16.mxu0 %v14898_v29  ;;  %10805 = vmatprep.subr.bf16.mxu1 %v15026_v11  ;;  %v1344_v4 = vld [vmem:[#allocation2 + $0x2430] sm:$0xff]  ;;  %v14873_v11 = vcombine.low %v1212_v60, %v1216_v62 }
 0x482   :  { %v15002_v14 = vcombine.high %v1340_v1, %v1344_v4  ;;  %v1332_v33 = vld [vmem:[#allocation2 + $0x23d0] sm:$0xff]  ;;  %v15001_v30 = vcombine.low %v1340_v1, %v1344_v4 }
 0x483   :  { %v1336_v22 = vld [vmem:[#allocation2 + $0x23f0] sm:$0xff] }
 0x484   :  { %10765 = vmatpush1.bf16.msra.mxu0 %v14897_v47  ;;  %10806 = vmatpush1.bf16.msra.mxu1 %v15025_v27  ;;  %v1460_v42 = vld [vmem:[#allocation2 + $0x27d0] sm:$0xff]  ;;  %v14994_v23 = vcombine.high %v1332_v33, %v1336_v22 }
 0x485   :  { %10766 = vmatprep.subr.bf16.mxu0 %v14890_v0  ;;  %10807 = vmatprep.subr.bf16.mxu1 %v15018_v52  ;;  %v1464_v29 = vld [vmem:[#allocation2 + $0x27f0] sm:$0xff]  ;;  %v14993_v52 = vcombine.low %v1332_v33, %v1336_v22 }
 0x486   :  { %v15122_v24 = vcombine.high %v1460_v42, %v1464_v29  ;;  %v1324_v36 = vld [vmem:[#allocation2 + $0x2390] sm:$0xff]  ;;  %v15121_v43 = vcombine.low %v1460_v42, %v1464_v29 }
 0x487   :  { %v1328_v47 = vld [vmem:[#allocation2 + $0x23b0] sm:$0xff] }
 0x488   :  { %10767 = vmatpush1.bf16.msra.mxu0 %v14889_v7  ;;  %10808 = vmatpush1.bf16.msra.mxu1 %v15017_v45  ;;  %v1452_v27 = vld [vmem:[#allocation2 + $0x2790] sm:$0xff]  ;;  %v14986_v48 = vcombine.high %v1324_v36, %v1328_v47 }
 0x489   :  { %10768 = vmatprep.subr.bf16.mxu0 %v14882_v55  ;;  %10809 = vmatprep.subr.bf16.mxu1 %v15010_v63  ;;  %v1456_v0 = vld [vmem:[#allocation2 + $0x27b0] sm:$0xff]  ;;  %v14985_v63 = vcombine.low %v1324_v36, %v1328_v47 }
 0x48a   :  { %v15114_v19 = vcombine.high %v1452_v27, %v1456_v0  ;;  %v1316_v2 = vld [vmem:[#allocation2 + $0x2350] sm:$0xff]  ;;  %v15113_v60 = vcombine.low %v1452_v27, %v1456_v0 }
 0x48b   :  { %v1320_v7 = vld [vmem:[#allocation2 + $0x2370] sm:$0xff] }
 0x48c   :  { %10769 = vmatpush1.bf16.msra.mxu0 %v14881_v8  ;;  %10810 = vmatpush1.bf16.msra.mxu1 %v15009_v57  ;;  %v1444_v45 = vld [vmem:[#allocation2 + $0x2750] sm:$0xff]  ;;  %v14978_v62 = vcombine.high %v1316_v2, %v1320_v7 }
 0x48d   :  { %10770 = vmatprep.subr.bf16.mxu0 %v14874_v35  ;;  %10811 = vmatprep.subr.bf16.mxu1 %v15002_v14  ;;  %v1448_v55 = vld [vmem:[#allocation2 + $0x2770] sm:$0xff]  ;;  %v14977_v14 = vcombine.low %v1316_v2, %v1320_v7 }
 0x48e   :  { %v15106_v1 = vcombine.high %v1444_v45, %v1448_v55  ;;  %v1308_v4 = vld [vmem:[#allocation2 + $0x2310] sm:$0xff]  ;;  %v15105_v33 = vcombine.low %v1444_v45, %v1448_v55 }
 0x48f   :  { %v1312_v8 = vld [vmem:[#allocation2 + $0x2330] sm:$0xff] }
 0x490   :  { %10771 = vmatpush1.bf16.msra.mxu0 %v14873_v11  ;;  %10812 = vmatpush1.bf16.msra.mxu1 %v15001_v30  ;;  %v1436_v57 = vld [vmem:[#allocation2 + $0x2710] sm:$0xff]  ;;  %v14970_v22 = vcombine.high %v1308_v4, %v1312_v8 }
 0x491   :  { %10772 = vmatprep.subr.bf16.mxu0 %v14994_v23  ;;  %10813 = vmatprep.subr.bf16.mxu1 %v15122_v24  ;;  %v1440_v35 = vld [vmem:[#allocation2 + $0x2730] sm:$0xff]  ;;  %v14969_v24 = vcombine.low %v1308_v4, %v1312_v8 }
 0x492   :  { %v15098_v42 = vcombine.high %v1436_v57, %v1440_v35  ;;  %v1300_v29 = vld [vmem:[#allocation2 + $0x22d0] sm:$0xff]  ;;  %v15097_v36 = vcombine.low %v1436_v57, %v1440_v35 }
 0x493   :  { %v1304_v11 = vld [vmem:[#allocation2 + $0x22f0] sm:$0xff] }
 0x494   :  { %10773 = vmatpush2.bf16.msra.mxu0 %v14993_v52  ;;  %10814 = vmatpush2.bf16.msra.mxu1 %v15121_v43  ;;  %v1428_v30 = vld [vmem:[#allocation2 + $0x26d0] sm:$0xff]  ;;  %v14962_v47 = vcombine.high %v1300_v29, %v1304_v11 }
 0x495   :  { %10774 = vmatprep.subr.bf16.mxu0 %v14986_v48  ;;  %10815 = vmatprep.subr.bf16.mxu1 %v15114_v19  ;;  %v1432_v23 = vld [vmem:[#allocation2 + $0x26f0] sm:$0xff]  ;;  %v14961_v19 = vcombine.low %v1300_v29, %v1304_v11 }
 0x496   :  { %v15090_v27 = vcombine.high %v1428_v30, %v1432_v23  ;;  %v1292_v0 = vld [vmem:[#allocation2 + $0x2290] sm:$0xff]  ;;  %v15089_v2 = vcombine.low %v1428_v30, %v1432_v23 }
 0x497   :  { %v1296_v52 = vld [vmem:[#allocation2 + $0x22b0] sm:$0xff] }
 0x498   :  { %10775 = vmatpush2.bf16.msra.mxu0 %v14985_v63  ;;  %10816 = vmatpush2.bf16.msra.mxu1 %v15113_v60  ;;  %v1420_v43 = vld [vmem:[#allocation2 + $0x2690] sm:$0xff]  ;;  %v14954_v7 = vcombine.high %v1292_v0, %v1296_v52 }
 0x499   :  { %10776 = vmatprep.subr.bf16.mxu0 %v14978_v62  ;;  %10817 = vmatprep.subr.bf16.mxu1 %v15106_v1  ;;  %v1424_v48 = vld [vmem:[#allocation2 + $0x26b0] sm:$0xff]  ;;  %v14953_v1 = vcombine.low %v1292_v0, %v1296_v52 }
 0x49a   :  { %v15082_v45 = vcombine.high %v1420_v43, %v1424_v48  ;;  %v1284_v55 = vld [vmem:[#allocation2 + $0x2250] sm:$0xff]  ;;  %v15081_v4 = vcombine.low %v1420_v43, %v1424_v48 }
 0x49b   :  { %v1288_v63 = vld [vmem:[#allocation2 + $0x2270] sm:$0xff] }
 0x49c   :  { %10777 = vmatpush2.bf16.msra.mxu0 %v14977_v14  ;;  %10818 = vmatpush2.bf16.msra.mxu1 %v15105_v33  ;;  %v1412_v60 = vld [vmem:[#allocation2 + $0x2650] sm:$0xff]  ;;  %v14946_v8 = vcombine.high %v1284_v55, %v1288_v63 }
 0x49d   :  { %10778 = vmatprep.subr.bf16.mxu0 %v14970_v22  ;;  %10819 = vmatprep.subr.bf16.mxu1 %v15098_v42  ;;  %v1416_v62 = vld [vmem:[#allocation2 + $0x2670] sm:$0xff]  ;;  %v14945_v42 = vcombine.low %v1284_v55, %v1288_v63 }
 0x49e   :  { %v15074_v57 = vcombine.high %v1412_v60, %v1416_v62  ;;  %v1276_v35 = vld [vmem:[#allocation2 + $0x2210] sm:$0xff]  ;;  %v15073_v29 = vcombine.low %v1412_v60, %v1416_v62 }
 0x49f   :  { %v1280_v14 = vld [vmem:[#allocation2 + $0x2230] sm:$0xff] }
 0x4a0   :  { %10779 = vmatpush2.bf16.msra.mxu0 %v14969_v24  ;;  %10820 = vmatpush2.bf16.msra.mxu1 %v15097_v36  ;;  %v1404_v33 = vld [vmem:[#allocation2 + $0x2610] sm:$0xff]  ;;  %v14938_v11 = vcombine.high %v1276_v35, %v1280_v14 }
 0x4a1   :  { %10780 = vmatprep.subr.bf16.mxu0 %v14962_v47  ;;  %10821 = vmatprep.subr.bf16.mxu1 %v15090_v27  ;;  %v1408_v22 = vld [vmem:[#allocation2 + $0x2630] sm:$0xff]  ;;  %v14937_v27 = vcombine.low %v1276_v35, %v1280_v14 }
 0x4a2   :  { %v15066_v30 = vcombine.high %v1404_v33, %v1408_v22  ;;  %v1524_v23 = vld [vmem:[#allocation2 + $0x29d0] sm:$0xff]  ;;  %v15065_v0 = vcombine.low %v1404_v33, %v1408_v22 }
 0x4a3   :  { %v1528_v24 = vld [vmem:[#allocation2 + $0x29f0] sm:$0xff] }
 0x4a4   :  { %10781 = vmatpush2.bf16.msra.mxu0 %v14961_v19  ;;  %10822 = vmatpush2.bf16.msra.mxu1 %v15089_v2  ;;  %v1652_v36 = vld [vmem:[#allocation2 + $0x2dd0] sm:$0xff]  ;;  %v15186_v52 = vcombine.high %v1524_v23, %v1528_v24 }
 0x4a5   :  { %10782 = vmatprep.subr.bf16.mxu0 %v14954_v7  ;;  %10823 = vmatprep.subr.bf16.mxu1 %v15082_v45  ;;  %v1656_v47 = vld [vmem:[#allocation2 + $0x2df0] sm:$0xff]  ;;  %v15185_v45 = vcombine.low %v1524_v23, %v1528_v24 }
 0x4a6   :  { %v15314_v43 = vcombine.high %v1652_v36, %v1656_v47  ;;  %v1516_v48 = vld [vmem:[#allocation2 + $0x2990] sm:$0xff]  ;;  %v15313_v55 = vcombine.low %v1652_v36, %v1656_v47 }
 0x4a7   :  { %v1520_v19 = vld [vmem:[#allocation2 + $0x29b0] sm:$0xff] }
 0x4a8   :  { %10783 = vmatpush2.bf16.msra.mxu0 %v14953_v1  ;;  %10824 = vmatpush2.bf16.msra.mxu1 %v15081_v4  ;;  %v1644_v2 = vld [vmem:[#allocation2 + $0x2d90] sm:$0xff]  ;;  %v15178_v63 = vcombine.high %v1516_v48, %v1520_v19  ;;  %v15177_v33 = vcombine.low %v1516_v48, %v1520_v19 }
 0x4a9   :  { %10784 = vmatprep.subr.bf16.mxu0 %v14946_v8  ;;  %10825 = vmatprep.subr.bf16.mxu1 %v15074_v57  ;;  %v1648_v7 = vld [vmem:[#allocation2 + $0x2db0] sm:$0xff] }
 0x4aa   :  { %v15306_v60 = vcombine.high %v1644_v2, %v1648_v7  ;;  %v1508_v62 = vld [vmem:[#allocation2 + $0x2950] sm:$0xff] }
 0x4ab   :  { %v1512_v1 = vld [vmem:[#allocation2 + $0x2970] sm:$0xff] }
 0x4ac   :  { %10785 = vmatpush2.bf16.msra.mxu0 %v14945_v42  ;;  %10826 = vmatpush2.bf16.msra.mxu1 %v15073_v29  ;;  %v1636_v8 = vld [vmem:[#allocation2 + $0x2d50] sm:$0xff]  ;;  %v15305_v42 = vcombine.low %v1644_v2, %v1648_v7  ;;  %v15170_v29 = vcombine.high %v1508_v62, %v1512_v1  ;;  %v15169_v48 = vcombine.low %v1508_v62, %v1512_v1 }
 0x4ad   :  { %10786 = vmatprep.subr.bf16.mxu0 %v14938_v11  ;;  %10827 = vmatprep.subr.bf16.mxu1 %v15066_v30  ;;  %v1640_v57 = vld [vmem:[#allocation2 + $0x2d70] sm:$0xff] }
 0x4ae   :  { %v15298_v24 = vcombine.high %v1636_v8, %v1640_v57  ;;  %v1500_v36 = vld [vmem:[#allocation2 + $0x2910] sm:$0xff] }
 0x4af   :  { %v1504_v47 = vld [vmem:[#allocation2 + $0x2930] sm:$0xff] }
 0x4b0   :  { %10787 = vmatpush2.bf16.msra.mxu0 %v14937_v27  ;;  %10828 = vmatpush2.bf16.msra.mxu1 %v15065_v0  ;;  %v1628_v27 = vld [vmem:[#allocation2 + $0x2d10] sm:$0xff]  ;;  %v15162_v2 = vcombine.high %v1500_v36, %v1504_v47 }
 0x4b1   :  { %10838 = vmatprep.subr.bf16.mxu0 %v15186_v52  ;;  %10879 = vmatprep.subr.bf16.mxu1 %v15314_v43  ;;  %v1632_v0 = vld [vmem:[#allocation2 + $0x2d30] sm:$0xff] }
 0x4b2   :  { %v1484_v1 = vld [vmem:[#allocation2 + $0x2890] sm:$0xff] }
 0x4b3   :  { %v10544_v4 = vpop.f32.mrf.mxu0  ;;  %10789 = vmatmul.mubr.bf16.vlgmr.msra.gmra.mxu0 %v16599_v21  ;;  %v10585_v14 = vpop.f32.mrf.mxu1  ;;  %10830 = vmatmul.mubr.bf16.vlgmr.msra.gmra.mxu1 %v16604_v25 }
 0x4b4   :  { %v10545_v35 = vadd.f32 %v10544_v4, %v16741_v41  ;;  %10839 = vmatpush1.bf16.msra.mxu0 %v15185_v45  ;;  %10880 = vmatpush1.bf16.msra.mxu1 %v15313_v55  ;;  %v15290_v45 = vcombine.high %v1628_v27, %v1632_v0  ;;  %v1492_v55 = vld [vmem:[#allocation2 + $0x28d0] sm:$0xff] }
 0x4b5   :  { %v10546_v22 = vpop.f32.mrf.mxu0  ;;  %10840 = vmatprep.subr.bf16.mxu0 %v15178_v63  ;;  %v10587_v23 = vpop.f32.mrf.mxu1  ;;  %10881 = vmatprep.subr.bf16.mxu1 %v15306_v60  ;;  %v1496_v63 = vld [vmem:[#allocation2 + $0x28f0] sm:$0xff] }
 0x4b6   :  { %v16750_v11 = vadd.f32 %v10585_v14, %v10545_v35  ;;  %v10547_v30 = vadd.f32 %v10546_v22, %v16745_v12  ;;  %10870 = vmatprep.mubr.bf16.mxu0 %v16609_v38  ;;  %10911 = vmatprep.mubr.bf16.mxu1 %v16612_v44  ;;  %v15297_v12 = vcombine.low %v1636_v8, %v1640_v57  ;;  %v1620_v60 = vld [vmem:[#allocation2 + $0x2cd0] sm:$0xff] }
 0x4b7   :  { %v10548_v41 = vpop.f32.mrf.mxu0  ;;  %v10589_v43 = vpop.f32.mrf.mxu1  ;;  %v1624_v4 = vld [vmem:[#allocation2 + $0x2cf0] sm:$0xff]  ;;  %v15161_v35 = vcombine.low %v1500_v36, %v1504_v47  ;;  %v15289_v14 = vcombine.low %v1628_v27, %v1632_v0  ;;  %v15154_v22 = vcombine.high %v1492_v55, %v1496_v63  ;;  %v15153_v57 = vcombine.low %v1492_v55, %v1496_v63 }
 0x4b8   :  { %v16755_v52 = vadd.f32 %v10587_v23, %v10547_v30  ;;  %10841 = vmatpush1.bf16.msra.mxu0 %v15177_v33  ;;  %10882 = vmatpush1.bf16.msra.mxu1 %v15305_v42  ;;  %v15282_v62 = vcombine.high %v1620_v60, %v1624_v4  ;;  %v1488_v33 = vld [vmem:[#allocation2 + $0x28b0] sm:$0xff] }
 0x4b9   :  { %v10549_v19 = vpop.f32.mrf.mxu0  ;;  %10842 = vmatprep.subr.bf16.mxu0 %v15170_v29  ;;  %v10590_v7 = vpop.f32.mrf.mxu1  ;;  %10883 = vmatprep.subr.bf16.mxu1 %v15298_v24  ;;  %v1612_v42 = vld [vmem:[#allocation2 + $0x2c90] sm:$0xff]  ;;  %v15281_v29 = vcombine.low %v1620_v60, %v1624_v4  ;;  %v15146_v30 = vcombine.high %v1484_v1, %v1488_v33  ;;  %v15145_v27 = vcombine.low %v1484_v1, %v1488_v33 }
 0x4ba   :  { %v1616_v8 = vld [vmem:[#allocation2 + $0x2cb0] sm:$0xff] }
 0x4bb   :  { %v15274_v23 = vcombine.high %v1612_v42, %v1616_v8  ;;  %v1476_v24 = vld [vmem:[#allocation2 + $0x2850] sm:$0xff]  ;;  %v15273_v0 = vcombine.low %v1612_v42, %v1616_v8 }
 0x4bc   :  { %10843 = vmatpush1.bf16.msra.mxu0 %v15169_v48  ;;  %10884 = vmatpush1.bf16.msra.mxu1 %v15297_v12  ;;  %v1480_v36 = vld [vmem:[#allocation2 + $0x2870] sm:$0xff] }
 0x4bd   :  { %10844 = vmatprep.subr.bf16.mxu0 %v15162_v2  ;;  %10885 = vmatprep.subr.bf16.mxu1 %v15290_v45  ;;  %v1604_v47 = vld [vmem:[#allocation2 + $0x2c50] sm:$0xff]  ;;  %v15138_v43 = vcombine.high %v1476_v24, %v1480_v36  ;;  %v15137_v45 = vcombine.low %v1476_v24, %v1480_v36 }
 0x4be   :  { %v1608_v41 = vld [vmem:[#allocation2 + $0x2c70] sm:$0xff] }
 0x4bf   :  { %v15266_v48 = vcombine.high %v1604_v47, %v1608_v41  ;;  %v1468_v19 = vld [vmem:[#allocation2 + $0x2810] sm:$0xff]  ;;  %v15265_v55 = vcombine.low %v1604_v47, %v1608_v41 }
 0x4c0   :  { %10845 = vmatpush1.bf16.msra.mxu0 %v15161_v35  ;;  %10886 = vmatpush1.bf16.msra.mxu1 %v15289_v14  ;;  %v1472_v12 = vld [vmem:[#allocation2 + $0x2830] sm:$0xff] }
 0x4c1   :  { %10846 = vmatprep.subr.bf16.mxu0 %v15154_v22  ;;  %10887 = vmatprep.subr.bf16.mxu1 %v15282_v62  ;;  %v1596_v2 = vld [vmem:[#allocation2 + $0x2c10] sm:$0xff]  ;;  %v15130_v63 = vcombine.high %v1468_v19, %v1472_v12  ;;  %v15129_v62 = vcombine.low %v1468_v19, %v1472_v12 }
 0x4c2   :  { %v1600_v7 = vld [vmem:[#allocation2 + $0x2c30] sm:$0xff] }
 0x4c3   :  { %v15258_v60 = vcombine.high %v1596_v2, %v1600_v7  ;;  %v1588_v4 = vld [vmem:[#allocation2 + $0x2bd0] sm:$0xff]  ;;  %v15257_v1 = vcombine.low %v1596_v2, %v1600_v7 }
 0x4c4   :  { %10847 = vmatpush1.bf16.msra.mxu0 %v15153_v57  ;;  %10888 = vmatpush1.bf16.msra.mxu1 %v15281_v29  ;;  %v1592_v35 = vld [vmem:[#allocation2 + $0x2bf0] sm:$0xff] }
 0x4c5   :  { %10848 = vmatprep.subr.bf16.mxu0 %v15146_v30  ;;  %10889 = vmatprep.subr.bf16.mxu1 %v15274_v23  ;;  %v1716_v14 = vld [vmem:[#allocation2 + $0x2fd0] sm:$0xff]  ;;  %v15250_v33 = vcombine.high %v1588_v4, %v1592_v35  ;;  %v15249_v23 = vcombine.low %v1588_v4, %v1592_v35 }
 0x4c6   :  { %v1720_v22 = vld [vmem:[#allocation2 + $0x2ff0] sm:$0xff] }
 0x4c7   :  { %v15378_v42 = vcombine.high %v1716_v14, %v1720_v22  ;;  %v1580_v8 = vld [vmem:[#allocation2 + $0x2b90] sm:$0xff]  ;;  %v15377_v24 = vcombine.low %v1716_v14, %v1720_v22 }
 0x4c8   :  { %10849 = vmatpush1.bf16.msra.mxu0 %v15145_v27  ;;  %10890 = vmatpush1.bf16.msra.mxu1 %v15273_v0  ;;  %v1584_v57 = vld [vmem:[#allocation2 + $0x2bb0] sm:$0xff] }
 0x4c9   :  { %10850 = vmatprep.subr.bf16.mxu0 %v15138_v43  ;;  %10891 = vmatprep.subr.bf16.mxu1 %v15266_v48  ;;  %v1708_v29 = vld [vmem:[#allocation2 + $0x2f90] sm:$0xff]  ;;  %v15242_v36 = vcombine.high %v1580_v8, %v1584_v57  ;;  %v15241_v48 = vcombine.low %v1580_v8, %v1584_v57 }
 0x4ca   :  { %v1712_v30 = vld [vmem:[#allocation2 + $0x2fb0] sm:$0xff] }
 0x4cb   :  { %v15370_v47 = vcombine.high %v1708_v29, %v1712_v30  ;;  %v1572_v41 = vld [vmem:[#allocation2 + $0x2b50] sm:$0xff]  ;;  %v15369_v19 = vcombine.low %v1708_v29, %v1712_v30 }
 0x4cc   :  { %10851 = vmatpush1.bf16.msra.mxu0 %v15137_v45  ;;  %10892 = vmatpush1.bf16.msra.mxu1 %v15265_v55  ;;  %v1576_v27 = vld [vmem:[#allocation2 + $0x2b70] sm:$0xff] }
 0x4cd   :  { %10852 = vmatprep.subr.bf16.mxu0 %v15130_v63  ;;  %10893 = vmatprep.subr.bf16.mxu1 %v15258_v60  ;;  %v1700_v0 = vld [vmem:[#allocation2 + $0x2f50] sm:$0xff]  ;;  %v15234_v12 = vcombine.high %v1572_v41, %v1576_v27  ;;  %v15233_v60 = vcombine.low %v1572_v41, %v1576_v27 }
 0x4ce   :  { %v1704_v43 = vld [vmem:[#allocation2 + $0x2f70] sm:$0xff] }
 0x4cf   :  { %v15362_v2 = vcombine.high %v1700_v0, %v1704_v43  ;;  %v1564_v7 = vld [vmem:[#allocation2 + $0x2b10] sm:$0xff]  ;;  %v15361_v4 = vcombine.low %v1700_v0, %v1704_v43 }
 0x4d0   :  { %10853 = vmatpush1.bf16.msra.mxu0 %v15129_v62  ;;  %10894 = vmatpush1.bf16.msra.mxu1 %v15257_v1  ;;  %v1568_v45 = vld [vmem:[#allocation2 + $0x2b30] sm:$0xff] }
 0x4d1   :  { %10854 = vmatprep.subr.bf16.mxu0 %v15250_v33  ;;  %10895 = vmatprep.subr.bf16.mxu1 %v15378_v42  ;;  %v1692_v55 = vld [vmem:[#allocation2 + $0x2f10] sm:$0xff]  ;;  %v15226_v35 = vcombine.high %v1564_v7, %v1568_v45  ;;  %v15225_v42 = vcombine.low %v1564_v7, %v1568_v45 }
 0x4d2   :  { %v1696_v63 = vld [vmem:[#allocation2 + $0x2f30] sm:$0xff] }
 0x4d3   :  { %v15354_v14 = vcombine.high %v1692_v55, %v1696_v63  ;;  %v1556_v22 = vld [vmem:[#allocation2 + $0x2ad0] sm:$0xff]  ;;  %v15353_v8 = vcombine.low %v1692_v55, %v1696_v63 }
 0x4d4   :  { %10855 = vmatpush2.bf16.msra.mxu0 %v15249_v23  ;;  %10896 = vmatpush2.bf16.msra.mxu1 %v15377_v24  ;;  %v1560_v62 = vld [vmem:[#allocation2 + $0x2af0] sm:$0xff] }
 0x4d5   :  { %10856 = vmatprep.subr.bf16.mxu0 %v15242_v36  ;;  %10897 = vmatprep.subr.bf16.mxu1 %v15370_v47  ;;  %v1684_v1 = vld [vmem:[#allocation2 + $0x2ed0] sm:$0xff]  ;;  %v15218_v57 = vcombine.high %v1556_v22, %v1560_v62  ;;  %v15217_v47 = vcombine.low %v1556_v22, %v1560_v62 }
 0x4d6   :  { %v1688_v33 = vld [vmem:[#allocation2 + $0x2ef0] sm:$0xff] }
 0x4d7   :  { %v15346_v29 = vcombine.high %v1684_v1, %v1688_v33  ;;  %v1548_v30 = vld [vmem:[#allocation2 + $0x2a90] sm:$0xff]  ;;  %v15345_v41 = vcombine.low %v1684_v1, %v1688_v33  ;;  %v245_v33 = vld [vmem:[#allocation2 + $0x1d8] sm:$0xff] }
 0x4d8   :  { %10857 = vmatpush2.bf16.msra.mxu0 %v15241_v48  ;;  %10898 = vmatpush2.bf16.msra.mxu1 %v15369_v19  ;;  %v1552_v23 = vld [vmem:[#allocation2 + $0x2ab0] sm:$0xff] }
 0x4d9   :  { %10858 = vmatprep.subr.bf16.mxu0 %v15234_v12  ;;  %10899 = vmatprep.subr.bf16.mxu1 %v15362_v2  ;;  %v1676_v24 = vld [vmem:[#allocation2 + $0x2e90] sm:$0xff]  ;;  %v15210_v27 = vcombine.high %v1548_v30, %v1552_v23  ;;  %v15209_v2 = vcombine.low %v1548_v30, %v1552_v23 }
 0x4da   :  { %v1680_v36 = vld [vmem:[#allocation2 + $0x2eb0] sm:$0xff] }
 0x4db   :  { %v15338_v0 = vcombine.high %v1676_v24, %v1680_v36  ;;  %v1540_v43 = vld [vmem:[#allocation2 + $0x2a50] sm:$0xff]  ;;  %v15337_v7 = vcombine.low %v1676_v24, %v1680_v36  ;;  %v237_v36 = vld [vmem:[#allocation2 + $0x198] sm:$0xff] }
 0x4dc   :  { %10859 = vmatpush2.bf16.msra.mxu0 %v15233_v60  ;;  %10900 = vmatpush2.bf16.msra.mxu1 %v15361_v4  ;;  %v1544_v48 = vld [vmem:[#allocation2 + $0x2a70] sm:$0xff] }
 0x4dd   :  { %10860 = vmatprep.subr.bf16.mxu0 %v15226_v35  ;;  %10901 = vmatprep.subr.bf16.mxu1 %v15354_v14  ;;  %v1668_v19 = vld [vmem:[#allocation2 + $0x2e50] sm:$0xff]  ;;  %v15202_v45 = vcombine.high %v1540_v43, %v1544_v48  ;;  %v15201_v14 = vcombine.low %v1540_v43, %v1544_v48 }
 0x4de   :  { %v1672_v12 = vld [vmem:[#allocation2 + $0x2e70] sm:$0xff] }
 0x4df   :  { %v15330_v55 = vcombine.high %v1668_v19, %v1672_v12  ;;  %v1532_v63 = vld [vmem:[#allocation2 + $0x2a10] sm:$0xff]  ;;  %v15329_v22 = vcombine.low %v1668_v19, %v1672_v12  ;;  %v229_v12 = vld [vmem:[#allocation2 + $0x158] sm:$0xff] }
 0x4e0   :  { %10861 = vmatpush2.bf16.msra.mxu0 %v15225_v42  ;;  %10902 = vmatpush2.bf16.msra.mxu1 %v15353_v8  ;;  %v1536_v60 = vld [vmem:[#allocation2 + $0x2a30] sm:$0xff]  ;;  %v249_v42 = vld [vmem:[#allocation2 + $0x1f8] sm:$0xff] }
 0x4e1   :  { %10862 = vmatprep.subr.bf16.mxu0 %v15218_v57  ;;  %10903 = vmatprep.subr.bf16.mxu1 %v15346_v29  ;;  %v1660_v4 = vld [vmem:[#allocation2 + $0x2e10] sm:$0xff]  ;;  %v15194_v62 = vcombine.high %v1532_v63, %v1536_v60  ;;  %v373_v8 = vld [vmem:[#allocation2 + $0x5d8] sm:$0xff]  ;;  %v15193_v29 = vcombine.low %v1532_v63, %v1536_v60  ;;  %v13908_v23 = vcombine.high %v245_v33, %v249_v42 }
 0x4e2   :  { %v1664_v35 = vld [vmem:[#allocation2 + $0x2e30] sm:$0xff]  ;;  %v377_v57 = vld [vmem:[#allocation2 + $0x5f8] sm:$0xff] }
 0x4e3   :  { %v15322_v1 = vcombine.high %v1660_v4, %v1664_v35  ;;  %v15321_v30 = vcombine.low %v1660_v4, %v1664_v35  ;;  %v14036_v24 = vcombine.high %v373_v8, %v377_v57  ;;  %v14035_v43 = vcombine.low %v373_v8, %v377_v57  ;;  %v221_v8 = vld [vmem:[#allocation2 + $0x118] sm:$0xff] }
 0x4e4   :  { %10863 = vmatpush2.bf16.msra.mxu0 %v15217_v47  ;;  %10904 = vmatpush2.bf16.msra.mxu1 %v15345_v41  ;;  %v241_v47 = vld [vmem:[#allocation2 + $0x1b8] sm:$0xff] }
 0x4e5   :  { %10864 = vmatprep.subr.bf16.mxu0 %v15210_v27  ;;  %10905 = vmatprep.subr.bf16.mxu1 %v15338_v0  ;;  %v365_v41 = vld [vmem:[#allocation2 + $0x598] sm:$0xff]  ;;  %v13907_v0 = vcombine.low %v245_v33, %v249_v42  ;;  %v13900_v48 = vcombine.high %v237_v36, %v241_v47  ;;  %v13899_v4 = vcombine.low %v237_v36, %v241_v47 }
 0x4e6   :  { %v369_v27 = vld [vmem:[#allocation2 + $0x5b8] sm:$0xff] }
 0x4e7   :  { %v14028_v19 = vcombine.high %v365_v41, %v369_v27  ;;  %v225_v57 = vld [vmem:[#allocation2 + $0x138] sm:$0xff] }
 0x4e8   :  { %10865 = vmatpush2.bf16.msra.mxu0 %v15209_v2  ;;  %10906 = vmatpush2.bf16.msra.mxu1 %v15337_v7  ;;  %v233_v2 = vld [vmem:[#allocation2 + $0x178] sm:$0xff] }
 0x4e9   :  { %10866 = vmatprep.subr.bf16.mxu0 %v15202_v45  ;;  %10907 = vmatprep.subr.bf16.mxu1 %v15330_v55  ;;  %v357_v45 = vld [vmem:[#allocation2 + $0x558] sm:$0xff]  ;;  %v13891_v36 = vcombine.low %v229_v12, %v233_v2 }
 0x4ea   :  { %v361_v55 = vld [vmem:[#allocation2 + $0x578] sm:$0xff] }
 0x4eb   :  { %v14020_v42 = vcombine.high %v357_v45, %v361_v55 }
 0x4ec   :  { %10867 = vmatpush2.bf16.msra.mxu0 %v15201_v14  ;;  %10908 = vmatpush2.bf16.msra.mxu1 %v15329_v22  ;;  %v14027_v14 = vcombine.low %v365_v41, %v369_v27  ;;  %v13892_v22 = vcombine.high %v229_v12, %v233_v2  ;;  %v13884_v41 = vcombine.high %v221_v8, %v225_v57  ;;  %v205_v2 = vld [vmem:[#allocation2 + $0x98] sm:$0xff] }
 0x4ed   :  { %10868 = vmatprep.subr.bf16.mxu0 %v15194_v62  ;;  %10909 = vmatprep.subr.bf16.mxu1 %v15322_v1 }
 0x4f0   :  { %10869 = vmatpush2.bf16.msra.mxu0 %v15193_v29  ;;  %10910 = vmatpush2.bf16.msra.mxu1 %v15321_v30  ;;  %v349_v29 = vld [vmem:[#allocation2 + $0x518] sm:$0xff] }
 0x4f1   :  { %10920 = vmatprep.subr.bf16.mxu0 %v13908_v23  ;;  %10961 = vmatprep.subr.bf16.mxu1 %v14036_v24  ;;  %v353_v30 = vld [vmem:[#allocation2 + $0x538] sm:$0xff] }
 0x4f3   :  { %v10626_v7 = vpop.f32.mrf.mxu0  ;;  %10871 = vmatmul.mubr.bf16.vlgmr.msra.gmra.mxu0 %v16629_v10  ;;  %v10667_v60 = vpop.f32.mrf.mxu1  ;;  %10912 = vmatmul.mubr.bf16.vlgmr.msra.gmra.mxu1 %v16631_v13 }
 0x4f4   :  { %v10627_v63 = vadd.f32 %v10626_v7, %v16750_v11  ;;  %10921 = vmatpush1.bf16.msra.mxu0 %v13907_v0  ;;  %10962 = vmatpush1.bf16.msra.mxu1 %v14035_v43  ;;  %v14012_v0 = vcombine.high %v349_v29, %v353_v30  ;;  %v213_v43 = vld [vmem:[#allocation2 + $0xd8] sm:$0xff]  ;;  %v13883_v7 = vcombine.low %v221_v8, %v225_v57 }
 0x4f5   :  { %v10628_v35 = vpop.f32.mrf.mxu0  ;;  %10922 = vmatprep.subr.bf16.mxu0 %v13900_v48  ;;  %v10669_v33 = vpop.f32.mrf.mxu1  ;;  %10963 = vmatprep.subr.bf16.mxu1 %v14028_v19  ;;  %v341_v48 = vld [vmem:[#allocation2 + $0x4d8] sm:$0xff] }
 0x4f6   :  { %v16760_v62 = vadd.f32 %v10667_v60, %v10627_v63  ;;  %v10629_v1 = vadd.f32 %v10628_v35, %v16755_v52  ;;  %10952 = vmatprep.mubr.bf16.mxu0 %v16479_v58  ;;  %10993 = vmatprep.mubr.bf16.mxu1 %v16481_v59  ;;  %v14019_v52 = vcombine.low %v357_v45, %v361_v55  ;;  %v217_v58 = vld [vmem:[#allocation2 + $0xf8] sm:$0xff] }
 0x4f7   :  { %v10630_v11 = vpop.f32.mrf.mxu0  ;;  %v10671_v24 = vpop.f32.mrf.mxu1  ;;  %v345_v19 = vld [vmem:[#allocation2 + $0x4f8] sm:$0xff]  ;;  %v14011_v59 = vcombine.low %v349_v29, %v353_v30  ;;  %v13876_v63 = vcombine.high %v213_v43, %v217_v58  ;;  %v13875_v55 = vcombine.low %v213_v43, %v217_v58 }
 0x4f8   :  { %v16765_v23 = vadd.f32 %v10669_v33, %v10629_v1  ;;  %10923 = vmatpush1.bf16.msra.mxu0 %v13899_v4  ;;  %10964 = vmatpush1.bf16.msra.mxu1 %v14027_v14  ;;  %v14004_v12 = vcombine.high %v341_v48, %v345_v19  ;;  %v209_v60 = vld [vmem:[#allocation2 + $0xb8] sm:$0xff]  ;;  %v14003_v35 = vcombine.low %v341_v48, %v345_v19 }
 0x4f9   :  { %v10631_v47 = vpop.f32.mrf.mxu0  ;;  %10924 = vmatprep.subr.bf16.mxu0 %v13892_v22  ;;  %v10672_v27 = vpop.f32.mrf.mxu1  ;;  %10965 = vmatprep.subr.bf16.mxu1 %v14020_v42  ;;  %v333_v4 = vld [vmem:[#allocation2 + $0x498] sm:$0xff]  ;;  %v13868_v14 = vcombine.high %v205_v2, %v209_v60  ;;  %v13867_v57 = vcombine.low %v205_v2, %v209_v60 }
 0x4fa   :  { %v337_v45 = vld [vmem:[#allocation2 + $0x4b8] sm:$0xff] }
 0x4fb   :  { %v13996_v22 = vcombine.high %v333_v4, %v337_v45  ;;  %v197_v1 = vld [vmem:[#allocation2 + $0x58] sm:$0xff]  ;;  %v13995_v11 = vcombine.low %v333_v4, %v337_v45 }
 0x4fc   :  { %10925 = vmatpush1.bf16.msra.mxu0 %v13891_v36  ;;  %10966 = vmatpush1.bf16.msra.mxu1 %v14019_v52  ;;  %v201_v33 = vld [vmem:[#allocation2 + $0x78] sm:$0xff] }
 0x4fd   :  { %10926 = vmatprep.subr.bf16.mxu0 %v13884_v41  ;;  %10967 = vmatprep.subr.bf16.mxu1 %v14012_v0  ;;  %v325_v42 = vld [vmem:[#allocation2 + $0x458] sm:$0xff]  ;;  %v13860_v29 = vcombine.high %v197_v1, %v201_v33  ;;  %v13859_v41 = vcombine.low %v197_v1, %v201_v33 }
 0x4fe   :  { %v329_v8 = vld [vmem:[#allocation2 + $0x478] sm:$0xff] }
 0x4ff   :  { %v13988_v30 = vcombine.high %v325_v42, %v329_v8  ;;  %v189_v24 = vld [vmem:[#allocation2 + $0x18] sm:$0xff]  ;;  %v13987_v27 = vcombine.low %v325_v42, %v329_v8 }
 0x500   :  { %10927 = vmatpush1.bf16.msra.mxu0 %v13883_v7  ;;  %10968 = vmatpush1.bf16.msra.mxu1 %v14011_v59  ;;  %v193_v36 = vld [vmem:[#allocation2 + $0x38] sm:$0xff] }
 0x501   :  { %10928 = vmatprep.subr.bf16.mxu0 %v13876_v63  ;;  %10969 = vmatprep.subr.bf16.mxu1 %v14004_v12  ;;  %v317_v47 = vld [vmem:[#allocation2 + $0x418] sm:$0xff]  ;;  %v13852_v0 = vcombine.high %v189_v24, %v193_v36  ;;  %v13851_v59 = vcombine.low %v189_v24, %v193_v36 }
 0x502   :  { %v321_v52 = vld [vmem:[#allocation2 + $0x438] sm:$0xff] }
 0x503   :  { %v13980_v43 = vcombine.high %v317_v47, %v321_v52  ;;  %v309_v58 = vld [vmem:[#allocation2 + $0x3d8] sm:$0xff]  ;;  %v13979_v63 = vcombine.low %v317_v47, %v321_v52 }
 0x504   :  { %10929 = vmatpush1.bf16.msra.mxu0 %v13875_v55  ;;  %10970 = vmatpush1.bf16.msra.mxu1 %v14003_v35  ;;  %v313_v48 = vld [vmem:[#allocation2 + $0x3f8] sm:$0xff] }
 0x505   :  { %10930 = vmatprep.subr.bf16.mxu0 %v13868_v14  ;;  %10971 = vmatprep.subr.bf16.mxu1 %v13996_v22  ;;  %v437_v19 = vld [vmem:[#allocation2 + $0x7d8] sm:$0xff]  ;;  %v13972_v12 = vcombine.high %v309_v58, %v313_v48  ;;  %v13971_v35 = vcombine.low %v309_v58, %v313_v48 }
 0x506   :  { %v441_v7 = vld [vmem:[#allocation2 + $0x7f8] sm:$0xff] }
 0x507   :  { %v14100_v2 = vcombine.high %v437_v19, %v441_v7  ;;  %v301_v60 = vld [vmem:[#allocation2 + $0x398] sm:$0xff]  ;;  %v14099_v14 = vcombine.low %v437_v19, %v441_v7 }
 0x508   :  { %10931 = vmatpush1.bf16.msra.mxu0 %v13867_v57  ;;  %10972 = vmatpush1.bf16.msra.mxu1 %v13995_v11  ;;  %v305_v4 = vld [vmem:[#allocation2 + $0x3b8] sm:$0xff] }
 0x509   :  { %10932 = vmatprep.subr.bf16.mxu0 %v13860_v29  ;;  %10973 = vmatprep.subr.bf16.mxu1 %v13988_v30  ;;  %v429_v45 = vld [vmem:[#allocation2 + $0x798] sm:$0xff]  ;;  %v13964_v22 = vcombine.high %v301_v60, %v305_v4  ;;  %v13963_v11 = vcombine.low %v301_v60, %v305_v4 }
 0x50a   :  { %v433_v55 = vld [vmem:[#allocation2 + $0x7b8] sm:$0xff] }
 0x50b   :  { %v14092_v1 = vcombine.high %v429_v45, %v433_v55  ;;  %v293_v33 = vld [vmem:[#allocation2 + $0x358] sm:$0xff]  ;;  %v14091_v29 = vcombine.low %v429_v45, %v433_v55 }
 0x50c   :  { %10933 = vmatpush1.bf16.msra.mxu0 %v13859_v41  ;;  %10974 = vmatpush1.bf16.msra.mxu1 %v13987_v27  ;;  %v297_v42 = vld [vmem:[#allocation2 + $0x378] sm:$0xff] }
 0x50d   :  { %10934 = vmatprep.subr.bf16.mxu0 %v13852_v0  ;;  %10975 = vmatprep.subr.bf16.mxu1 %v13980_v43  ;;  %v421_v8 = vld [vmem:[#allocation2 + $0x758] sm:$0xff]  ;;  %v13956_v30 = vcombine.high %v293_v33, %v297_v42  ;;  %v13955_v27 = vcombine.low %v293_v33, %v297_v42 }
 0x50e   :  { %v425_v57 = vld [vmem:[#allocation2 + $0x778] sm:$0xff] }
 0x50f   :  { %v14084_v24 = vcombine.high %v421_v8, %v425_v57  ;;  %v285_v36 = vld [vmem:[#allocation2 + $0x318] sm:$0xff]  ;;  %v14083_v0 = vcombine.low %v421_v8, %v425_v57 }
 0x510   :  { %10935 = vmatpush1.bf16.msra.mxu0 %v13851_v59  ;;  %10976 = vmatpush1.bf16.msra.mxu1 %v13979_v63  ;;  %v289_v47 = vld [vmem:[#allocation2 + $0x338] sm:$0xff] }
 0x511   :  { %10936 = vmatprep.subr.bf16.mxu0 %v13972_v12  ;;  %10977 = vmatprep.subr.bf16.mxu1 %v14100_v2  ;;  %v413_v52 = vld [vmem:[#allocation2 + $0x718] sm:$0xff]  ;;  %v13948_v43 = vcombine.high %v285_v36, %v289_v47  ;;  %v13947_v63 = vcombine.low %v285_v36, %v289_v47 }
 0x512   :  { %v417_v41 = vld [vmem:[#allocation2 + $0x738] sm:$0xff] }
 0x513   :  { %v14076_v58 = vcombine.high %v413_v52, %v417_v41  ;;  %v277_v48 = vld [vmem:[#allocation2 + $0x2d8] sm:$0xff]  ;;  %v14075_v12 = vcombine.low %v413_v52, %v417_v41 }
 0x514   :  { %10937 = vmatpush2.bf16.msra.mxu0 %v13971_v35  ;;  %10978 = vmatpush2.bf16.msra.mxu1 %v14099_v14  ;;  %v281_v19 = vld [vmem:[#allocation2 + $0x2f8] sm:$0xff] }
 0x515   :  { %10938 = vmatprep.subr.bf16.mxu0 %v13964_v22  ;;  %10979 = vmatprep.subr.bf16.mxu1 %v14092_v1  ;;  %v405_v7 = vld [vmem:[#allocation2 + $0x6d8] sm:$0xff]  ;;  %v13940_v2 = vcombine.high %v277_v48, %v281_v19  ;;  %v13939_v14 = vcombine.low %v277_v48, %v281_v19 }
 0x516   :  { %v409_v59 = vld [vmem:[#allocation2 + $0x6f8] sm:$0xff] }
 0x517   :  { %v14068_v60 = vcombine.high %v405_v7, %v409_v59  ;;  %v269_v4 = vld [vmem:[#allocation2 + $0x298] sm:$0xff]  ;;  %v14067_v22 = vcombine.low %v405_v7, %v409_v59 }
 0x518   :  { %10939 = vmatpush2.bf16.msra.mxu0 %v13963_v11  ;;  %10980 = vmatpush2.bf16.msra.mxu1 %v14091_v29  ;;  %v273_v45 = vld [vmem:[#allocation2 + $0x2b8] sm:$0xff] }
 0x519   :  { %10940 = vmatprep.subr.bf16.mxu0 %v13956_v30  ;;  %10981 = vmatprep.subr.bf16.mxu1 %v14084_v24  ;;  %v397_v55 = vld [vmem:[#allocation2 + $0x698] sm:$0xff]  ;;  %v13932_v1 = vcombine.high %v269_v4, %v273_v45  ;;  %v13931_v29 = vcombine.low %v269_v4, %v273_v45 }
 0x51a   :  { %v401_v35 = vld [vmem:[#allocation2 + $0x6b8] sm:$0xff] }
 0x51b   :  { %v14060_v33 = vcombine.high %v397_v55, %v401_v35  ;;  %v261_v42 = vld [vmem:[#allocation2 + $0x258] sm:$0xff]  ;;  %v14059_v30 = vcombine.low %v397_v55, %v401_v35 }
 0x51c   :  { %10941 = vmatpush2.bf16.msra.mxu0 %v13955_v27  ;;  %10982 = vmatpush2.bf16.msra.mxu1 %v14083_v0  ;;  %v265_v8 = vld [vmem:[#allocation2 + $0x278] sm:$0xff] }
 0x51d   :  { %10942 = vmatprep.subr.bf16.mxu0 %v13948_v43  ;;  %10983 = vmatprep.subr.bf16.mxu1 %v14076_v58  ;;  %v389_v57 = vld [vmem:[#allocation2 + $0x658] sm:$0xff]  ;;  %v13924_v24 = vcombine.high %v261_v42, %v265_v8  ;;  %v13923_v0 = vcombine.low %v261_v42, %v265_v8 }
 0x51e   :  { %v393_v11 = vld [vmem:[#allocation2 + $0x678] sm:$0xff] }
 0x51f   :  { %v14052_v36 = vcombine.high %v389_v57, %v393_v11  ;;  %v253_v47 = vld [vmem:[#allocation2 + $0x218] sm:$0xff]  ;;  %v14051_v43 = vcombine.low %v389_v57, %v393_v11 }
 0x520   :  { %10943 = vmatpush2.bf16.msra.mxu0 %v13947_v63  ;;  %10984 = vmatpush2.bf16.msra.mxu1 %v14075_v12  ;;  %v257_v52 = vld [vmem:[#allocation2 + $0x238] sm:$0xff] }
 0x521   :  { %10944 = vmatprep.subr.bf16.mxu0 %v13940_v2  ;;  %10985 = vmatprep.subr.bf16.mxu1 %v14068_v60  ;;  %v381_v41 = vld [vmem:[#allocation2 + $0x618] sm:$0xff]  ;;  %v13916_v58 = vcombine.high %v253_v47, %v257_v52  ;;  %v13915_v12 = vcombine.low %v253_v47, %v257_v52 }
 0x522   :  { %v385_v27 = vld [vmem:[#allocation2 + $0x638] sm:$0xff] }
 0x523   :  { %v14044_v48 = vcombine.high %v381_v41, %v385_v27  ;;  %v501_v19 = vld [vmem:[#allocation2 + $0x9d8] sm:$0xff]  ;;  %v14043_v2 = vcombine.low %v381_v41, %v385_v27 }
 0x524   :  { %10945 = vmatpush2.bf16.msra.mxu0 %v13939_v14  ;;  %10986 = vmatpush2.bf16.msra.mxu1 %v14067_v22  ;;  %v505_v7 = vld [vmem:[#allocation2 + $0x9f8] sm:$0xff] }
 0x525   :  { %10946 = vmatprep.subr.bf16.mxu0 %v13932_v1  ;;  %10987 = vmatprep.subr.bf16.mxu1 %v14060_v33  ;;  %v629_v59 = vld [vmem:[#allocation2 + $0xdd8] sm:$0xff]  ;;  %v14164_v60 = vcombine.high %v501_v19, %v505_v7  ;;  %v14163_v22 = vcombine.low %v501_v19, %v505_v7 }
 0x526   :  { %v633_v63 = vld [vmem:[#allocation2 + $0xdf8] sm:$0xff] }
 0x527   :  { %v14292_v4 = vcombine.high %v629_v59, %v633_v63  ;;  %v493_v45 = vld [vmem:[#allocation2 + $0x998] sm:$0xff]  ;;  %v14291_v1 = vcombine.low %v629_v59, %v633_v63 }
 0x528   :  { %10947 = vmatpush2.bf16.msra.mxu0 %v13931_v29  ;;  %10988 = vmatpush2.bf16.msra.mxu1 %v14059_v30  ;;  %v497_v55 = vld [vmem:[#allocation2 + $0x9b8] sm:$0xff] }
 0x529   :  { %10948 = vmatprep.subr.bf16.mxu0 %v13924_v24  ;;  %10989 = vmatprep.subr.bf16.mxu1 %v14052_v36  ;;  %v621_v35 = vld [vmem:[#allocation2 + $0xd98] sm:$0xff]  ;;  %v14156_v33 = vcombine.high %v493_v45, %v497_v55  ;;  %v14155_v47 = vcombine.low %v493_v45, %v497_v55 }
 0x52a   :  { %v625_v14 = vld [vmem:[#allocation2 + $0xdb8] sm:$0xff] }
 0x52b   :  { %v14284_v42 = vcombine.high %v621_v35, %v625_v14  ;;  %v485_v8 = vld [vmem:[#allocation2 + $0x958] sm:$0xff]  ;;  %v14283_v41 = vcombine.low %v621_v35, %v625_v14 }
 0x52c   :  { %10949 = vmatpush2.bf16.msra.mxu0 %v13923_v0  ;;  %10990 = vmatpush2.bf16.msra.mxu1 %v14051_v43  ;;  %v489_v57 = vld [vmem:[#allocation2 + $0x978] sm:$0xff] }
 0x52d   :  { %10950 = vmatprep.subr.bf16.mxu0 %v13916_v58  ;;  %10991 = vmatprep.subr.bf16.mxu1 %v14044_v48  ;;  %v613_v29 = vld [vmem:[#allocation2 + $0xd58] sm:$0xff]  ;;  %v14148_v27 = vcombine.high %v485_v8, %v489_v57 }
 0x52e   :  { %v617_v30 = vld [vmem:[#allocation2 + $0xd78] sm:$0xff] }
 0x52f   :  { %v477_v48 = vld [vmem:[#allocation2 + $0x918] sm:$0xff] }
 0x530   :  { %10951 = vmatpush2.bf16.msra.mxu0 %v13915_v12  ;;  %10992 = vmatpush2.bf16.msra.mxu1 %v14043_v2  ;;  %v481_v19 = vld [vmem:[#allocation2 + $0x938] sm:$0xff]  ;;  %v14147_v12 = vcombine.low %v485_v8, %v489_v57 }
 0x531   :  { %11002 = vmatprep.subr.bf16.mxu0 %v14164_v60  ;;  %11043 = vmatprep.subr.bf16.mxu1 %v14292_v4  ;;  %v609_v7 = vld [vmem:[#allocation2 + $0xd38] sm:$0xff]  ;;  %v14140_v60 = vcombine.high %v477_v48, %v481_v19 }
 0x532   :  { %v469_v55 = vld [vmem:[#allocation2 + $0x8d8] sm:$0xff] }
 0x533   :  { %v10708_v11 = vpop.f32.mrf.mxu0  ;;  %10953 = vmatmul.mubr.bf16.vlgmr.msra.gmra.mxu0 %v16491_v16  ;;  %v10749_v36 = vpop.f32.mrf.mxu1  ;;  %10994 = vmatmul.mubr.bf16.vlgmr.msra.gmra.mxu1 %v16496_v20  ;;  %v14276_v16 = vcombine.high %v613_v29, %v617_v30  ;;  %v605_v20 = vld [vmem:[#allocation2 + $0xd18] sm:$0xff] }
 0x534   :  { %v10709_v24 = vadd.f32 %v10708_v11, %v16760_v62  ;;  %11003 = vmatpush1.bf16.msra.mxu0 %v14163_v22  ;;  %11044 = vmatpush1.bf16.msra.mxu1 %v14291_v1  ;;  %v14268_v45 = vcombine.high %v605_v20, %v609_v7  ;;  %v597_v35 = vld [vmem:[#allocation2 + $0xcd8] sm:$0xff]  ;;  %v14139_v22 = vcombine.low %v477_v48, %v481_v19 }
 0x535   :  { %v10710_v52 = vpop.f32.mrf.mxu0  ;;  %11004 = vmatprep.subr.bf16.mxu0 %v14156_v33  ;;  %v10751_v58 = vpop.f32.mrf.mxu1  ;;  %11045 = vmatprep.subr.bf16.mxu1 %v14284_v42  ;;  %v601_v14 = vld [vmem:[#allocation2 + $0xcf8] sm:$0xff] }
 0x536   :  { %v16770_v0 = vadd.f32 %v10749_v36, %v10709_v24  ;;  %v10711_v43 = vadd.f32 %v10710_v52, %v16765_v23  ;;  %11034 = vmatprep.mubr.bf16.mxu0 %v16501_v28  ;;  %11075 = vmatprep.mubr.bf16.mxu1 %v16504_v31  ;;  %v14275_v23 = vcombine.low %v613_v29, %v617_v30  ;;  %v473_v28 = vld [vmem:[#allocation2 + $0x8f8] sm:$0xff] }
 0x537   :  { %v10712_v62 = vpop.f32.mrf.mxu0  ;;  %v10753_v63 = vpop.f32.mrf.mxu1  ;;  %v14267_v31 = vcombine.low %v605_v20, %v609_v7  ;;  %v14132_v1 = vcombine.high %v469_v55, %v473_v28  ;;  %v14260_v33 = vcombine.high %v597_v35, %v601_v14  ;;  %v461_v42 = vld [vmem:[#allocation2 + $0x898] sm:$0xff]  ;;  %v14131_v29 = vcombine.low %v469_v55, %v473_v28 }
 0x538   :  { %v16775_v59 = vadd.f32 %v10751_v58, %v10711_v43  ;;  %11005 = vmatpush1.bf16.msra.mxu0 %v14155_v47  ;;  %11046 = vmatpush1.bf16.msra.mxu1 %v14283_v41  ;;  %v465_v8 = vld [vmem:[#allocation2 + $0x8b8] sm:$0xff]  ;;  %v14259_v30 = vcombine.low %v597_v35, %v601_v14 }
 0x539   :  { %v10713_v2 = vpop.f32.mrf.mxu0  ;;  %11006 = vmatprep.subr.bf16.mxu0 %v14148_v27  ;;  %v10754_v4 = vpop.f32.mrf.mxu1  ;;  %11047 = vmatprep.subr.bf16.mxu1 %v14276_v16  ;;  %v589_v57 = vld [vmem:[#allocation2 + $0xc98] sm:$0xff]  ;;  %v14124_v24 = vcombine.high %v461_v42, %v465_v8  ;;  %v14123_v43 = vcombine.low %v461_v42, %v465_v8 }
 0x53a   :  { %v593_v11 = vld [vmem:[#allocation2 + $0xcb8] sm:$0xff] }
 0x53b   :  { %v14252_v36 = vcombine.high %v589_v57, %v593_v11  ;;  %v453_v47 = vld [vmem:[#allocation2 + $0x858] sm:$0xff]  ;;  %v14251_v58 = vcombine.low %v589_v57, %v593_v11 }
 0x53c   :  { %11007 = vmatpush1.bf16.msra.mxu0 %v14147_v12  ;;  %11048 = vmatpush1.bf16.msra.mxu1 %v14275_v23  ;;  %v457_v52 = vld [vmem:[#allocation2 + $0x878] sm:$0xff] }
 0x53d   :  { %11008 = vmatprep.subr.bf16.mxu0 %v14140_v60  ;;  %11049 = vmatprep.subr.bf16.mxu1 %v14268_v45  ;;  %v581_v41 = vld [vmem:[#allocation2 + $0xc58] sm:$0xff]  ;;  %v14116_v16 = vcombine.high %v453_v47, %v457_v52  ;;  %v14115_v63 = vcombine.low %v453_v47, %v457_v52 }
 0x53e   :  { %v585_v27 = vld [vmem:[#allocation2 + $0xc78] sm:$0xff] }
 0x53f   :  { %v14244_v48 = vcombine.high %v581_v41, %v585_v27  ;;  %v445_v19 = vld [vmem:[#allocation2 + $0x818] sm:$0xff]  ;;  %v14243_v12 = vcombine.low %v581_v41, %v585_v27 }
 0x540   :  { %11009 = vmatpush1.bf16.msra.mxu0 %v14139_v22  ;;  %11050 = vmatpush1.bf16.msra.mxu1 %v14267_v31  ;;  %v449_v62 = vld [vmem:[#allocation2 + $0x838] sm:$0xff] }
 0x541   :  { %11010 = vmatprep.subr.bf16.mxu0 %v14132_v1  ;;  %11051 = vmatprep.subr.bf16.mxu1 %v14260_v33  ;;  %v573_v20 = vld [vmem:[#allocation2 + $0xc18] sm:$0xff]  ;;  %v14108_v2 = vcombine.high %v445_v19, %v449_v62  ;;  %v14107_v28 = vcombine.low %v445_v19, %v449_v62 }
 0x542   :  { %v577_v7 = vld [vmem:[#allocation2 + $0xc38] sm:$0xff] }
 0x543   :  { %v14236_v23 = vcombine.high %v573_v20, %v577_v7  ;;  %v565_v60 = vld [vmem:[#allocation2 + $0xbd8] sm:$0xff]  ;;  %v14235_v35 = vcombine.low %v573_v20, %v577_v7 }
 0x544   :  { %11011 = vmatpush1.bf16.msra.mxu0 %v14131_v29  ;;  %11052 = vmatpush1.bf16.msra.mxu1 %v14259_v30  ;;  %v569_v4 = vld [vmem:[#allocation2 + $0xbf8] sm:$0xff] }
 0x545   :  { %11012 = vmatprep.subr.bf16.mxu0 %v14124_v24  ;;  %11053 = vmatprep.subr.bf16.mxu1 %v14252_v36  ;;  %v693_v45 = vld [vmem:[#allocation2 + $0xfd8] sm:$0xff]  ;;  %v14228_v14 = vcombine.high %v565_v60, %v569_v4  ;;  %v14227_v8 = vcombine.low %v565_v60, %v569_v4 }
 0x546   :  { %v697_v55 = vld [vmem:[#allocation2 + $0xff8] sm:$0xff] }
 0x547   :  { %v14356_v22 = vcombine.high %v693_v45, %v697_v55  ;;  %v557_v31 = vld [vmem:[#allocation2 + $0xb98] sm:$0xff]  ;;  %v14355_v57 = vcombine.low %v693_v45, %v697_v55 }
 0x548   :  { %11013 = vmatpush1.bf16.msra.mxu0 %v14123_v43  ;;  %11054 = vmatpush1.bf16.msra.mxu1 %v14251_v58  ;;  %v561_v1 = vld [vmem:[#allocation2 + $0xbb8] sm:$0xff] }
 0x549   :  { %11014 = vmatprep.subr.bf16.mxu0 %v14116_v16  ;;  %11055 = vmatprep.subr.bf16.mxu1 %v14244_v48  ;;  %v685_v33 = vld [vmem:[#allocation2 + $0xf98] sm:$0xff]  ;;  %v14220_v11 = vcombine.high %v557_v31, %v561_v1  ;;  %v14219_v52 = vcombine.low %v557_v31, %v561_v1 }
 0x54a   :  { %v689_v42 = vld [vmem:[#allocation2 + $0xfb8] sm:$0xff] }
 0x54b   :  { %v14348_v29 = vcombine.high %v685_v33, %v689_v42  ;;  %v549_v30 = vld [vmem:[#allocation2 + $0xb58] sm:$0xff]  ;;  %v14347_v41 = vcombine.low %v685_v33, %v689_v42 }
 0x54c   :  { %11015 = vmatpush1.bf16.msra.mxu0 %v14115_v63  ;;  %11056 = vmatpush1.bf16.msra.mxu1 %v14243_v12  ;;  %v553_v24 = vld [vmem:[#allocation2 + $0xb78] sm:$0xff] }
 0x54d   :  { %11016 = vmatprep.subr.bf16.mxu0 %v14108_v2  ;;  %11057 = vmatprep.subr.bf16.mxu1 %v14236_v23  ;;  %v677_v36 = vld [vmem:[#allocation2 + $0xf58] sm:$0xff]  ;;  %v14212_v27 = vcombine.high %v549_v30, %v553_v24  ;;  %v14211_v62 = vcombine.low %v549_v30, %v553_v24 }
 0x54e   :  { %v681_v47 = vld [vmem:[#allocation2 + $0xf78] sm:$0xff] }
 0x54f   :  { %v14340_v43 = vcombine.high %v677_v36, %v681_v47  ;;  %v541_v58 = vld [vmem:[#allocation2 + $0xb18] sm:$0xff]  ;;  %v14339_v20 = vcombine.low %v677_v36, %v681_v47 }
 0x550   :  { %11017 = vmatpush1.bf16.msra.mxu0 %v14107_v28  ;;  %11058 = vmatpush1.bf16.msra.mxu1 %v14235_v35  ;;  %v545_v16 = vld [vmem:[#allocation2 + $0xb38] sm:$0xff] }
 0x551   :  { %11018 = vmatprep.subr.bf16.mxu0 %v14228_v14  ;;  %11059 = vmatprep.subr.bf16.mxu1 %v14356_v22  ;;  %v669_v48 = vld [vmem:[#allocation2 + $0xf18] sm:$0xff]  ;;  %v14204_v7 = vcombine.high %v541_v58, %v545_v16  ;;  %v14203_v4 = vcombine.low %v541_v58, %v545_v16 }
 0x552   :  { %v673_v19 = vld [vmem:[#allocation2 + $0xf38] sm:$0xff] }
 0x553   :  { %v14332_v63 = vcombine.high %v669_v48, %v673_v19  ;;  %v533_v12 = vld [vmem:[#allocation2 + $0xad8] sm:$0xff]  ;;  %v14331_v45 = vcombine.low %v669_v48, %v673_v19 }
 0x554   :  { %11019 = vmatpush2.bf16.msra.mxu0 %v14227_v8  ;;  %11060 = vmatpush2.bf16.msra.mxu1 %v14355_v57  ;;  %v537_v2 = vld [vmem:[#allocation2 + $0xaf8] sm:$0xff] }
 0x555   :  { %11020 = vmatprep.subr.bf16.mxu0 %v14220_v11  ;;  %11061 = vmatprep.subr.bf16.mxu1 %v14348_v29  ;;  %v661_v23 = vld [vmem:[#allocation2 + $0xed8] sm:$0xff]  ;;  %v14196_v55 = vcombine.high %v533_v12, %v537_v2  ;;  %v14195_v1 = vcombine.low %v533_v12, %v537_v2 }
 0x556   :  { %v665_v60 = vld [vmem:[#allocation2 + $0xef8] sm:$0xff] }
 0x557   :  { %v14324_v28 = vcombine.high %v661_v23, %v665_v60  ;;  %v525_v35 = vld [vmem:[#allocation2 + $0xa98] sm:$0xff]  ;;  %v14323_v33 = vcombine.low %v661_v23, %v665_v60 }
 0x558   :  { %11021 = vmatpush2.bf16.msra.mxu0 %v14219_v52  ;;  %11062 = vmatpush2.bf16.msra.mxu1 %v14347_v41  ;;  %v529_v14 = vld [vmem:[#allocation2 + $0xab8] sm:$0xff] }
 0x559   :  { %11022 = vmatprep.subr.bf16.mxu0 %v14212_v27  ;;  %11063 = vmatprep.subr.bf16.mxu1 %v14340_v43  ;;  %v653_v22 = vld [vmem:[#allocation2 + $0xe98] sm:$0xff]  ;;  %v14188_v42 = vcombine.high %v525_v35, %v529_v14  ;;  %v14187_v24 = vcombine.low %v525_v35, %v529_v14 }
 0x55a   :  { %v657_v31 = vld [vmem:[#allocation2 + $0xeb8] sm:$0xff] }
 0x55b   :  { %v14316_v8 = vcombine.high %v653_v22, %v657_v31  ;;  %v517_v57 = vld [vmem:[#allocation2 + $0xa58] sm:$0xff]  ;;  %v14315_v36 = vcombine.low %v653_v22, %v657_v31 }
 0x55c   :  { %11023 = vmatpush2.bf16.msra.mxu0 %v14211_v62  ;;  %11064 = vmatpush2.bf16.msra.mxu1 %v14339_v20  ;;  %v521_v11 = vld [vmem:[#allocation2 + $0xa78] sm:$0xff] }
 0x55d   :  { %11024 = vmatprep.subr.bf16.mxu0 %v14204_v7  ;;  %11065 = vmatprep.subr.bf16.mxu1 %v14332_v63  ;;  %v645_v29 = vld [vmem:[#allocation2 + $0xe58] sm:$0xff]  ;;  %v14180_v47 = vcombine.high %v517_v57, %v521_v11  ;;  %v14179_v16 = vcombine.low %v517_v57, %v521_v11 }
 0x55e   :  { %v649_v30 = vld [vmem:[#allocation2 + $0xe78] sm:$0xff] }
 0x55f   :  { %v14308_v52 = vcombine.high %v645_v29, %v649_v30  ;;  %v509_v41 = vld [vmem:[#allocation2 + $0xa18] sm:$0xff]  ;;  %v14307_v48 = vcombine.low %v645_v29, %v649_v30 }
 0x560   :  { %11025 = vmatpush2.bf16.msra.mxu0 %v14203_v4  ;;  %11066 = vmatpush2.bf16.msra.mxu1 %v14331_v45  ;;  %v513_v27 = vld [vmem:[#allocation2 + $0xa38] sm:$0xff] }
 0x561   :  { %11026 = vmatprep.subr.bf16.mxu0 %v14196_v55  ;;  %11067 = vmatprep.subr.bf16.mxu1 %v14324_v28  ;;  %v637_v43 = vld [vmem:[#allocation2 + $0xe18] sm:$0xff]  ;;  %v14172_v19 = vcombine.high %v509_v41, %v513_v27  ;;  %v14171_v2 = vcombine.low %v509_v41, %v513_v27 }
 0x562   :  { %v641_v58 = vld [vmem:[#allocation2 + $0xe38] sm:$0xff] }
 0x563   :  { %v14300_v62 = vcombine.high %v637_v43, %v641_v58  ;;  %v757_v20 = vld [vmem:[#allocation2 + $0x11d8] sm:$0xff]  ;;  %v14299_v23 = vcombine.low %v637_v43, %v641_v58 }
 0x564   :  { %11027 = vmatpush2.bf16.msra.mxu0 %v14195_v1  ;;  %11068 = vmatpush2.bf16.msra.mxu1 %v14323_v33  ;;  %v761_v7 = vld [vmem:[#allocation2 + $0x11f8] sm:$0xff] }
 0x565   :  { %11028 = vmatprep.subr.bf16.mxu0 %v14188_v42  ;;  %11069 = vmatprep.subr.bf16.mxu1 %v14316_v8  ;;  %v885_v63 = vld [vmem:[#allocation2 + $0x15d8] sm:$0xff]  ;;  %v14420_v60 = vcombine.high %v757_v20, %v761_v7  ;;  %v14419_v14 = vcombine.low %v757_v20, %v761_v7 }
 0x566   :  { %v889_v12 = vld [vmem:[#allocation2 + $0x15f8] sm:$0xff] }
 0x567   :  { %v14548_v4 = vcombine.high %v885_v63, %v889_v12  ;;  %v749_v45 = vld [vmem:[#allocation2 + $0x1198] sm:$0xff]  ;;  %v14547_v22 = vcombine.low %v885_v63, %v889_v12 }
 0x568   :  { %11029 = vmatpush2.bf16.msra.mxu0 %v14187_v24  ;;  %11070 = vmatpush2.bf16.msra.mxu1 %v14315_v36  ;;  %v753_v55 = vld [vmem:[#allocation2 + $0x11b8] sm:$0xff] }
 0x569   :  { %11030 = vmatprep.subr.bf16.mxu0 %v14180_v47  ;;  %11071 = vmatprep.subr.bf16.mxu1 %v14308_v52  ;;  %v877_v28 = vld [vmem:[#allocation2 + $0x1598] sm:$0xff]  ;;  %v14412_v31 = vcombine.high %v749_v45, %v753_v55  ;;  %v14411_v24 = vcombine.low %v749_v45, %v753_v55 }
 0x56a   :  { %v881_v35 = vld [vmem:[#allocation2 + $0x15b8] sm:$0xff] }
 0x56b   :  { %v14540_v1 = vcombine.high %v877_v28, %v881_v35  ;;  %v741_v33 = vld [vmem:[#allocation2 + $0x1158] sm:$0xff]  ;;  %v14539_v47 = vcombine.low %v877_v28, %v881_v35 }
 0x56c   :  { %11031 = vmatpush2.bf16.msra.mxu0 %v14179_v16  ;;  %11072 = vmatpush2.bf16.msra.mxu1 %v14307_v48  ;;  %v745_v42 = vld [vmem:[#allocation2 + $0x1178] sm:$0xff] }
 0x56d   :  { %11032 = vmatprep.subr.bf16.mxu0 %v14172_v19  ;;  %11073 = vmatprep.subr.bf16.mxu1 %v14300_v62  ;;  %v869_v57 = vld [vmem:[#allocation2 + $0x1558] sm:$0xff]  ;;  %v14404_v52 = vcombine.high %v741_v33, %v745_v42  ;;  %v14403_v20 = vcombine.low %v741_v33, %v745_v42 }
 0x56e   :  { %v873_v11 = vld [vmem:[#allocation2 + $0x1578] sm:$0xff] }
 0x56f   :  { %v733_v58 = vld [vmem:[#allocation2 + $0x1118] sm:$0xff] }
 0x570   :  { %11033 = vmatpush2.bf16.msra.mxu0 %v14171_v2  ;;  %11074 = vmatpush2.bf16.msra.mxu1 %v14299_v23  ;;  %v737_v16 = vld [vmem:[#allocation2 + $0x1138] sm:$0xff] }
 0x571   :  { %11084 = vmatprep.subr.bf16.mxu0 %v14420_v60  ;;  %11125 = vmatprep.subr.bf16.mxu1 %v14548_v4  ;;  %v865_v48 = vld [vmem:[#allocation2 + $0x1538] sm:$0xff]  ;;  %v14396_v63 = vcombine.high %v733_v58, %v737_v16  ;;  %v14395_v45 = vcombine.low %v733_v58, %v737_v16 }
 0x572   :  { %v725_v23 = vld [vmem:[#allocation2 + $0x10d8] sm:$0xff] }
 0x573   :  { %v10790_v8 = vpop.f32.mrf.mxu0  ;;  %11035 = vmatmul.mubr.bf16.vlgmr.msra.gmra.mxu0 %v16518_v39  ;;  %v10831_v30 = vpop.f32.mrf.mxu1  ;;  %11076 = vmatmul.mubr.bf16.vlgmr.msra.gmra.mxu1 %v16520_v40  ;;  %v14532_v39 = vcombine.high %v869_v57, %v873_v11  ;;  %v861_v40 = vld [vmem:[#allocation2 + $0x1518] sm:$0xff] }
 0x574   :  { %v10791_v29 = vadd.f32 %v10790_v8, %v16770_v0  ;;  %11085 = vmatpush1.bf16.msra.mxu0 %v14419_v14  ;;  %11126 = vmatpush1.bf16.msra.mxu1 %v14547_v22  ;;  %v14524_v2 = vcombine.high %v861_v40, %v865_v48  ;;  %v853_v60 = vld [vmem:[#allocation2 + $0x14d8] sm:$0xff] }
 0x575   :  { %v10792_v36 = vpop.f32.mrf.mxu0  ;;  %11086 = vmatprep.subr.bf16.mxu0 %v14412_v31  ;;  %v10833_v43 = vpop.f32.mrf.mxu1  ;;  %11127 = vmatprep.subr.bf16.mxu1 %v14540_v1  ;;  %v857_v4 = vld [vmem:[#allocation2 + $0x14f8] sm:$0xff] }
 0x576   :  { %v16780_v41 = vadd.f32 %v10831_v30, %v10791_v29  ;;  %v10793_v27 = vadd.f32 %v10792_v36, %v16775_v59  ;;  %11116 = vmatprep.mubr.bf16.mxu0 %v16525_v49  ;;  %11157 = vmatprep.mubr.bf16.mxu1 %v16528_v51  ;;  %v14531_v59 = vcombine.low %v869_v57, %v873_v11  ;;  %v729_v49 = vld [vmem:[#allocation2 + $0x10f8] sm:$0xff] }
 0x577   :  { %v10794_v0 = vpop.f32.mrf.mxu0  ;;  %v10835_v62 = vpop.f32.mrf.mxu1  ;;  %v14523_v51 = vcombine.low %v861_v40, %v865_v48  ;;  %v14388_v55 = vcombine.high %v725_v23, %v729_v49  ;;  %v14516_v28 = vcombine.high %v853_v60, %v857_v4  ;;  %v717_v35 = vld [vmem:[#allocation2 + $0x1098] sm:$0xff]  ;;  %v14387_v1 = vcombine.low %v725_v23, %v729_v49 }
 0x578   :  { %v16785_v19 = vadd.f32 %v10833_v43, %v10793_v27  ;;  %11087 = vmatpush1.bf16.msra.mxu0 %v14411_v24  ;;  %11128 = vmatpush1.bf16.msra.mxu1 %v14539_v47  ;;  %v721_v14 = vld [vmem:[#allocation2 + $0x10b8] sm:$0xff]  ;;  %v14515_v33 = vcombine.low %v853_v60, %v857_v4 }
 0x579   :  { %v10795_v7 = vpop.f32.mrf.mxu0  ;;  %11088 = vmatprep.subr.bf16.mxu0 %v14404_v52  ;;  %v10836_v12 = vpop.f32.mrf.mxu1  ;;  %11129 = vmatprep.subr.bf16.mxu1 %v14532_v39  ;;  %v845_v22 = vld [vmem:[#allocation2 + $0x1498] sm:$0xff]  ;;  %v14380_v42 = vcombine.high %v717_v35, %v721_v14  ;;  %v14379_v24 = vcombine.low %v717_v35, %v721_v14 }
 0x57a   :  { %v849_v31 = vld [vmem:[#allocation2 + $0x14b8] sm:$0xff] }
 0x57b   :  { %v14508_v8 = vcombine.high %v845_v22, %v849_v31  ;;  %v709_v57 = vld [vmem:[#allocation2 + $0x1058] sm:$0xff]  ;;  %v14507_v36 = vcombine.low %v845_v22, %v849_v31 }
 0x57c   :  { %11089 = vmatpush1.bf16.msra.mxu0 %v14403_v20  ;;  %11130 = vmatpush1.bf16.msra.mxu1 %v14531_v59  ;;  %v713_v11 = vld [vmem:[#allocation2 + $0x1078] sm:$0xff] }
 0x57d   :  { %11090 = vmatprep.subr.bf16.mxu0 %v14396_v63  ;;  %11131 = vmatprep.subr.bf16.mxu1 %v14524_v2  ;;  %v837_v29 = vld [vmem:[#allocation2 + $0x1458] sm:$0xff]  ;;  %v14372_v47 = vcombine.high %v709_v57, %v713_v11  ;;  %v14371_v16 = vcombine.low %v709_v57, %v713_v11 }
 0x57e   :  { %v841_v30 = vld [vmem:[#allocation2 + $0x1478] sm:$0xff] }
 0x57f   :  { %v14500_v52 = vcombine.high %v837_v29, %v841_v30  ;;  %v701_v27 = vld [vmem:[#allocation2 + $0x1018] sm:$0xff]  ;;  %v14499_v0 = vcombine.low %v837_v29, %v841_v30 }
 0x580   :  { %11091 = vmatpush1.bf16.msra.mxu0 %v14395_v45  ;;  %11132 = vmatpush1.bf16.msra.mxu1 %v14523_v51  ;;  %v705_v43 = vld [vmem:[#allocation2 + $0x1038] sm:$0xff] }
 0x581   :  { %11092 = vmatprep.subr.bf16.mxu0 %v14388_v55  ;;  %11133 = vmatprep.subr.bf16.mxu1 %v14516_v28  ;;  %v829_v39 = vld [vmem:[#allocation2 + $0x1418] sm:$0xff]  ;;  %v14364_v40 = vcombine.high %v701_v27, %v705_v43  ;;  %v14363_v63 = vcombine.low %v701_v27, %v705_v43 }
 0x582   :  { %v833_v58 = vld [vmem:[#allocation2 + $0x1438] sm:$0xff] }
 0x583   :  { %v14492_v48 = vcombine.high %v829_v39, %v833_v58  ;;  %v821_v62 = vld [vmem:[#allocation2 + $0x13d8] sm:$0xff]  ;;  %v14491_v12 = vcombine.low %v829_v39, %v833_v58 }
 0x584   :  { %11093 = vmatpush1.bf16.msra.mxu0 %v14387_v1  ;;  %11134 = vmatpush1.bf16.msra.mxu1 %v14515_v33  ;;  %v825_v20 = vld [vmem:[#allocation2 + $0x13f8] sm:$0xff] }
 0x585   :  { %11094 = vmatprep.subr.bf16.mxu0 %v14380_v42  ;;  %11135 = vmatprep.subr.bf16.mxu1 %v14508_v8  ;;  %v949_v7 = vld [vmem:[#allocation2 + $0x17d8] sm:$0xff]  ;;  %v14484_v2 = vcombine.high %v821_v62, %v825_v20  ;;  %v14483_v51 = vcombine.low %v821_v62, %v825_v20 }
 0x586   :  { %v953_v59 = vld [vmem:[#allocation2 + $0x17f8] sm:$0xff] }
 0x587   :  { %v14612_v23 = vcombine.high %v949_v7, %v953_v59  ;;  %v813_v49 = vld [vmem:[#allocation2 + $0x1398] sm:$0xff]  ;;  %v14611_v55 = vcombine.low %v949_v7, %v953_v59 }
 0x588   :  { %11095 = vmatpush1.bf16.msra.mxu0 %v14379_v24  ;;  %11136 = vmatpush1.bf16.msra.mxu1 %v14507_v36  ;;  %v817_v60 = vld [vmem:[#allocation2 + $0x13b8] sm:$0xff] }
 0x589   :  { %11096 = vmatprep.subr.bf16.mxu0 %v14372_v47  ;;  %11137 = vmatprep.subr.bf16.mxu1 %v14500_v52  ;;  %v941_v4 = vld [vmem:[#allocation2 + $0x1798] sm:$0xff]  ;;  %v14476_v28 = vcombine.high %v813_v49, %v817_v60  ;;  %v14475_v33 = vcombine.low %v813_v49, %v817_v60 }
 0x58a   :  { %v945_v45 = vld [vmem:[#allocation2 + $0x17b8] sm:$0xff] }
 0x58b   :  { %v14604_v35 = vcombine.high %v941_v4, %v945_v45  ;;  %v805_v14 = vld [vmem:[#allocation2 + $0x1358] sm:$0xff]  ;;  %v14603_v42 = vcombine.low %v941_v4, %v945_v45 }
 0x58c   :  { %11097 = vmatpush1.bf16.msra.mxu0 %v14371_v16  ;;  %11138 = vmatpush1.bf16.msra.mxu1 %v14499_v0  ;;  %v809_v22 = vld [vmem:[#allocation2 + $0x1378] sm:$0xff] }
 0x58d   :  { %11098 = vmatprep.subr.bf16.mxu0 %v14364_v40  ;;  %11139 = vmatprep.subr.bf16.mxu1 %v14492_v48  ;;  %v933_v31 = vld [vmem:[#allocation2 + $0x1758] sm:$0xff]  ;;  %v14468_v8 = vcombine.high %v805_v14, %v809_v22  ;;  %v14467_v36 = vcombine.low %v805_v14, %v809_v22 }
 0x58e   :  { %v937_v1 = vld [vmem:[#allocation2 + $0x1778] sm:$0xff] }
 0x58f   :  { %v14596_v57 = vcombine.high %v933_v31, %v937_v1  ;;  %v797_v11 = vld [vmem:[#allocation2 + $0x1318] sm:$0xff]  ;;  %v14595_v47 = vcombine.low %v933_v31, %v937_v1 }
 0x590   :  { %11099 = vmatpush1.bf16.msra.mxu0 %v14363_v63  ;;  %11140 = vmatpush1.bf16.msra.mxu1 %v14491_v12  ;;  %v801_v29 = vld [vmem:[#allocation2 + $0x1338] sm:$0xff] }
 0x591   :  { %11100 = vmatprep.subr.bf16.mxu0 %v14484_v2  ;;  %11141 = vmatprep.subr.bf16.mxu1 %v14612_v23  ;;  %v925_v30 = vld [vmem:[#allocation2 + $0x1718] sm:$0xff]  ;;  %v14460_v52 = vcombine.high %v797_v11, %v801_v29  ;;  %v14459_v0 = vcombine.low %v797_v11, %v801_v29 }
 0x592   :  { %v929_v24 = vld [vmem:[#allocation2 + $0x1738] sm:$0xff] }
 0x593   :  { %v14588_v27 = vcombine.high %v925_v30, %v929_v24  ;;  %v789_v43 = vld [vmem:[#allocation2 + $0x12d8] sm:$0xff]  ;;  %v14587_v40 = vcombine.low %v925_v30, %v929_v24 }
 0x594   :  { %11101 = vmatpush2.bf16.msra.mxu0 %v14483_v51  ;;  %11142 = vmatpush2.bf16.msra.mxu1 %v14611_v55  ;;  %v793_v39 = vld [vmem:[#allocation2 + $0x12f8] sm:$0xff] }
 0x595   :  { %11102 = vmatprep.subr.bf16.mxu0 %v14476_v28  ;;  %11143 = vmatprep.subr.bf16.mxu1 %v14604_v35  ;;  %v917_v58 = vld [vmem:[#allocation2 + $0x16d8] sm:$0xff]  ;;  %v14452_v48 = vcombine.high %v789_v43, %v793_v39  ;;  %v14451_v12 = vcombine.low %v789_v43, %v793_v39 }
 0x596   :  { %v921_v16 = vld [vmem:[#allocation2 + $0x16f8] sm:$0xff] }
 0x597   :  { %v14580_v62 = vcombine.high %v917_v58, %v921_v16  ;;  %v781_v20 = vld [vmem:[#allocation2 + $0x1298] sm:$0xff]  ;;  %v14579_v2 = vcombine.low %v917_v58, %v921_v16 }
 0x598   :  { %11103 = vmatpush2.bf16.msra.mxu0 %v14475_v33  ;;  %11144 = vmatpush2.bf16.msra.mxu1 %v14603_v42  ;;  %v785_v7 = vld [vmem:[#allocation2 + $0x12b8] sm:$0xff] }
 0x599   :  { %11104 = vmatprep.subr.bf16.mxu0 %v14468_v8  ;;  %11145 = vmatprep.subr.bf16.mxu1 %v14596_v57  ;;  %v909_v59 = vld [vmem:[#allocation2 + $0x1698] sm:$0xff]  ;;  %v14444_v23 = vcombine.high %v781_v20, %v785_v7  ;;  %v14443_v55 = vcombine.low %v781_v20, %v785_v7 }
 0x59a   :  { %v913_v63 = vld [vmem:[#allocation2 + $0x16b8] sm:$0xff] }
 0x59b   :  { %v14572_v49 = vcombine.high %v909_v59, %v913_v63  ;;  %v773_v60 = vld [vmem:[#allocation2 + $0x1258] sm:$0xff]  ;;  %v14571_v28 = vcombine.low %v909_v59, %v913_v63 }
 0x59c   :  { %11105 = vmatpush2.bf16.msra.mxu0 %v14467_v36  ;;  %11146 = vmatpush2.bf16.msra.mxu1 %v14595_v47  ;;  %v777_v4 = vld [vmem:[#allocation2 + $0x1278] sm:$0xff] }
 0x59d   :  { %11106 = vmatprep.subr.bf16.mxu0 %v14460_v52  ;;  %11147 = vmatprep.subr.bf16.mxu1 %v14588_v27  ;;  %v901_v45 = vld [vmem:[#allocation2 + $0x1658] sm:$0xff]  ;;  %v14436_v35 = vcombine.high %v773_v60, %v777_v4  ;;  %v14435_v42 = vcombine.low %v773_v60, %v777_v4 }
 0x59e   :  { %v905_v51 = vld [vmem:[#allocation2 + $0x1678] sm:$0xff] }
 0x59f   :  { %v14564_v14 = vcombine.high %v901_v45, %v905_v51  ;;  %v765_v22 = vld [vmem:[#allocation2 + $0x1218] sm:$0xff]  ;;  %v14563_v8 = vcombine.low %v901_v45, %v905_v51 }
 0x5a0   :  { %11107 = vmatpush2.bf16.msra.mxu0 %v14459_v0  ;;  %11148 = vmatpush2.bf16.msra.mxu1 %v14587_v40  ;;  %v769_v31 = vld [vmem:[#allocation2 + $0x1238] sm:$0xff] }
 0x5a1   :  { %11108 = vmatprep.subr.bf16.mxu0 %v14452_v48  ;;  %11149 = vmatprep.subr.bf16.mxu1 %v14580_v62  ;;  %v893_v1 = vld [vmem:[#allocation2 + $0x1618] sm:$0xff]  ;;  %v14428_v57 = vcombine.high %v765_v22, %v769_v31  ;;  %v14427_v47 = vcombine.low %v765_v22, %v769_v31 }
 0x5a2   :  { %v897_v33 = vld [vmem:[#allocation2 + $0x1638] sm:$0xff] }
 0x5a3   :  { %v14556_v11 = vcombine.high %v893_v1, %v897_v33  ;;  %v1013_v29 = vld [vmem:[#allocation2 + $0x19d8] sm:$0xff]  ;;  %v14555_v52 = vcombine.low %v893_v1, %v897_v33 }
 0x5a4   :  { %11109 = vmatpush2.bf16.msra.mxu0 %v14451_v12  ;;  %11150 = vmatpush2.bf16.msra.mxu1 %v14579_v2  ;;  %v1017_v30 = vld [vmem:[#allocation2 + $0x19f8] sm:$0xff] }
 0x5a5   :  { %11110 = vmatprep.subr.bf16.mxu0 %v14444_v23  ;;  %11151 = vmatprep.subr.bf16.mxu1 %v14572_v49  ;;  %v1141_v24 = vld [vmem:[#allocation2 + $0x1dd8] sm:$0xff]  ;;  %v14676_v27 = vcombine.high %v1013_v29, %v1017_v30  ;;  %v14675_v40 = vcombine.low %v1013_v29, %v1017_v30 }
 0x5a6   :  { %v1145_v36 = vld [vmem:[#allocation2 + $0x1df8] sm:$0xff] }
 0x5a7   :  { %v14804_v43 = vcombine.high %v1141_v24, %v1145_v36  ;;  %v1005_v39 = vld [vmem:[#allocation2 + $0x1998] sm:$0xff]  ;;  %v14803_v48 = vcombine.low %v1141_v24, %v1145_v36 }
 0x5a8   :  { %11111 = vmatpush2.bf16.msra.mxu0 %v14443_v55  ;;  %11152 = vmatpush2.bf16.msra.mxu1 %v14571_v28  ;;  %v1009_v58 = vld [vmem:[#allocation2 + $0x19b8] sm:$0xff] }
 0x5a9   :  { %11112 = vmatprep.subr.bf16.mxu0 %v14436_v35  ;;  %11153 = vmatprep.subr.bf16.mxu1 %v14564_v14  ;;  %v1133_v16 = vld [vmem:[#allocation2 + $0x1d98] sm:$0xff]  ;;  %v14668_v62 = vcombine.high %v1005_v39, %v1009_v58  ;;  %v14667_v60 = vcombine.low %v1005_v39, %v1009_v58 }
 0x5aa   :  { %v1137_v0 = vld [vmem:[#allocation2 + $0x1db8] sm:$0xff] }
 0x5ab   :  { %v14796_v20 = vcombine.high %v1133_v16, %v1137_v0  ;;  %v997_v7 = vld [vmem:[#allocation2 + $0x1958] sm:$0xff]  ;;  %v14795_v45 = vcombine.low %v1133_v16, %v1137_v0 }
 0x5ac   :  { %11113 = vmatpush2.bf16.msra.mxu0 %v14435_v42  ;;  %11154 = vmatpush2.bf16.msra.mxu1 %v14563_v8  ;;  %v1001_v59 = vld [vmem:[#allocation2 + $0x1978] sm:$0xff] }
 0x5ad   :  { %11114 = vmatprep.subr.bf16.mxu0 %v14428_v57  ;;  %11155 = vmatprep.subr.bf16.mxu1 %v14556_v11  ;;  %v1125_v12 = vld [vmem:[#allocation2 + $0x1d58] sm:$0xff]  ;;  %v14660_v51 = vcombine.high %v997_v7, %v1001_v59  ;;  %v14659_v42 = vcombine.low %v997_v7, %v1001_v59 }
 0x5ae   :  { %v1129_v2 = vld [vmem:[#allocation2 + $0x1d78] sm:$0xff] }
 0x5af   :  { %v989_v14 = vld [vmem:[#allocation2 + $0x1918] sm:$0xff] }
 0x5b0   :  { %11115 = vmatpush2.bf16.msra.mxu0 %v14427_v47  ;;  %11156 = vmatpush2.bf16.msra.mxu1 %v14555_v52  ;;  %v993_v22 = vld [vmem:[#allocation2 + $0x1938] sm:$0xff] }
 0x5b1   :  { %11166 = vmatprep.subr.bf16.mxu0 %v14676_v27  ;;  %11207 = vmatprep.subr.bf16.mxu1 %v14804_v43  ;;  %v1121_v31 = vld [vmem:[#allocation2 + $0x1d38] sm:$0xff]  ;;  %v14652_v57 = vcombine.high %v989_v14, %v993_v22  ;;  %v14651_v47 = vcombine.low %v989_v14, %v993_v22 }
 0x5b2   :  { %v981_v30 = vld [vmem:[#allocation2 + $0x18d8] sm:$0xff] }
 0x5b3   :  { %v10872_v63 = vpop.f32.mrf.mxu0  ;;  %11117 = vmatmul.mubr.bf16.vlgmr.msra.gmra.mxu0 %v16542_v5  ;;  %v10913_v49 = vpop.f32.mrf.mxu1  ;;  %11158 = vmatmul.mubr.bf16.vlgmr.msra.gmra.mxu1 %v16544_v6  ;;  %v14788_v5 = vcombine.high %v1125_v12, %v1129_v2  ;;  %v1117_v6 = vld [vmem:[#allocation2 + $0x1d18] sm:$0xff] }
 0x5b4   :  { %v10873_v23 = vadd.f32 %v10872_v63, %v16780_v41  ;;  %11167 = vmatpush1.bf16.msra.mxu0 %v14675_v40  ;;  %11208 = vmatpush1.bf16.msra.mxu1 %v14803_v48  ;;  %v14780_v29 = vcombine.high %v1117_v6, %v1121_v31  ;;  %v1109_v24 = vld [vmem:[#allocation2 + $0x1cd8] sm:$0xff] }
 0x5b5   :  { %v10874_v4 = vpop.f32.mrf.mxu0  ;;  %11168 = vmatprep.subr.bf16.mxu0 %v14668_v62  ;;  %v10915_v35 = vpop.f32.mrf.mxu1  ;;  %11209 = vmatprep.subr.bf16.mxu1 %v14796_v20  ;;  %v1113_v36 = vld [vmem:[#allocation2 + $0x1cf8] sm:$0xff] }
 0x5b6   :  { %v16790_v55 = vadd.f32 %v10913_v49, %v10873_v23  ;;  %v10875_v28 = vadd.f32 %v10874_v4, %v16785_v19  ;;  %11198 = vmatprep.mubr.bf16.mxu0 %v16549_v17  ;;  %11239 = vmatprep.mubr.bf16.mxu1 %v16552_v18  ;;  %v14787_v19 = vcombine.low %v1125_v12, %v1129_v2  ;;  %v985_v17 = vld [vmem:[#allocation2 + $0x18f8] sm:$0xff] }
 0x5b7   :  { %v10876_v41 = vpop.f32.mrf.mxu0  ;;  %v10917_v33 = vpop.f32.mrf.mxu1  ;;  %v14779_v18 = vcombine.low %v1117_v6, %v1121_v31  ;;  %v14644_v52 = vcombine.high %v981_v30, %v985_v17  ;;  %v14772_v27 = vcombine.high %v1109_v24, %v1113_v36  ;;  %v973_v43 = vld [vmem:[#allocation2 + $0x1898] sm:$0xff]  ;;  %v14643_v0 = vcombine.low %v981_v30, %v985_v17 }
 0x5b8   :  { %v16795_v1 = vadd.f32 %v10915_v35, %v10875_v28  ;;  %11169 = vmatpush1.bf16.msra.mxu0 %v14667_v60  ;;  %11210 = vmatpush1.bf16.msra.mxu1 %v14795_v45  ;;  %v977_v39 = vld [vmem:[#allocation2 + $0x18b8] sm:$0xff]  ;;  %v14771_v40 = vcombine.low %v1109_v24, %v1113_v36 }
 0x5b9   :  { %v10877_v8 = vpop.f32.mrf.mxu0  ;;  %11170 = vmatprep.subr.bf16.mxu0 %v14660_v51  ;;  %v10918_v11 = vpop.f32.mrf.mxu1  ;;  %11211 = vmatprep.subr.bf16.mxu1 %v14788_v5  ;;  %v1101_v58 = vld [vmem:[#allocation2 + $0x1c98] sm:$0xff]  ;;  %v14636_v48 = vcombine.high %v973_v43, %v977_v39  ;;  %v14635_v12 = vcombine.low %v973_v43, %v977_v39 }
 0x5ba   :  { %v1105_v16 = vld [vmem:[#allocation2 + $0x1cb8] sm:$0xff] }
 0x5bb   :  { %v14764_v62 = vcombine.high %v1101_v58, %v1105_v16  ;;  %v965_v20 = vld [vmem:[#allocation2 + $0x1858] sm:$0xff]  ;;  %v14763_v2 = vcombine.low %v1101_v58, %v1105_v16 }
 0x5bc   :  { %11171 = vmatpush1.bf16.msra.mxu0 %v14659_v42  ;;  %11212 = vmatpush1.bf16.msra.mxu1 %v14787_v19  ;;  %v969_v7 = vld [vmem:[#allocation2 + $0x1878] sm:$0xff] }
 0x5bd   :  { %11172 = vmatprep.subr.bf16.mxu0 %v14652_v57  ;;  %11213 = vmatprep.subr.bf16.mxu1 %v14780_v29  ;;  %v1093_v59 = vld [vmem:[#allocation2 + $0x1c58] sm:$0xff]  ;;  %v14628_v23 = vcombine.high %v965_v20, %v969_v7  ;;  %v14627_v28 = vcombine.low %v965_v20, %v969_v7 }
 0x5be   :  { %v1097_v63 = vld [vmem:[#allocation2 + $0x1c78] sm:$0xff] }
 0x5bf   :  { %v14756_v49 = vcombine.high %v1093_v59, %v1097_v63  ;;  %v957_v60 = vld [vmem:[#allocation2 + $0x1818] sm:$0xff]  ;;  %v14755_v35 = vcombine.low %v1093_v59, %v1097_v63 }
 0x5c0   :  { %11173 = vmatpush1.bf16.msra.mxu0 %v14651_v47  ;;  %11214 = vmatpush1.bf16.msra.mxu1 %v14779_v18  ;;  %v961_v4 = vld [vmem:[#allocation2 + $0x1838] sm:$0xff] }
 0x5c1   :  { %11174 = vmatprep.subr.bf16.mxu0 %v14644_v52  ;;  %11215 = vmatprep.subr.bf16.mxu1 %v14772_v27  ;;  %v1085_v45 = vld [vmem:[#allocation2 + $0x1c18] sm:$0xff]  ;;  %v14620_v5 = vcombine.high %v957_v60, %v961_v4  ;;  %v14619_v33 = vcombine.low %v957_v60, %v961_v4 }
 0x5c2   :  { %v1089_v51 = vld [vmem:[#allocation2 + $0x1c38] sm:$0xff] }
 0x5c3   :  { %v14748_v14 = vcombine.high %v1085_v45, %v1089_v51  ;;  %v1077_v22 = vld [vmem:[#allocation2 + $0x1bd8] sm:$0xff]  ;;  %v14747_v42 = vcombine.low %v1085_v45, %v1089_v51 }
 0x5c4   :  { %11175 = vmatpush1.bf16.msra.mxu0 %v14643_v0  ;;  %11216 = vmatpush1.bf16.msra.mxu1 %v14771_v40  ;;  %v1081_v41 = vld [vmem:[#allocation2 + $0x1bf8] sm:$0xff] }
 0x5c5   :  { %11176 = vmatprep.subr.bf16.mxu0 %v14636_v48  ;;  %11217 = vmatprep.subr.bf16.mxu1 %v14764_v62  ;;  %v1205_v6 = vld [vmem:[#allocation2 + $0x1fd8] sm:$0xff]  ;;  %v14740_v8 = vcombine.high %v1077_v22, %v1081_v41  ;;  %v14739_v17 = vcombine.low %v1077_v22, %v1081_v41 }
 0x5c6   :  { %v1209_v31 = vld [vmem:[#allocation2 + $0x1ff8] sm:$0xff] }
 0x5c7   :  { %v14868_v19 = vcombine.high %v1205_v6, %v1209_v31  ;;  %v1069_v57 = vld [vmem:[#allocation2 + $0x1b98] sm:$0xff]  ;;  %v14867_v24 = vcombine.low %v1205_v6, %v1209_v31 }
 0x5c8   :  { %11177 = vmatpush1.bf16.msra.mxu0 %v14635_v12  ;;  %11218 = vmatpush1.bf16.msra.mxu1 %v14763_v2  ;;  %v1073_v11 = vld [vmem:[#allocation2 + $0x1bb8] sm:$0xff] }
 0x5c9   :  { %11178 = vmatprep.subr.bf16.mxu0 %v14628_v23  ;;  %11219 = vmatprep.subr.bf16.mxu1 %v14756_v49  ;;  %v1197_v29 = vld [vmem:[#allocation2 + $0x1f98] sm:$0xff]  ;;  %v14732_v36 = vcombine.high %v1069_v57, %v1073_v11  ;;  %v14731_v39 = vcombine.low %v1069_v57, %v1073_v11 }
 0x5ca   :  { %v1201_v30 = vld [vmem:[#allocation2 + $0x1fb8] sm:$0xff] }
 0x5cb   :  { %v14860_v47 = vcombine.high %v1197_v29, %v1201_v30  ;;  %v1061_v18 = vld [vmem:[#allocation2 + $0x1b58] sm:$0xff]  ;;  %v14859_v58 = vcombine.low %v1197_v29, %v1201_v30 }
 0x5cc   :  { %11179 = vmatpush1.bf16.msra.mxu0 %v14627_v28  ;;  %11220 = vmatpush1.bf16.msra.mxu1 %v14755_v35  ;;  %v1065_v52 = vld [vmem:[#allocation2 + $0x1b78] sm:$0xff] }
 0x5cd   :  { %11180 = vmatprep.subr.bf16.mxu0 %v14620_v5  ;;  %11221 = vmatprep.subr.bf16.mxu1 %v14748_v14  ;;  %v1189_v27 = vld [vmem:[#allocation2 + $0x1f58] sm:$0xff]  ;;  %v14724_v16 = vcombine.high %v1061_v18, %v1065_v52  ;;  %v14723_v7 = vcombine.low %v1061_v18, %v1065_v52 }
 0x5ce   :  { %v1193_v43 = vld [vmem:[#allocation2 + $0x1f78] sm:$0xff] }
 0x5cf   :  { %v14852_v0 = vcombine.high %v1189_v27, %v1193_v43  ;;  %v1053_v40 = vld [vmem:[#allocation2 + $0x1b18] sm:$0xff]  ;;  %v14851_v59 = vcombine.low %v1189_v27, %v1193_v43 }
 0x5d0   :  { %11181 = vmatpush1.bf16.msra.mxu0 %v14619_v33  ;;  %11222 = vmatpush1.bf16.msra.mxu1 %v14747_v42  ;;  %v1057_v48 = vld [vmem:[#allocation2 + $0x1b38] sm:$0xff] }
 0x5d1   :  { %11182 = vmatprep.subr.bf16.mxu0 %v14740_v8  ;;  %11223 = vmatprep.subr.bf16.mxu1 %v14868_v19  ;;  %v1181_v62 = vld [vmem:[#allocation2 + $0x1f18] sm:$0xff]  ;;  %v14716_v63 = vcombine.high %v1053_v40, %v1057_v48  ;;  %v14715_v4 = vcombine.low %v1053_v40, %v1057_v48 }
 0x5d2   :  { %v1185_v20 = vld [vmem:[#allocation2 + $0x1f38] sm:$0xff] }
 0x5d3   :  { %v14844_v12 = vcombine.high %v1181_v62, %v1185_v20  ;;  %v1045_v2 = vld [vmem:[#allocation2 + $0x1ad8] sm:$0xff]  ;;  %v14843_v45 = vcombine.low %v1181_v62, %v1185_v20  ;;  %v1750_v62 = vsub.s32 6, %v16557_v26 }
 0x5d4   :  { %11183 = vmatpush2.bf16.msra.mxu0 %v14739_v17  ;;  %11224 = vmatpush2.bf16.msra.mxu1 %v14867_v24  ;;  %v1049_v23 = vld [vmem:[#allocation2 + $0x1af8] sm:$0xff] }
 0x5d5   :  { %11184 = vmatprep.subr.bf16.mxu0 %v14732_v36  ;;  %11225 = vmatprep.subr.bf16.mxu1 %v14860_v47  ;;  %v1173_v49 = vld [vmem:[#allocation2 + $0x1ed8] sm:$0xff]  ;;  %v14708_v51 = vcombine.high %v1045_v2, %v1049_v23  ;;  %v14707_v41 = vcombine.low %v1045_v2, %v1049_v23 }
 0x5d6   :  { %v1177_v60 = vld [vmem:[#allocation2 + $0x1ef8] sm:$0xff] }
 0x5d7   :  { %v14836_v28 = vcombine.high %v1173_v49, %v1177_v60  ;;  %v1037_v35 = vld [vmem:[#allocation2 + $0x1a98] sm:$0xff]  ;;  %v14835_v6 = vcombine.low %v1173_v49, %v1177_v60  ;;  %v16202_v60 = vld [vmem:[#allocation4] sm:$0xff] }
 0x5d8   :  { %11185 = vmatpush2.bf16.msra.mxu0 %v14731_v39  ;;  %11226 = vmatpush2.bf16.msra.mxu1 %v14859_v58  ;;  %v1041_v5 = vld [vmem:[#allocation2 + $0x1ab8] sm:$0xff] }
 0x5d9   :  { %11186 = vmatprep.subr.bf16.mxu0 %v14724_v16  ;;  %11227 = vmatprep.subr.bf16.mxu1 %v14852_v0  ;;  %v1165_v14 = vld [vmem:[#allocation2 + $0x1e98] sm:$0xff]  ;;  %v14700_v31 = vcombine.high %v1037_v35, %v1041_v5  ;;  %v14699_v11 = vcombine.low %v1037_v35, %v1041_v5 }
 0x5da   :  { %v1169_v22 = vld [vmem:[#allocation2 + $0x1eb8] sm:$0xff] }
 0x5db   :  { %v14828_v33 = vcombine.high %v1165_v14, %v1169_v22  ;;  %v1029_v42 = vld [vmem:[#allocation2 + $0x1a58] sm:$0xff]  ;;  %v14827_v29 = vcombine.low %v1165_v14, %v1169_v22 }
 0x5dc   :  { %11187 = vmatpush2.bf16.msra.mxu0 %v14723_v7  ;;  %11228 = vmatpush2.bf16.msra.mxu1 %v14851_v59  ;;  %v1033_v8 = vld [vmem:[#allocation2 + $0x1a78] sm:$0xff] }
 0x5dd   :  { %11188 = vmatprep.subr.bf16.mxu0 %v14716_v63  ;;  %11229 = vmatprep.subr.bf16.mxu1 %v14844_v12  ;;  %v1157_v19 = vld [vmem:[#allocation2 + $0x1e58] sm:$0xff]  ;;  %v14692_v30 = vcombine.high %v1029_v42, %v1033_v8  ;;  %v14691_v52 = vcombine.low %v1029_v42, %v1033_v8  ;;  %v1754_v63 = vsub.s32 7, %v16557_v26 }
 0x5de   :  { %v1161_v57 = vld [vmem:[#allocation2 + $0x1e78] sm:$0xff] }
 0x5df   :  { %v14820_v17 = vcombine.high %v1157_v19, %v1161_v57  ;;  %v1021_v24 = vld [vmem:[#allocation2 + $0x1a18] sm:$0xff]  ;;  %v14819_v27 = vcombine.low %v1157_v19, %v1161_v57  ;;  %v1755_v35 = vrot.slane %v16202_v60, %v1754_v63 }
 0x5e0   :  { %11189 = vmatpush2.bf16.msra.mxu0 %v14715_v4  ;;  %11230 = vmatpush2.bf16.msra.mxu1 %v14843_v45  ;;  %v1025_v36 = vld [vmem:[#allocation2 + $0x1a38] sm:$0xff]  ;;  %v1751_v4 = vrot.slane %v16202_v60, %v1750_v62 }
 0x5e1   :  { %11190 = vmatprep.subr.bf16.mxu0 %v14708_v51  ;;  %11231 = vmatprep.subr.bf16.mxu1 %v14836_v28  ;;  %v1149_v47 = vld [vmem:[#allocation2 + $0x1e18] sm:$0xff]  ;;  %v14684_v43 = vcombine.high %v1021_v24, %v1025_v36  ;;  %v14683_v48 = vcombine.low %v1021_v24, %v1025_v36 }
 0x5e2   :  { %v1153_v18 = vld [vmem:[#allocation2 + $0x1e38] sm:$0xff] }
 0x5e3   :  { %v14812_v39 = vcombine.high %v1149_v47, %v1153_v18  ;;  %v1269_v58 = vld [vmem:[#allocation2 + $0x21d8] sm:$0xff]  ;;  %v14811_v20 = vcombine.low %v1149_v47, %v1153_v18 }
 0x5e4   :  { %11191 = vmatpush2.bf16.msra.mxu0 %v14707_v41  ;;  %11232 = vmatpush2.bf16.msra.mxu1 %v14835_v6  ;;  %v1273_v16 = vld [vmem:[#allocation2 + $0x21f8] sm:$0xff] }
 0x5e5   :  { %11192 = vmatprep.subr.bf16.mxu0 %v14700_v31  ;;  %11233 = vmatprep.subr.bf16.mxu1 %v14828_v33  ;;  %v1397_v0 = vld [vmem:[#allocation2 + $0x25d8] sm:$0xff]  ;;  %v14932_v7 = vcombine.high %v1269_v58, %v1273_v16  ;;  %v14931_v45 = vcombine.low %v1269_v58, %v1273_v16 }
 0x5e6   :  { %v1401_v40 = vld [vmem:[#allocation2 + $0x25f8] sm:$0xff] }
 0x5e7   :  { %v15060_v59 = vcombine.high %v1397_v0, %v1401_v40  ;;  %v1261_v12 = vld [vmem:[#allocation2 + $0x2198] sm:$0xff]  ;;  %v15059_v51 = vcombine.low %v1397_v0, %v1401_v40 }
 0x5e8   :  { %11193 = vmatpush2.bf16.msra.mxu0 %v14699_v11  ;;  %11234 = vmatpush2.bf16.msra.mxu1 %v14827_v29  ;;  %v1265_v2 = vld [vmem:[#allocation2 + $0x21b8] sm:$0xff] }
 0x5e9   :  { %11194 = vmatprep.subr.bf16.mxu0 %v14692_v30  ;;  %11235 = vmatprep.subr.bf16.mxu1 %v14820_v17  ;;  %v1389_v23 = vld [vmem:[#allocation2 + $0x2598] sm:$0xff]  ;;  %v14924_v28 = vcombine.high %v1261_v12, %v1265_v2  ;;  %v14923_v8 = vcombine.low %v1261_v12, %v1265_v2 }
 0x5ea   :  { %v1393_v49 = vld [vmem:[#allocation2 + $0x25b8] sm:$0xff] }
 0x5eb   :  { %v15052_v5 = vcombine.high %v1389_v23, %v1393_v49  ;;  %v1253_v14 = vld [vmem:[#allocation2 + $0x2158] sm:$0xff]  ;;  %v15051_v57 = vcombine.low %v1389_v23, %v1393_v49 }
 0x5ec   :  { %11195 = vmatpush2.bf16.msra.mxu0 %v14691_v52  ;;  %11236 = vmatpush2.bf16.msra.mxu1 %v14819_v27  ;;  %v1257_v22 = vld [vmem:[#allocation2 + $0x2178] sm:$0xff] }
 0x5ed   :  { %11196 = vmatprep.subr.bf16.mxu0 %v14684_v43  ;;  %11237 = vmatprep.subr.bf16.mxu1 %v14812_v39  ;;  %v1381_v6 = vld [vmem:[#allocation2 + $0x2558] sm:$0xff]  ;;  %v14916_v11 = vcombine.high %v1253_v14, %v1257_v22  ;;  %v14915_v43 = vcombine.low %v1253_v14, %v1257_v22 }
 0x5ee   :  { %v1385_v31 = vld [vmem:[#allocation2 + $0x2578] sm:$0xff] }
 0x5ef   :  { %v15044_v24 = vcombine.high %v1381_v6, %v1385_v31  ;;  %v1249_v36 = vld [vmem:[#allocation2 + $0x2138] sm:$0xff]  ;;  %v15043_v58 = vcombine.low %v1381_v6, %v1385_v31 }
 0x5f0   :  { %11197 = vmatpush2.bf16.msra.mxu0 %v14683_v48  ;;  %11238 = vmatpush2.bf16.msra.mxu1 %v14811_v20  ;;  %v1373_v18 = vld [vmem:[#allocation2 + $0x2518] sm:$0xff] }
 0x5f1   :  { %11248 = vmatprep.subr.bf16.mxu0 %v14932_v7  ;;  %11289 = vmatprep.subr.bf16.mxu1 %v15060_v59  ;;  %v1237_v48 = vld [vmem:[#allocation2 + $0x20d8] sm:$0xff] }
 0x5f2   :  { %v1365_v62 = vld [vmem:[#allocation2 + $0x24d8] sm:$0xff] }
 0x5f3   :  { %v10954_v41 = vpop.f32.mrf.mxu0  ;;  %11199 = vmatmul.mubr.bf16.vlgmr.msra.gmra.mxu0 %v16567_v50  ;;  %v10995_v42 = vpop.f32.mrf.mxu1  ;;  %11240 = vmatmul.mubr.bf16.vlgmr.msra.gmra.mxu1 %v16574_v56  ;;  %v1245_v50 = vld [vmem:[#allocation2 + $0x2118] sm:$0xff] }
 0x5f4   :  { %v10955_v33 = vadd.f32 %v10954_v41, %v1751_v4  ;;  %11249 = vmatpush1.bf16.msra.mxu0 %v14931_v45  ;;  %11290 = vmatpush1.bf16.msra.mxu1 %v15059_v51  ;;  %v1377_v56 = vld [vmem:[#allocation2 + $0x2538] sm:$0xff]  ;;  %v14908_v16 = vcombine.high %v1245_v50, %v1249_v36  ;;  %v14907_v7 = vcombine.low %v1245_v50, %v1249_v36 }
 0x5f5   :  { %v10956_v19 = vpop.f32.mrf.mxu0  ;;  %11250 = vmatprep.subr.bf16.mxu0 %v14924_v28  ;;  %v10997_v17 = vpop.f32.mrf.mxu1  ;;  %11291 = vmatprep.subr.bf16.mxu1 %v15052_v5  ;;  %v15036_v40 = vcombine.high %v1373_v18, %v1377_v56  ;;  %v1369_v20 = vld [vmem:[#allocation2 + $0x24f8] sm:$0xff] }
 0x5f6   :  { %v16801_v29 = vadd.f32 %v10995_v42, %v10955_v33  ;;  %v10957_v30 = vadd.f32 %v10956_v19, %v1755_v35  ;;  %11280 = vmatprep.mubr.bf16.mxu0 %v16581_v3  ;;  %11321 = vmatprep.mubr.bf16.mxu1 %v16584_v9  ;;  %v1241_v3 = vld [vmem:[#allocation2 + $0x20f8] sm:$0xff]  ;;  %v15035_v9 = vcombine.low %v1373_v18, %v1377_v56 }
 0x5f7   :  { %v10958_v47 = vpop.f32.mrf.mxu0  ;;  %v10999_v27 = vpop.f32.mrf.mxu1  ;;  %v14900_v59 = vcombine.high %v1237_v48, %v1241_v3  ;;  %v15028_v63 = vcombine.high %v1365_v62, %v1369_v20  ;;  %v1229_v12 = vld [vmem:[#allocation2 + $0x2098] sm:$0xff]  ;;  %v14899_v60 = vcombine.low %v1237_v48, %v1241_v3  ;;  %v15027_v4 = vcombine.low %v1365_v62, %v1369_v20 }
 0x5f8   :  { %v16805_v52 = vadd.f32 %v10997_v17, %v10957_v30  ;;  %11251 = vmatpush1.bf16.msra.mxu0 %v14923_v8  ;;  %11292 = vmatpush1.bf16.msra.mxu1 %v15051_v57  ;;  %v1233_v2 = vld [vmem:[#allocation2 + $0x20b8] sm:$0xff] }
 0x5f9   :  { %v10959_v39 = vpop.f32.mrf.mxu0  ;;  %11252 = vmatprep.subr.bf16.mxu0 %v14916_v11  ;;  %v11000_v0 = vpop.f32.mrf.mxu1  ;;  %11293 = vmatprep.subr.bf16.mxu1 %v15044_v24  ;;  %v1357_v23 = vld [vmem:[#allocation2 + $0x2498] sm:$0xff]  ;;  %v14892_v45 = vcombine.high %v1229_v12, %v1233_v2  ;;  %v14891_v22 = vcombine.low %v1229_v12, %v1233_v2 }
 0x5fa   :  { %v1361_v49 = vld [vmem:[#allocation2 + $0x24b8] sm:$0xff] }
 0x5fb   :  { %v15020_v51 = vcombine.high %v1357_v23, %v1361_v49  ;;  %v1221_v28 = vld [vmem:[#allocation2 + $0x2058] sm:$0xff]  ;;  %v15019_v41 = vcombine.low %v1357_v23, %v1361_v49 }
 0x5fc   :  { %11253 = vmatpush1.bf16.msra.mxu0 %v14915_v43  ;;  %11294 = vmatpush1.bf16.msra.mxu1 %v15043_v58  ;;  %v1225_v35 = vld [vmem:[#allocation2 + $0x2078] sm:$0xff] }
 0x5fd   :  { %11254 = vmatprep.subr.bf16.mxu0 %v14908_v16  ;;  %11295 = vmatprep.subr.bf16.mxu1 %v15036_v40  ;;  %v1349_v5 = vld [vmem:[#allocation2 + $0x2458] sm:$0xff]  ;;  %v14884_v6 = vcombine.high %v1221_v28, %v1225_v35  ;;  %v14883_v57 = vcombine.low %v1221_v28, %v1225_v35 }
 0x5fe   :  { %v1353_v14 = vld [vmem:[#allocation2 + $0x2478] sm:$0xff] }
 0x5ff   :  { %v15012_v31 = vcombine.high %v1349_v5, %v1353_v14  ;;  %v1213_v33 = vld [vmem:[#allocation2 + $0x2018] sm:$0xff]  ;;  %v15011_v11 = vcombine.low %v1349_v5, %v1353_v14 }
 0x600   :  { %11255 = vmatpush1.bf16.msra.mxu0 %v14907_v7  ;;  %11296 = vmatpush1.bf16.msra.mxu1 %v15035_v9  ;;  %v1217_v42 = vld [vmem:[#allocation2 + $0x2038] sm:$0xff] }
 0x601   :  { %11256 = vmatprep.subr.bf16.mxu0 %v14900_v59  ;;  %11297 = vmatprep.subr.bf16.mxu1 %v15028_v63  ;;  %v1341_v8 = vld [vmem:[#allocation2 + $0x2418] sm:$0xff]  ;;  %v14876_v30 = vcombine.high %v1213_v33, %v1217_v42  ;;  %v14875_v18 = vcombine.low %v1213_v33, %v1217_v42 }
 0x602   :  { %v1345_v19 = vld [vmem:[#allocation2 + $0x2438] sm:$0xff] }
 0x603   :  { %v15004_v17 = vcombine.high %v1341_v8, %v1345_v19  ;;  %v1333_v24 = vld [vmem:[#allocation2 + $0x23d8] sm:$0xff]  ;;  %v15003_v56 = vcombine.low %v1341_v8, %v1345_v19 }
 0x604   :  { %11257 = vmatpush1.bf16.msra.mxu0 %v14899_v60  ;;  %11298 = vmatpush1.bf16.msra.mxu1 %v15027_v4  ;;  %v1337_v50 = vld [vmem:[#allocation2 + $0x23f8] sm:$0xff] }
 0x605   :  { %11258 = vmatprep.subr.bf16.mxu0 %v14892_v45  ;;  %11299 = vmatprep.subr.bf16.mxu1 %v15020_v51  ;;  %v1461_v36 = vld [vmem:[#allocation2 + $0x27d8] sm:$0xff]  ;;  %v14996_v27 = vcombine.high %v1333_v24, %v1337_v50  ;;  %v14995_v40 = vcombine.low %v1333_v24, %v1337_v50 }
 0x606   :  { %v1465_v47 = vld [vmem:[#allocation2 + $0x27f8] sm:$0xff] }
 0x607   :  { %v15124_v43 = vcombine.high %v1461_v36, %v1465_v47  ;;  %v1325_v39 = vld [vmem:[#allocation2 + $0x2398] sm:$0xff]  ;;  %v15123_v48 = vcombine.low %v1461_v36, %v1465_v47 }
 0x608   :  { %11259 = vmatpush1.bf16.msra.mxu0 %v14891_v22  ;;  %11300 = vmatpush1.bf16.msra.mxu1 %v15019_v41  ;;  %v1329_v58 = vld [vmem:[#allocation2 + $0x23b8] sm:$0xff] }
 0x609   :  { %11260 = vmatprep.subr.bf16.mxu0 %v14884_v6  ;;  %11301 = vmatprep.subr.bf16.mxu1 %v15012_v31  ;;  %v1453_v16 = vld [vmem:[#allocation2 + $0x2798] sm:$0xff]  ;;  %v14988_v3 = vcombine.high %v1325_v39, %v1329_v58  ;;  %v14987_v63 = vcombine.low %v1325_v39, %v1329_v58 }
 0x60a   :  { %v1457_v0 = vld [vmem:[#allocation2 + $0x27b8] sm:$0xff] }
 0x60b   :  { %v15116_v62 = vcombine.high %v1453_v16, %v1457_v0  ;;  %v1317_v20 = vld [vmem:[#allocation2 + $0x2358] sm:$0xff]  ;;  %v15115_v12 = vcombine.low %v1453_v16, %v1457_v0 }
 0x60c   :  { %11261 = vmatpush1.bf16.msra.mxu0 %v14883_v57  ;;  %11302 = vmatpush1.bf16.msra.mxu1 %v15011_v11  ;;  %v1321_v7 = vld [vmem:[#allocation2 + $0x2378] sm:$0xff] }
 0x60d   :  { %11262 = vmatprep.subr.bf16.mxu0 %v14876_v30  ;;  %11303 = vmatprep.subr.bf16.mxu1 %v15004_v17  ;;  %v1445_v9 = vld [vmem:[#allocation2 + $0x2758] sm:$0xff]  ;;  %v14980_v2 = vcombine.high %v1317_v20, %v1321_v7  ;;  %v14979_v51 = vcombine.low %v1317_v20, %v1321_v7 }
 0x60e   :  { %v1449_v59 = vld [vmem:[#allocation2 + $0x2778] sm:$0xff] }
 0x60f   :  { %v15108_v23 = vcombine.high %v1445_v9, %v1449_v59  ;;  %v1309_v49 = vld [vmem:[#allocation2 + $0x2318] sm:$0xff]  ;;  %v15107_v28 = vcombine.low %v1445_v9, %v1449_v59 }
 0x610   :  { %11263 = vmatpush1.bf16.msra.mxu0 %v14875_v18  ;;  %11304 = vmatpush1.bf16.msra.mxu1 %v15003_v56  ;;  %v1313_v60 = vld [vmem:[#allocation2 + $0x2338] sm:$0xff] }
 0x611   :  { %11264 = vmatprep.subr.bf16.mxu0 %v14996_v27  ;;  %11305 = vmatprep.subr.bf16.mxu1 %v15124_v43  ;;  %v1437_v4 = vld [vmem:[#allocation2 + $0x2718] sm:$0xff]  ;;  %v14972_v35 = vcombine.high %v1309_v49, %v1313_v60  ;;  %v14971_v31 = vcombine.low %v1309_v49, %v1313_v60 }
 0x612   :  { %v1441_v45 = vld [vmem:[#allocation2 + $0x2738] sm:$0xff] }
 0x613   :  { %v15100_v5 = vcombine.high %v1437_v4, %v1441_v45  ;;  %v1301_v14 = vld [vmem:[#allocation2 + $0x22d8] sm:$0xff]  ;;  %v15099_v33 = vcombine.low %v1437_v4, %v1441_v45 }
 0x614   :  { %11265 = vmatpush2.bf16.msra.mxu0 %v14995_v40  ;;  %11306 = vmatpush2.bf16.msra.mxu1 %v15123_v48  ;;  %v1305_v22 = vld [vmem:[#allocation2 + $0x22f8] sm:$0xff] }
 0x615   :  { %11266 = vmatprep.subr.bf16.mxu0 %v14988_v3  ;;  %11307 = vmatprep.subr.bf16.mxu1 %v15116_v62  ;;  %v1429_v41 = vld [vmem:[#allocation2 + $0x26d8] sm:$0xff]  ;;  %v14964_v42 = vcombine.high %v1301_v14, %v1305_v22  ;;  %v14963_v17 = vcombine.low %v1301_v14, %v1305_v22 }
 0x616   :  { %v1433_v6 = vld [vmem:[#allocation2 + $0x26f8] sm:$0xff] }
 0x617   :  { %v15092_v8 = vcombine.high %v1429_v41, %v1433_v6  ;;  %v1293_v19 = vld [vmem:[#allocation2 + $0x2298] sm:$0xff]  ;;  %v15091_v24 = vcombine.low %v1429_v41, %v1433_v6 }
 0x618   :  { %11267 = vmatpush2.bf16.msra.mxu0 %v14987_v63  ;;  %11308 = vmatpush2.bf16.msra.mxu1 %v15115_v12  ;;  %v1297_v57 = vld [vmem:[#allocation2 + $0x22b8] sm:$0xff] }
 0x619   :  { %11268 = vmatprep.subr.bf16.mxu0 %v14980_v2  ;;  %11309 = vmatprep.subr.bf16.mxu1 %v15108_v23  ;;  %v1421_v11 = vld [vmem:[#allocation2 + $0x2698] sm:$0xff]  ;;  %v14956_v50 = vcombine.high %v1293_v19, %v1297_v57  ;;  %v14955_v43 = vcombine.low %v1293_v19, %v1297_v57 }
 0x61a   :  { %v1425_v30 = vld [vmem:[#allocation2 + $0x26b8] sm:$0xff] }
 0x61b   :  { %v15084_v36 = vcombine.high %v1421_v11, %v1425_v30  ;;  %v1285_v47 = vld [vmem:[#allocation2 + $0x2258] sm:$0xff]  ;;  %v15083_v39 = vcombine.low %v1421_v11, %v1425_v30 }
 0x61c   :  { %11269 = vmatpush2.bf16.msra.mxu0 %v14979_v51  ;;  %11310 = vmatpush2.bf16.msra.mxu1 %v15107_v28  ;;  %v1289_v18 = vld [vmem:[#allocation2 + $0x2278] sm:$0xff] }
 0x61d   :  { %11270 = vmatprep.subr.bf16.mxu0 %v14972_v35  ;;  %11311 = vmatprep.subr.bf16.mxu1 %v15100_v5  ;;  %v1413_v56 = vld [vmem:[#allocation2 + $0x2658] sm:$0xff]  ;;  %v14948_v58 = vcombine.high %v1285_v47, %v1289_v18  ;;  %v14947_v62 = vcombine.low %v1285_v47, %v1289_v18 }
 0x61e   :  { %v1417_v27 = vld [vmem:[#allocation2 + $0x2678] sm:$0xff] }
 0x61f   :  { %v15076_v16 = vcombine.high %v1413_v56, %v1417_v27  ;;  %v1277_v0 = vld [vmem:[#allocation2 + $0x2218] sm:$0xff]  ;;  %v15075_v20 = vcombine.low %v1413_v56, %v1417_v27 }
 0x620   :  { %11271 = vmatpush2.bf16.msra.mxu0 %v14971_v31  ;;  %11312 = vmatpush2.bf16.msra.mxu1 %v15099_v33  ;;  %v1281_v40 = vld [vmem:[#allocation2 + $0x2238] sm:$0xff] }
 0x621   :  { %11272 = vmatprep.subr.bf16.mxu0 %v14964_v42  ;;  %11313 = vmatprep.subr.bf16.mxu1 %v15092_v8  ;;  %v1405_v48 = vld [vmem:[#allocation2 + $0x2618] sm:$0xff]  ;;  %v14940_v7 = vcombine.high %v1277_v0, %v1281_v40  ;;  %v14939_v23 = vcombine.low %v1277_v0, %v1281_v40 }
 0x622   :  { %v1409_v3 = vld [vmem:[#allocation2 + $0x2638] sm:$0xff] }
 0x623   :  { %v15068_v9 = vcombine.high %v1405_v48, %v1409_v3  ;;  %v1525_v59 = vld [vmem:[#allocation2 + $0x29d8] sm:$0xff]  ;;  %v15067_v49 = vcombine.low %v1405_v48, %v1409_v3 }
 0x624   :  { %11273 = vmatpush2.bf16.msra.mxu0 %v14963_v17  ;;  %11314 = vmatpush2.bf16.msra.mxu1 %v15091_v24  ;;  %v1529_v63 = vld [vmem:[#allocation2 + $0x29f8] sm:$0xff] }
 0x625   :  { %11274 = vmatprep.subr.bf16.mxu0 %v14956_v50  ;;  %11315 = vmatprep.subr.bf16.mxu1 %v15084_v36  ;;  %v1653_v12 = vld [vmem:[#allocation2 + $0x2dd8] sm:$0xff]  ;;  %v15188_v60 = vcombine.high %v1525_v59, %v1529_v63  ;;  %v15187_v5 = vcombine.low %v1525_v59, %v1529_v63 }
 0x626   :  { %v1657_v2 = vld [vmem:[#allocation2 + $0x2df8] sm:$0xff] }
 0x627   :  { %v15316_v4 = vcombine.high %v1653_v12, %v1657_v2  ;;  %v1517_v45 = vld [vmem:[#allocation2 + $0x2998] sm:$0xff]  ;;  %v15315_v14 = vcombine.low %v1653_v12, %v1657_v2 }
 0x628   :  { %11275 = vmatpush2.bf16.msra.mxu0 %v14955_v43  ;;  %11316 = vmatpush2.bf16.msra.mxu1 %v15083_v39  ;;  %v1521_v51 = vld [vmem:[#allocation2 + $0x29b8] sm:$0xff] }
 0x629   :  { %11276 = vmatprep.subr.bf16.mxu0 %v14948_v58  ;;  %11317 = vmatprep.subr.bf16.mxu1 %v15076_v16  ;;  %v1645_v28 = vld [vmem:[#allocation2 + $0x2d98] sm:$0xff]  ;;  %v15180_v22 = vcombine.high %v1517_v45, %v1521_v51  ;;  %v15179_v11 = vcombine.low %v1517_v45, %v1521_v51 }
 0x62a   :  { %v1649_v35 = vld [vmem:[#allocation2 + $0x2db8] sm:$0xff] }
 0x62b   :  { %v15308_v41 = vcombine.high %v1645_v28, %v1649_v35  ;;  %v1509_v6 = vld [vmem:[#allocation2 + $0x2958] sm:$0xff]  ;;  %v15307_v17 = vcombine.low %v1645_v28, %v1649_v35 }
 0x62c   :  { %11277 = vmatpush2.bf16.msra.mxu0 %v14947_v62  ;;  %11318 = vmatpush2.bf16.msra.mxu1 %v15075_v20  ;;  %v1513_v31 = vld [vmem:[#allocation2 + $0x2978] sm:$0xff] }
 0x62d   :  { %11278 = vmatprep.subr.bf16.mxu0 %v14940_v7  ;;  %11319 = vmatprep.subr.bf16.mxu1 %v15068_v9  ;;  %v1637_v42 = vld [vmem:[#allocation2 + $0x2d58] sm:$0xff]  ;;  %v15172_v24 = vcombine.high %v1509_v6, %v1513_v31  ;;  %v15171_v58 = vcombine.low %v1509_v6, %v1513_v31 }
 0x62e   :  { %v1641_v8 = vld [vmem:[#allocation2 + $0x2d78] sm:$0xff] }
 0x62f   :  { %v1501_v18 = vld [vmem:[#allocation2 + $0x2918] sm:$0xff] }
 0x630   :  { %11279 = vmatpush2.bf16.msra.mxu0 %v14939_v23  ;;  %11320 = vmatpush2.bf16.msra.mxu1 %v15067_v49  ;;  %v1505_v56 = vld [vmem:[#allocation2 + $0x2938] sm:$0xff] }
 0x631   :  { %11330 = vmatprep.subr.bf16.mxu0 %v15188_v60  ;;  %11371 = vmatprep.subr.bf16.mxu1 %v15316_v4  ;;  %v1633_v27 = vld [vmem:[#allocation2 + $0x2d38] sm:$0xff]  ;;  %v15164_v0 = vcombine.high %v1501_v18, %v1505_v56  ;;  %v15163_v7 = vcombine.low %v1501_v18, %v1505_v56 }
 0x632   :  { %v1493_v3 = vld [vmem:[#allocation2 + $0x28d8] sm:$0xff] }
 0x633   :  { %v11036_v33 = vpop.f32.mrf.mxu0  ;;  %11281 = vmatmul.mubr.bf16.vlgmr.msra.gmra.mxu0 %v16599_v21  ;;  %v11077_v57 = vpop.f32.mrf.mxu1  ;;  %11322 = vmatmul.mubr.bf16.vlgmr.msra.gmra.mxu1 %v16604_v25  ;;  %v15300_v21 = vcombine.high %v1637_v42, %v1641_v8  ;;  %v1629_v25 = vld [vmem:[#allocation2 + $0x2d18] sm:$0xff] }
 0x634   :  { %v11037_v19 = vadd.f32 %v11036_v33, %v16801_v29  ;;  %11331 = vmatpush1.bf16.msra.mxu0 %v15187_v5  ;;  %11372 = vmatpush1.bf16.msra.mxu1 %v15315_v14  ;;  %v15292_v48 = vcombine.high %v1629_v25, %v1633_v27  ;;  %v1621_v62 = vld [vmem:[#allocation2 + $0x2cd8] sm:$0xff] }
 0x635   :  { %v11038_v30 = vpop.f32.mrf.mxu0  ;;  %11332 = vmatprep.subr.bf16.mxu0 %v15180_v22  ;;  %v11079_v47 = vpop.f32.mrf.mxu1  ;;  %11373 = vmatprep.subr.bf16.mxu1 %v15308_v41  ;;  %v1625_v20 = vld [vmem:[#allocation2 + $0x2cf8] sm:$0xff] }
 0x636   :  { %v16810_v50 = vadd.f32 %v11077_v57, %v11037_v19  ;;  %v11039_v36 = vadd.f32 %v11038_v30, %v16805_v52  ;;  %11362 = vmatprep.mubr.bf16.mxu0 %v16609_v38  ;;  %11403 = vmatprep.mubr.bf16.mxu1 %v16612_v44  ;;  %v15299_v52 = vcombine.low %v1637_v42, %v1641_v8  ;;  %v1497_v38 = vld [vmem:[#allocation2 + $0x28f8] sm:$0xff] }
 0x637   :  { %v11040_v29 = vpop.f32.mrf.mxu0  ;;  %v11081_v39 = vpop.f32.mrf.mxu1  ;;  %v15291_v44 = vcombine.low %v1629_v25, %v1633_v27  ;;  %v15156_v9 = vcombine.high %v1493_v3, %v1497_v38  ;;  %v15284_v59 = vcombine.high %v1621_v62, %v1625_v20  ;;  %v1485_v63 = vld [vmem:[#allocation2 + $0x2898] sm:$0xff]  ;;  %v15155_v49 = vcombine.low %v1493_v3, %v1497_v38 }
 0x638   :  { %v16815_v43 = vadd.f32 %v11079_v47, %v11039_v36  ;;  %11333 = vmatpush1.bf16.msra.mxu0 %v15179_v11  ;;  %11374 = vmatpush1.bf16.msra.mxu1 %v15307_v17  ;;  %v1489_v12 = vld [vmem:[#allocation2 + $0x28b8] sm:$0xff]  ;;  %v15283_v60 = vcombine.low %v1621_v62, %v1625_v20 }
 0x639   :  { %v11041_v16 = vpop.f32.mrf.mxu0  ;;  %11334 = vmatprep.subr.bf16.mxu0 %v15172_v24  ;;  %v11082_v40 = vpop.f32.mrf.mxu1  ;;  %11375 = vmatprep.subr.bf16.mxu1 %v15300_v21  ;;  %v1613_v2 = vld [vmem:[#allocation2 + $0x2c98] sm:$0xff]  ;;  %v15148_v4 = vcombine.high %v1485_v63, %v1489_v12  ;;  %v15147_v14 = vcombine.low %v1485_v63, %v1489_v12 }
 0x63a   :  { %v1617_v23 = vld [vmem:[#allocation2 + $0x2cb8] sm:$0xff] }
 0x63b   :  { %v15276_v45 = vcombine.high %v1613_v2, %v1617_v23  ;;  %v1477_v51 = vld [vmem:[#allocation2 + $0x2858] sm:$0xff]  ;;  %v15275_v22 = vcombine.low %v1613_v2, %v1617_v23 }
 0x63c   :  { %11335 = vmatpush1.bf16.msra.mxu0 %v15171_v58  ;;  %11376 = vmatpush1.bf16.msra.mxu1 %v15299_v52  ;;  %v1481_v28 = vld [vmem:[#allocation2 + $0x2878] sm:$0xff] }
 0x63d   :  { %11336 = vmatprep.subr.bf16.mxu0 %v15164_v0  ;;  %11377 = vmatprep.subr.bf16.mxu1 %v15292_v48  ;;  %v1605_v35 = vld [vmem:[#allocation2 + $0x2c58] sm:$0xff]  ;;  %v15140_v41 = vcombine.high %v1477_v51, %v1481_v28  ;;  %v15139_v19 = vcombine.low %v1477_v51, %v1481_v28 }
 0x63e   :  { %v1609_v5 = vld [vmem:[#allocation2 + $0x2c78] sm:$0xff] }
 0x63f   :  { %v15268_v6 = vcombine.high %v1605_v35, %v1609_v5  ;;  %v1469_v31 = vld [vmem:[#allocation2 + $0x2818] sm:$0xff]  ;;  %v15267_v57 = vcombine.low %v1605_v35, %v1609_v5 }
 0x640   :  { %11337 = vmatpush1.bf16.msra.mxu0 %v15163_v7  ;;  %11378 = vmatpush1.bf16.msra.mxu1 %v15291_v44  ;;  %v1473_v33 = vld [vmem:[#allocation2 + $0x2838] sm:$0xff] }
 0x641   :  { %11338 = vmatprep.subr.bf16.mxu0 %v15156_v9  ;;  %11379 = vmatprep.subr.bf16.mxu1 %v15284_v59  ;;  %v1597_v42 = vld [vmem:[#allocation2 + $0x2c18] sm:$0xff]  ;;  %v15132_v11 = vcombine.high %v1469_v31, %v1473_v33  ;;  %v15131_v21 = vcombine.low %v1469_v31, %v1473_v33 }
 0x642   :  { %v1601_v8 = vld [vmem:[#allocation2 + $0x2c38] sm:$0xff] }
 0x643   :  { %v15260_v30 = vcombine.high %v1597_v42, %v1601_v8  ;;  %v1589_v17 = vld [vmem:[#allocation2 + $0x2bd8] sm:$0xff]  ;;  %v15259_v18 = vcombine.low %v1597_v42, %v1601_v8 }
 0x644   :  { %11339 = vmatpush1.bf16.msra.mxu0 %v15155_v49  ;;  %11380 = vmatpush1.bf16.msra.mxu1 %v15283_v60  ;;  %v1593_v24 = vld [vmem:[#allocation2 + $0x2bf8] sm:$0xff] }
 0x645   :  { %11340 = vmatprep.subr.bf16.mxu0 %v15148_v4  ;;  %11381 = vmatprep.subr.bf16.mxu1 %v15276_v45  ;;  %v1717_v36 = vld [vmem:[#allocation2 + $0x2fd8] sm:$0xff]  ;;  %v15252_v56 = vcombine.high %v1589_v17, %v1593_v24  ;;  %v15251_v16 = vcombine.low %v1589_v17, %v1593_v24 }
 0x646   :  { %v1721_v47 = vld [vmem:[#allocation2 + $0x2ff8] sm:$0xff] }
 0x647   :  { %v15380_v29 = vcombine.high %v1717_v36, %v1721_v47  ;;  %v1581_v25 = vld [vmem:[#allocation2 + $0x2b98] sm:$0xff]  ;;  %v15379_v52 = vcombine.low %v1717_v36, %v1721_v47 }
 0x648   :  { %11341 = vmatpush1.bf16.msra.mxu0 %v15147_v14  ;;  %11382 = vmatpush1.bf16.msra.mxu1 %v15275_v22  ;;  %v1585_v27 = vld [vmem:[#allocation2 + $0x2bb8] sm:$0xff] }
 0x649   :  { %11342 = vmatprep.subr.bf16.mxu0 %v15140_v41  ;;  %11383 = vmatprep.subr.bf16.mxu1 %v15268_v6  ;;  %v1709_v39 = vld [vmem:[#allocation2 + $0x2f98] sm:$0xff]  ;;  %v15244_v0 = vcombine.high %v1581_v25, %v1585_v27  ;;  %v15243_v20 = vcombine.low %v1581_v25, %v1585_v27 }
 0x64a   :  { %v1713_v58 = vld [vmem:[#allocation2 + $0x2fb8] sm:$0xff] }
 0x64b   :  { %v15372_v40 = vcombine.high %v1709_v39, %v1713_v58  ;;  %v1573_v48 = vld [vmem:[#allocation2 + $0x2b58] sm:$0xff]  ;;  %v15371_v7 = vcombine.low %v1709_v39, %v1713_v58 }
 0x64c   :  { %11343 = vmatpush1.bf16.msra.mxu0 %v15139_v19  ;;  %11384 = vmatpush1.bf16.msra.mxu1 %v15267_v57  ;;  %v1577_v3 = vld [vmem:[#allocation2 + $0x2b78] sm:$0xff] }
 0x64d   :  { %11344 = vmatprep.subr.bf16.mxu0 %v15132_v11  ;;  %11385 = vmatprep.subr.bf16.mxu1 %v15260_v30  ;;  %v1701_v38 = vld [vmem:[#allocation2 + $0x2f58] sm:$0xff]  ;;  %v15236_v44 = vcombine.high %v1573_v48, %v1577_v3  ;;  %v15235_v23 = vcombine.low %v1573_v48, %v1577_v3 }
 0x64e   :  { %v1705_v62 = vld [vmem:[#allocation2 + $0x2f78] sm:$0xff] }
 0x64f   :  { %v15364_v9 = vcombine.high %v1701_v38, %v1705_v62  ;;  %v1565_v59 = vld [vmem:[#allocation2 + $0x2b18] sm:$0xff]  ;;  %v15363_v49 = vcombine.low %v1701_v38, %v1705_v62  ;;  %v11413_v62 = vmax.f32 %v16671_v53, 0.0 }
 0x650   :  { %11345 = vmatpush1.bf16.msra.mxu0 %v15131_v21  ;;  %11386 = vmatpush1.bf16.msra.mxu1 %v15259_v18  ;;  %v1569_v63 = vld [vmem:[#allocation2 + $0x2b38] sm:$0xff] }
 0x651   :  { %11346 = vmatprep.subr.bf16.mxu0 %v15252_v56  ;;  %11387 = vmatprep.subr.bf16.mxu1 %v15380_v29  ;;  %v1693_v12 = vld [vmem:[#allocation2 + $0x2f18] sm:$0xff]  ;;  %v15228_v60 = vcombine.high %v1565_v59, %v1569_v63  ;;  %v15227_v5 = vcombine.low %v1565_v59, %v1569_v63  ;;  %v16819_v59 = vpack.c.bf16 %v11413_v62, %v11413_v62 }
 0x652   :  { %v1697_v2 = vld [vmem:[#allocation2 + $0x2f38] sm:$0xff] }
 0x653   :  { %v15356_v4 = vcombine.high %v1693_v12, %v1697_v2  ;;  %v1557_v45 = vld [vmem:[#allocation2 + $0x2ad8] sm:$0xff]  ;;  %v15355_v14 = vcombine.low %v1693_v12, %v1697_v2 }
 0x654   :  { %11347 = vmatpush2.bf16.msra.mxu0 %v15251_v16  ;;  %11388 = vmatpush2.bf16.msra.mxu1 %v15379_v52  ;;  %v1561_v51 = vld [vmem:[#allocation2 + $0x2af8] sm:$0xff] }
 0x655   :  { %11348 = vmatprep.subr.bf16.mxu0 %v15244_v0  ;;  %11389 = vmatprep.subr.bf16.mxu1 %v15372_v40  ;;  %v1685_v28 = vld [vmem:[#allocation2 + $0x2ed8] sm:$0xff]  ;;  %v15220_v22 = vcombine.high %v1557_v45, %v1561_v51  ;;  %v15219_v8 = vcombine.low %v1557_v45, %v1561_v51 }
 0x656   :  { %v1689_v35 = vld [vmem:[#allocation2 + $0x2ef8] sm:$0xff] }
 0x657   :  { %v15348_v41 = vcombine.high %v1685_v28, %v1689_v35  ;;  %v1549_v6 = vld [vmem:[#allocation2 + $0x2a98] sm:$0xff]  ;;  %v15347_v19 = vcombine.low %v1685_v28, %v1689_v35 }
 0x658   :  { %11349 = vmatpush2.bf16.msra.mxu0 %v15243_v20  ;;  %11390 = vmatpush2.bf16.msra.mxu1 %v15371_v7  ;;  %v1553_v31 = vld [vmem:[#allocation2 + $0x2ab8] sm:$0xff]  ;;  %v11415_v20 = vmax.f32 %v16735_v32, 0.0 }
 0x659   :  { %11350 = vmatprep.subr.bf16.mxu0 %v15236_v44  ;;  %11391 = vmatprep.subr.bf16.mxu1 %v15364_v9  ;;  %v1677_v33 = vld [vmem:[#allocation2 + $0x2e98] sm:$0xff]  ;;  %v15212_v57 = vcombine.high %v1549_v6, %v1553_v31  ;;  %v15211_v47 = vcombine.low %v1549_v6, %v1553_v31 }
 0x65a   :  { %v1681_v42 = vld [vmem:[#allocation2 + $0x2eb8] sm:$0xff]  ;;  %v16822_v2 = vpack.c.bf16 %v11415_v20, %v11415_v20 }
 0x65b   :  { %v15340_v11 = vcombine.high %v1677_v33, %v1681_v42  ;;  %v1541_v30 = vld [vmem:[#allocation2 + $0x2a58] sm:$0xff]  ;;  %v15339_v21 = vcombine.low %v1677_v33, %v1681_v42 }
 0x65c   :  { %11351 = vmatpush2.bf16.msra.mxu0 %v15235_v23  ;;  %11392 = vmatpush2.bf16.msra.mxu1 %v15363_v49  ;;  %v1545_v17 = vld [vmem:[#allocation2 + $0x2a78] sm:$0xff] }
 0x65d   :  { %11352 = vmatprep.subr.bf16.mxu0 %v15228_v60  ;;  %11393 = vmatprep.subr.bf16.mxu1 %v15356_v4  ;;  %v1669_v24 = vld [vmem:[#allocation2 + $0x2e58] sm:$0xff]  ;;  %v15204_v18 = vcombine.high %v1541_v30, %v1545_v17  ;;  %v15203_v58 = vcombine.low %v1541_v30, %v1545_v17 }
 0x65e   :  { %v1673_v36 = vld [vmem:[#allocation2 + $0x2e78] sm:$0xff] }
 0x65f   :  { %v15332_v56 = vcombine.high %v1669_v24, %v1673_v36  ;;  %v1533_v29 = vld [vmem:[#allocation2 + $0x2a18] sm:$0xff]  ;;  %v15331_v16 = vcombine.low %v1669_v24, %v1673_v36 }
 0x660   :  { %11353 = vmatpush2.bf16.msra.mxu0 %v15227_v5  ;;  %11394 = vmatpush2.bf16.msra.mxu1 %v15355_v14  ;;  %v1537_v25 = vld [vmem:[#allocation2 + $0x2a38] sm:$0xff] }
 0x661   :  { %11354 = vmatprep.subr.bf16.mxu0 %v15220_v22  ;;  %11395 = vmatprep.subr.bf16.mxu1 %v15348_v41  ;;  %v1661_v27 = vld [vmem:[#allocation2 + $0x2e18] sm:$0xff]  ;;  %v15196_v52 = vcombine.high %v1533_v29, %v1537_v25  ;;  %v15195_v40 = vcombine.low %v1533_v29, %v1537_v25 }
 0x662   :  { %v1665_v39 = vld [vmem:[#allocation2 + $0x2e38] sm:$0xff] }
 0x663   :  { %v15324_v0 = vcombine.high %v1661_v27, %v1665_v39  ;;  %v15323_v48 = vcombine.low %v1661_v27, %v1665_v39  ;;  %v15778_v3 = vld [vmem:[#allocation6 + $0xe4] ss:$16 sps:$4 sm:$0xff]   ;;  %v15776_v7 = vld [vmem:[#allocation6 + $0xe0] ss:$16 sps:$4 sm:$0xff]  }
 0x664   :  { %11355 = vmatpush2.bf16.msra.mxu0 %v15219_v8  ;;  %11396 = vmatpush2.bf16.msra.mxu1 %v15347_v19  ;;  %v15781_v38 = vld [vmem:[#allocation6 + $0x2e4] ss:$16 sps:$4 sm:$0xff]   ;;  %v15779_v44 = vld [vmem:[#allocation6 + $0x2e0] ss:$16 sps:$4 sm:$0xff]  }
 0x665   :  { %11356 = vmatprep.subr.bf16.mxu0 %v15212_v57  ;;  %11397 = vmatprep.subr.bf16.mxu1 %v15340_v11  ;;  %v15784_v9 = vld [vmem:[#allocation6 + $0xc4] ss:$16 sps:$4 sm:$0xff]   ;;  %v15782_v32 = vld [vmem:[#allocation6 + $0xc0] ss:$16 sps:$4 sm:$0xff]  }
 0x666   :  { %v15787_v12 = vld [vmem:[#allocation6 + $0x2c4] ss:$16 sps:$4 sm:$0xff]   ;;  %v15785_v60 = vld [vmem:[#allocation6 + $0x2c0] ss:$16 sps:$4 sm:$0xff]  }
 0x667   :  { %v15790_v4 = vld [vmem:[#allocation6 + $0xa4] ss:$16 sps:$4 sm:$0xff]   ;;  %v15788_v5 = vld [vmem:[#allocation6 + $0xa0] ss:$16 sps:$4 sm:$0xff]  }
 0x668   :  { %11357 = vmatpush2.bf16.msra.mxu0 %v15211_v47  ;;  %11398 = vmatpush2.bf16.msra.mxu1 %v15339_v21  ;;  %v15791_v22 = vld [vmem:[#allocation6 + $0x2a0] ss:$16 sps:$4 sm:$0xff]   ;;  %v15796_v41 = vld [vmem:[#allocation6 + $0x84] ss:$16 sps:$4 sm:$0xff]  }
 0x669   :  { %11358 = vmatprep.subr.bf16.mxu0 %v15204_v18  ;;  %11399 = vmatprep.subr.bf16.mxu1 %v15332_v56  ;;  %v15799_v31 = vld [vmem:[#allocation6 + $0x284] ss:$16 sps:$4 sm:$0xff]   ;;  %v15797_v33 = vld [vmem:[#allocation6 + $0x280] ss:$16 sps:$4 sm:$0xff]  }
 0x66a   :  { %v15802_v42 = vld [vmem:[#allocation6 + $0x64] ss:$16 sps:$4 sm:$0xff]   ;;  %v15800_v19 = vld [vmem:[#allocation6 + $0x60] ss:$16 sps:$4 sm:$0xff]  }
 0x66b   :  { %v15805_v8 = vld [vmem:[#allocation6 + $0x264] ss:$16 sps:$4 sm:$0xff]   ;;  %v15803_v57 = vld [vmem:[#allocation6 + $0x260] ss:$16 sps:$4 sm:$0xff]  }
 0x66c   :  { %11359 = vmatpush2.bf16.msra.mxu0 %v15203_v58  ;;  %11400 = vmatpush2.bf16.msra.mxu1 %v15331_v16  ;;  %v15808_v11 = vld [vmem:[#allocation6 + $0x44] ss:$16 sps:$4 sm:$0xff]   ;;  %v15806_v17 = vld [vmem:[#allocation6 + $0x40] ss:$16 sps:$4 sm:$0xff]  }
 0x66d   :  { %11360 = vmatprep.subr.bf16.mxu0 %v15196_v52  ;;  %11401 = vmatprep.subr.bf16.mxu1 %v15324_v0  ;;  %v15811_v30 = vld [vmem:[#allocation6 + $0x244] ss:$16 sps:$4 sm:$0xff]   ;;  %v15809_v24 = vld [vmem:[#allocation6 + $0x240] ss:$16 sps:$4 sm:$0xff]  }
 0x66e   :  { %v15814_v36 = vld [vmem:[#allocation6 + $0x24] ss:$16 sps:$4 sm:$0xff]   ;;  %v15812_v21 = vld [vmem:[#allocation6 + $0x20] ss:$16 sps:$4 sm:$0xff]  }
 0x66f   :  { %v15817_v47 = vld [vmem:[#allocation6 + $0x224] ss:$16 sps:$4 sm:$0xff]   ;;  %v15815_v18 = vld [vmem:[#allocation6 + $0x220] ss:$16 sps:$4 sm:$0xff]  }
 0x670   :  { %11361 = vmatpush2.bf16.msra.mxu0 %v15195_v40  ;;  %11402 = vmatpush2.bf16.msra.mxu1 %v15323_v48  ;;  %v15820_v56 = vld [vmem:[#allocation6 + $0x4] ss:$16 sps:$4 sm:$0xff]   ;;  %v15818_v25 = vld [vmem:[#allocation6] ss:$16 sps:$4 sm:$0xff]  }
 0x671   :  { %12986 = vmatprep.subr.bf16.mxu0 %v15778_v3  ;;  %13027 = vmatprep.subr.bf16.mxu1 %v15781_v38  ;;  %v15823_v29 = vld [vmem:[#allocation6 + $0x204] ss:$16 sps:$4 sm:$0xff]   ;;  %v15821_v27 = vld [vmem:[#allocation6 + $0x200] ss:$16 sps:$4 sm:$0xff]  }
 0x672   :  { %v15826_v39 = vld [vmem:[#allocation6 + $0x1e4] ss:$16 sps:$4 sm:$0xff]   ;;  %v15824_v16 = vld [vmem:[#allocation6 + $0x1e0] ss:$16 sps:$4 sm:$0xff]  }
 0x673   :  { %v11118_v63 = vpop.f32.mrf.mxu0  ;;  %11363 = vmatmul.mubr.bf16.vlgmr.msra.gmra.mxu0 %v16629_v10  ;;  %v11159_v53 = vpop.f32.mrf.mxu1  ;;  %11404 = vmatmul.mubr.bf16.vlgmr.msra.gmra.mxu1 %v16631_v13  ;;  %v15829_v58 = vld [vmem:[#allocation6 + $0x3e4] ss:$16 sps:$4 sm:$0xff]   ;;  %v15827_v52 = vld [vmem:[#allocation6 + $0x3e0] ss:$16 sps:$4 sm:$0xff]  }
 0x674   :  { %v11119_v23 = vadd.f32 %v11118_v63, %v16810_v50  ;;  %12987 = vmatpush1.bf16.msra.mxu0 %v15776_v7  ;;  %13018 = vmatprep.mubr.bf16.mxu0 %v16819_v59  ;;  %v15793_v50 = vld [vmem:[#allocation6 + $0x2a4] ss:$16 sps:$4 sm:$0xff]   ;;  %v15830_v48 = vld [vmem:[#allocation6 + $0x1c0] ss:$16 sps:$4 sm:$0xff]  }
 0x675   :  { %13028 = vmatpush1.bf16.msra.mxu1 %v15779_v44  ;;  %v11120_v49 = vpop.f32.mrf.mxu0  ;;  %13059 = vmatprep.mubr.bf16.mxu1 %v16822_v2  ;;  %v11161_v51 = vpop.f32.mrf.mxu1  ;;  %v15832_v0 = vld [vmem:[#allocation6 + $0x1c4] ss:$16 sps:$4 sm:$0xff]   ;;  %v15833_v3 = vld [vmem:[#allocation6 + $0x3c0] ss:$16 sps:$4 sm:$0xff]  }
 0x676   :  { %v16827_v45 = vadd.f32 %v11159_v53, %v11119_v23  ;;  %v11121_v10 = vadd.f32 %v11120_v49, %v16815_v43  ;;  %12988 = vmatprep.subr.bf16.mxu0 %v15784_v9  ;;  %13029 = vmatprep.subr.bf16.mxu1 %v15787_v12  ;;  %v15794_v43 = vld [vmem:[#allocation6 + $0x80] ss:$16 sps:$4 sm:$0xff]   ;;  %v15835_v40 = vld [vmem:[#allocation6 + $0x3c4] ss:$16 sps:$4 sm:$0xff]  }
 0x677   :  { %v11122_v28 = vpop.f32.mrf.mxu0  ;;  %v11163_v35 = vpop.f32.mrf.mxu1  ;;  %v15838_v38 = vld [vmem:[#allocation6 + $0x1a4] ss:$16 sps:$4 sm:$0xff]   ;;  %v15836_v20 = vld [vmem:[#allocation6 + $0x1a0] ss:$16 sps:$4 sm:$0xff]  }
 0x678   :  { %v16831_v13 = vadd.f32 %v11161_v51, %v11121_v10  ;;  %12989 = vmatpush1.bf16.msra.mxu0 %v15782_v32  ;;  %v15841_v62 = vld [vmem:[#allocation6 + $0x3a4] ss:$16 sps:$4 sm:$0xff]   ;;  %v15839_v7 = vld [vmem:[#allocation6 + $0x3a0] ss:$16 sps:$4 sm:$0xff]  }
 0x679   :  { %13030 = vmatpush1.bf16.msra.mxu1 %v15785_v60  ;;  %v11123_v14 = vpop.f32.mrf.mxu0  ;;  %12990 = vmatprep.subr.bf16.mxu0 %v15790_v4  ;;  %v11164_v6 = vpop.f32.mrf.mxu1  ;;  %v15844_v44 = vld [vmem:[#allocation6 + $0x184] ss:$16 sps:$4 sm:$0xff]   ;;  %v15842_v63 = vld [vmem:[#allocation6 + $0x180] ss:$16 sps:$4 sm:$0xff]  }
 0x67a   :  { %13031 = vmatprep.subr.bf16.mxu1 %v15793_v50  ;;  %v15847_v9 = vld [vmem:[#allocation6 + $0x384] ss:$16 sps:$4 sm:$0xff]   ;;  %v15845_v12 = vld [vmem:[#allocation6 + $0x380] ss:$16 sps:$4 sm:$0xff]   ;;  %v11412_v6 = vmax.f32 %v16666_v34, 0.0 }
 0x67b   :  { %v15850_v23 = vld [vmem:[#allocation6 + $0x164] ss:$16 sps:$4 sm:$0xff]   ;;  %v15848_v32 = vld [vmem:[#allocation6 + $0x160] ss:$16 sps:$4 sm:$0xff]  }
 0x67c   :  { %12991 = vmatpush1.bf16.msra.mxu0 %v15788_v5  ;;  %v15853_v53 = vld [vmem:[#allocation6 + $0x364] ss:$16 sps:$4 sm:$0xff]   ;;  %v15851_v49 = vld [vmem:[#allocation6 + $0x360] ss:$16 sps:$4 sm:$0xff]  }
 0x67d   :  { %13032 = vmatpush1.bf16.msra.mxu1 %v15791_v22  ;;  %12992 = vmatprep.subr.bf16.mxu0 %v15796_v41  ;;  %v15856_v60 = vld [vmem:[#allocation6 + $0x144] ss:$16 sps:$4 sm:$0xff]   ;;  %v15854_v10 = vld [vmem:[#allocation6 + $0x140] ss:$16 sps:$4 sm:$0xff]  }
 0x67e   :  { %13033 = vmatprep.subr.bf16.mxu1 %v15799_v31  ;;  %v15859_v4 = vld [vmem:[#allocation6 + $0x344] ss:$16 sps:$4 sm:$0xff]   ;;  %v15857_v51 = vld [vmem:[#allocation6 + $0x340] ss:$16 sps:$4 sm:$0xff]  }
 0x67f   :  { %v15862_v50 = vld [vmem:[#allocation6 + $0x124] ss:$16 sps:$4 sm:$0xff]   ;;  %v15860_v35 = vld [vmem:[#allocation6 + $0x120] ss:$16 sps:$4 sm:$0xff]  }
 0x680   :  { %12993 = vmatpush1.bf16.msra.mxu0 %v15794_v43  ;;  %v15865_v28 = vld [vmem:[#allocation6 + $0x324] ss:$16 sps:$4 sm:$0xff]   ;;  %v15863_v5 = vld [vmem:[#allocation6 + $0x320] ss:$16 sps:$4 sm:$0xff]  }
 0x681   :  { %13034 = vmatpush1.bf16.msra.mxu1 %v15797_v33  ;;  %12994 = vmatprep.subr.bf16.mxu0 %v15802_v42  ;;  %v15868_v14 = vld [vmem:[#allocation6 + $0x104] ss:$16 sps:$4 sm:$0xff]   ;;  %v15866_v41 = vld [vmem:[#allocation6 + $0x100] ss:$16 sps:$4 sm:$0xff]   ;;  %v11414_v33 = vmax.f32 %v16730_v15, 0.0 }
 0x682   :  { %13035 = vmatprep.subr.bf16.mxu1 %v15805_v8  ;;  %v15871_v22 = vld [vmem:[#allocation6 + $0x304] ss:$16 sps:$4 sm:$0xff]   ;;  %v15869_v31 = vld [vmem:[#allocation6 + $0x300] ss:$16 sps:$4 sm:$0xff]   ;;  %v11417_v8 = vmax.f32 %v16795_v1, 0.0 }
 0x683   :  { %v15874_v43 = vld [vmem:[#allocation6 + $0x4e4] ss:$16 sps:$4 sm:$0xff]   ;;  %v15929_v34 = vld [vmem:[#allocation6 + $0x6e0] ss:$16 sps:$4 sm:$0xff]  }
 0x684   :  { %12995 = vmatpush1.bf16.msra.mxu0 %v15800_v19  ;;  %v15931_v42 = vld [vmem:[#allocation6 + $0x6e4] ss:$16 sps:$4 sm:$0xff]   ;;  %v15872_v19 = vld [vmem:[#allocation6 + $0x4e0] ss:$16 sps:$4 sm:$0xff]  }
 0x685   :  { %13036 = vmatpush1.bf16.msra.mxu1 %v15803_v57  ;;  %12996 = vmatprep.subr.bf16.mxu0 %v15808_v11  ;;  %v16836_v57 = vpack.c.bf16 %v11412_v6, %v11412_v6  ;;  %v15877_v11 = vld [vmem:[#allocation6 + $0x4c4] ss:$16 sps:$4 sm:$0xff]  }
 0x686   :  { %13037 = vmatprep.subr.bf16.mxu1 %v15811_v30  ;;  %v16838_v30 = vpack.c.bf16 %v11414_v33, %v11414_v33  ;;  %v15937_v15 = vld [vmem:[#allocation6 + $0x6c4] ss:$16 sps:$4 sm:$0xff]   ;;  %v15983_v33 = vld [vmem:[#allocation6 + $0x7c0] ss:$16 sps:$4 sm:$0xff]  }
 0x687   :  { %v15985_v6 = vld [vmem:[#allocation6 + $0x7c4] ss:$16 sps:$4 sm:$0xff]  }
 0x688   :  { %12997 = vmatpush1.bf16.msra.mxu0 %v15806_v17  ;;  %v16840_v17 = vpack.c.bf16 %v11417_v8, %v11417_v8  ;;  %v15902_v8 = vld [vmem:[#allocation6 + $0x5a0] ss:$16 sps:$4 sm:$0xff]  }
 0x689   :  { %13038 = vmatpush1.bf16.msra.mxu1 %v15809_v24  ;;  %12998 = vmatprep.subr.bf16.mxu0 %v15814_v36 }
 0x68a   :  { %13039 = vmatprep.subr.bf16.mxu1 %v15817_v47  ;;  %v15875_v47 = vld [vmem:[#allocation6 + $0x4c0] ss:$16 sps:$4 sm:$0xff]  }
 0x68c   :  { %12999 = vmatpush1.bf16.msra.mxu0 %v15812_v21 }
 0x68d   :  { %13040 = vmatpush1.bf16.msra.mxu1 %v15815_v18  ;;  %13000 = vmatprep.subr.bf16.mxu0 %v15820_v56  ;;  %v15880_v18 = vld [vmem:[#allocation6 + $0x4a4] ss:$16 sps:$4 sm:$0xff]  }
 0x68e   :  { %13041 = vmatprep.subr.bf16.mxu1 %v15823_v29 }
 0x690   :  { %13001 = vmatpush1.bf16.msra.mxu0 %v15818_v25 }
 0x691   :  { %13042 = vmatpush1.bf16.msra.mxu1 %v15821_v27  ;;  %13002 = vmatprep.subr.bf16.mxu0 %v15826_v39  ;;  %v15935_v27 = vld [vmem:[#allocation6 + $0x6c0] ss:$16 sps:$4 sm:$0xff]  }
 0x692   :  { %13043 = vmatprep.subr.bf16.mxu1 %v15829_v58 }
 0x694   :  { %13003 = vmatpush2.bf16.msra.mxu0 %v15824_v16 }
 0x695   :  { %13044 = vmatpush2.bf16.msra.mxu1 %v15827_v52  ;;  %13004 = vmatprep.subr.bf16.mxu0 %v15832_v0  ;;  %v15878_v52 = vld [vmem:[#allocation6 + $0x4a0] ss:$16 sps:$4 sm:$0xff]  }
 0x696   :  { %13045 = vmatprep.subr.bf16.mxu1 %v15835_v40  ;;  %v15883_v40 = vld [vmem:[#allocation6 + $0x484] ss:$16 sps:$4 sm:$0xff]  }
 0x698   :  { %13005 = vmatpush2.bf16.msra.mxu0 %v15830_v48 }
 0x699   :  { %13046 = vmatpush2.bf16.msra.mxu1 %v15833_v3  ;;  %13006 = vmatprep.subr.bf16.mxu0 %v15838_v38  ;;  %v15941_v3 = vld [vmem:[#allocation6 + $0x6a0] ss:$16 sps:$4 sm:$0xff]   ;;  %v15949_v38 = vld [vmem:[#allocation6 + $0x684] ss:$16 sps:$4 sm:$0xff]  }
 0x69a   :  { %13047 = vmatprep.subr.bf16.mxu1 %v15841_v62  ;;  %v15886_v62 = vld [vmem:[#allocation6 + $0x464] ss:$16 sps:$4 sm:$0xff]  }
 0x69c   :  { %13007 = vmatpush2.bf16.msra.mxu0 %v15836_v20  ;;  %v15947_v20 = vld [vmem:[#allocation6 + $0x680] ss:$16 sps:$4 sm:$0xff]  }
 0x69d   :  { %13048 = vmatpush2.bf16.msra.mxu1 %v15839_v7  ;;  %13008 = vmatprep.subr.bf16.mxu0 %v15844_v44  ;;  %v15955_v7 = vld [vmem:[#allocation6 + $0x664] ss:$16 sps:$4 sm:$0xff]   ;;  %v15884_v44 = vld [vmem:[#allocation6 + $0x460] ss:$16 sps:$4 sm:$0xff]  }
 0x69e   :  { %13049 = vmatprep.subr.bf16.mxu1 %v15847_v9  ;;  %v15889_v9 = vld [vmem:[#allocation6 + $0x444] ss:$16 sps:$4 sm:$0xff]  }
 0x6a0   :  { %13009 = vmatpush2.bf16.msra.mxu0 %v15842_v63  ;;  %v15953_v63 = vld [vmem:[#allocation6 + $0x660] ss:$16 sps:$4 sm:$0xff]  }
 0x6a1   :  { %13050 = vmatpush2.bf16.msra.mxu1 %v15845_v12  ;;  %13010 = vmatprep.subr.bf16.mxu0 %v15850_v23  ;;  %v15961_v12 = vld [vmem:[#allocation6 + $0x644] ss:$16 sps:$4 sm:$0xff]   ;;  %v15887_v23 = vld [vmem:[#allocation6 + $0x440] ss:$16 sps:$4 sm:$0xff]  }
 0x6a2   :  { %13051 = vmatprep.subr.bf16.mxu1 %v15853_v53  ;;  %v15892_v53 = vld [vmem:[#allocation6 + $0x424] ss:$16 sps:$4 sm:$0xff]  }
 0x6a4   :  { %13011 = vmatpush2.bf16.msra.mxu0 %v15848_v32  ;;  %v15959_v32 = vld [vmem:[#allocation6 + $0x640] ss:$16 sps:$4 sm:$0xff]  }
 0x6a5   :  { %13052 = vmatpush2.bf16.msra.mxu1 %v15851_v49  ;;  %13012 = vmatprep.subr.bf16.mxu0 %v15856_v60  ;;  %v15967_v49 = vld [vmem:[#allocation6 + $0x624] ss:$16 sps:$4 sm:$0xff]   ;;  %v15890_v60 = vld [vmem:[#allocation6 + $0x420] ss:$16 sps:$4 sm:$0xff]  }
 0x6a6   :  { %13053 = vmatprep.subr.bf16.mxu1 %v15859_v4  ;;  %v15895_v4 = vld [vmem:[#allocation6 + $0x404] ss:$16 sps:$4 sm:$0xff]  }
 0x6a8   :  { %13013 = vmatpush2.bf16.msra.mxu0 %v15854_v10  ;;  %v15965_v10 = vld [vmem:[#allocation6 + $0x620] ss:$16 sps:$4 sm:$0xff]  }
 0x6a9   :  { %13054 = vmatpush2.bf16.msra.mxu1 %v15857_v51  ;;  %13014 = vmatprep.subr.bf16.mxu0 %v15862_v50  ;;  %v15973_v51 = vld [vmem:[#allocation6 + $0x604] ss:$16 sps:$4 sm:$0xff]   ;;  %v15893_v50 = vld [vmem:[#allocation6 + $0x400] ss:$16 sps:$4 sm:$0xff]  }
 0x6aa   :  { %13055 = vmatprep.subr.bf16.mxu1 %v15865_v28  ;;  %v15898_v28 = vld [vmem:[#allocation6 + $0x5e4] ss:$16 sps:$4 sm:$0xff]  }
 0x6ac   :  { %13015 = vmatpush2.bf16.msra.mxu0 %v15860_v35  ;;  %v15971_v35 = vld [vmem:[#allocation6 + $0x600] ss:$16 sps:$4 sm:$0xff]  }
 0x6ad   :  { %13056 = vmatpush2.bf16.msra.mxu1 %v15863_v5  ;;  %13016 = vmatprep.subr.bf16.mxu0 %v15868_v14  ;;  %v15979_v5 = vld [vmem:[#allocation6 + $0x7e4] ss:$16 sps:$4 sm:$0xff]   ;;  %v15896_v14 = vld [vmem:[#allocation6 + $0x5e0] ss:$16 sps:$4 sm:$0xff]  }
 0x6ae   :  { %13057 = vmatprep.subr.bf16.mxu1 %v15871_v22  ;;  %v15901_v22 = vld [vmem:[#allocation6 + $0x5c4] ss:$16 sps:$4 sm:$0xff]  }
 0x6b0   :  { %13017 = vmatpush2.bf16.msra.mxu0 %v15866_v41  ;;  %v15977_v41 = vld [vmem:[#allocation6 + $0x7e0] ss:$16 sps:$4 sm:$0xff]  }
 0x6b1   :  { %13058 = vmatpush2.bf16.msra.mxu1 %v15869_v31  ;;  %13068 = vmatprep.subr.bf16.mxu0 %v15874_v43  ;;  %v15899_v31 = vld [vmem:[#allocation6 + $0x5c0] ss:$16 sps:$4 sm:$0xff]   ;;  %v15904_v43 = vld [vmem:[#allocation6 + $0x5a4] ss:$16 sps:$4 sm:$0xff]  }
 0x6b2   :  { %13109 = vmatprep.subr.bf16.mxu1 %v15931_v42  ;;  %v15991_v42 = vld [vmem:[#allocation6 + $0x7a4] ss:$16 sps:$4 sm:$0xff]  }
 0x6b3   :  { %v11200_v24 = vpop.f32.mrf.mxu0  ;;  %13019 = vmatmul.mubr.bf16.vlgmr.msra.gmra.mxu0 %v16836_v57  ;;  %v11241_v1 = vpop.f32.mrf.mxu1 }
 0x6b4   :  { %v11201_v36 = vadd.f32 %v11200_v24, %v16827_v45  ;;  %13060 = vmatmul.mubr.bf16.vlgmr.msra.gmra.mxu1 %v16838_v30  ;;  %13069 = vmatpush1.bf16.msra.mxu0 %v15872_v19  ;;  %v15943_v45 = vld [vmem:[#allocation6 + $0x6a4] ss:$16 sps:$4 sm:$0xff]   ;;  %v15905_v24 = vld [vmem:[#allocation6 + $0x580] ss:$16 sps:$4 sm:$0xff]  }
 0x6b5   :  { %13100 = vmatprep.mubr.bf16.mxu0 %v16840_v17  ;;  %v11202_v21 = vpop.f32.mrf.mxu0  ;;  %13070 = vmatprep.subr.bf16.mxu0 %v15877_v11  ;;  %v11243_v25 = vpop.f32.mrf.mxu1  ;;  %v15907_v19 = vld [vmem:[#allocation6 + $0x584] ss:$16 sps:$4 sm:$0xff]   ;;  %v15989_v11 = vld [vmem:[#allocation6 + $0x7a0] ss:$16 sps:$4 sm:$0xff]  }
 0x6b6   :  { %v16846_v56 = vadd.f32 %v11241_v1, %v11201_v36  ;;  %v11203_v29 = vadd.f32 %v11202_v21, %v16831_v13  ;;  %13110 = vmatpush1.bf16.msra.mxu1 %v15929_v34  ;;  %v15881_v13 = vld [vmem:[#allocation6 + $0x480] ss:$16 sps:$4 sm:$0xff]   ;;  %v15997_v34 = vld [vmem:[#allocation6 + $0x784] ss:$16 sps:$4 sm:$0xff]  }
 0x6b7   :  { %v11204_v39 = vpop.f32.mrf.mxu0  ;;  %13111 = vmatprep.subr.bf16.mxu1 %v15937_v15  ;;  %v11245_v16 = vpop.f32.mrf.mxu1  ;;  %v15910_v15 = vld [vmem:[#allocation6 + $0x564] ss:$16 sps:$4 sm:$0xff]   ;;  %v15995_v36 = vld [vmem:[#allocation6 + $0x780] ss:$16 sps:$4 sm:$0xff]  }
 0x6b8   :  { %v16849_v58 = vadd.f32 %v11243_v25, %v11203_v29  ;;  %13071 = vmatpush1.bf16.msra.mxu0 %v15875_v47  ;;  %v16003_v1 = vld [vmem:[#allocation6 + $0x764] ss:$16 sps:$4 sm:$0xff]   ;;  %v15908_v47 = vld [vmem:[#allocation6 + $0x560] ss:$16 sps:$4 sm:$0xff]  }
 0x6b9   :  { %v11205_v0 = vpop.f32.mrf.mxu0  ;;  %13072 = vmatprep.subr.bf16.mxu0 %v15880_v18  ;;  %v11246_v48 = vpop.f32.mrf.mxu1  ;;  %v15913_v21 = vld [vmem:[#allocation6 + $0x544] ss:$16 sps:$4 sm:$0xff]   ;;  %v16001_v18 = vld [vmem:[#allocation6 + $0x760] ss:$16 sps:$4 sm:$0xff]  }
 0x6ba   :  { %13112 = vmatpush1.bf16.msra.mxu1 %v15935_v27  ;;  %v16009_v29 = vld [vmem:[#allocation6 + $0x744] ss:$16 sps:$4 sm:$0xff]   ;;  %v15911_v25 = vld [vmem:[#allocation6 + $0x540] ss:$16 sps:$4 sm:$0xff]  }
 0x6bb   :  { %13113 = vmatprep.subr.bf16.mxu1 %v15943_v45  ;;  %v15916_v27 = vld [vmem:[#allocation6 + $0x524] ss:$16 sps:$4 sm:$0xff]   ;;  %v16007_v39 = vld [vmem:[#allocation6 + $0x740] ss:$16 sps:$4 sm:$0xff]  }
 0x6bc   :  { %13073 = vmatpush1.bf16.msra.mxu0 %v15878_v52  ;;  %v16015_v45 = vld [vmem:[#allocation6 + $0x724] ss:$16 sps:$4 sm:$0xff]   ;;  %v15914_v16 = vld [vmem:[#allocation6 + $0x520] ss:$16 sps:$4 sm:$0xff]  }
 0x6bd   :  { %13074 = vmatprep.subr.bf16.mxu0 %v15883_v40  ;;  %v15919_v52 = vld [vmem:[#allocation6 + $0x504] ss:$16 sps:$4 sm:$0xff]   ;;  %v16013_v0 = vld [vmem:[#allocation6 + $0x720] ss:$16 sps:$4 sm:$0xff]  }
 0x6be   :  { %13114 = vmatpush1.bf16.msra.mxu1 %v15941_v3  ;;  %v16021_v40 = vld [vmem:[#allocation6 + $0x704] ss:$16 sps:$4 sm:$0xff]   ;;  %v15917_v48 = vld [vmem:[#allocation6 + $0x500] ss:$16 sps:$4 sm:$0xff]   ;;  %v11416_v3 = vmax.f32 %v16790_v55, 0.0 }
 0x6bf   :  { %13115 = vmatprep.subr.bf16.mxu1 %v15949_v38  ;;  %v15922_v38 = vld [vmem:[#allocation6 + $0xec] ss:$16 sps:$4 sm:$0xff]  }
 0x6c0   :  { %13075 = vmatpush1.bf16.msra.mxu0 %v15881_v13  ;;  %v16019_v13 = vld [vmem:[#allocation6 + $0x700] ss:$16 sps:$4 sm:$0xff]  }
 0x6c1   :  { %13076 = vmatprep.subr.bf16.mxu0 %v15886_v62  ;;  %v16027_v62 = vld [vmem:[#allocation6 + $0x2ec] ss:$16 sps:$4 sm:$0xff]  }
 0x6c2   :  { %13116 = vmatpush1.bf16.msra.mxu1 %v15947_v20  ;;  %v15920_v20 = vld [vmem:[#allocation6 + $0xe8] ss:$16 sps:$4 sm:$0xff]  }
 0x6c3   :  { %13117 = vmatprep.subr.bf16.mxu1 %v15955_v7  ;;  %v16852_v7 = vpack.c.bf16 %v11416_v3, %v11416_v3  ;;  %v16016_v3 = vld [vmem:[#allocation6 + $0x4c8] ss:$16 sps:$4 sm:$0xff]  }
 0x6c4   :  { %13077 = vmatpush1.bf16.msra.mxu0 %v15884_v44  ;;  %v15925_v44 = vld [vmem:[#allocation6 + $0xcc] ss:$16 sps:$4 sm:$0xff]  }
 0x6c5   :  { %13078 = vmatprep.subr.bf16.mxu0 %v15889_v9 }
 0x6c6   :  { %13118 = vmatpush1.bf16.msra.mxu1 %v15953_v63 }
 0x6c7   :  { %13119 = vmatprep.subr.bf16.mxu1 %v15961_v12  ;;  %v15923_v12 = vld [vmem:[#allocation6 + $0xc8] ss:$16 sps:$4 sm:$0xff]  }
 0x6c8   :  { %13079 = vmatpush1.bf16.msra.mxu0 %v15887_v23 }
 0x6c9   :  { %13080 = vmatprep.subr.bf16.mxu0 %v15892_v53  ;;  %v15928_v53 = vld [vmem:[#allocation6 + $0xac] ss:$16 sps:$4 sm:$0xff]  }
 0x6ca   :  { %13120 = vmatpush1.bf16.msra.mxu1 %v15959_v32 }
 0x6cb   :  { %13121 = vmatprep.subr.bf16.mxu1 %v15967_v49 }
 0x6cc   :  { %13081 = vmatpush1.bf16.msra.mxu0 %v15890_v60 }
 0x6cd   :  { %13082 = vmatprep.subr.bf16.mxu0 %v15895_v4 }
 0x6ce   :  { %13122 = vmatpush1.bf16.msra.mxu1 %v15965_v10  ;;  %v15926_v10 = vld [vmem:[#allocation6 + $0xa8] ss:$16 sps:$4 sm:$0xff]  }
 0x6cf   :  { %13123 = vmatprep.subr.bf16.mxu1 %v15973_v51 }
 0x6d0   :  { %13083 = vmatpush1.bf16.msra.mxu0 %v15893_v50 }
 0x6d1   :  { %13084 = vmatprep.subr.bf16.mxu0 %v15898_v28  ;;  %v15932_v28 = vld [vmem:[#allocation6 + $0x88] ss:$16 sps:$4 sm:$0xff]  }
 0x6d2   :  { %13124 = vmatpush1.bf16.msra.mxu1 %v15971_v35  ;;  %v15938_v35 = vld [vmem:[#allocation6 + $0x68] ss:$16 sps:$4 sm:$0xff]  }
 0x6d3   :  { %13125 = vmatprep.subr.bf16.mxu1 %v15979_v5  ;;  %v15946_v5 = vld [vmem:[#allocation6 + $0x4c] ss:$16 sps:$4 sm:$0xff]  }
 0x6d4   :  { %13085 = vmatpush2.bf16.msra.mxu0 %v15896_v14  ;;  %v15944_v14 = vld [vmem:[#allocation6 + $0x48] ss:$16 sps:$4 sm:$0xff]  }
 0x6d5   :  { %13086 = vmatprep.subr.bf16.mxu0 %v15901_v22  ;;  %v15952_v22 = vld [vmem:[#allocation6 + $0x2c] ss:$16 sps:$4 sm:$0xff]  }
 0x6d6   :  { %13126 = vmatpush2.bf16.msra.mxu1 %v15977_v41  ;;  %v15950_v41 = vld [vmem:[#allocation6 + $0x28] ss:$16 sps:$4 sm:$0xff]  }
 0x6d7   :  { %13127 = vmatprep.subr.bf16.mxu1 %v15985_v6  ;;  %v15958_v6 = vld [vmem:[#allocation6 + $0xc] ss:$16 sps:$4 sm:$0xff]  }
 0x6d8   :  { %13087 = vmatpush2.bf16.msra.mxu0 %v15899_v31  ;;  %v15956_v31 = vld [vmem:[#allocation6 + $0x8] ss:$16 sps:$4 sm:$0xff]  }
 0x6d9   :  { %13088 = vmatprep.subr.bf16.mxu0 %v15904_v43  ;;  %v15964_v43 = vld [vmem:[#allocation6 + $0x1ec] ss:$16 sps:$4 sm:$0xff]  }
 0x6da   :  { %13128 = vmatpush2.bf16.msra.mxu1 %v15983_v33  ;;  %v15962_v33 = vld [vmem:[#allocation6 + $0x1e8] ss:$16 sps:$4 sm:$0xff]  }
 0x6db   :  { %13129 = vmatprep.subr.bf16.mxu1 %v15991_v42  ;;  %v15970_v42 = vld [vmem:[#allocation6 + $0x1cc] ss:$16 sps:$4 sm:$0xff]  }
 0x6dc   :  { %13089 = vmatpush2.bf16.msra.mxu0 %v15902_v8  ;;  %v15968_v8 = vld [vmem:[#allocation6 + $0x1c8] ss:$16 sps:$4 sm:$0xff]  }
 0x6dd   :  { %13090 = vmatprep.subr.bf16.mxu0 %v15907_v19  ;;  %v15976_v19 = vld [vmem:[#allocation6 + $0x1ac] ss:$16 sps:$4 sm:$0xff]  }
 0x6de   :  { %13130 = vmatpush2.bf16.msra.mxu1 %v15989_v11  ;;  %v15974_v11 = vld [vmem:[#allocation6 + $0x1a8] ss:$16 sps:$4 sm:$0xff]  }
 0x6df   :  { %13131 = vmatprep.subr.bf16.mxu1 %v15997_v34  ;;  %v15982_v34 = vld [vmem:[#allocation6 + $0x18c] ss:$16 sps:$4 sm:$0xff]  }
 0x6e0   :  { %13091 = vmatpush2.bf16.msra.mxu0 %v15905_v24  ;;  %v15980_v24 = vld [vmem:[#allocation6 + $0x188] ss:$16 sps:$4 sm:$0xff]  }
 0x6e1   :  { %13092 = vmatprep.subr.bf16.mxu0 %v15910_v15  ;;  %v15988_v15 = vld [vmem:[#allocation6 + $0x16c] ss:$16 sps:$4 sm:$0xff]  }
 0x6e2   :  { %13132 = vmatpush2.bf16.msra.mxu1 %v15995_v36  ;;  %v15986_v36 = vld [vmem:[#allocation6 + $0x168] ss:$16 sps:$4 sm:$0xff]  }
 0x6e3   :  { %13133 = vmatprep.subr.bf16.mxu1 %v16003_v1  ;;  %v15994_v1 = vld [vmem:[#allocation6 + $0x14c] ss:$16 sps:$4 sm:$0xff]  }
 0x6e4   :  { %13093 = vmatpush2.bf16.msra.mxu0 %v15908_v47  ;;  %v15992_v47 = vld [vmem:[#allocation6 + $0x148] ss:$16 sps:$4 sm:$0xff]  }
 0x6e5   :  { %13094 = vmatprep.subr.bf16.mxu0 %v15913_v21  ;;  %v16000_v21 = vld [vmem:[#allocation6 + $0x12c] ss:$16 sps:$4 sm:$0xff]  }
 0x6e6   :  { %13134 = vmatpush2.bf16.msra.mxu1 %v16001_v18  ;;  %v15998_v18 = vld [vmem:[#allocation6 + $0x128] ss:$16 sps:$4 sm:$0xff]  }
 0x6e7   :  { %13135 = vmatprep.subr.bf16.mxu1 %v16009_v29  ;;  %v16006_v29 = vld [vmem:[#allocation6 + $0x10c] ss:$16 sps:$4 sm:$0xff]  }
 0x6e8   :  { %13095 = vmatpush2.bf16.msra.mxu0 %v15911_v25  ;;  %v16004_v25 = vld [vmem:[#allocation6 + $0x108] ss:$16 sps:$4 sm:$0xff]  }
 0x6e9   :  { %13096 = vmatprep.subr.bf16.mxu0 %v15916_v27  ;;  %v16012_v27 = vld [vmem:[#allocation6 + $0x4ec] ss:$16 sps:$4 sm:$0xff]  }
 0x6ea   :  { %13136 = vmatpush2.bf16.msra.mxu1 %v16007_v39 }
 0x6eb   :  { %13137 = vmatprep.subr.bf16.mxu1 %v16015_v45  ;;  %v16010_v45 = vld [vmem:[#allocation6 + $0x4e8] ss:$16 sps:$4 sm:$0xff]  }
 0x6ec   :  { %13097 = vmatpush2.bf16.msra.mxu0 %v15914_v16  ;;  %v16018_v16 = vld [vmem:[#allocation6 + $0x4cc] ss:$16 sps:$4 sm:$0xff]  }
 0x6ed   :  { %13098 = vmatprep.subr.bf16.mxu0 %v15919_v52 }
 0x6ee   :  { %13138 = vmatpush2.bf16.msra.mxu1 %v16013_v0 }
 0x6ef   :  { %13139 = vmatprep.subr.bf16.mxu1 %v16021_v40 }
 0x6f0   :  { %13099 = vmatpush2.bf16.msra.mxu0 %v15917_v48 }
 0x6f1   :  { %13150 = vmatprep.subr.bf16.mxu0 %v15922_v38 }
 0x6f2   :  { %13140 = vmatpush2.bf16.msra.mxu1 %v16019_v13  ;;  %v16024_v13 = vld [vmem:[#allocation6 + $0x4ac] ss:$16 sps:$4 sm:$0xff]  }
 0x6f3   :  { %v11282_v9 = vpop.f32.mrf.mxu0  ;;  %13101 = vmatmul.mubr.bf16.vlgmr.msra.gmra.mxu0 %v16852_v7  ;;  %13191 = vmatprep.subr.bf16.mxu1 %v16027_v62  ;;  %v11323_v55 = vpop.f32.mrf.mxu1 }
 0x6f4   :  { %v11283_v63 = vadd.f32 %v11282_v9, %v16846_v56  ;;  %13151 = vmatpush1.bf16.msra.mxu0 %v15920_v20  ;;  %13182 = vmatprep.mubr.bf16.mxu0 %v16819_v59  ;;  %v15934_v56 = vld [vmem:[#allocation6 + $0x8c] ss:$16 sps:$4 sm:$0xff]  }
 0x6f5   :  { %v16857_v23 = vpop.f32.mrf.mxu0  ;;  %13152 = vmatprep.subr.bf16.mxu0 %v15925_v44  ;;  %v16861_v49 = vpop.f32.mrf.mxu1  ;;  %v15940_v59 = vld [vmem:[#allocation6 + $0x6c] ss:$16 sps:$4 sm:$0xff]  }
 0x6f6   :  { %v16859_v32 = vadd.f32 %v11323_v55, %v11283_v63  ;;  %v11285_v39 = vadd.f32 %v16857_v23, %v16849_v58  ;;  %v16030_v23 = vld [vmem:[#allocation6 + $0x48c] ss:$16 sps:$4 sm:$0xff]  }
 0x6f7   :  { %v11286_v60 = vpop.f32.mrf.mxu0  ;;  %v11327_v4 = vpop.f32.mrf.mxu1 }
 0x6f8   :  { %13153 = vmatpush1.bf16.msra.mxu0 %v15923_v12  ;;  %v11326_v0 = vadd.f32 %v16861_v49, %v11285_v39  ;;  %v16028_v4 = vld [vmem:[#allocation6 + $0x488] ss:$16 sps:$4 sm:$0xff]  }
 0x6f9   :  { %v11287_v51 = vpop.f32.mrf.mxu0  ;;  %13154 = vmatprep.subr.bf16.mxu0 %v15928_v53  ;;  %v11328_v50 = vpop.f32.mrf.mxu1  ;;  %v16076_v39 = vld [vmem:[#allocation6 + $0x588] ss:$16 sps:$4 sm:$0xff]  }
 0x6fa   :  { %v16036_v51 = vld [vmem:[#allocation6 + $0x46c] ss:$16 sps:$4 sm:$0xff]   ;;  %v16034_v50 = vld [vmem:[#allocation6 + $0x468] ss:$16 sps:$4 sm:$0xff]  }
 0x6fc   :  { %13155 = vmatpush1.bf16.msra.mxu0 %v15926_v10  ;;  %v16033_v10 = vld [vmem:[#allocation6 + $0x2cc] ss:$16 sps:$4 sm:$0xff]  }
 0x6fd   :  { %13156 = vmatprep.subr.bf16.mxu0 %v15934_v56  ;;  %v16031_v56 = vld [vmem:[#allocation6 + $0x2c8] ss:$16 sps:$4 sm:$0xff]  }
 0x700   :  { %13157 = vmatpush1.bf16.msra.mxu0 %v15932_v28  ;;  %v16039_v28 = vld [vmem:[#allocation6 + $0x2ac] ss:$16 sps:$4 sm:$0xff]  }
 0x701   :  { %13158 = vmatprep.subr.bf16.mxu0 %v15940_v59  ;;  %v16042_v59 = vld [vmem:[#allocation6 + $0x44c] ss:$16 sps:$4 sm:$0xff]  }
 0x704   :  { %13159 = vmatpush1.bf16.msra.mxu0 %v15938_v35  ;;  %v16037_v35 = vld [vmem:[#allocation6 + $0x2a8] ss:$16 sps:$4 sm:$0xff]  }
 0x705   :  { %13160 = vmatprep.subr.bf16.mxu0 %v15946_v5  ;;  %v16040_v5 = vld [vmem:[#allocation6 + $0x448] ss:$16 sps:$4 sm:$0xff]  }
 0x708   :  { %13161 = vmatpush1.bf16.msra.mxu0 %v15944_v14  ;;  %v16045_v14 = vld [vmem:[#allocation6 + $0x28c] ss:$16 sps:$4 sm:$0xff]  }
 0x709   :  { %13162 = vmatprep.subr.bf16.mxu0 %v15952_v22  ;;  %v16048_v22 = vld [vmem:[#allocation6 + $0x42c] ss:$16 sps:$4 sm:$0xff]  }
 0x70c   :  { %13163 = vmatpush1.bf16.msra.mxu0 %v15950_v41  ;;  %v16043_v41 = vld [vmem:[#allocation6 + $0x288] ss:$16 sps:$4 sm:$0xff]  }
 0x70d   :  { %13164 = vmatprep.subr.bf16.mxu0 %v15958_v6  ;;  %v16051_v6 = vld [vmem:[#allocation6 + $0x26c] ss:$16 sps:$4 sm:$0xff]  }
 0x710   :  { %13165 = vmatpush1.bf16.msra.mxu0 %v15956_v31  ;;  %v16054_v31 = vld [vmem:[#allocation6 + $0x40c] ss:$16 sps:$4 sm:$0xff]  }
 0x711   :  { %13166 = vmatprep.subr.bf16.mxu0 %v15964_v43  ;;  %v16049_v43 = vld [vmem:[#allocation6 + $0x268] ss:$16 sps:$4 sm:$0xff]  }
 0x714   :  { %13167 = vmatpush2.bf16.msra.mxu0 %v15962_v33  ;;  %v16052_v33 = vld [vmem:[#allocation6 + $0x408] ss:$16 sps:$4 sm:$0xff]  }
 0x715   :  { %13168 = vmatprep.subr.bf16.mxu0 %v15970_v42  ;;  %v16057_v42 = vld [vmem:[#allocation6 + $0x24c] ss:$16 sps:$4 sm:$0xff]  }
 0x718   :  { %13169 = vmatpush2.bf16.msra.mxu0 %v15968_v8  ;;  %v16060_v8 = vld [vmem:[#allocation6 + $0x5ec] ss:$16 sps:$4 sm:$0xff]  }
 0x719   :  { %13170 = vmatprep.subr.bf16.mxu0 %v15976_v19  ;;  %v16055_v19 = vld [vmem:[#allocation6 + $0x248] ss:$16 sps:$4 sm:$0xff]  }
 0x71c   :  { %13171 = vmatpush2.bf16.msra.mxu0 %v15974_v11  ;;  %v16058_v11 = vld [vmem:[#allocation6 + $0x5e8] ss:$16 sps:$4 sm:$0xff]  }
 0x71d   :  { %13172 = vmatprep.subr.bf16.mxu0 %v15982_v34  ;;  %v16063_v34 = vld [vmem:[#allocation6 + $0x22c] ss:$16 sps:$4 sm:$0xff]  }
 0x720   :  { %13173 = vmatpush2.bf16.msra.mxu0 %v15980_v24  ;;  %v16066_v24 = vld [vmem:[#allocation6 + $0x5cc] ss:$16 sps:$4 sm:$0xff]  }
 0x721   :  { %13174 = vmatprep.subr.bf16.mxu0 %v15988_v15  ;;  %v16061_v15 = vld [vmem:[#allocation6 + $0x228] ss:$16 sps:$4 sm:$0xff]  }
 0x724   :  { %13175 = vmatpush2.bf16.msra.mxu0 %v15986_v36  ;;  %v16064_v36 = vld [vmem:[#allocation6 + $0x5c8] ss:$16 sps:$4 sm:$0xff]  }
 0x725   :  { %13176 = vmatprep.subr.bf16.mxu0 %v15994_v1  ;;  %v16069_v1 = vld [vmem:[#allocation6 + $0x20c] ss:$16 sps:$4 sm:$0xff]  }
 0x728   :  { %13177 = vmatpush2.bf16.msra.mxu0 %v15992_v47  ;;  %v16072_v47 = vld [vmem:[#allocation6 + $0x5ac] ss:$16 sps:$4 sm:$0xff]  }
 0x729   :  { %13178 = vmatprep.subr.bf16.mxu0 %v16000_v21  ;;  %v16067_v21 = vld [vmem:[#allocation6 + $0x208] ss:$16 sps:$4 sm:$0xff]  }
 0x72c   :  { %13179 = vmatpush2.bf16.msra.mxu0 %v15998_v18  ;;  %v16070_v18 = vld [vmem:[#allocation6 + $0x5a8] ss:$16 sps:$4 sm:$0xff]  }
 0x72d   :  { %13180 = vmatprep.subr.bf16.mxu0 %v16006_v29  ;;  %v16075_v29 = vld [vmem:[#allocation6 + $0x3ec] ss:$16 sps:$4 sm:$0xff]  }
 0x730   :  { %13181 = vmatpush2.bf16.msra.mxu0 %v16004_v25  ;;  %v16078_v25 = vld [vmem:[#allocation6 + $0x58c] ss:$16 sps:$4 sm:$0xff]  }
 0x731   :  { %13232 = vmatprep.subr.bf16.mxu0 %v16012_v27  ;;  %v16073_v27 = vld [vmem:[#allocation6 + $0x3e8] ss:$16 sps:$4 sm:$0xff]  }
 0x733   :  { %v11364_v52 = vpop.f32.mrf.mxu0  ;;  %13183 = vmatmul.mubr.bf16.vlgmr.msra.gmra.mxu0 %v16836_v57  ;;  %v11405_v48 = vpop.f32.mrf.mxu1  ;;  %v16022_v57 = vld [vmem:[#allocation6 + $0x4a8] ss:$16 sps:$4 sm:$0xff]  }
 0x734   :  { %v11365_v40 = vadd.f32 %v11364_v52, %v16859_v32  ;;  %13233 = vmatpush1.bf16.msra.mxu0 %v16010_v45  ;;  %13264 = vmatprep.mubr.bf16.mxu0 %v16840_v17  ;;  %v16025_v17 = vld [vmem:[#allocation6 + $0x2e8] ss:$16 sps:$4 sm:$0xff]   ;;  %v16081_v45 = vld [vmem:[#allocation6 + $0x3cc] ss:$16 sps:$4 sm:$0xff]  }
 0x735   :  { %v11366_v38 = vpop.f32.mrf.mxu0  ;;  %13234 = vmatprep.subr.bf16.mxu0 %v16018_v16  ;;  %v11407_v20 = vpop.f32.mrf.mxu1  ;;  %v16084_v16 = vld [vmem:[#allocation6 + $0x56c] ss:$16 sps:$4 sm:$0xff]   ;;  %v16079_v52 = vld [vmem:[#allocation6 + $0x3c8] ss:$16 sps:$4 sm:$0xff]  }
 0x736   :  { %v11406_v58 = vadd.f32 %v11405_v48, %v11365_v40  ;;  %v11367_v62 = vadd.f32 %v11366_v38, %v11326_v0  ;;  %v16082_v0 = vld [vmem:[#allocation6 + $0x568] ss:$16 sps:$4 sm:$0xff]   ;;  %v16087_v40 = vld [vmem:[#allocation6 + $0x3ac] ss:$16 sps:$4 sm:$0xff]  }
 0x737   :  { %v11368_v44 = vpop.f32.mrf.mxu0  ;;  %v11409_v63 = vpop.f32.mrf.mxu1  ;;  %v16090_v48 = vld [vmem:[#allocation6 + $0x54c] ss:$16 sps:$4 sm:$0xff]   ;;  %v16088_v38 = vld [vmem:[#allocation6 + $0x548] ss:$16 sps:$4 sm:$0xff]  }
 0x738   :  { %v11408_v9 = vadd.f32 %v11407_v20, %v11367_v62  ;;  %13235 = vmatpush1.bf16.msra.mxu0 %v16016_v3  ;;  %v11418_v55 = vmax.f32 %v11406_v58, 0.0  ;;  %v16085_v3 = vld [vmem:[#allocation6 + $0x3a8] ss:$16 sps:$4 sm:$0xff]   ;;  %v16096_v58 = vld [vmem:[#allocation6 + $0x52c] ss:$16 sps:$4 sm:$0xff]  }
 0x739   :  { %v11369_v12 = vpop.f32.mrf.mxu0  ;;  %13236 = vmatprep.subr.bf16.mxu0 %v16024_v13  ;;  %v11410_v32 = vpop.f32.mrf.mxu1  ;;  %v16093_v13 = vld [vmem:[#allocation6 + $0x38c] ss:$16 sps:$4 sm:$0xff]   ;;  %v16091_v62 = vld [vmem:[#allocation6 + $0x388] ss:$16 sps:$4 sm:$0xff]  }
 0x73a   :  { %v11419_v53 = vmax.f32 %v11408_v9, 0.0  ;;  %v16871_v60 = vpack.c.bf16 %v11418_v55, %v11418_v55  ;;  %v16094_v20 = vld [vmem:[#allocation6 + $0x528] ss:$16 sps:$4 sm:$0xff]   ;;  %v16099_v44 = vld [vmem:[#allocation6 + $0x36c] ss:$16 sps:$4 sm:$0xff]  }
 0x73b   :  { %v16102_v9 = vld [vmem:[#allocation6 + $0x50c] ss:$16 sps:$4 sm:$0xff]   ;;  %v16097_v63 = vld [vmem:[#allocation6 + $0x368] ss:$16 sps:$4 sm:$0xff]   ;;  %v16876_v12 = vld [vmem:[#allocation7] sm:$0xf] }
 0x73c   :  { %v16869_v49 = vpack.c.bf16 %v11419_v53, %v11419_v53  ;;  %13237 = vmatpush1.bf16.msra.mxu0 %v16022_v57  ;;  %v16100_v57 = vld [vmem:[#allocation6 + $0x508] ss:$16 sps:$4 sm:$0xff]   ;;  %v16105_v55 = vld [vmem:[#allocation6 + $0x34c] ss:$16 sps:$4 sm:$0xff]   ;;  %v11689_v32 = vrot.slane %v16876_v12, %v1726_v37 }
 0x73d   :  { %13238 = vmatprep.subr.bf16.mxu0 %v16030_v23  ;;  %v16160_v23 = vld [vmem:[%s17018_s5 + $0x78] sm:$0xff]   ;;  %v16103_v53 = vld [vmem:[#allocation6 + $0x348] ss:$16 sps:$4 sm:$0xff]  }
 0x73e   :  { %13141 = vmatprep.mubr.bf16.mxu1 %v16869_v49  ;;  %v16106_v37 = vld [vmem:[#allocation6 + $0x328] ss:$16 sps:$4 sm:$0xff]  }
 0x73f   :  { %13142 = vmatmul.mubr.bf16.vlgmr.msra.gmra.mxu1 %v16871_v60 }
 0x740   :  { %13192 = vmatpush1.bf16.msra.mxu1 %v16025_v17  ;;  %13223 = vmatprep.mubr.bf16.mxu1 %v16822_v2  ;;  %v16046_v2 = vld [vmem:[#allocation6 + $0x428] ss:$16 sps:$4 sm:$0xff]   ;;  %v16108_v17 = vld [vmem:[#allocation6 + $0x32c] ss:$16 sps:$4 sm:$0xff]  }
 0x741   :  { %13239 = vmatpush1.bf16.msra.mxu0 %v16028_v4  ;;  %13193 = vmatprep.subr.bf16.mxu1 %v16033_v10  ;;  %v16161_v4 = vld [vmem:[%s17018_s5 + $0x38] sm:$0xff]   ;;  %v11693_v10 = vrot.slane %v16876_v12, %v1730_v46  ;;  %v16163_v46 = vld [vmem:[%s17018_s5 + $0x30] sm:$0xff]  }
 0x742   :  { %13240 = vmatprep.subr.bf16.mxu0 %v16036_v51  ;;  %v16162_v51 = vld [vmem:[%s17018_s5 + $0x70] sm:$0xff]  }
 0x744   :  { %13194 = vmatpush1.bf16.msra.mxu1 %v16031_v56 }
 0x745   :  { %13241 = vmatpush1.bf16.msra.mxu0 %v16034_v50  ;;  %13195 = vmatprep.subr.bf16.mxu1 %v16039_v28 }
 0x746   :  { %13242 = vmatprep.subr.bf16.mxu0 %v16042_v59 }
 0x748   :  { %13196 = vmatpush1.bf16.msra.mxu1 %v16037_v35  ;;  %v16111_v35 = vld [vmem:[#allocation6 + $0x30c] ss:$16 sps:$4 sm:$0xff]  }
 0x749   :  { %13243 = vmatpush1.bf16.msra.mxu0 %v16040_v5  ;;  %13197 = vmatprep.subr.bf16.mxu1 %v16045_v14 }
 0x74a   :  { %13244 = vmatprep.subr.bf16.mxu0 %v16048_v22 }
 0x74c   :  { %13198 = vmatpush1.bf16.msra.mxu1 %v16043_v41  ;;  %v16164_v41 = vld [vmem:[%s17018_s5 + $0x68] sm:$0xff]  }
 0x74d   :  { %13245 = vmatpush1.bf16.msra.mxu0 %v16046_v2  ;;  %13199 = vmatprep.subr.bf16.mxu1 %v16051_v6 }
 0x74e   :  { %13246 = vmatprep.subr.bf16.mxu0 %v16054_v31  ;;  %v16109_v31 = vld [vmem:[#allocation6 + $0x308] ss:$16 sps:$4 sm:$0xff]  }
 0x750   :  { %13200 = vmatpush1.bf16.msra.mxu1 %v16049_v43 }
 0x751   :  { %13247 = vmatpush1.bf16.msra.mxu0 %v16052_v33  ;;  %13201 = vmatprep.subr.bf16.mxu1 %v16057_v42  ;;  %v16114_v33 = vld [vmem:[#allocation6 + $0x6ec] ss:$16 sps:$4 sm:$0xff]   ;;  %v16165_v42 = vld [vmem:[%s17018_s5 + $0x28] sm:$0xff]  }
 0x752   :  { %13248 = vmatprep.subr.bf16.mxu0 %v16060_v8 }
 0x754   :  { %13202 = vmatpush1.bf16.msra.mxu1 %v16055_v19  ;;  %v16166_v19 = vld [vmem:[%s17018_s5 + $0x60] sm:$0xff]  }
 0x755   :  { %13249 = vmatpush2.bf16.msra.mxu0 %v16058_v11  ;;  %13203 = vmatprep.subr.bf16.mxu1 %v16063_v34  ;;  %v16112_v11 = vld [vmem:[#allocation6 + $0x6e8] ss:$16 sps:$4 sm:$0xff]   ;;  %v16117_v34 = vld [vmem:[#allocation6 + $0x6cc] ss:$16 sps:$4 sm:$0xff]  }
 0x756   :  { %13250 = vmatprep.subr.bf16.mxu0 %v16066_v24  ;;  %v16167_v24 = vld [vmem:[%s17018_s5 + $0x20] sm:$0xff]  }
 0x758   :  { %13204 = vmatpush1.bf16.msra.mxu1 %v16061_v15  ;;  %v16168_v15 = vld [vmem:[%s17018_s5 + $0x58] sm:$0xff]  }
 0x759   :  { %13251 = vmatpush2.bf16.msra.mxu0 %v16064_v36  ;;  %13205 = vmatprep.subr.bf16.mxu1 %v16069_v1  ;;  %v16115_v36 = vld [vmem:[#allocation6 + $0x6c8] ss:$16 sps:$4 sm:$0xff]   ;;  %v16120_v1 = vld [vmem:[#allocation6 + $0x6ac] ss:$16 sps:$4 sm:$0xff]  }
 0x75a   :  { %13252 = vmatprep.subr.bf16.mxu0 %v16072_v47  ;;  %v16169_v47 = vld [vmem:[%s17018_s5 + $0x18] sm:$0xff]  }
 0x75c   :  { %13206 = vmatpush1.bf16.msra.mxu1 %v16067_v21  ;;  %v16170_v21 = vld [vmem:[%s17018_s5 + $0x50] sm:$0xff]  }
 0x75d   :  { %13253 = vmatpush2.bf16.msra.mxu0 %v16070_v18  ;;  %13207 = vmatprep.subr.bf16.mxu1 %v16075_v29  ;;  %v16118_v18 = vld [vmem:[#allocation6 + $0x6a8] ss:$16 sps:$4 sm:$0xff]   ;;  %v16172_v29 = vld [vmem:[%s17018_s5 + $0x48] sm:$0xff]  }
 0x75e   :  { %13254 = vmatprep.subr.bf16.mxu0 %v16078_v25  ;;  %v16121_v25 = vld [vmem:[#allocation6 + $0x688] ss:$16 sps:$4 sm:$0xff]  }
 0x760   :  { %13208 = vmatpush2.bf16.msra.mxu1 %v16073_v27  ;;  %v16126_v27 = vld [vmem:[#allocation6 + $0x66c] ss:$16 sps:$4 sm:$0xff]  }
 0x761   :  { %13255 = vmatpush2.bf16.msra.mxu0 %v16076_v39  ;;  %13209 = vmatprep.subr.bf16.mxu1 %v16081_v45  ;;  %v16173_v39 = vld [vmem:[%s17018_s5 + $0x8] sm:$0xff]   ;;  %v16174_v45 = vld [vmem:[%s17018_s5 + $0x40] sm:$0xff]  }
 0x762   :  { %13256 = vmatprep.subr.bf16.mxu0 %v16084_v16  ;;  %v16124_v16 = vld [vmem:[#allocation6 + $0x668] ss:$16 sps:$4 sm:$0xff]  }
 0x764   :  { %13210 = vmatpush2.bf16.msra.mxu1 %v16079_v52  ;;  %v16129_v52 = vld [vmem:[#allocation6 + $0x64c] ss:$16 sps:$4 sm:$0xff]  }
 0x765   :  { %13257 = vmatpush2.bf16.msra.mxu0 %v16082_v0  ;;  %13211 = vmatprep.subr.bf16.mxu1 %v16087_v40  ;;  %v16175_v0 = vld [vmem:[%s17018_s5] sm:$0xff]  }
 0x766   :  { %13258 = vmatprep.subr.bf16.mxu0 %v16090_v48  ;;  %v16127_v40 = vld [vmem:[#allocation6 + $0x648] ss:$16 sps:$4 sm:$0xff]   ;;  %v16132_v48 = vld [vmem:[#allocation6 + $0x62c] ss:$16 sps:$4 sm:$0xff]  }
 0x768   :  { %13212 = vmatpush2.bf16.msra.mxu1 %v16085_v3  ;;  %v16130_v3 = vld [vmem:[#allocation6 + $0x628] ss:$16 sps:$4 sm:$0xff]  }
 0x769   :  { %13259 = vmatpush2.bf16.msra.mxu0 %v16088_v38  ;;  %13213 = vmatprep.subr.bf16.mxu1 %v16093_v13  ;;  %v16135_v38 = vld [vmem:[#allocation6 + $0x60c] ss:$16 sps:$4 sm:$0xff]   ;;  %v16133_v13 = vld [vmem:[#allocation6 + $0x608] ss:$16 sps:$4 sm:$0xff]  }
 0x76a   :  { %13260 = vmatprep.subr.bf16.mxu0 %v16096_v58  ;;  %v16138_v58 = vld [vmem:[#allocation6 + $0x7ec] ss:$16 sps:$4 sm:$0xff]  }
 0x76c   :  { %13214 = vmatpush2.bf16.msra.mxu1 %v16091_v62  ;;  %v16136_v62 = vld [vmem:[#allocation6 + $0x7e8] ss:$16 sps:$4 sm:$0xff]  }
 0x76d   :  { %13261 = vmatpush2.bf16.msra.mxu0 %v16094_v20  ;;  %13215 = vmatprep.subr.bf16.mxu1 %v16099_v44  ;;  %v16141_v20 = vld [vmem:[#allocation6 + $0x7cc] ss:$16 sps:$4 sm:$0xff]   ;;  %v16139_v44 = vld [vmem:[#allocation6 + $0x7c8] ss:$16 sps:$4 sm:$0xff]  }
 0x76e   :  { %13262 = vmatprep.subr.bf16.mxu0 %v16102_v9  ;;  %v16144_v9 = vld [vmem:[#allocation6 + $0x7ac] ss:$16 sps:$4 sm:$0xff]  }
 0x770   :  { %13216 = vmatpush2.bf16.msra.mxu1 %v16097_v63  ;;  %v16142_v63 = vld [vmem:[#allocation6 + $0x7a8] ss:$16 sps:$4 sm:$0xff]  }
 0x771   :  { %13263 = vmatpush2.bf16.msra.mxu0 %v16100_v57  ;;  %13217 = vmatprep.subr.bf16.mxu1 %v16105_v55  ;;  %v16147_v57 = vld [vmem:[#allocation6 + $0x78c] ss:$16 sps:$4 sm:$0xff]   ;;  %v16145_v55 = vld [vmem:[#allocation6 + $0x788] ss:$16 sps:$4 sm:$0xff]  }
 0x772   :  { %15682 = vmatprep.subr.bf16.mxu0 %v16160_v23  ;;  %v16150_v23 = vld [vmem:[#allocation6 + $0x76c] ss:$16 sps:$4 sm:$0xff]  }
 0x773   :  { %v13020_v56 = vpop.f32.mrf.mxu0 }
 0x774   :  { %v13021_v50 = vadd.f32 %v13020_v56, %v11689_v32  ;;  %v13061_v28 = vpop.f32.mrf.mxu1  ;;  %13218 = vmatpush2.bf16.msra.mxu1 %v16103_v53  ;;  %13265 = vmatmul.mubr.bf16.vlgmr.msra.gmra.mxu0 %v16852_v7  ;;  %v16148_v53 = vld [vmem:[#allocation6 + $0x768] ss:$16 sps:$4 sm:$0xff]   ;;  %v16153_v32 = vld [vmem:[#allocation6 + $0x74c] ss:$16 sps:$4 sm:$0xff]  }
 0x775   :  { %v13022_v59 = vpop.f32.mrf.mxu0  ;;  %13219 = vmatprep.subr.bf16.mxu1 %v16108_v17  ;;  %15683 = vmatpush3.bf16.msra.mxu0 %v16161_v4  ;;  %v16151_v17 = vld [vmem:[#allocation6 + $0x748] ss:$16 sps:$4 sm:$0xff]   ;;  %v16156_v4 = vld [vmem:[#allocation6 + $0x72c] ss:$16 sps:$4 sm:$0xff]  }
 0x776   :  { %v16897_v5 = vadd.f32 %v13061_v28, %v13021_v50  ;;  %v13023_v14 = vadd.f32 %v13022_v59, %v11693_v10  ;;  %v13063_v22 = vpop.f32.mrf.mxu1  ;;  %15684 = vmatprep.subr.bf16.mxu0 %v16162_v51  ;;  %v16154_v56 = vld [vmem:[#allocation6 + $0x728] ss:$16 sps:$4 sm:$0xff]   ;;  %v16159_v28 = vld [vmem:[#allocation6 + $0x70c] ss:$16 sps:$4 sm:$0xff]  }
 0x777   :  { %v13024_v2 = vpop.f32.mrf.mxu0 }
 0x778   :  { %v16902_v7 = vadd.f32 %v13063_v22, %v13023_v14  ;;  %v13065_v6 = vpop.f32.mrf.mxu1  ;;  %13220 = vmatpush2.bf16.msra.mxu1 %v16106_v37  ;;  %v16176_v14 = vld [vmem:[%s17018_s5 + $0xf8] sm:$0xff]   ;;  %v16178_v22 = vld [vmem:[%s17018_s5 + $0xf0] sm:$0xff]   ;;  %v16181_v2 = vld [vmem:[%s17018_s5 + $0xa8] sm:$0xff]  }
 0x779   :  { %v13025_v43 = vpop.f32.mrf.mxu0  ;;  %13221 = vmatprep.subr.bf16.mxu1 %v16111_v35  ;;  %15685 = vmatpush3.bf16.msra.mxu0 %v16163_v46  ;;  %v16157_v35 = vld [vmem:[#allocation6 + $0x708] ss:$16 sps:$4 sm:$0xff]  }
 0x77a   :  { %v13066_v8 = vpop.f32.mrf.mxu1  ;;  %15686 = vmatprep.subr.bf16.mxu0 %v16164_v41  ;;  %v16179_v41 = vld [vmem:[%s17018_s5 + $0xb0] sm:$0xff]   ;;  %v16183_v6 = vld [vmem:[%s17018_s5 + $0xa0] sm:$0xff]   ;;  %v16185_v43 = vld [vmem:[%s17018_s5 + $0x98] sm:$0xff]  }
 0x77c   :  { %13222 = vmatpush2.bf16.msra.mxu1 %v16109_v31  ;;  %v16184_v31 = vld [vmem:[%s17018_s5 + $0xd8] sm:$0xff]  }
 0x77d   :  { %13273 = vmatprep.subr.bf16.mxu1 %v16114_v33  ;;  %15687 = vmatpush3.bf16.msra.mxu0 %v16165_v42  ;;  %v16186_v33 = vld [vmem:[%s17018_s5 + $0xd0] sm:$0xff]  }
 0x77e   :  { %15688 = vmatprep.subr.bf16.mxu0 %v16166_v19  ;;  %v16187_v42 = vld [vmem:[%s17018_s5 + $0x90] sm:$0xff]  }
 0x77f   :  { %13224 = vmatmul.mubr.bf16.vlgmr.msra.gmra.mxu1 %v16838_v30  ;;  %v16123_v30 = vld [vmem:[#allocation6 + $0x68c] ss:$16 sps:$4 sm:$0xff]  }
 0x780   :  { %13274 = vmatpush1.bf16.msra.mxu1 %v16112_v11  ;;  %13305 = vmatprep.mubr.bf16.mxu1 %v16869_v49  ;;  %v16171_v49 = vld [vmem:[%s17018_s5 + $0x10] sm:$0xff]  }
 0x781   :  { %13275 = vmatprep.subr.bf16.mxu1 %v16117_v34  ;;  %15689 = vmatpush3.bf16.msra.mxu0 %v16167_v24 }
 0x782   :  { %15690 = vmatprep.subr.bf16.mxu0 %v16168_v15 }
 0x784   :  { %13276 = vmatpush1.bf16.msra.mxu1 %v16115_v36  ;;  %v16188_v36 = vld [vmem:[%s17018_s5 + $0xc8] sm:$0xff]  }
 0x785   :  { %13277 = vmatprep.subr.bf16.mxu1 %v16120_v1  ;;  %15691 = vmatpush3.bf16.msra.mxu0 %v16169_v47  ;;  %v16189_v47 = vld [vmem:[%s17018_s5 + $0x88] sm:$0xff]  }
 0x786   :  { %15692 = vmatprep.subr.bf16.mxu0 %v16170_v21 }
 0x788   :  { %13278 = vmatpush1.bf16.msra.mxu1 %v16118_v18 }
 0x789   :  { %13279 = vmatprep.subr.bf16.mxu1 %v16123_v30  ;;  %15693 = vmatpush3.bf16.msra.mxu0 %v16171_v49 }
 0x78a   :  { %15694 = vmatprep.subr.bf16.mxu0 %v16172_v29  ;;  %v16190_v29 = vld [vmem:[%s17018_s5 + $0xc0] sm:$0xff]  }
 0x78c   :  { %13280 = vmatpush1.bf16.msra.mxu1 %v16121_v25 }
 0x78d   :  { %13281 = vmatprep.subr.bf16.mxu1 %v16126_v27  ;;  %15695 = vmatpush3.bf16.msra.mxu0 %v16173_v39  ;;  %v16191_v27 = vld [vmem:[%s17018_s5 + $0x80] sm:$0xff]  }
 0x78e   :  { %15696 = vmatprep.subr.bf16.mxu0 %v16174_v45 }
 0x790   :  { %13282 = vmatpush1.bf16.msra.mxu1 %v16124_v16 }
 0x791   :  { %13283 = vmatprep.subr.bf16.mxu1 %v16129_v52  ;;  %15697 = vmatpush3.bf16.msra.mxu0 %v16175_v0 }
 0x794   :  { %13284 = vmatpush1.bf16.msra.mxu1 %v16127_v40  ;;  %v11697_v40 = vrot.slane %v16876_v12, %v1734_v54 }
 0x795   :  { %13285 = vmatprep.subr.bf16.mxu1 %v16132_v48 }
 0x798   :  { %13286 = vmatpush1.bf16.msra.mxu1 %v16130_v3  ;;  %v11701_v3 = vrot.slane %v16876_v12, %v1738_v61 }
 0x799   :  { %13287 = vmatprep.subr.bf16.mxu1 %v16135_v38 }
 0x79c   :  { %13288 = vmatpush1.bf16.msra.mxu1 %v16133_v13 }
 0x79d   :  { %13289 = vmatprep.subr.bf16.mxu1 %v16138_v58 }
 0x7a0   :  { %13290 = vmatpush2.bf16.msra.mxu1 %v16136_v62 }
 0x7a1   :  { %13291 = vmatprep.subr.bf16.mxu1 %v16141_v20 }
 0x7a4   :  { %13292 = vmatpush2.bf16.msra.mxu1 %v16139_v44 }
 0x7a5   :  { %13293 = vmatprep.subr.bf16.mxu1 %v16144_v9 }
 0x7a8   :  { %13294 = vmatpush2.bf16.msra.mxu1 %v16142_v63 }
 0x7a9   :  { %13295 = vmatprep.subr.bf16.mxu1 %v16147_v57 }
 0x7ac   :  { %13296 = vmatpush2.bf16.msra.mxu1 %v16145_v55 }
 0x7ad   :  { %13297 = vmatprep.subr.bf16.mxu1 %v16150_v23  ;;  %v16192_v23 = vld [vmem:[#allocation10 + $0x18] sm:$0xff]  }
 0x7b0   :  { %13298 = vmatpush2.bf16.msra.mxu1 %v16148_v53  ;;  %v16387_v53 = vmov 0.0  }
 0x7b1   :  { %13299 = vmatprep.subr.bf16.mxu1 %v16153_v32  ;;  %15736 = vmatprep.subr.bf16.mxu0 %v16387_v53 }
 0x7b3   :  { %v13102_v10 = vpop.f32.mrf.mxu0 }
 0x7b4   :  { %v13103_v51 = vadd.f32 %v13102_v10, %v16897_v5  ;;  %13300 = vmatpush2.bf16.msra.mxu1 %v16151_v17  ;;  %v16177_v5 = vld [vmem:[%s17018_s5 + $0xb8] sm:$0xff]  }
 0x7b5   :  { %v13104_v50 = vpop.f32.mrf.mxu0  ;;  %13301 = vmatprep.subr.bf16.mxu1 %v16156_v4 }
 0x7b6   :  { %v13105_v37 = vadd.f32 %v13104_v50, %v16902_v7  ;;  %v16182_v7 = vld [vmem:[%s17018_s5 + $0xe0] sm:$0xff]  }
 0x7b7   :  { %v13106_v59 = vpop.f32.mrf.mxu0  ;;  %v16193_v50 = vld [vmem:[#allocation10 + $0x10] sm:$0xff]  }
 0x7b8   :  { %13302 = vmatpush2.bf16.msra.mxu1 %v16154_v56 }
 0x7b9   :  { %v13107_v46 = vpop.f32.mrf.mxu0  ;;  %13303 = vmatprep.subr.bf16.mxu1 %v16159_v28 }
 0x7bc   :  { %13304 = vmatpush2.bf16.msra.mxu1 %v16157_v35  ;;  %v16194_v35 = vld [vmem:[#allocation10 + $0x8] sm:$0xff]  }
 0x7bd   :  { %15704 = vmatprep.subr.bf16.mxu1 %v16176_v14 }
 0x7bf   :  { %13306 = vmatmul.mubr.bf16.vlgmr.msra.gmra.mxu1 %v16871_v60  ;;  %v16180_v60 = vld [vmem:[%s17018_s5 + $0xe8] sm:$0xff]  }
 0x7c0   :  { %15705 = vmatpush3.bf16.msra.mxu1 %v16177_v5  ;;  %v16195_v5 = vld [vmem:[#allocation10] sm:$0xff]  }
 0x7c1   :  { %15706 = vmatprep.subr.bf16.mxu1 %v16178_v22  ;;  %v16196_v22 = vld [vmem:[%s17022_s9 + $0x18] sm:$0xff]  }
 0x7c4   :  { %15707 = vmatpush3.bf16.msra.mxu1 %v16179_v41  ;;  %v16197_v41 = vld [vmem:[%s17022_s9 + $0x10] sm:$0xff]  }
 0x7c5   :  { %15708 = vmatprep.subr.bf16.mxu1 %v16180_v60  ;;  %v15637_v60 = vld [vmem:[#allocation9] ss:$0 sm:$0xff] }
 0x7c8   :  { %15709 = vmatpush3.bf16.msra.mxu1 %v16181_v2 }
 0x7c9   :  { %15710 = vmatprep.subr.bf16.mxu1 %v16182_v7 }
 0x7cc   :  { %15711 = vmatpush3.bf16.msra.mxu1 %v16183_v6 }
 0x7cd   :  { %15712 = vmatprep.subr.bf16.mxu1 %v16184_v31 }
 0x7d0   :  { %15713 = vmatpush3.bf16.msra.mxu1 %v16185_v43 }
 0x7d1   :  { %15714 = vmatprep.subr.bf16.mxu1 %v16186_v33 }
 0x7d4   :  { %15715 = vmatpush3.bf16.msra.mxu1 %v16187_v42 }
 0x7d5   :  { %15716 = vmatprep.subr.bf16.mxu1 %v16188_v36 }
 0x7d8   :  { %15717 = vmatpush3.bf16.msra.mxu1 %v16189_v47 }
 0x7d9   :  { %15718 = vmatprep.subr.bf16.mxu1 %v16190_v29 }
 0x7dc   :  { %15719 = vmatpush3.bf16.msra.mxu1 %v16191_v27 }
 0x7dd   :  { %15748 = vmatprep.subr.bf16.mxu1 %v16387_v53 }
 0x7f3   :  { %v13184_v8 = vpop.f32.mrf.mxu0 }
 0x7f4   :  { %v13185_v38 = vadd.f32 %v13184_v8, %v11697_v40 }
 0x7f5   :  { %v13186_v19 = vpop.f32.mrf.mxu0 }
 0x7f6   :  { %v13187_v58 = vadd.f32 %v13186_v19, %v11701_v3 }
 0x7f7   :  { %v13188_v11 = vpop.f32.mrf.mxu0 }
 0x7f8   :  { %v16198_v11 = vld [vmem:[%s17022_s9 + $0x8] sm:$0xff]  }
 0x7f9   :  { %v13189_v34 = vpop.f32.mrf.mxu0 }
 0x7fa   :  { %v16199_v34 = vld [vmem:[%s17022_s9] sm:$0xff]  }
 0x7ff   :  { %v13143_v24 = vpop.f32.mrf.mxu1 }
 0x800   :  { %v13144_v15 = vadd.f32 %v13143_v24, %v13103_v51  ;;  %v15670_v24 = vld [vmem:[#allocation12] ss:$0 sm:$0xff] }
 0x801   :  { %v13145_v1 = vpop.f32.mrf.mxu1 }
 0x802   :  { %v13146_v21 = vadd.f32 %v13145_v1, %v13105_v37  ;;  %v13314_v18 = vmax.f32 %v13144_v15, 0.0 }
 0x803   :  { %v13147_v30 = vpop.f32.mrf.mxu1 }
 0x804   :  { %v13315_v49 = vmax.f32 %v13146_v21, 0.0  ;;  %v13318_v45 = vpack.c.bf16 %v13314_v18, %v13314_v18 }
 0x805   :  { %v13148_v25 = vpop.f32.mrf.mxu1 }
 0x806   :  { %v13319_v39 = vpack.c.bf16 %v13315_v49, %v13315_v49  ;;  %v15676_v49 = vld [vmem:[#allocation13] ss:$0 sm:$0xff] }
 0x808   :  { %13617 = vmatprep.mubr.bf16.mxu0 %v13319_v39 }
 0x809   :  { %13618 = vmatmul.mubr.bf16.vlgmr.msra.gmra.mxu0 %v13318_v45 }
 0x80a   :  { %15737 = vmatpush3.bf16.msra.mxu0 %v16192_v23  ;;  %15744 = vmatprep.mubr.msk.bf16.mxu0 %vm16388_vm0, %v16387_v53 }
 0x80b   :  { %15738 = vmatprep.subr.bf16.mxu0 %v16387_v53 }
 0x80e   :  { %15739 = vmatpush3.bf16.msra.mxu0 %v16193_v50 }
 0x80f   :  { %15740 = vmatprep.subr.bf16.mxu0 %v16387_v53 }
 0x812   :  { %15741 = vmatpush3.bf16.msra.mxu0 %v16194_v35 }
 0x813   :  { %15742 = vmatprep.subr.bf16.mxu0 %v16387_v53 }
 0x816   :  { %15743 = vmatpush3.bf16.msra.mxu0 %v16195_v5 }
 0x834   :  { %v13266_v16 = vpop.f32.mrf.mxu0 }
 0x836   :  { %v13268_v52 = vpop.f32.mrf.mxu0 }
 0x838   :  { %v13270_v0 = vpop.f32.mrf.mxu0 }
 0x83a   :  { %v13271_v48 = vpop.f32.mrf.mxu0 }
 0x83f   :  { %v13225_v13 = vpop.f32.mrf.mxu1 }
 0x840   :  { %v13226_v62 = vadd.f32 %v13225_v13, %v13185_v38 }
 0x841   :  { %v13227_v20 = vpop.f32.mrf.mxu1 }
 0x842   :  { %v13228_v44 = vadd.f32 %v13227_v20, %v13187_v58  ;;  %v13267_v9 = vadd.f32 %v13266_v16, %v13226_v62 }
 0x843   :  { %v13229_v63 = vpop.f32.mrf.mxu1 }
 0x844   :  { %v13269_v57 = vadd.f32 %v13268_v52, %v13228_v44 }
 0x845   :  { %v13230_v55 = vpop.f32.mrf.mxu1 }
 0x87f   :  { %v13307_v54 = vpop.f32.mrf.mxu1 }
 0x880   :  { %v13308_v26 = vadd.f32 %v13307_v54, %v13267_v9 }
 0x881   :  { %v13309_v32 = vpop.f32.mrf.mxu1 }
 0x882   :  { %v13310_v61 = vadd.f32 %v13309_v32, %v13269_v57  ;;  %v13316_v12 = vmax.f32 %v13308_v26, 0.0 }
 0x883   :  { %v13311_v17 = vpop.f32.mrf.mxu1 }
 0x884   :  { %v13317_v4 = vmax.f32 %v13310_v61, 0.0  ;;  %v13320_v56 = vpack.c.bf16 %v13316_v12, %v13316_v12 }
 0x885   :  { %v13312_v10 = vpop.f32.mrf.mxu1 }
 0x886   :  { %v13321_v51 = vpack.c.bf16 %v13317_v4, %v13317_v4 }
 0x888   :  { %13657 = vmatprep.mubr.bf16.mxu1 %v13321_v51 }
 0x889   :  { %13658 = vmatmul.mubr.bf16.vlgmr.msra.gmra.mxu1 %v13320_v56 }
 0x88a   :  { %15756 = vmatprep.mubr.msk.bf16.mxu1 %vm16388_vm0, %v16387_v53  ;;  %15749 = vmatpush3.bf16.msra.mxu1 %v16196_v22 }
 0x88b   :  { %15750 = vmatprep.subr.bf16.mxu1 %v16387_v53 }
 0x88e   :  { %15751 = vmatpush3.bf16.msra.mxu1 %v16197_v41 }
 0x88f   :  { %15752 = vmatprep.subr.bf16.mxu1 %v16387_v53 }
 0x892   :  { %15753 = vmatpush3.bf16.msra.mxu1 %v16198_v11 }
 0x893   :  { %15754 = vmatprep.subr.bf16.mxu1 %v16387_v53 }
 0x896   :  { %15755 = vmatpush3.bf16.msra.mxu1 %v16199_v34 }
 0x8c9   :  { %v15698_v28 = vpop.f32.mrf.mxu0 }
 0x8cb   :  { %v15699_v37 = vpop.f32.mrf.mxu0 }
 0x8cc   :  { %v15700_v59 = vadd.f32 %v15699_v37, %v15698_v28 }
 0x8cd   :  { %v15701_v46 = vpop.f32.mrf.mxu0 }
 0x8ce   :  { %v13620_v6 = vadd.f32 %v15700_v59, %v15637_v60 }
 0x8cf   :  { %v15702_v14 = vpop.f32.mrf.mxu0 }
 0x949   :  { %v15720_v2 = vpop.f32.mrf.mxu1 }
 0x94b   :  { %v15721_v7 = vpop.f32.mrf.mxu1 }
 0x94c   :  { %v15722_v31 = vadd.f32 %v15721_v7, %v15720_v2 }
 0x94d   :  { %v15723_v43 = vpop.f32.mrf.mxu1 }
 0x94e   :  { %v13660_v33 = vadd.f32 %v15722_v31, %v13620_v6 }
 0x94f   :  { %v15724_v42 = vpop.f32.mrf.mxu1 }
 0x950   :  { %v13665_v8 = vmax.f32 %v13660_v33, 0.0 }
 0x952   :  { %v13666_v19 = vpack.c.bf16 %v13665_v8, %v13665_v8 }
 0x954   :  { %15745 = vmatmul.mubr.msk.bf16.vlgmr.msra.gmra.mxu0 %vm13706_vm1, %v13666_v19 }
 0xa14   :  { %v13744_v15 = vpop.f32.mrf.mxu0 }
 0xa15   :  { %v13745_v36 = vadd.f32 %v15670_v24, %v13744_v15 }
 0xa16   :  { %v15746_v1 = vpop.f32.mrf.mxu0 }
 0xa17   :  { %v13750_v47 = vmax.f32 %v13745_v36, 0.0 }
 0xa18   :  { %v13747_v21 = vpop.f32.mrf.mxu0 }
 0xa19   :  { %v13751_v18 = vpack.c.bf16 %v13750_v47, %v13750_v47 }
 0xa1a   :  { %v15747_v30 = vpop.f32.mrf.mxu0 }
 0xa1b   :  { %15757 = vmatmul.mubr.msk.bf16.vlgmr.msra.gmra.mxu1 %vm13706_vm1, %v13751_v18 }
 0xadb   :  { %v13828_v29 = vpop.f32.mrf.mxu1 }
 0xadc   :  { %v13829_v25 = vadd.f32 %v15676_v49, %v13828_v29 }
 0xadd   :  { %v15758_v27 = vpop.f32.mrf.mxu1 }
 0xade   :  { %13835 = vst.msk [vmem:[%s17024_s11] sm:$0xff] %vm13834_vm2, %v13829_v25 }
 0xadf   :  { %v13831_v39 = vpop.f32.mrf.mxu1 }
 0xae1   :  { %v15759_v45 = vpop.f32.mrf.mxu1 }
 0xae2   :  { %13840 = vsyncpa [#allocation3], 1 }
 0xae3   :  { %13841 = vsyncpa [#allocation5], 1 }
 0xae4   :  { %13842 = vsyncpa [#allocation8], 1 }
 0xae5   :  { %13843 = vsyncpa [#allocation11], 1 }
 0xae6   :  { %13844 = vsyncpa [#allocation14], 1 }

</bundles_post_ra>
